<compile_context>
chip_gen: v6e
topology: v6e:2x2x1
jax: 0.10.0
libtpu: 0.0.40
codegen_flags: <defaults>
</compile_context>

<pallas_src>
import functools

import jax
import jax.numpy as jnp
from jax.experimental import pallas as pl
from jax.experimental.pallas import tpu as pltpu


_VMEM_LIMIT = 48 * 1024 * 1024


def _cparams(*sem):
    return pltpu.CompilerParams(dimension_semantics=sem,
                                vmem_limit_bytes=_VMEM_LIMIT)


def _row_tile(m, preferred=512):
    """Largest row-tile <= preferred that is a multiple of 8 and divides m."""
    if m <= preferred:
        return m
    for t in range(preferred, 7, -8):
        if m % t == 0:
            return t
    return m


# ---------------------------------------------------------------------------
# Kernels
# ---------------------------------------------------------------------------
def _ln1_q_kernel(x_ref, g_ref, b_ref, wq_ref, bq_ref, xn_ref, q_ref, *, eps):
    x = x_ref[...].astype(jnp.float32)
    mu = jnp.mean(x, axis=-1, keepdims=True)
    var = jnp.mean(jnp.square(x - mu), axis=-1, keepdims=True)
    xn = (x - mu) * jax.lax.rsqrt(var + eps)
    xn = (xn * g_ref[...] + b_ref[...]).astype(xn_ref.dtype)
    xn_ref[...] = xn
    q_ref[...] = (
        jnp.dot(xn, wq_ref[...], preferred_element_type=jnp.float32) + bq_ref[...]
    ).astype(q_ref.dtype)


def _sr_ln_kv_kernel(xp_ref, wsr_ref, bsr_ref, g_ref, b_ref, wkv_ref, bkv_ref,
                     kv_ref, *, eps):
    # spatial-reduction conv (kernel==stride) expressed as patch matmul,
    # fused with the inner LayerNorm and the kv projection.
    y = jnp.dot(xp_ref[...], wsr_ref[...],
                preferred_element_type=jnp.float32) + bsr_ref[...]
    mu = jnp.mean(y, axis=-1, keepdims=True)
    var = jnp.mean(jnp.square(y - mu), axis=-1, keepdims=True)
    yn = (y - mu) * jax.lax.rsqrt(var + eps)
    yn = (yn * g_ref[...] + b_ref[...]).astype(kv_ref.dtype)
    kv_ref[...] = (
        jnp.dot(yn, wkv_ref[...], preferred_element_type=jnp.float32) + bkv_ref[...]
    ).astype(kv_ref.dtype)


def _ln_linear_kernel(x_ref, g_ref, b_ref, w_ref, bw_ref, o_ref, *, eps):
    x = x_ref[...].astype(jnp.float32)
    mu = jnp.mean(x, axis=-1, keepdims=True)
    var = jnp.mean(jnp.square(x - mu), axis=-1, keepdims=True)
    xn = (x - mu) * jax.lax.rsqrt(var + eps)
    xn = (xn * g_ref[...] + b_ref[...]).astype(x_ref.dtype)
    o_ref[...] = (
        jnp.dot(xn, w_ref[...], preferred_element_type=jnp.float32) + bw_ref[...]
    ).astype(o_ref.dtype)


def _linear_kernel(x_ref, w_ref, b_ref, o_ref):
    o_ref[...] = (
        jnp.dot(x_ref[...], w_ref[...], preferred_element_type=jnp.float32)
        + b_ref[...]
    ).astype(o_ref.dtype)


def _linear_residual_kernel(x_ref, w_ref, b_ref, skip_ref, o_ref):
    y = jnp.dot(x_ref[...], w_ref[...],
                preferred_element_type=jnp.float32) + b_ref[...]
    o_ref[...] = (y + skip_ref[...].astype(jnp.float32)).astype(o_ref.dtype)


def _attn_proj_kernel(q_ref, kv_ref, wp_ref, bp_ref, skip_ref, o_ref,
                      *, num_heads, scale):
    # q_ref: (TQ, C), kv_ref: (Nk, 2C) with columns [k heads | v heads].
    C = q_ref.shape[-1]
    d = C // num_heads
    q = q_ref[...]
    kv = kv_ref[...]
    heads = []
    for hh in range(num_heads):
        qh = q[:, hh * d:(hh + 1) * d]
        kh = kv[:, hh * d:(hh + 1) * d]
        vh = kv[:, C + hh * d:C + (hh + 1) * d]
        # contract on the last axis of both operands (no explicit k.T)
        s = jax.lax.dot_general(qh, kh, (((1,), (1,)), ((), ())),
                                preferred_element_type=jnp.float32) * scale
        m = jnp.max(s, axis=-1, keepdims=True)
        p = jnp.exp(s - m)
        l = jnp.sum(p, axis=-1, keepdims=True)
        p = p * pl.reciprocal(l, approx=True)
        heads.append(jnp.dot(p.astype(kv.dtype), vh,
                             preferred_element_type=jnp.float32))
    # lane-dense (TQ, C) head-concatenated output, then fused out-proj + skip
    o = jnp.concatenate(heads, axis=-1).astype(q.dtype)
    y = jnp.dot(o, wp_ref[...], preferred_element_type=jnp.float32) + bp_ref[...]
    o_ref[...] = (y + skip_ref[...].astype(jnp.float32)).astype(o_ref.dtype)


def _dwconv_gelu_kernel(x_ref, w_ref, b_ref, o_ref, *, H, W):
    # x_ref: zero-padded (H+2, W+2, F); w_ref: (9, F) taps; depthwise 3x3.
    F_ = o_ref.shape[-1]
    w = w_ref[...].astype(jnp.float32)
    acc = jnp.zeros((H, W, F_), jnp.float32)
    for di in range(3):
        for dj in range(3):
            tap = x_ref[di:di + H, dj:dj + W, :].astype(jnp.float32)
            acc = acc + tap * w[di * 3 + dj].reshape(1, 1, F_)
    acc = acc + b_ref[...].reshape(1, 1, F_).astype(jnp.float32)
    c0 = 0.7978845608028654  # sqrt(2/pi)
    acc = 0.5 * acc * (1.0 + jnp.tanh(c0 * (acc + 0.044715 * (acc * acc * acc))))
    o_ref[...] = acc.astype(o_ref.dtype)


# ---------------------------------------------------------------------------
# pallas_call wrappers
# ---------------------------------------------------------------------------
def ln1_q(x2, g, b, wq, bq, *, eps):
    M, C = x2.shape
    TM = _row_tile(M)
    return pl.pallas_call(
        functools.partial(_ln1_q_kernel, eps=eps),
        out_shape=(jax.ShapeDtypeStruct((M, C), x2.dtype),
                   jax.ShapeDtypeStruct((M, C), x2.dtype)),
        grid=(M // TM,),
        in_specs=[
            pl.BlockSpec((TM, C), lambda i: (i, 0)),
            pl.BlockSpec((1, C), lambda i: (0, 0)),
            pl.BlockSpec((1, C), lambda i: (0, 0)),
            pl.BlockSpec((C, C), lambda i: (0, 0)),
            pl.BlockSpec((1, C), lambda i: (0, 0)),
        ],
        out_specs=(pl.BlockSpec((TM, C), lambda i: (i, 0)),
                   pl.BlockSpec((TM, C), lambda i: (i, 0))),
        compiler_params=_cparams("parallel"),
    )(x2, g.reshape(1, C), b.reshape(1, C), wq, bq.reshape(1, C))


def sr_ln_kv(xp, w_sr, b_sr, g, b, wkv, bkv, *, eps):
    M, K = xp.shape
    C = w_sr.shape[1]
    C2 = wkv.shape[1]
    TM = _row_tile(M)
    return pl.pallas_call(
        functools.partial(_sr_ln_kv_kernel, eps=eps),
        out_shape=jax.ShapeDtypeStruct((M, C2), xp.dtype),
        grid=(M // TM,),
        in_specs=[
            pl.BlockSpec((TM, K), lambda i: (i, 0)),
            pl.BlockSpec((K, C), lambda i: (0, 0)),
            pl.BlockSpec((1, C), lambda i: (0, 0)),
            pl.BlockSpec((1, C), lambda i: (0, 0)),
            pl.BlockSpec((1, C), lambda i: (0, 0)),
            pl.BlockSpec((C, C2), lambda i: (0, 0)),
            pl.BlockSpec((1, C2), lambda i: (0, 0)),
        ],
        out_specs=pl.BlockSpec((TM, C2), lambda i: (i, 0)),
        compiler_params=_cparams("parallel"),
    )(xp, w_sr, b_sr.reshape(1, C), g.reshape(1, C), b.reshape(1, C),
      wkv, bkv.reshape(1, C2))


def ln_linear(x2, g, b, w, bw, *, eps):
    M, C = x2.shape
    Nw = w.shape[1]
    TM = _row_tile(M)
    return pl.pallas_call(
        functools.partial(_ln_linear_kernel, eps=eps),
        out_shape=jax.ShapeDtypeStruct((M, Nw), x2.dtype),
        grid=(M // TM,),
        in_specs=[
            pl.BlockSpec((TM, C), lambda i: (i, 0)),
            pl.BlockSpec((1, C), lambda i: (0, 0)),
            pl.BlockSpec((1, C), lambda i: (0, 0)),
            pl.BlockSpec((C, Nw), lambda i: (0, 0)),
            pl.BlockSpec((1, Nw), lambda i: (0, 0)),
        ],
        out_specs=pl.BlockSpec((TM, Nw), lambda i: (i, 0)),
        compiler_params=_cparams("parallel"),
    )(x2, g.reshape(1, C), b.reshape(1, C), w, bw.reshape(1, Nw))


def linear(x2, w, b):
    M, K = x2.shape
    Nw = w.shape[1]
    TM = _row_tile(M)
    return pl.pallas_call(
        _linear_kernel,
        out_shape=jax.ShapeDtypeStruct((M, Nw), x2.dtype),
        grid=(M // TM,),
        in_specs=[
            pl.BlockSpec((TM, K), lambda i: (i, 0)),
            pl.BlockSpec((K, Nw), lambda i: (0, 0)),
            pl.BlockSpec((1, Nw), lambda i: (0, 0)),
        ],
        out_specs=pl.BlockSpec((TM, Nw), lambda i: (i, 0)),
        compiler_params=_cparams("parallel"),
    )(x2, w, b.reshape(1, Nw))


def linear_residual(x2, w, b, skip):
    M, K = x2.shape
    Nw = w.shape[1]
    TM = _row_tile(M)
    return pl.pallas_call(
        _linear_residual_kernel,
        out_shape=jax.ShapeDtypeStruct((M, Nw), skip.dtype),
        grid=(M // TM,),
        in_specs=[
            pl.BlockSpec((TM, K), lambda i: (i, 0)),
            pl.BlockSpec((K, Nw), lambda i: (0, 0)),
            pl.BlockSpec((1, Nw), lambda i: (0, 0)),
            pl.BlockSpec((TM, Nw), lambda i: (i, 0)),
        ],
        out_specs=pl.BlockSpec((TM, Nw), lambda i: (i, 0)),
        compiler_params=_cparams("parallel"),
    )(x2, w, b.reshape(1, Nw), skip)


def attention_proj_residual(q, kv, wproj, bproj, skip, *, num_heads, scale):
    B, N, C = q.shape
    Nk = kv.shape[1]
    TQ = _row_tile(N, preferred=128)
    return pl.pallas_call(
        functools.partial(_attn_proj_kernel, num_heads=num_heads, scale=scale),
        out_shape=jax.ShapeDtypeStruct((B, N, C), q.dtype),
        grid=(B, N // TQ),
        in_specs=[
            pl.BlockSpec((None, TQ, C), lambda b, i: (b, i, 0)),
            pl.BlockSpec((None, Nk, 2 * C), lambda b, i: (b, 0, 0)),
            pl.BlockSpec((C, C), lambda b, i: (0, 0)),
            pl.BlockSpec((1, C), lambda b, i: (0, 0)),
            pl.BlockSpec((None, TQ, C), lambda b, i: (b, i, 0)),
        ],
        out_specs=pl.BlockSpec((None, TQ, C), lambda b, i: (b, i, 0)),
        compiler_params=_cparams("parallel", "parallel"),
    )(q, kv, wproj, bproj.reshape(1, C), skip)


def dwconv_gelu(xpad, w9, bdw, *, out_h, out_w):
    B, Hp, Wp, F_ = xpad.shape
    return pl.pallas_call(
        functools.partial(_dwconv_gelu_kernel, H=out_h, W=out_w),
        out_shape=jax.ShapeDtypeStruct((B, out_h, out_w, F_), xpad.dtype),
        grid=(B,),
        in_specs=[
            pl.BlockSpec((None, Hp, Wp, F_), lambda b: (b, 0, 0, 0)),
            pl.BlockSpec((9, F_), lambda b: (0, 0)),
            pl.BlockSpec((1, F_), lambda b: (0, 0)),
        ],
        out_specs=pl.BlockSpec((None, out_h, out_w, F_), lambda b: (b, 0, 0, 0)),
        compiler_params=_cparams("parallel"),
    )(xpad, w9, bdw.reshape(1, F_))


# ---------------------------------------------------------------------------
# Full transformer_block forward
# ---------------------------------------------------------------------------
def transformer_block_forward(x, h, w, params, num_heads, sr_ratio):
    B, N, C = x.shape
    d = C // num_heads
    scale = float(d) ** (-0.5)
    Fh = params["w1"].shape[1]

    x2 = x.reshape(B * N, C)

    # --- norm1 + q projection (fused, row-gridded) ---
    xn2, q2 = ln1_q(x2, params["norm1_g"], params["norm1_b"],
                    params["wq"], params["bq"], eps=1e-6)

    # --- kv path: spatial reduction (conv == patch matmul) + LN + kv proj ---
    if sr_ratio > 1:
        r = sr_ratio
        hh_, ww_ = h // r, w // r
        xp = xn2.reshape(B, hh_, r, ww_, r, C).transpose(0, 1, 3, 2, 4, 5)
        xp = xp.reshape(B * hh_ * ww_, r * r * C)
        kv2 = sr_ln_kv(xp, params["w_sr"], params["b_sr"],
                       params["sr_ln_g"], params["sr_ln_b"],
                       params["wkv"], params["bkv"], eps=1e-5)
        Nk = hh_ * ww_
    else:
        kv2 = linear(xn2, params["wkv"], params["bkv"])
        Nk = N

    # --- multi-head attention + out-proj + residual (fused) ---
    x1 = attention_proj_residual(q2.reshape(B, N, C),
                                 kv2.reshape(B, Nk, 2 * C),
                                 params["wproj"], params["bproj"], x,
                                 num_heads=num_heads, scale=scale)
    x1_2 = x1.reshape(B * N, C)

    # --- norm2 + fc1 (fused) ---
    h1 = ln_linear(x1_2, params["norm2_g"], params["norm2_b"],
                   params["w1"], params["b1"], eps=1e-6)

    # --- depthwise 3x3 conv + GELU (per-image) ---
    h1p = jnp.pad(h1.reshape(B, h, w, Fh), ((0, 0), (1, 1), (1, 1), (0, 0)))
    g = dwconv_gelu(h1p, params["w_dw9"], params["b_dw"], out_h=h, out_w=w)

    # --- fc2 + residual (fused) ---
    out = linear_residual(g.reshape(B * N, Fh), params["w2"], params["b2"], x1_2)
    # TODO(synk): dropout / drop_path omitted (p=0, eval mode).
    return out.reshape(B, N, C)


# ---------------------------------------------------------------------------
# Pure-JAX reference (lax.conv for both convs, exact softmax)
# ---------------------------------------------------------------------------
def ref_forward(x, h, w, p, num_heads, sr_ratio):
    B, N, C = x.shape
    d = C // num_heads
    scale = d ** (-0.5)

    def ln(t, g, b, eps):
        mu = t.mean(-1, keepdims=True)
        var = ((t - mu) ** 2).mean(-1, keepdims=True)
        return (t - mu) / jnp.sqrt(var + eps) * g + b

    skip1 = x
    xn = ln(x, p["norm1_g"], p["norm1_b"], 1e-6)
    q = xn @ p["wq"] + p["bq"]
    q = q.reshape(B, N, num_heads, d).transpose(0, 2, 1, 3)
    xk = xn
    if sr_ratio > 1:
        r = sr_ratio
        xi = xn.reshape(B, h, w, C).transpose(0, 3, 1, 2)  # NCHW
        y = jax.lax.conv_general_dilated(
            xi, p["w_conv"], (r, r), "VALID",
            dimension_numbers=("NCHW", "OIHW", "NCHW"))
        y = y + p["b_sr"][None, :, None, None]
        xk = y.transpose(0, 2, 3, 1).reshape(B, -1, C)
        xk = ln(xk, p["sr_ln_g"], p["sr_ln_b"], 1e-5)
    Nk = xk.shape[1]
    kv = xk @ p["wkv"] + p["bkv"]
    kv = kv.reshape(B, Nk, 2, num_heads, d).transpose(2, 0, 3, 1, 4)
    k, v = kv[0], kv[1]
    attn = jnp.einsum("bmnd,bmkd->bmnk", q, k) * scale
    attn = jax.nn.softmax(attn, axis=-1)
    o = jnp.einsum("bmnk,bmkd->bmnd", attn, v)
    o = o.transpose(0, 2, 1, 3).reshape(B, N, C)
    x1 = o @ p["wproj"] + p["bproj"] + skip1

    skip2 = x1
    xn2 = ln(x1, p["norm2_g"], p["norm2_b"], 1e-6)
    hdn = xn2 @ p["w1"] + p["b1"]
    Fh = hdn.shape[-1]
    hc = hdn.reshape(B, h, w, Fh).transpose(0, 3, 1, 2)  # NCHW
    yc = jax.lax.conv_general_dilated(
        hc, p["w_dw"], (1, 1), ((1, 1), (1, 1)),
        dimension_numbers=("NCHW", "OIHW", "NCHW"), feature_group_count=Fh)
    yc = yc + p["b_dw"][None, :, None, None]
    gact = jax.nn.gelu(yc.transpose(0, 2, 3, 1).reshape(B, N, Fh),
                       approximate=True)
    return gact @ p["w2"] + p["b2"] + skip2


if __name__ == "__main__":
    B, C, H, W = 2, 32, 16, 16           # dim=32
    num_heads, sr_ratio = 2, 2
    N = H * W
    r = sr_ratio
    Fh = 4 * C

    key = jax.random.PRNGKey(0)
    ks = jax.random.split(key, 24)
    f32 = jnp.float32
    x = jax.random.normal(ks[0], (B, N, C), f32)

    w_conv = 0.05 * jax.random.normal(ks[1], (C, C, r, r), f32)     # OIHW
    w_dw = 0.2 * jax.random.normal(ks[2], (Fh, 1, 3, 3), f32)       # depthwise OIHW

    params = {
        "norm1_g": 1.0 + 0.05 * jax.random.normal(ks[3], (C,), f32),
        "norm1_b": 0.05 * jax.random.normal(ks[4], (C,), f32),
        "wq": 0.05 * jax.random.normal(ks[5], (C, C), f32),
        "bq": 0.05 * jax.random.normal(ks[6], (C,), f32),
        "w_conv": w_conv,
        # conv (kernel=stride=r) as (r*r*C, C) matmul, patch order (ki, kj, c)
        "w_sr": jnp.transpose(w_conv, (2, 3, 1, 0)).reshape(r * r * C, C),
        "b_sr": 0.05 * jax.random.normal(ks[7], (C,), f32),
        "sr_ln_g": 1.0 + 0.05 * jax.random.normal(ks[8], (C,), f32),
        "sr_ln_b": 0.05 * jax.random.normal(ks[9], (C,), f32),
        "wkv": 0.05 * jax.random.normal(ks[10], (C, 2 * C), f32),
        "bkv": 0.05 * jax.random.normal(ks[11], (2 * C,), f32),
        "wproj": 0.05 * jax.random.normal(ks[12], (C, C), f32),
        "bproj": 0.05 * jax.random.normal(ks[13], (C,), f32),
        "norm2_g": 1.0 + 0.05 * jax.random.normal(ks[14], (C,), f32),
        "norm2_b": 0.05 * jax.random.normal(ks[15], (C,), f32),
        "w1": 0.05 * jax.random.normal(ks[16], (C, Fh), f32),
        "b1": 0.05 * jax.random.normal(ks[17], (Fh,), f32),
        "w_dw": w_dw,
        # depthwise 3x3 taps as (9, F), row index = ki*3 + kj
        "w_dw9": jnp.transpose(w_dw[:, 0, :, :], (1, 2, 0)).reshape(9, Fh),
        "b_dw": 0.05 * jax.random.normal(ks[18], (Fh,), f32),
        "w2": 0.05 * jax.random.normal(ks[19], (Fh, C), f32),
        "b2": 0.05 * jax.random.normal(ks[20], (C,), f32),
    }

    fwd = jax.jit(transformer_block_forward, static_argnums=(1, 2, 4, 5))
    out = jax.block_until_ready(fwd(x, H, W, params, num_heads, sr_ratio))
    ref = jax.block_until_ready(ref_forward(x, H, W, params, num_heads, sr_ratio))

    assert out.shape == (B, N, C), out.shape
    err = float(jnp.max(jnp.abs(out - ref)))
    assert jnp.allclose(out, ref, atol=2e-2, rtol=2e-2), err
    print("KERNEL_OK")
</pallas_src>

<mosaic_0001>
module attributes {stable_mosaic.version = 11 : i64} {
  func.func @_ln1_q_kernel(%arg0: i32, %arg1: memref<512x32xf32, #tpu.memory_space<vmem>>, %arg2: memref<1x32xf32, #tpu.memory_space<vmem>>, %arg3: memref<1x32xf32, #tpu.memory_space<vmem>>, %arg4: memref<32x32xf32, #tpu.memory_space<vmem>>, %arg5: memref<1x32xf32, #tpu.memory_space<vmem>>, %arg6: memref<512x32xf32, #tpu.memory_space<vmem>>, %arg7: memref<512x32xf32, #tpu.memory_space<vmem>>) attributes {dimension_semantics = [#tpu.dimension_semantics<parallel>], iteration_bounds = array<i64: 1>, scalar_prefetch = 0 : i64, scratch_operands = 0 : i64, tpu.core_type = #tpu.core_type<tc>, window_params = [{transform_indices = @transform_0, window_bounds = array<i64: 512, 32>}, {pipeline_mode = #tpu.pipeline_mode<synchronous>, transform_indices = @transform_1, window_bounds = array<i64: 1, 32>}, {pipeline_mode = #tpu.pipeline_mode<synchronous>, transform_indices = @transform_2, window_bounds = array<i64: 1, 32>}, {pipeline_mode = #tpu.pipeline_mode<synchronous>, transform_indices = @transform_3, window_bounds = array<i64: 32, 32>}, {pipeline_mode = #tpu.pipeline_mode<synchronous>, transform_indices = @transform_4, window_bounds = array<i64: 1, 32>}, {transform_indices = @transform_5, window_bounds = array<i64: 512, 32>}, {transform_indices = @transform_6, window_bounds = array<i64: 512, 32>}]} {
    %c0 = arith.constant 0 : index
    %c0_0 = arith.constant 0 : index
    %0 = vector.load %arg1[%c0, %c0_0] : memref<512x32xf32, #tpu.memory_space<vmem>>, vector<512x32xf32>
    %cst = arith.constant dense<0.000000e+00> : vector<512xf32>
    %1 = vector.multi_reduction <add>, %0, %cst [1] : vector<512x32xf32> to vector<512xf32>
    %2 = vector.shape_cast %1 : vector<512xf32> to vector<512x1xf32>
    %cst_1 = arith.constant 3.200000e+01 : f32
    %3 = vector.broadcast %cst_1 : f32 to vector<512x1xf32>
    %4 = arith.divf %2, %3 : vector<512x1xf32>
    %5 = vector.broadcast %4 : vector<512x1xf32> to vector<512x32xf32>
    %6 = arith.subf %0, %5 : vector<512x32xf32>
    %7 = arith.mulf %6, %6 : vector<512x32xf32>
    %cst_2 = arith.constant dense<0.000000e+00> : vector<512xf32>
    %8 = vector.multi_reduction <add>, %7, %cst_2 [1] : vector<512x32xf32> to vector<512xf32>
    %9 = vector.shape_cast %8 : vector<512xf32> to vector<512x1xf32>
    %cst_3 = arith.constant 3.200000e+01 : f32
    %10 = vector.broadcast %cst_3 : f32 to vector<512x1xf32>
    %11 = arith.divf %9, %10 : vector<512x1xf32>
    %12 = vector.broadcast %4 : vector<512x1xf32> to vector<512x32xf32>
    %13 = arith.subf %0, %12 : vector<512x32xf32>
    %cst_4 = arith.constant 9.99999997E-7 : f32
    %14 = vector.broadcast %cst_4 : f32 to vector<512x1xf32>
    %15 = arith.addf %11, %14 : vector<512x1xf32>
    %16 = math.rsqrt %15 : vector<512x1xf32>
    %17 = vector.broadcast %16 : vector<512x1xf32> to vector<512x32xf32>
    %18 = arith.mulf %13, %17 : vector<512x32xf32>
    %c0_5 = arith.constant 0 : index
    %c0_6 = arith.constant 0 : index
    %19 = vector.load %arg2[%c0_5, %c0_6] : memref<1x32xf32, #tpu.memory_space<vmem>>, vector<1x32xf32>
    %20 = vector.broadcast %19 : vector<1x32xf32> to vector<512x32xf32>
    %21 = arith.mulf %18, %20 : vector<512x32xf32>
    %c0_7 = arith.constant 0 : index
    %c0_8 = arith.constant 0 : index
    %22 = vector.load %arg3[%c0_7, %c0_8] : memref<1x32xf32, #tpu.memory_space<vmem>>, vector<1x32xf32>
    %23 = vector.broadcast %22 : vector<1x32xf32> to vector<512x32xf32>
    %24 = arith.addf %21, %23 : vector<512x32xf32>
    %c0_9 = arith.constant 0 : index
    %c0_10 = arith.constant 0 : index
    %25 = vector.load %arg6[%c0_9, %c0_10] : memref<512x32xf32, #tpu.memory_space<vmem>>, vector<512x32xf32>
    tpu.vector_store %arg6[%c0_9, %c0_10], %24 {strides = array<i32>} : memref<512x32xf32, #tpu.memory_space<vmem>>, vector<512x32xf32>,
    %c0_11 = arith.constant 0 : index
    %c0_12 = arith.constant 0 : index
    %26 = vector.load %arg4[%c0_11, %c0_12] : memref<32x32xf32, #tpu.memory_space<vmem>>, vector<32x32xf32>
    %cst_13 = arith.constant dense<0.000000e+00> : vector<512x32xf32>
    %27 = tpu.matmul %24, %26, %cst_13 {dimension_numbers = #tpu.dot_dimension_numbers<[1], [0], [0], [1], [0, 0, 1, 1], [], []>} : vector<512x32xf32>, vector<32x32xf32>, vector<512x32xf32> -> vector<512x32xf32>
    %c0_14 = arith.constant 0 : index
    %c0_15 = arith.constant 0 : index
    %28 = vector.load %arg5[%c0_14, %c0_15] : memref<1x32xf32, #tpu.memory_space<vmem>>, vector<1x32xf32>
    %29 = vector.broadcast %28 : vector<1x32xf32> to vector<512x32xf32>
    %30 = arith.addf %27, %29 : vector<512x32xf32>
    %c0_16 = arith.constant 0 : index
    %c0_17 = arith.constant 0 : index
    %31 = vector.load %arg7[%c0_16, %c0_17] : memref<512x32xf32, #tpu.memory_space<vmem>>, vector<512x32xf32>
    tpu.vector_store %arg7[%c0_16, %c0_17], %30 {strides = array<i32>} : memref<512x32xf32, #tpu.memory_space<vmem>>, vector<512x32xf32>,
    return
  }
  func.func @transform_0(%arg0: i32) -> (i32, i32) {
    %c0_i32 = arith.constant 0 : i32
    %c0_i32_0 = arith.constant 0 : i32
    return %arg0, %c0_i32 : i32, i32
  }
  func.func @transform_1(%arg0: i32) -> (i32, i32) {
    %c0_i32 = arith.constant 0 : i32
    %c0_i32_0 = arith.constant 0 : i32
    %c0_i32_1 = arith.constant 0 : i32
    return %c0_i32, %c0_i32_0 : i32, i32
  }
  func.func @transform_2(%arg0: i32) -> (i32, i32) {
    %c0_i32 = arith.constant 0 : i32
    %c0_i32_0 = arith.constant 0 : i32
    %c0_i32_1 = arith.constant 0 : i32
    return %c0_i32, %c0_i32_0 : i32, i32
  }
  func.func @transform_3(%arg0: i32) -> (i32, i32) {
    %c0_i32 = arith.constant 0 : i32
    %c0_i32_0 = arith.constant 0 : i32
    %c0_i32_1 = arith.constant 0 : i32
    return %c0_i32, %c0_i32_0 : i32, i32
  }
  func.func @transform_4(%arg0: i32) -> (i32, i32) {
    %c0_i32 = arith.constant 0 : i32
    %c0_i32_0 = arith.constant 0 : i32
    %c0_i32_1 = arith.constant 0 : i32
    return %c0_i32, %c0_i32_0 : i32, i32
  }
  func.func @transform_5(%arg0: i32) -> (i32, i32) {
    %c0_i32 = arith.constant 0 : i32
    %c0_i32_0 = arith.constant 0 : i32
    return %arg0, %c0_i32 : i32, i32
  }
  func.func @transform_6(%arg0: i32) -> (i32, i32) {
    %c0_i32 = arith.constant 0 : i32
    %c0_i32_0 = arith.constant 0 : i32
    return %arg0, %c0_i32 : i32, i32
  }
}

module attributes {stable_mosaic.version = 11 : i64} {
  func.func @_sr_ln_kv_kernel(%arg0: i32, %arg1: memref<128x128xf32, #tpu.memory_space<vmem>>, %arg2: memref<128x32xf32, #tpu.memory_space<vmem>>, %arg3: memref<1x32xf32, #tpu.memory_space<vmem>>, %arg4: memref<1x32xf32, #tpu.memory_space<vmem>>, %arg5: memref<1x32xf32, #tpu.memory_space<vmem>>, %arg6: memref<32x64xf32, #tpu.memory_space<vmem>>, %arg7: memref<1x64xf32, #tpu.memory_space<vmem>>, %arg8: memref<128x64xf32, #tpu.memory_space<vmem>>) attributes {dimension_semantics = [#tpu.dimension_semantics<parallel>], iteration_bounds = array<i64: 1>, scalar_prefetch = 0 : i64, scratch_operands = 0 : i64, tpu.core_type = #tpu.core_type<tc>, window_params = [{transform_indices = @transform_0, window_bounds = array<i64: 128, 128>}, {pipeline_mode = #tpu.pipeline_mode<synchronous>, transform_indices = @transform_1, window_bounds = array<i64: 128, 32>}, {pipeline_mode = #tpu.pipeline_mode<synchronous>, transform_indices = @transform_2, window_bounds = array<i64: 1, 32>}, {pipeline_mode = #tpu.pipeline_mode<synchronous>, transform_indices = @transform_3, window_bounds = array<i64: 1, 32>}, {pipeline_mode = #tpu.pipeline_mode<synchronous>, transform_indices = @transform_4, window_bounds = array<i64: 1, 32>}, {pipeline_mode = #tpu.pipeline_mode<synchronous>, transform_indices = @transform_5, window_bounds = array<i64: 32, 64>}, {pipeline_mode = #tpu.pipeline_mode<synchronous>, transform_indices = @transform_6, window_bounds = array<i64: 1, 64>}, {transform_indices = @transform_7, window_bounds = array<i64: 128, 64>}]} {
    %c0 = arith.constant 0 : index
    %c0_0 = arith.constant 0 : index
    %0 = vector.load %arg1[%c0, %c0_0] : memref<128x128xf32, #tpu.memory_space<vmem>>, vector<128x128xf32>
    %c0_1 = arith.constant 0 : index
    %c0_2 = arith.constant 0 : index
    %1 = vector.load %arg2[%c0_1, %c0_2] : memref<128x32xf32, #tpu.memory_space<vmem>>, vector<128x32xf32>
    %cst = arith.constant dense<0.000000e+00> : vector<128x32xf32>
    %2 = tpu.matmul %0, %1, %cst {dimension_numbers = #tpu.dot_dimension_numbers<[1], [0], [0], [1], [0, 0, 1, 1], [], []>} : vector<128x128xf32>, vector<128x32xf32>, vector<128x32xf32> -> vector<128x32xf32>
    %c0_3 = arith.constant 0 : index
    %c0_4 = arith.constant 0 : index
    %3 = vector.load %arg3[%c0_3, %c0_4] : memref<1x32xf32, #tpu.memory_space<vmem>>, vector<1x32xf32>
    %4 = vector.broadcast %3 : vector<1x32xf32> to vector<128x32xf32>
    %5 = arith.addf %2, %4 : vector<128x32xf32>
    %cst_5 = arith.constant dense<0.000000e+00> : vector<128xf32>
    %6 = vector.multi_reduction <add>, %5, %cst_5 [1] : vector<128x32xf32> to vector<128xf32>
    %7 = vector.shape_cast %6 : vector<128xf32> to vector<128x1xf32>
    %cst_6 = arith.constant 3.200000e+01 : f32
    %8 = vector.broadcast %cst_6 : f32 to vector<128x1xf32>
    %9 = arith.divf %7, %8 : vector<128x1xf32>
    %10 = vector.broadcast %9 : vector<128x1xf32> to vector<128x32xf32>
    %11 = arith.subf %5, %10 : vector<128x32xf32>
    %12 = arith.mulf %11, %11 : vector<128x32xf32>
    %cst_7 = arith.constant dense<0.000000e+00> : vector<128xf32>
    %13 = vector.multi_reduction <add>, %12, %cst_7 [1] : vector<128x32xf32> to vector<128xf32>
    %14 = vector.shape_cast %13 : vector<128xf32> to vector<128x1xf32>
    %cst_8 = arith.constant 3.200000e+01 : f32
    %15 = vector.broadcast %cst_8 : f32 to vector<128x1xf32>
    %16 = arith.divf %14, %15 : vector<128x1xf32>
    %17 = vector.broadcast %9 : vector<128x1xf32> to vector<128x32xf32>
    %18 = arith.subf %5, %17 : vector<128x32xf32>
    %cst_9 = arith.constant 9.99999974E-6 : f32
    %19 = vector.broadcast %cst_9 : f32 to vector<128x1xf32>
    %20 = arith.addf %16, %19 : vector<128x1xf32>
    %21 = math.rsqrt %20 : vector<128x1xf32>
    %22 = vector.broadcast %21 : vector<128x1xf32> to vector<128x32xf32>
    %23 = arith.mulf %18, %22 : vector<128x32xf32>
    %c0_10 = arith.constant 0 : index
    %c0_11 = arith.constant 0 : index
    %24 = vector.load %arg4[%c0_10, %c0_11] : memref<1x32xf32, #tpu.memory_space<vmem>>, vector<1x32xf32>
    %25 = vector.broadcast %24 : vector<1x32xf32> to vector<128x32xf32>
    %26 = arith.mulf %23, %25 : vector<128x32xf32>
    %c0_12 = arith.constant 0 : index
    %c0_13 = arith.constant 0 : index
    %27 = vector.load %arg5[%c0_12, %c0_13] : memref<1x32xf32, #tpu.memory_space<vmem>>, vector<1x32xf32>
    %28 = vector.broadcast %27 : vector<1x32xf32> to vector<128x32xf32>
    %29 = arith.addf %26, %28 : vector<128x32xf32>
    %c0_14 = arith.constant 0 : index
    %c0_15 = arith.constant 0 : index
    %30 = vector.load %arg6[%c0_14, %c0_15] : memref<32x64xf32, #tpu.memory_space<vmem>>, vector<32x64xf32>
    %cst_16 = arith.constant dense<0.000000e+00> : vector<128x64xf32>
    %31 = tpu.matmul %29, %30, %cst_16 {dimension_numbers = #tpu.dot_dimension_numbers<[1], [0], [0], [1], [0, 0, 1, 1], [], []>} : vector<128x32xf32>, vector<32x64xf32>, vector<128x64xf32> -> vector<128x64xf32>
    %c0_17 = arith.constant 0 : index
    %c0_18 = arith.constant 0 : index
    %32 = vector.load %arg7[%c0_17, %c0_18] : memref<1x64xf32, #tpu.memory_space<vmem>>, vector<1x64xf32>
    %33 = vector.broadcast %32 : vector<1x64xf32> to vector<128x64xf32>
    %34 = arith.addf %31, %33 : vector<128x64xf32>
    %c0_19 = arith.constant 0 : index
    %c0_20 = arith.constant 0 : index
    %35 = vector.load %arg8[%c0_19, %c0_20] : memref<128x64xf32, #tpu.memory_space<vmem>>, vector<128x64xf32>
    tpu.vector_store %arg8[%c0_19, %c0_20], %34 {strides = array<i32>} : memref<128x64xf32, #tpu.memory_space<vmem>>, vector<128x64xf32>,
    return
  }
  func.func @transform_0(%arg0: i32) -> (i32, i32) {
    %c0_i32 = arith.constant 0 : i32
    %c0_i32_0 = arith.constant 0 : i32
    return %arg0, %c0_i32 : i32, i32
  }
  func.func @transform_1(%arg0: i32) -> (i32, i32) {
    %c0_i32 = arith.constant 0 : i32
    %c0_i32_0 = arith.constant 0 : i32
    %c0_i32_1 = arith.constant 0 : i32
    return %c0_i32, %c0_i32_0 : i32, i32
  }
  func.func @transform_2(%arg0: i32) -> (i32, i32) {
    %c0_i32 = arith.constant 0 : i32
    %c0_i32_0 = arith.constant 0 : i32
    %c0_i32_1 = arith.constant 0 : i32
    return %c0_i32, %c0_i32_0 : i32, i32
  }
  func.func @transform_3(%arg0: i32) -> (i32, i32) {
    %c0_i32 = arith.constant 0 : i32
    %c0_i32_0 = arith.constant 0 : i32
    %c0_i32_1 = arith.constant 0 : i32
    return %c0_i32, %c0_i32_0 : i32, i32
  }
  func.func @transform_4(%arg0: i32) -> (i32, i32) {
    %c0_i32 = arith.constant 0 : i32
    %c0_i32_0 = arith.constant 0 : i32
    %c0_i32_1 = arith.constant 0 : i32
    return %c0_i32, %c0_i32_0 : i32, i32
  }
  func.func @transform_5(%arg0: i32) -> (i32, i32) {
    %c0_i32 = arith.constant 0 : i32
    %c0_i32_0 = arith.constant 0 : i32
    %c0_i32_1 = arith.constant 0 : i32
    return %c0_i32, %c0_i32_0 : i32, i32
  }
  func.func @transform_6(%arg0: i32) -> (i32, i32) {
    %c0_i32 = arith.constant 0 : i32
    %c0_i32_0 = arith.constant 0 : i32
    %c0_i32_1 = arith.constant 0 : i32
    return %c0_i32, %c0_i32_0 : i32, i32
  }
  func.func @transform_7(%arg0: i32) -> (i32, i32) {
    %c0_i32 = arith.constant 0 : i32
    %c0_i32_0 = arith.constant 0 : i32
    return %arg0, %c0_i32 : i32, i32
  }
}

module attributes {stable_mosaic.version = 11 : i64} {
  func.func @_attn_proj_kernel(%arg0: i32, %arg1: i32, %arg2: memref<1x128x32xf32, #tpu.memory_space<vmem>>, %arg3: memref<1x64x64xf32, #tpu.memory_space<vmem>>, %arg4: memref<32x32xf32, #tpu.memory_space<vmem>>, %arg5: memref<1x32xf32, #tpu.memory_space<vmem>>, %arg6: memref<1x128x32xf32, #tpu.memory_space<vmem>>, %arg7: memref<1x128x32xf32, #tpu.memory_space<vmem>>) attributes {dimension_semantics = [#tpu.dimension_semantics<parallel>, #tpu.dimension_semantics<parallel>], iteration_bounds = array<i64: 2, 2>, scalar_prefetch = 0 : i64, scratch_operands = 0 : i64, tpu.core_type = #tpu.core_type<tc>, window_params = [{transform_indices = @transform_0, window_bounds = array<i64: 1, 128, 32>}, {transform_indices = @transform_1, window_bounds = array<i64: 1, 64, 64>}, {pipeline_mode = #tpu.pipeline_mode<synchronous>, transform_indices = @transform_2, window_bounds = array<i64: 32, 32>}, {pipeline_mode = #tpu.pipeline_mode<synchronous>, transform_indices = @transform_3, window_bounds = array<i64: 1, 32>}, {transform_indices = @transform_4, window_bounds = array<i64: 1, 128, 32>}, {transform_indices = @transform_5, window_bounds = array<i64: 1, 128, 32>}]} {
    %c0 = arith.constant 0 : index
    %c0_0 = arith.constant 0 : index
    %c0_1 = arith.constant 0 : index
    %0 = vector.load %arg2[%c0, %c0_0, %c0_1] : memref<1x128x32xf32, #tpu.memory_space<vmem>>, vector<1x128x32xf32>
    %1 = vector.shape_cast %0 : vector<1x128x32xf32> to vector<128x32xf32>
    %c0_2 = arith.constant 0 : index
    %c0_3 = arith.constant 0 : index
    %c0_4 = arith.constant 0 : index
    %2 = vector.load %arg3[%c0_2, %c0_3, %c0_4] : memref<1x64x64xf32, #tpu.memory_space<vmem>>, vector<1x64x64xf32>
    %3 = vector.shape_cast %2 : vector<1x64x64xf32> to vector<64x64xf32>
    %4 = vector.extract_strided_slice %1 {offsets = [0, 0], sizes = [128, 16], strides = [1, 1]} : vector<128x32xf32> to vector<128x16xf32>
    %5 = vector.extract_strided_slice %3 {offsets = [0, 0], sizes = [64, 16], strides = [1, 1]} : vector<64x64xf32> to vector<64x16xf32>
    %6 = vector.extract_strided_slice %3 {offsets = [0, 32], sizes = [64, 16], strides = [1, 1]} : vector<64x64xf32> to vector<64x16xf32>
    %cst = arith.constant dense<0.000000e+00> : vector<128x64xf32>
    %7 = tpu.matmul %4, %5, %cst {dimension_numbers = #tpu.dot_dimension_numbers<[1], [1], [0], [0], [0, 0, 1, 0], [], []>} : vector<128x16xf32>, vector<64x16xf32>, vector<128x64xf32> -> vector<128x64xf32>
    %cst_5 = arith.constant 2.500000e-01 : f32
    %8 = vector.broadcast %cst_5 : f32 to vector<128x64xf32>
    %9 = arith.mulf %7, %8 : vector<128x64xf32>
    %cst_6 = arith.constant dense<0xFF800000> : vector<128xf32>
    %10 = vector.multi_reduction <maximumf>, %9, %cst_6 [1] : vector<128x64xf32> to vector<128xf32>
    %11 = vector.shape_cast %10 : vector<128xf32> to vector<128x1xf32>
    %12 = vector.broadcast %11 : vector<128x1xf32> to vector<128x64xf32>
    %13 = arith.subf %9, %12 : vector<128x64xf32>
    %14 = math.exp %13 : vector<128x64xf32>
    %cst_7 = arith.constant dense<0.000000e+00> : vector<128xf32>
    %15 = vector.multi_reduction <add>, %14, %cst_7 [1] : vector<128x64xf32> to vector<128xf32>
    %16 = vector.shape_cast %15 : vector<128xf32> to vector<128x1xf32>
    %17 = tpu.reciprocal %16 {approx = true} : vector<128x1xf32> -> vector<128x1xf32>
    %18 = vector.broadcast %17 : vector<128x1xf32> to vector<128x64xf32>
    %19 = arith.mulf %14, %18 : vector<128x64xf32>
    %cst_8 = arith.constant dense<0.000000e+00> : vector<128x16xf32>
    %20 = tpu.matmul %19, %6, %cst_8 {dimension_numbers = #tpu.dot_dimension_numbers<[1], [0], [0], [1], [0, 0, 1, 1], [], []>} : vector<128x64xf32>, vector<64x16xf32>, vector<128x16xf32> -> vector<128x16xf32>
    %21 = vector.extract_strided_slice %1 {offsets = [0, 16], sizes = [128, 16], strides = [1, 1]} : vector<128x32xf32> to vector<128x16xf32>
    %22 = vector.extract_strided_slice %3 {offsets = [0, 16], sizes = [64, 16], strides = [1, 1]} : vector<64x64xf32> to vector<64x16xf32>
    %23 = vector.extract_strided_slice %3 {offsets = [0, 48], sizes = [64, 16], strides = [1, 1]} : vector<64x64xf32> to vector<64x16xf32>
    %cst_9 = arith.constant dense<0.000000e+00> : vector<128x64xf32>
    %24 = tpu.matmul %21, %22, %cst_9 {dimension_numbers = #tpu.dot_dimension_numbers<[1], [1], [0], [0], [0, 0, 1, 0], [], []>} : vector<128x16xf32>, vector<64x16xf32>, vector<128x64xf32> -> vector<128x64xf32>
    %cst_10 = arith.constant 2.500000e-01 : f32
    %25 = vector.broadcast %cst_10 : f32 to vector<128x64xf32>
    %26 = arith.mulf %24, %25 : vector<128x64xf32>
    %cst_11 = arith.constant dense<0xFF800000> : vector<128xf32>
    %27 = vector.multi_reduction <maximumf>, %26, %cst_11 [1] : vector<128x64xf32> to vector<128xf32>
    %28 = vector.shape_cast %27 : vector<128xf32> to vector<128x1xf32>
    %29 = vector.broadcast %28 : vector<128x1xf32> to vector<128x64xf32>
    %30 = arith.subf %26, %29 : vector<128x64xf32>
    %31 = math.exp %30 : vector<128x64xf32>
    %cst_12 = arith.constant dense<0.000000e+00> : vector<128xf32>
    %32 = vector.multi_reduction <add>, %31, %cst_12 [1] : vector<128x64xf32> to vector<128xf32>
    %33 = vector.shape_cast %32 : vector<128xf32> to vector<128x1xf32>
    %34 = tpu.reciprocal %33 {approx = true} : vector<128x1xf32> -> vector<128x1xf32>
    %35 = vector.broadcast %34 : vector<128x1xf32> to vector<128x64xf32>
    %36 = arith.mulf %31, %35 : vector<128x64xf32>
    %cst_13 = arith.constant dense<0.000000e+00> : vector<128x16xf32>
    %37 = tpu.matmul %36, %23, %cst_13 {dimension_numbers = #tpu.dot_dimension_numbers<[1], [0], [0], [1], [0, 0, 1, 1], [], []>} : vector<128x64xf32>, vector<64x16xf32>, vector<128x16xf32> -> vector<128x16xf32>
    %38 = tpu.concatenate %20, %37 in 1 : vector<128x16xf32>, vector<128x16xf32> -> vector<128x32xf32>
    %c0_14 = arith.constant 0 : index
    %c0_15 = arith.constant 0 : index
    %39 = vector.load %arg4[%c0_14, %c0_15] : memref<32x32xf32, #tpu.memory_space<vmem>>, vector<32x32xf32>
    %cst_16 = arith.constant dense<0.000000e+00> : vector<128x32xf32>
    %40 = tpu.matmul %38, %39, %cst_16 {dimension_numbers = #tpu.dot_dimension_numbers<[1], [0], [0], [1], [0, 0, 1, 1], [], []>} : vector<128x32xf32>, vector<32x32xf32>, vector<128x32xf32> -> vector<128x32xf32>
    %c0_17 = arith.constant 0 : index
    %c0_18 = arith.constant 0 : index
    %41 = vector.load %arg5[%c0_17, %c0_18] : memref<1x32xf32, #tpu.memory_space<vmem>>, vector<1x32xf32>
    %42 = vector.broadcast %41 : vector<1x32xf32> to vector<128x32xf32>
    %43 = arith.addf %40, %42 : vector<128x32xf32>
    %c0_19 = arith.constant 0 : index
    %c0_20 = arith.constant 0 : index
    %c0_21 = arith.constant 0 : index
    %44 = vector.load %arg6[%c0_19, %c0_20, %c0_21] : memref<1x128x32xf32, #tpu.memory_space<vmem>>, vector<1x128x32xf32>
    %45 = vector.shape_cast %44 : vector<1x128x32xf32> to vector<128x32xf32>
    %46 = arith.addf %43, %45 : vector<128x32xf32>
    %c0_22 = arith.constant 0 : index
    %c0_23 = arith.constant 0 : index
    %c0_24 = arith.constant 0 : index
    %47 = vector.load %arg7[%c0_22, %c0_23, %c0_24] : memref<1x128x32xf32, #tpu.memory_space<vmem>>, vector<1x128x32xf32>
    %48 = vector.shape_cast %47 : vector<1x128x32xf32> to vector<128x32xf32>
    %49 = vector.shape_cast %46 : vector<128x32xf32> to vector<1x128x32xf32>
    tpu.vector_store %arg7[%c0_22, %c0_23, %c0_24], %49 {strides = array<i32>} : memref<1x128x32xf32, #tpu.memory_space<vmem>>, vector<1x128x32xf32>,
    return
  }
  func.func @transform_0(%arg0: i32, %arg1: i32) -> (i32, i32, i32) {
    %c0_i32 = arith.constant 0 : i32
    %c0_i32_0 = arith.constant 0 : i32
    return %arg0, %arg1, %c0_i32 : i32, i32, i32
  }
  func.func @transform_1(%arg0: i32, %arg1: i32) -> (i32, i32, i32) {
    %c0_i32 = arith.constant 0 : i32
    %c0_i32_0 = arith.constant 0 : i32
    %c0_i32_1 = arith.constant 0 : i32
    return %arg0, %c0_i32, %c0_i32_0 : i32, i32, i32
  }
  func.func @transform_2(%arg0: i32, %arg1: i32) -> (i32, i32) {
    %c0_i32 = arith.constant 0 : i32
    %c0_i32_0 = arith.constant 0 : i32
    %c0_i32_1 = arith.constant 0 : i32
    return %c0_i32, %c0_i32_0 : i32, i32
  }
  func.func @transform_3(%arg0: i32, %arg1: i32) -> (i32, i32) {
    %c0_i32 = arith.constant 0 : i32
    %c0_i32_0 = arith.constant 0 : i32
    %c0_i32_1 = arith.constant 0 : i32
    return %c0_i32, %c0_i32_0 : i32, i32
  }
  func.func @transform_4(%arg0: i32, %arg1: i32) -> (i32, i32, i32) {
    %c0_i32 = arith.constant 0 : i32
    %c0_i32_0 = arith.constant 0 : i32
    return %arg0, %arg1, %c0_i32 : i32, i32, i32
  }
  func.func @transform_5(%arg0: i32, %arg1: i32) -> (i32, i32, i32) {
    %c0_i32 = arith.constant 0 : i32
    %c0_i32_0 = arith.constant 0 : i32
    return %arg0, %arg1, %c0_i32 : i32, i32, i32
  }
}

module attributes {stable_mosaic.version = 11 : i64} {
  func.func @_ln_linear_kernel(%arg0: i32, %arg1: memref<512x32xf32, #tpu.memory_space<vmem>>, %arg2: memref<1x32xf32, #tpu.memory_space<vmem>>, %arg3: memref<1x32xf32, #tpu.memory_space<vmem>>, %arg4: memref<32x128xf32, #tpu.memory_space<vmem>>, %arg5: memref<1x128xf32, #tpu.memory_space<vmem>>, %arg6: memref<512x128xf32, #tpu.memory_space<vmem>>) attributes {dimension_semantics = [#tpu.dimension_semantics<parallel>], iteration_bounds = array<i64: 1>, scalar_prefetch = 0 : i64, scratch_operands = 0 : i64, tpu.core_type = #tpu.core_type<tc>, window_params = [{transform_indices = @transform_0, window_bounds = array<i64: 512, 32>}, {pipeline_mode = #tpu.pipeline_mode<synchronous>, transform_indices = @transform_1, window_bounds = array<i64: 1, 32>}, {pipeline_mode = #tpu.pipeline_mode<synchronous>, transform_indices = @transform_2, window_bounds = array<i64: 1, 32>}, {pipeline_mode = #tpu.pipeline_mode<synchronous>, transform_indices = @transform_3, window_bounds = array<i64: 32, 128>}, {pipeline_mode = #tpu.pipeline_mode<synchronous>, transform_indices = @transform_4, window_bounds = array<i64: 1, 128>}, {transform_indices = @transform_5, window_bounds = array<i64: 512, 128>}]} {
    %c0 = arith.constant 0 : index
    %c0_0 = arith.constant 0 : index
    %0 = vector.load %arg1[%c0, %c0_0] : memref<512x32xf32, #tpu.memory_space<vmem>>, vector<512x32xf32>
    %cst = arith.constant dense<0.000000e+00> : vector<512xf32>
    %1 = vector.multi_reduction <add>, %0, %cst [1] : vector<512x32xf32> to vector<512xf32>
    %2 = vector.shape_cast %1 : vector<512xf32> to vector<512x1xf32>
    %cst_1 = arith.constant 3.200000e+01 : f32
    %3 = vector.broadcast %cst_1 : f32 to vector<512x1xf32>
    %4 = arith.divf %2, %3 : vector<512x1xf32>
    %5 = vector.broadcast %4 : vector<512x1xf32> to vector<512x32xf32>
    %6 = arith.subf %0, %5 : vector<512x32xf32>
    %7 = arith.mulf %6, %6 : vector<512x32xf32>
    %cst_2 = arith.constant dense<0.000000e+00> : vector<512xf32>
    %8 = vector.multi_reduction <add>, %7, %cst_2 [1] : vector<512x32xf32> to vector<512xf32>
    %9 = vector.shape_cast %8 : vector<512xf32> to vector<512x1xf32>
    %cst_3 = arith.constant 3.200000e+01 : f32
    %10 = vector.broadcast %cst_3 : f32 to vector<512x1xf32>
    %11 = arith.divf %9, %10 : vector<512x1xf32>
    %12 = vector.broadcast %4 : vector<512x1xf32> to vector<512x32xf32>
    %13 = arith.subf %0, %12 : vector<512x32xf32>
    %cst_4 = arith.constant 9.99999997E-7 : f32
    %14 = vector.broadcast %cst_4 : f32 to vector<512x1xf32>
    %15 = arith.addf %11, %14 : vector<512x1xf32>
    %16 = math.rsqrt %15 : vector<512x1xf32>
    %17 = vector.broadcast %16 : vector<512x1xf32> to vector<512x32xf32>
    %18 = arith.mulf %13, %17 : vector<512x32xf32>
    %c0_5 = arith.constant 0 : index
    %c0_6 = arith.constant 0 : index
    %19 = vector.load %arg2[%c0_5, %c0_6] : memref<1x32xf32, #tpu.memory_space<vmem>>, vector<1x32xf32>
    %20 = vector.broadcast %19 : vector<1x32xf32> to vector<512x32xf32>
    %21 = arith.mulf %18, %20 : vector<512x32xf32>
    %c0_7 = arith.constant 0 : index
    %c0_8 = arith.constant 0 : index
    %22 = vector.load %arg3[%c0_7, %c0_8] : memref<1x32xf32, #tpu.memory_space<vmem>>, vector<1x32xf32>
    %23 = vector.broadcast %22 : vector<1x32xf32> to vector<512x32xf32>
    %24 = arith.addf %21, %23 : vector<512x32xf32>
    %c0_9 = arith.constant 0 : index
    %c0_10 = arith.constant 0 : index
    %25 = vector.load %arg4[%c0_9, %c0_10] : memref<32x128xf32, #tpu.memory_space<vmem>>, vector<32x128xf32>
    %cst_11 = arith.constant dense<0.000000e+00> : vector<512x128xf32>
    %26 = tpu.matmul %24, %25, %cst_11 {dimension_numbers = #tpu.dot_dimension_numbers<[1], [0], [0], [1], [0, 0, 1, 1], [], []>} : vector<512x32xf32>, vector<32x128xf32>, vector<512x128xf32> -> vector<512x128xf32>
    %c0_12 = arith.constant 0 : index
    %c0_13 = arith.constant 0 : index
    %27 = vector.load %arg5[%c0_12, %c0_13] : memref<1x128xf32, #tpu.memory_space<vmem>>, vector<1x128xf32>
    %28 = vector.broadcast %27 : vector<1x128xf32> to vector<512x128xf32>
    %29 = arith.addf %26, %28 : vector<512x128xf32>
    %c0_14 = arith.constant 0 : index
    %c0_15 = arith.constant 0 : index
    %30 = vector.load %arg6[%c0_14, %c0_15] : memref<512x128xf32, #tpu.memory_space<vmem>>, vector<512x128xf32>
    tpu.vector_store %arg6[%c0_14, %c0_15], %29 {strides = array<i32>} : memref<512x128xf32, #tpu.memory_space<vmem>>, vector<512x128xf32>,
    return
  }
  func.func @transform_0(%arg0: i32) -> (i32, i32) {
    %c0_i32 = arith.constant 0 : i32
    %c0_i32_0 = arith.constant 0 : i32
    return %arg0, %c0_i32 : i32, i32
  }
  func.func @transform_1(%arg0: i32) -> (i32, i32) {
    %c0_i32 = arith.constant 0 : i32
    %c0_i32_0 = arith.constant 0 : i32
    %c0_i32_1 = arith.constant 0 : i32
    return %c0_i32, %c0_i32_0 : i32, i32
  }
  func.func @transform_2(%arg0: i32) -> (i32, i32) {
    %c0_i32 = arith.constant 0 : i32
    %c0_i32_0 = arith.constant 0 : i32
    %c0_i32_1 = arith.constant 0 : i32
    return %c0_i32, %c0_i32_0 : i32, i32
  }
  func.func @transform_3(%arg0: i32) -> (i32, i32) {
    %c0_i32 = arith.constant 0 : i32
    %c0_i32_0 = arith.constant 0 : i32
    %c0_i32_1 = arith.constant 0 : i32
    return %c0_i32, %c0_i32_0 : i32, i32
  }
  func.func @transform_4(%arg0: i32) -> (i32, i32) {
    %c0_i32 = arith.constant 0 : i32
    %c0_i32_0 = arith.constant 0 : i32
    %c0_i32_1 = arith.constant 0 : i32
    return %c0_i32, %c0_i32_0 : i32, i32
  }
  func.func @transform_5(%arg0: i32) -> (i32, i32) {
    %c0_i32 = arith.constant 0 : i32
    %c0_i32_0 = arith.constant 0 : i32
    return %arg0, %c0_i32 : i32, i32
  }
}

module attributes {stable_mosaic.version = 11 : i64} {
  func.func @_dwconv_gelu_kernel(%arg0: i32, %arg1: memref<1x18x18x128xf32, #tpu.memory_space<vmem>>, %arg2: memref<9x128xf32, #tpu.memory_space<vmem>>, %arg3: memref<1x128xf32, #tpu.memory_space<vmem>>, %arg4: memref<1x16x16x128xf32, #tpu.memory_space<vmem>>) attributes {dimension_semantics = [#tpu.dimension_semantics<parallel>], iteration_bounds = array<i64: 2>, scalar_prefetch = 0 : i64, scratch_operands = 0 : i64, tpu.core_type = #tpu.core_type<tc>, window_params = [{transform_indices = @transform_0, window_bounds = array<i64: 1, 18, 18, 128>}, {pipeline_mode = #tpu.pipeline_mode<synchronous>, transform_indices = @transform_1, window_bounds = array<i64: 9, 128>}, {pipeline_mode = #tpu.pipeline_mode<synchronous>, transform_indices = @transform_2, window_bounds = array<i64: 1, 128>}, {transform_indices = @transform_3, window_bounds = array<i64: 1, 16, 16, 128>}]} {
    %c0 = arith.constant 0 : index
    %c0_0 = arith.constant 0 : index
    %0 = vector.load %arg2[%c0, %c0_0] : memref<9x128xf32, #tpu.memory_space<vmem>>, vector<9x128xf32>
    %cst = arith.constant 0.000000e+00 : f32
    %1 = vector.broadcast %cst : f32 to vector<16x16x128xf32>
    %c0_1 = arith.constant 0 : index
    %c0_2 = arith.constant 0 : index
    %c0_3 = arith.constant 0 : index
    %c0_4 = arith.constant 0 : index
    %2 = vector.load %arg1[%c0_1, %c0_2, %c0_3, %c0_4] : memref<1x18x18x128xf32, #tpu.memory_space<vmem>>, vector<1x16x16x128xf32>
    %3 = vector.shape_cast %2 : vector<1x16x16x128xf32> to vector<16x16x128xf32>
    %4 = vector.extract_strided_slice %0 {offsets = [0, 0], sizes = [1, 128], strides = [1, 1]} : vector<9x128xf32> to vector<1x128xf32>
    %5 = vector.shape_cast %4 : vector<1x128xf32> to vector<128xf32>
    %6 = vector.shape_cast %5 : vector<128xf32> to vector<1x1x128xf32>
    %7 = vector.broadcast %6 : vector<1x1x128xf32> to vector<16x16x128xf32>
    %8 = arith.mulf %3, %7 : vector<16x16x128xf32>
    %9 = arith.addf %1, %8 : vector<16x16x128xf32>
    %c0_5 = arith.constant 0 : index
    %c0_6 = arith.constant 0 : index
    %c1 = arith.constant 1 : index
    %c0_7 = arith.constant 0 : index
    %10 = vector.load %arg1[%c0_5, %c0_6, %c1, %c0_7] : memref<1x18x18x128xf32, #tpu.memory_space<vmem>>, vector<1x16x16x128xf32>
    %11 = vector.shape_cast %10 : vector<1x16x16x128xf32> to vector<16x16x128xf32>
    %12 = vector.extract_strided_slice %0 {offsets = [1, 0], sizes = [1, 128], strides = [1, 1]} : vector<9x128xf32> to vector<1x128xf32>
    %13 = vector.shape_cast %12 : vector<1x128xf32> to vector<128xf32>
    %14 = vector.shape_cast %13 : vector<128xf32> to vector<1x1x128xf32>
    %15 = vector.broadcast %14 : vector<1x1x128xf32> to vector<16x16x128xf32>
    %16 = arith.mulf %11, %15 : vector<16x16x128xf32>
    %17 = arith.addf %9, %16 : vector<16x16x128xf32>
    %c0_8 = arith.constant 0 : index
    %c0_9 = arith.constant 0 : index
    %c2 = arith.constant 2 : index
    %c0_10 = arith.constant 0 : index
    %18 = vector.load %arg1[%c0_8, %c0_9, %c2, %c0_10] : memref<1x18x18x128xf32, #tpu.memory_space<vmem>>, vector<1x16x16x128xf32>
    %19 = vector.shape_cast %18 : vector<1x16x16x128xf32> to vector<16x16x128xf32>
    %20 = vector.extract_strided_slice %0 {offsets = [2, 0], sizes = [1, 128], strides = [1, 1]} : vector<9x128xf32> to vector<1x128xf32>
    %21 = vector.shape_cast %20 : vector<1x128xf32> to vector<128xf32>
    %22 = vector.shape_cast %21 : vector<128xf32> to vector<1x1x128xf32>
    %23 = vector.broadcast %22 : vector<1x1x128xf32> to vector<16x16x128xf32>
    %24 = arith.mulf %19, %23 : vector<16x16x128xf32>
    %25 = arith.addf %17, %24 : vector<16x16x128xf32>
    %c0_11 = arith.constant 0 : index
    %c1_12 = arith.constant 1 : index
    %c0_13 = arith.constant 0 : index
    %c0_14 = arith.constant 0 : index
    %26 = vector.load %arg1[%c0_11, %c1_12, %c0_13, %c0_14] : memref<1x18x18x128xf32, #tpu.memory_space<vmem>>, vector<1x16x16x128xf32>
    %27 = vector.shape_cast %26 : vector<1x16x16x128xf32> to vector<16x16x128xf32>
    %28 = vector.extract_strided_slice %0 {offsets = [3, 0], sizes = [1, 128], strides = [1, 1]} : vector<9x128xf32> to vector<1x128xf32>
    %29 = vector.shape_cast %28 : vector<1x128xf32> to vector<128xf32>
    %30 = vector.shape_cast %29 : vector<128xf32> to vector<1x1x128xf32>
    %31 = vector.broadcast %30 : vector<1x1x128xf32> to vector<16x16x128xf32>
    %32 = arith.mulf %27, %31 : vector<16x16x128xf32>
    %33 = arith.addf %25, %32 : vector<16x16x128xf32>
    %c0_15 = arith.constant 0 : index
    %c1_16 = arith.constant 1 : index
    %c1_17 = arith.constant 1 : index
    %c0_18 = arith.constant 0 : index
    %34 = vector.load %arg1[%c0_15, %c1_16, %c1_17, %c0_18] : memref<1x18x18x128xf32, #tpu.memory_space<vmem>>, vector<1x16x16x128xf32>
    %35 = vector.shape_cast %34 : vector<1x16x16x128xf32> to vector<16x16x128xf32>
    %36 = vector.extract_strided_slice %0 {offsets = [4, 0], sizes = [1, 128], strides = [1, 1]} : vector<9x128xf32> to vector<1x128xf32>
    %37 = vector.shape_cast %36 : vector<1x128xf32> to vector<128xf32>
    %38 = vector.shape_cast %37 : vector<128xf32> to vector<1x1x128xf32>
    %39 = vector.broadcast %38 : vector<1x1x128xf32> to vector<16x16x128xf32>
    %40 = arith.mulf %35, %39 : vector<16x16x128xf32>
    %41 = arith.addf %33, %40 : vector<16x16x128xf32>
    %c0_19 = arith.constant 0 : index
    %c1_20 = arith.constant 1 : index
    %c2_21 = arith.constant 2 : index
    %c0_22 = arith.constant 0 : index
    %42 = vector.load %arg1[%c0_19, %c1_20, %c2_21, %c0_22] : memref<1x18x18x128xf32, #tpu.memory_space<vmem>>, vector<1x16x16x128xf32>
    %43 = vector.shape_cast %42 : vector<1x16x16x128xf32> to vector<16x16x128xf32>
    %44 = vector.extract_strided_slice %0 {offsets = [5, 0], sizes = [1, 128], strides = [1, 1]} : vector<9x128xf32> to vector<1x128xf32>
    %45 = vector.shape_cast %44 : vector<1x128xf32> to vector<128xf32>
    %46 = vector.shape_cast %45 : vector<128xf32> to vector<1x1x128xf32>
    %47 = vector.broadcast %46 : vector<1x1x128xf32> to vector<16x16x128xf32>
    %48 = arith.mulf %43, %47 : vector<16x16x128xf32>
    %49 = arith.addf %41, %48 : vector<16x16x128xf32>
    %c0_23 = arith.constant 0 : index
    %c2_24 = arith.constant 2 : index
    %c0_25 = arith.constant 0 : index
    %c0_26 = arith.constant 0 : index
    %50 = vector.load %arg1[%c0_23, %c2_24, %c0_25, %c0_26] : memref<1x18x18x128xf32, #tpu.memory_space<vmem>>, vector<1x16x16x128xf32>
    %51 = vector.shape_cast %50 : vector<1x16x16x128xf32> to vector<16x16x128xf32>
    %52 = vector.extract_strided_slice %0 {offsets = [6, 0], sizes = [1, 128], strides = [1, 1]} : vector<9x128xf32> to vector<1x128xf32>
    %53 = vector.shape_cast %52 : vector<1x128xf32> to vector<128xf32>
    %54 = vector.shape_cast %53 : vector<128xf32> to vector<1x1x128xf32>
    %55 = vector.broadcast %54 : vector<1x1x128xf32> to vector<16x16x128xf32>
    %56 = arith.mulf %51, %55 : vector<16x16x128xf32>
    %57 = arith.addf %49, %56 : vector<16x16x128xf32>
    %c0_27 = arith.constant 0 : index
    %c2_28 = arith.constant 2 : index
    %c1_29 = arith.constant 1 : index
    %c0_30 = arith.constant 0 : index
    %58 = vector.load %arg1[%c0_27, %c2_28, %c1_29, %c0_30] : memref<1x18x18x128xf32, #tpu.memory_space<vmem>>, vector<1x16x16x128xf32>
    %59 = vector.shape_cast %58 : vector<1x16x16x128xf32> to vector<16x16x128xf32>
    %60 = vector.extract_strided_slice %0 {offsets = [7, 0], sizes = [1, 128], strides = [1, 1]} : vector<9x128xf32> to vector<1x128xf32>
    %61 = vector.shape_cast %60 : vector<1x128xf32> to vector<128xf32>
    %62 = vector.shape_cast %61 : vector<128xf32> to vector<1x1x128xf32>
    %63 = vector.broadcast %62 : vector<1x1x128xf32> to vector<16x16x128xf32>
    %64 = arith.mulf %59, %63 : vector<16x16x128xf32>
    %65 = arith.addf %57, %64 : vector<16x16x128xf32>
    %c0_31 = arith.constant 0 : index
    %c2_32 = arith.constant 2 : index
    %c2_33 = arith.constant 2 : index
    %c0_34 = arith.constant 0 : index
    %66 = vector.load %arg1[%c0_31, %c2_32, %c2_33, %c0_34] : memref<1x18x18x128xf32, #tpu.memory_space<vmem>>, vector<1x16x16x128xf32>
    %67 = vector.shape_cast %66 : vector<1x16x16x128xf32> to vector<16x16x128xf32>
    %68 = vector.extract_strided_slice %0 {offsets = [8, 0], sizes = [1, 128], strides = [1, 1]} : vector<9x128xf32> to vector<1x128xf32>
    %69 = vector.shape_cast %68 : vector<1x128xf32> to vector<128xf32>
    %70 = vector.shape_cast %69 : vector<128xf32> to vector<1x1x128xf32>
    %71 = vector.broadcast %70 : vector<1x1x128xf32> to vector<16x16x128xf32>
    %72 = arith.mulf %67, %71 : vector<16x16x128xf32>
    %73 = arith.addf %65, %72 : vector<16x16x128xf32>
    %c0_35 = arith.constant 0 : index
    %c0_36 = arith.constant 0 : index
    %74 = vector.load %arg3[%c0_35, %c0_36] : memref<1x128xf32, #tpu.memory_space<vmem>>, vector<1x128xf32>
    %75 = vector.shape_cast %74 : vector<1x128xf32> to vector<1x1x128xf32>
    %76 = vector.broadcast %75 : vector<1x1x128xf32> to vector<16x16x128xf32>
    %77 = arith.addf %73, %76 : vector<16x16x128xf32>
    %cst_37 = arith.constant 5.000000e-01 : f32
    %78 = vector.broadcast %cst_37 : f32 to vector<16x16x128xf32>
    %79 = arith.mulf %78, %77 : vector<16x16x128xf32>
    %80 = arith.mulf %77, %77 : vector<16x16x128xf32>
    %81 = arith.mulf %80, %77 : vector<16x16x128xf32>
    %cst_38 = arith.constant 4.471500e-02 : f32
    %82 = vector.broadcast %cst_38 : f32 to vector<16x16x128xf32>
    %83 = arith.mulf %82, %81 : vector<16x16x128xf32>
    %84 = arith.addf %77, %83 : vector<16x16x128xf32>
    %cst_39 = arith.constant 0.797884583 : f32
    %85 = vector.broadcast %cst_39 : f32 to vector<16x16x128xf32>
    %86 = arith.mulf %85, %84 : vector<16x16x128xf32>
    %87 = math.tanh %86 : vector<16x16x128xf32>
    %cst_40 = arith.constant 1.000000e+00 : f32
    %88 = vector.broadcast %cst_40 : f32 to vector<16x16x128xf32>
    %89 = arith.addf %88, %87 : vector<16x16x128xf32>
    %90 = arith.mulf %79, %89 : vector<16x16x128xf32>
    %c0_41 = arith.constant 0 : index
    %c0_42 = arith.constant 0 : index
    %c0_43 = arith.constant 0 : index
    %c0_44 = arith.constant 0 : index
    %91 = vector.load %arg4[%c0_41, %c0_42, %c0_43, %c0_44] : memref<1x16x16x128xf32, #tpu.memory_space<vmem>>, vector<1x16x16x128xf32>
    %92 = vector.shape_cast %91 : vector<1x16x16x128xf32> to vector<16x16x128xf32>
    %93 = vector.shape_cast %90 : vector<16x16x128xf32> to vector<1x16x16x128xf32>
    tpu.vector_store %arg4[%c0_41, %c0_42, %c0_43, %c0_44], %93 {strides = array<i32>} : memref<1x16x16x128xf32, #tpu.memory_space<vmem>>, vector<1x16x16x128xf32>,
    return
  }
  func.func @transform_0(%arg0: i32) -> (i32, i32, i32, i32) {
    %c0_i32 = arith.constant 0 : i32
    %c0_i32_0 = arith.constant 0 : i32
    %c0_i32_1 = arith.constant 0 : i32
    %c0_i32_2 = arith.constant 0 : i32
    return %arg0, %c0_i32, %c0_i32_0, %c0_i32_1 : i32, i32, i32, i32
  }
  func.func @transform_1(%arg0: i32) -> (i32, i32) {
    %c0_i32 = arith.constant 0 : i32
    %c0_i32_0 = arith.constant 0 : i32
    %c0_i32_1 = arith.constant 0 : i32
    return %c0_i32, %c0_i32_0 : i32, i32
  }
  func.func @transform_2(%arg0: i32) -> (i32, i32) {
    %c0_i32 = arith.constant 0 : i32
    %c0_i32_0 = arith.constant 0 : i32
    %c0_i32_1 = arith.constant 0 : i32
    return %c0_i32, %c0_i32_0 : i32, i32
  }
  func.func @transform_3(%arg0: i32) -> (i32, i32, i32, i32) {
    %c0_i32 = arith.constant 0 : i32
    %c0_i32_0 = arith.constant 0 : i32
    %c0_i32_1 = arith.constant 0 : i32
    %c0_i32_2 = arith.constant 0 : i32
    return %arg0, %c0_i32, %c0_i32_0, %c0_i32_1 : i32, i32, i32, i32
  }
}

module attributes {stable_mosaic.version = 11 : i64} {
  func.func @_linear_residual_kernel(%arg0: i32, %arg1: memref<512x128xf32, #tpu.memory_space<vmem>>, %arg2: memref<128x32xf32, #tpu.memory_space<vmem>>, %arg3: memref<1x32xf32, #tpu.memory_space<vmem>>, %arg4: memref<512x32xf32, #tpu.memory_space<vmem>>, %arg5: memref<512x32xf32, #tpu.memory_space<vmem>>) attributes {dimension_semantics = [#tpu.dimension_semantics<parallel>], iteration_bounds = array<i64: 1>, scalar_prefetch = 0 : i64, scratch_operands = 0 : i64, tpu.core_type = #tpu.core_type<tc>, window_params = [{transform_indices = @transform_0, window_bounds = array<i64: 512, 128>}, {pipeline_mode = #tpu.pipeline_mode<synchronous>, transform_indices = @transform_1, window_bounds = array<i64: 128, 32>}, {pipeline_mode = #tpu.pipeline_mode<synchronous>, transform_indices = @transform_2, window_bounds = array<i64: 1, 32>}, {transform_indices = @transform_3, window_bounds = array<i64: 512, 32>}, {transform_indices = @transform_4, window_bounds = array<i64: 512, 32>}]} {
    %c0 = arith.constant 0 : index
    %c0_0 = arith.constant 0 : index
    %0 = vector.load %arg1[%c0, %c0_0] : memref<512x128xf32, #tpu.memory_space<vmem>>, vector<512x128xf32>
    %c0_1 = arith.constant 0 : index
    %c0_2 = arith.constant 0 : index
    %1 = vector.load %arg2[%c0_1, %c0_2] : memref<128x32xf32, #tpu.memory_space<vmem>>, vector<128x32xf32>
    %cst = arith.constant dense<0.000000e+00> : vector<512x32xf32>
    %2 = tpu.matmul %0, %1, %cst {dimension_numbers = #tpu.dot_dimension_numbers<[1], [0], [0], [1], [0, 0, 1, 1], [], []>} : vector<512x128xf32>, vector<128x32xf32>, vector<512x32xf32> -> vector<512x32xf32>
    %c0_3 = arith.constant 0 : index
    %c0_4 = arith.constant 0 : index
    %3 = vector.load %arg3[%c0_3, %c0_4] : memref<1x32xf32, #tpu.memory_space<vmem>>, vector<1x32xf32>
    %4 = vector.broadcast %3 : vector<1x32xf32> to vector<512x32xf32>
    %5 = arith.addf %2, %4 : vector<512x32xf32>
    %c0_5 = arith.constant 0 : index
    %c0_6 = arith.constant 0 : index
    %6 = vector.load %arg4[%c0_5, %c0_6] : memref<512x32xf32, #tpu.memory_space<vmem>>, vector<512x32xf32>
    %7 = arith.addf %5, %6 : vector<512x32xf32>
    %c0_7 = arith.constant 0 : index
    %c0_8 = arith.constant 0 : index
    %8 = vector.load %arg5[%c0_7, %c0_8] : memref<512x32xf32, #tpu.memory_space<vmem>>, vector<512x32xf32>
    tpu.vector_store %arg5[%c0_7, %c0_8], %7 {strides = array<i32>} : memref<512x32xf32, #tpu.memory_space<vmem>>, vector<512x32xf32>,
    return
  }
  func.func @transform_0(%arg0: i32) -> (i32, i32) {
    %c0_i32 = arith.constant 0 : i32
    %c0_i32_0 = arith.constant 0 : i32
    return %arg0, %c0_i32 : i32, i32
  }
  func.func @transform_1(%arg0: i32) -> (i32, i32) {
    %c0_i32 = arith.constant 0 : i32
    %c0_i32_0 = arith.constant 0 : i32
    %c0_i32_1 = arith.constant 0 : i32
    return %c0_i32, %c0_i32_0 : i32, i32
  }
  func.func @transform_2(%arg0: i32) -> (i32, i32) {
    %c0_i32 = arith.constant 0 : i32
    %c0_i32_0 = arith.constant 0 : i32
    %c0_i32_1 = arith.constant 0 : i32
    return %c0_i32, %c0_i32_0 : i32, i32
  }
  func.func @transform_3(%arg0: i32) -> (i32, i32) {
    %c0_i32 = arith.constant 0 : i32
    %c0_i32_0 = arith.constant 0 : i32
    return %arg0, %c0_i32 : i32, i32
  }
  func.func @transform_4(%arg0: i32) -> (i32, i32) {
    %c0_i32 = arith.constant 0 : i32
    %c0_i32_0 = arith.constant 0 : i32
    return %arg0, %c0_i32 : i32, i32
  }
}

</mosaic_0001>

<bundles_post_ra>
// kernel: transformer_block_forward.7
= control target key start
LH: loop header
LB: loop body
LE: loop exit
PB: predicated region body
PF: predicated region fallthrough
CT: control target
= control target key end

     0   :  { %vm210_vm0 = vcmask 261120   ;;  %vm670_vm1 = vcmask 523264   ;;  %s1335_s1 = inlined_call_operand.vmem [shape: f32[128,32], index: 1, kind: input, shape index: {}]   ;;  %s1336_s0 = inlined_call_operand.vmem [shape: f32[128,128], index: 0, kind: input, shape index: {}]   ;;  %s1337_s2 = inlined_call_operand.vmem [shape: f32[1,32], index: 2, kind: input, shape index: {}]   ;;  %s1338_s5 = inlined_call_operand.vmem [shape: f32[32,64], index: 5, kind: input, shape index: {}]   ;;  %s1339_s3 = inlined_call_operand.vmem [shape: f32[1,32], index: 3, kind: input, shape index: {}]   ;;  %s1340_s4 = inlined_call_operand.vmem [shape: f32[1,32], index: 4, kind: input, shape index: {}]   ;;  %s1341_s6 = inlined_call_operand.vmem [shape: f32[1,64], index: 6, kind: input, shape index: {}]   ;;  %s1342_s7 = inlined_call_operand.vmem [shape: f32[128,64], index: 7, kind: output, shape index: {}]  }
   0x1   :  { %v57_v0 = vld [vmem:[%s1335_s1 + $0x78] sm:$0xff]  ;;  %v56_v1 = vld [vmem:[%s1335_s1 + $0x70] sm:$0xff]  ;;  %v55_v2 = vld [vmem:[%s1335_s1 + $0x68] sm:$0xff] }
   0x2   :  { %763 = vmatprep.subr.mxu0 %v57_v0  ;;  %v54_v3 = vld [vmem:[%s1335_s1 + $0x60] sm:$0xff]  ;;  %v53_v5 = vld [vmem:[%s1335_s1 + $0x58] sm:$0xff]  ;;  %v52_v6 = vld [vmem:[%s1335_s1 + $0x50] sm:$0xff] }
   0x3   :  { %764 = vmatpush3.msra.mxu0 %v57_v0  ;;  %v26_v4 = vld [vmem:[%s1336_s0] sm:$0xff]  ;;  %v51_v7 = vld [vmem:[%s1335_s1 + $0x48] sm:$0xff]  ;;  %v49_v9 = vld [vmem:[%s1335_s1 + $0x38] sm:$0xff] }
   0x4   :  { %765 = vmatprep.subr.mxu0 %v56_v1  ;;  %795 = vmatprep.mubr.f32.mxu0 %v26_v4  ;;  %v50_v8 = vld [vmem:[%s1335_s1 + $0x40] sm:$0xff]  ;;  %v48_v10 = vld [vmem:[%s1335_s1 + $0x30] sm:$0xff]  ;;  %v47_v11 = vld [vmem:[%s1335_s1 + $0x28] sm:$0xff] }
   0x5   :  { %766 = vmatpush3.msra.mxu0 %v56_v1  ;;  %v46_v12 = vld [vmem:[%s1335_s1 + $0x20] sm:$0xff]  ;;  %v45_v13 = vld [vmem:[%s1335_s1 + $0x18] sm:$0xff]  ;;  %v44_v14 = vld [vmem:[%s1335_s1 + $0x10] sm:$0xff] }
   0x6   :  { %767 = vmatprep.subr.mxu0 %v55_v2  ;;  %v43_v15 = vld [vmem:[%s1335_s1 + $0x8] sm:$0xff]  ;;  %v42_v16 = vld [vmem:[%s1335_s1] sm:$0xff]  ;;  %v28_v18 = vld [vmem:[%s1336_s0 + $0x10] sm:$0xff] }
   0x7   :  { %768 = vmatpush3.msra.mxu0 %v55_v2  ;;  %v27_v17 = vld [vmem:[%s1336_s0 + $0x8] sm:$0xff]  ;;  %v29_v19 = vld [vmem:[%s1336_s0 + $0x18] sm:$0xff]  ;;  %v30_v20 = vld [vmem:[%s1336_s0 + $0x20] sm:$0xff] }
   0x8   :  { %769 = vmatprep.subr.mxu0 %v54_v3  ;;  %v31_v21 = vld [vmem:[%s1336_s0 + $0x28] sm:$0xff]  ;;  %v32_v22 = vld [vmem:[%s1336_s0 + $0x30] sm:$0xff]  ;;  %v33_v23 = vld [vmem:[%s1336_s0 + $0x38] sm:$0xff] }
   0x9   :  { %770 = vmatpush3.msra.mxu0 %v54_v3  ;;  %v34_v24 = vld [vmem:[%s1336_s0 + $0x40] sm:$0xff]  ;;  %v35_v25 = vld [vmem:[%s1336_s0 + $0x48] sm:$0xff]  ;;  %v36_v26 = vld [vmem:[%s1336_s0 + $0x50] sm:$0xff] }
   0xa   :  { %771 = vmatprep.subr.mxu0 %v53_v5  ;;  %v37_v27 = vld [vmem:[%s1336_s0 + $0x58] sm:$0xff]  ;;  %v38_v28 = vld [vmem:[%s1336_s0 + $0x60] sm:$0xff]  ;;  %v39_v29 = vld [vmem:[%s1336_s0 + $0x68] sm:$0xff] }
   0xb   :  { %772 = vmatpush3.msra.mxu0 %v53_v5  ;;  %v40_v30 = vld [vmem:[%s1336_s0 + $0x70] sm:$0xff]  ;;  %v41_v31 = vld [vmem:[%s1336_s0 + $0x78] sm:$0xff]  ;;  %v691_v33 = vld [vmem:[%s1337_s2] ss:$0 sm:$0xff] }
   0xc   :  { %773 = vmatprep.subr.mxu0 %v52_v6 }
   0xd   :  { %774 = vmatpush3.msra.mxu0 %v52_v6 }
   0xe   :  { %775 = vmatprep.subr.mxu0 %v51_v7 }
   0xf   :  { %776 = vmatpush3.msra.mxu0 %v51_v7 }
  0x10   :  { %777 = vmatprep.subr.mxu0 %v50_v8 }
  0x11   :  { %778 = vmatpush3.msra.mxu0 %v50_v8 }
  0x12   :  { %779 = vmatprep.subr.mxu0 %v49_v9 }
  0x13   :  { %780 = vmatpush3.msra.mxu0 %v49_v9 }
  0x14   :  { %781 = vmatprep.subr.mxu0 %v48_v10 }
  0x15   :  { %782 = vmatpush3.msra.mxu0 %v48_v10 }
  0x16   :  { %783 = vmatprep.subr.mxu0 %v47_v11 }
  0x17   :  { %784 = vmatpush3.msra.mxu0 %v47_v11 }
  0x18   :  { %785 = vmatprep.subr.mxu0 %v46_v12 }
  0x19   :  { %786 = vmatpush3.msra.mxu0 %v46_v12 }
  0x1a   :  { %787 = vmatprep.subr.mxu0 %v45_v13 }
  0x1b   :  { %788 = vmatpush3.msra.mxu0 %v45_v13 }
  0x1c   :  { %789 = vmatprep.subr.mxu0 %v44_v14 }
  0x1d   :  { %790 = vmatpush3.msra.mxu0 %v44_v14 }
  0x1e   :  { %791 = vmatprep.subr.mxu0 %v43_v15 }
  0x1f   :  { %792 = vmatpush3.msra.mxu0 %v43_v15 }
  0x20   :  { %793 = vmatprep.subr.mxu0 %v42_v16 }
  0x21   :  { %794 = vmatpush3.msra.mxu0 %v42_v16 }
  0x22   :  { %796 = vmatmul.mubr.f32.vlgmr.msra.gmra.mxu0 %v27_v17 }
  0x23   :  { %798 = vmatprep.mubr.f32.mxu0 %v28_v18 }
  0x26   :  { %799 = vmatmul.mubr.f32.gmra.mxu0 %v29_v19 }
  0x27   :  { %801 = vmatprep.mubr.f32.mxu0 %v30_v20 }
  0x2a   :  { %802 = vmatmul.mubr.f32.gmra.mxu0 %v31_v21 }
  0x2b   :  { %804 = vmatprep.mubr.f32.mxu0 %v32_v22 }
  0x2e   :  { %805 = vmatmul.mubr.f32.gmra.mxu0 %v33_v23 }
  0x2f   :  { %807 = vmatprep.mubr.f32.mxu0 %v34_v24 }
  0x32   :  { %808 = vmatmul.mubr.f32.gmra.mxu0 %v35_v25 }
  0x33   :  { %810 = vmatprep.mubr.f32.mxu0 %v36_v26 }
  0x36   :  { %811 = vmatmul.mubr.f32.gmra.mxu0 %v37_v27 }
  0x37   :  { %813 = vmatprep.mubr.f32.mxu0 %v38_v28 }
  0x3a   :  { %814 = vmatmul.mubr.f32.gmra.mxu0 %v39_v29 }
  0x3b   :  { %816 = vmatprep.mubr.f32.mxu0 %v40_v30 }
  0x3e   :  { %817 = vmatmul.mubr.f32.gmra.mxu0 %v41_v31 }
  0xe2   :  { %v797_v32 = vpop.f32.mrf.mxu0 }
  0xe3   :  { %v1024_v37 = vadd.f32 %v797_v32, %v691_v33 }
  0xe4   :  { %v131_v34 = vpop.f32.mrf.mxu0 }
  0xe5   :  { %v1022_v35 = vadd.f32 %v691_v33, %v131_v34  ;;  %v214_v44 = vsel %vm210_vm0, %v1024_v37, 0.0 }
  0xe6   :  { %v800_v36 = vpop.f32.mrf.mxu0 }
  0xe7   :  { %v211_v38 = vsel %vm210_vm0, %v1022_v35, 0.0  ;;  %v1030_v42 = vadd.f32 %v800_v36, %v691_v33 }
  0xe8   :  { %v141_v39 = vpop.f32.mrf.mxu0  ;;  %212 = vadd.xlane.f32.xlu0 %v211_v38 }
  0xe9   :  { %v1028_v40 = vadd.f32 %v691_v33, %v141_v39  ;;  %v220_v49 = vsel %vm210_vm0, %v1030_v42, 0.0 }
  0xea   :  { %v803_v41 = vpop.f32.mrf.mxu0 }
  0xeb   :  { %v217_v43 = vsel %vm210_vm0, %v1028_v40, 0.0  ;;  %v1038_v48 = vadd.f32 %v803_v41, %v691_v33 }
  0xec   :  { %v151_v45 = vpop.f32.mrf.mxu0  ;;  %218 = vadd.xlane.f32.xlu1 %v217_v43  ;;  %215 = vadd.xlane.f32.xlu0 %v214_v44 }
  0xed   :  { %v1036_v46 = vadd.f32 %v691_v33, %v151_v45  ;;  %v226_v55 = vsel %vm210_vm0, %v1038_v48, 0.0 }
  0xee   :  { %v806_v47 = vpop.f32.mrf.mxu0 }
  0xef   :  { %v223_v50 = vsel %vm210_vm0, %v1036_v46, 0.0  ;;  %v1046_v54 = vadd.f32 %v806_v47, %v691_v33 }
  0xf0   :  { %v161_v51 = vpop.f32.mrf.mxu0  ;;  %221 = vadd.xlane.f32.xlu1 %v220_v49  ;;  %224 = vadd.xlane.f32.xlu0 %v223_v50 }
  0xf1   :  { %v1044_v52 = vadd.f32 %v691_v33, %v161_v51  ;;  %v232_v61 = vsel %vm210_vm0, %v1046_v54, 0.0 }
  0xf2   :  { %v809_v53 = vpop.f32.mrf.mxu0 }
  0xf3   :  { %v229_v56 = vsel %vm210_vm0, %v1044_v52, 0.0  ;;  %v1054_v60 = vadd.f32 %v809_v53, %v691_v33 }
  0xf4   :  { %v171_v57 = vpop.f32.mrf.mxu0  ;;  %227 = vadd.xlane.f32.xlu1 %v226_v55  ;;  %230 = vadd.xlane.f32.xlu0 %v229_v56 }
  0xf5   :  { %v1052_v58 = vadd.f32 %v691_v33, %v171_v57  ;;  %v238_v3 = vsel %vm210_vm0, %v1054_v60, 0.0 }
  0xf6   :  { %v812_v59 = vpop.f32.mrf.mxu0 }
  0xf7   :  { %v235_v62 = vsel %vm210_vm0, %v1052_v58, 0.0  ;;  %v1062_v2 = vadd.f32 %v812_v59, %v691_v33 }
  0xf8   :  { %v181_v63 = vpop.f32.mrf.mxu0  ;;  %233 = vadd.xlane.f32.xlu1 %v232_v61  ;;  %236 = vadd.xlane.f32.xlu0 %v235_v62 }
  0xf9   :  { %v1060_v0 = vadd.f32 %v691_v33, %v181_v63  ;;  %v244_v9 = vsel %vm210_vm0, %v1062_v2, 0.0 }
  0xfa   :  { %v815_v1 = vpop.f32.mrf.mxu0 }
  0xfb   :  { %v241_v4 = vsel %vm210_vm0, %v1060_v0, 0.0  ;;  %v1070_v8 = vadd.f32 %v815_v1, %v691_v33 }
  0xfc   :  { %v191_v5 = vpop.f32.mrf.mxu0  ;;  %239 = vadd.xlane.f32.xlu1 %v238_v3  ;;  %242 = vadd.xlane.f32.xlu0 %v241_v4 }
  0xfd   :  { %v1068_v6 = vadd.f32 %v691_v33, %v191_v5  ;;  %v250_v14 = vsel %vm210_vm0, %v1070_v8, 0.0 }
  0xfe   :  { %v818_v7 = vpop.f32.mrf.mxu0 }
  0xff   :  { %v247_v10 = vsel %vm210_vm0, %v1068_v6, 0.0  ;;  %v1078_v13 = vadd.f32 %v818_v7, %v691_v33 }
 0x100   :  { %v201_v11 = vpop.f32.mrf.mxu0  ;;  %245 = vadd.xlane.f32.xlu1 %v244_v9  ;;  %248 = vadd.xlane.f32.xlu0 %v247_v10 }
 0x101   :  { %v1076_v12 = vadd.f32 %v691_v33, %v201_v11  ;;  %v256_v16 = vsel %vm210_vm0, %v1078_v13, 0.0 }
 0x103   :  { %v253_v15 = vsel %vm210_vm0, %v1076_v12, 0.0 }
 0x104   :  { %251 = vadd.xlane.f32.xlu1 %v250_v14  ;;  %254 = vadd.xlane.f32.xlu0 %v253_v15 }
 0x108   :  { %257 = vadd.xlane.f32.xlu1 %v256_v16 }
 0x171   :  { %v213_v17 = vpop.xlane.xlu0 %212 }
 0x172   :  { %v260_v18 = vmul.f32 0.03125, %v213_v17 }
 0x174   :  { %v1087_v19 = vsub.f32 %v1022_v35, %v260_v18 }
 0x175   :  { %v219_v20 = vpop.xlane.xlu1 %218  ;;  %v216_v21 = vpop.xlane.xlu0 %215 }
 0x176   :  { %v262_v22 = vmul.f32 0.03125, %v219_v20  ;;  %v261_v23 = vmul.f32 0.03125, %v216_v21  ;;  %v292_v24 = vmul.f32 %v1087_v19, %v1087_v19 }
 0x178   :  { %v1092_v25 = vsub.f32 %v1028_v40, %v262_v22  ;;  %v1095_v26 = vsub.f32 %v1024_v37, %v261_v23  ;;  %v308_v27 = vsel %vm210_vm0, %v292_v24, 0.0 }
 0x179   :  { %v222_v28 = vpop.xlane.xlu1 %221  ;;  %309 = vadd.xlane.f32.xlu0 %v308_v27  ;;  %v225_v29 = vpop.xlane.xlu0 %224 }
 0x17a   :  { %v263_v30 = vmul.f32 0.03125, %v222_v28  ;;  %v264_v31 = vmul.f32 0.03125, %v225_v29  ;;  %v294_v32 = vmul.f32 %v1092_v25, %v1092_v25  ;;  %v293_v33 = vmul.f32 %v1095_v26, %v1095_v26 }
 0x17c   :  { %v1103_v34 = vsub.f32 %v1030_v42, %v263_v30  ;;  %v1106_v35 = vsub.f32 %v1036_v46, %v264_v31  ;;  %v314_v36 = vsel %vm210_vm0, %v294_v32, 0.0  ;;  %v311_v37 = vsel %vm210_vm0, %v293_v33, 0.0 }
 0x17d   :  { %v228_v38 = vpop.xlane.xlu1 %227  ;;  %315 = vadd.xlane.f32.xlu0 %v314_v36  ;;  %312 = vadd.xlane.f32.xlu1 %v311_v37  ;;  %v231_v39 = vpop.xlane.xlu0 %230 }
 0x17e   :  { %v265_v40 = vmul.f32 0.03125, %v228_v38  ;;  %v266_v41 = vmul.f32 0.03125, %v231_v39  ;;  %v295_v43 = vmul.f32 %v1103_v34, %v1103_v34  ;;  %v296_v42 = vmul.f32 %v1106_v35, %v1106_v35  ;;  %v469_v38 = vld [vmem:[%s1338_s5 + $0x18] sm:$0xff] }
 0x17f   :  { %819 = vmatprep.subr.mxu1 %v469_v38 }
 0x180   :  { %v1115_v44 = vsub.f32 %v1038_v48, %v265_v40  ;;  %v1118_v45 = vsub.f32 %v1044_v52, %v266_v41  ;;  %v317_v46 = vsel %vm210_vm0, %v295_v43, 0.0  ;;  %v320_v47 = vsel %vm210_vm0, %v296_v42, 0.0  ;;  %820 = vmatpush3.msra.mxu1 %v469_v38  ;;  %v467_v40 = vld [vmem:[%s1338_s5 + $0x8] sm:$0xff]  ;;  %v466_v41 = vld [vmem:[%s1338_s5] sm:$0xff] }
 0x181   :  { %v234_v49 = vpop.xlane.xlu1 %233  ;;  %318 = vadd.xlane.f32.xlu1 %v317_v46  ;;  %321 = vadd.xlane.f32.xlu0 %v320_v47  ;;  %v237_v50 = vpop.xlane.xlu0 %236 }
 0x182   :  { %v267_v51 = vmul.f32 0.03125, %v234_v49  ;;  %v268_v53 = vmul.f32 0.03125, %v237_v50  ;;  %v297_v55 = vmul.f32 %v1115_v44, %v1115_v44  ;;  %v298_v48 = vmul.f32 %v1118_v45, %v1118_v45 }
 0x184   :  { %v1127_v56 = vsub.f32 %v1046_v54, %v267_v51  ;;  %v1130_v52 = vsub.f32 %v1052_v58, %v268_v53  ;;  %v323_v57 = vsel %vm210_vm0, %v297_v55, 0.0  ;;  %v326_v59 = vsel %vm210_vm0, %v298_v48, 0.0 }
 0x185   :  { %v240_v61 = vpop.xlane.xlu1 %239  ;;  %324 = vadd.xlane.f32.xlu1 %v323_v57  ;;  %327 = vadd.xlane.f32.xlu0 %v326_v59  ;;  %v243_v62 = vpop.xlane.xlu0 %242 }
 0x186   :  { %v269_v63 = vmul.f32 0.03125, %v240_v61  ;;  %v270_v1 = vmul.f32 0.03125, %v243_v62  ;;  %v299_v3 = vmul.f32 %v1127_v56, %v1127_v56  ;;  %v300_v54 = vmul.f32 %v1130_v52, %v1130_v52 }
 0x188   :  { %v1139_v4 = vsub.f32 %v1054_v60, %v269_v63  ;;  %v1142_v58 = vsub.f32 %v1060_v0, %v270_v1  ;;  %v329_v5 = vsel %vm210_vm0, %v299_v3, 0.0  ;;  %v332_v7 = vsel %vm210_vm0, %v300_v54, 0.0 }
 0x189   :  { %v246_v9 = vpop.xlane.xlu1 %245  ;;  %330 = vadd.xlane.f32.xlu1 %v329_v5  ;;  %333 = vadd.xlane.f32.xlu0 %v332_v7  ;;  %v249_v10 = vpop.xlane.xlu0 %248 }
 0x18a   :  { %v271_v11 = vmul.f32 0.03125, %v246_v9  ;;  %v272_v14 = vmul.f32 0.03125, %v249_v10  ;;  %v301_v15 = vmul.f32 %v1139_v4, %v1139_v4  ;;  %v302_v60 = vmul.f32 %v1142_v58, %v1142_v58 }
 0x18c   :  { %v1151_v16 = vsub.f32 %v1062_v2, %v271_v11  ;;  %v1154_v0 = vsub.f32 %v1068_v6, %v272_v14  ;;  %v335_v17 = vsel %vm210_vm0, %v301_v15, 0.0  ;;  %v338_v18 = vsel %vm210_vm0, %v302_v60, 0.0 }
 0x18d   :  { %v252_v20 = vpop.xlane.xlu1 %251  ;;  %336 = vadd.xlane.f32.xlu1 %v335_v17  ;;  %339 = vadd.xlane.f32.xlu0 %v338_v18  ;;  %v255_v21 = vpop.xlane.xlu0 %254  ;;  %v1197_v17 = vld [vmem:[%s1339_s3] ss:$0 sm:$0xff] }
 0x18e   :  { %v273_v22 = vmul.f32 0.03125, %v252_v20  ;;  %v274_v23 = vmul.f32 0.03125, %v255_v21  ;;  %v303_v24 = vmul.f32 %v1151_v16, %v1151_v16  ;;  %v304_v2 = vmul.f32 %v1154_v0, %v1154_v0 }
 0x190   :  { %v1163_v27 = vsub.f32 %v1070_v8, %v273_v22  ;;  %v1166_v6 = vsub.f32 %v1076_v12, %v274_v23  ;;  %v341_v28 = vsel %vm210_vm0, %v303_v24, 0.0  ;;  %v344_v29 = vsel %vm210_vm0, %v304_v2, 0.0  ;;  %v1203_v24 = vld [vmem:[%s1340_s4] ss:$0 sm:$0xff] }
 0x191   :  { %v258_v30 = vpop.xlane.xlu1 %257  ;;  %342 = vadd.xlane.f32.xlu1 %v341_v28  ;;  %345 = vadd.xlane.f32.xlu0 %v344_v29 }
 0x192   :  { %v275_v31 = vmul.f32 0.03125, %v258_v30  ;;  %v305_v32 = vmul.f32 %v1163_v27, %v1163_v27  ;;  %v306_v33 = vmul.f32 %v1166_v6, %v1166_v6 }
 0x194   :  { %v1175_v8 = vsub.f32 %v1078_v13, %v275_v31  ;;  %v347_v12 = vsel %vm210_vm0, %v305_v32, 0.0  ;;  %v350_v36 = vsel %vm210_vm0, %v306_v33, 0.0  ;;  %v468_v13 = vld [vmem:[%s1338_s5 + $0x10] sm:$0xff] }
 0x195   :  { %348 = vadd.xlane.f32.xlu1 %v347_v12  ;;  %351 = vadd.xlane.f32.xlu0 %v350_v36 }
 0x196   :  { %v307_v37 = vmul.f32 %v1175_v8, %v1175_v8  ;;  %821 = vmatprep.subr.mxu1 %v468_v13 }
 0x197   :  { %822 = vmatpush3.msra.mxu1 %v468_v13 }
 0x198   :  { %v353_v39 = vsel %vm210_vm0, %v307_v37, 0.0  ;;  %823 = vmatprep.subr.mxu1 %v467_v40 }
 0x199   :  { %354 = vadd.xlane.f32.xlu1 %v353_v39  ;;  %824 = vmatpush3.msra.mxu1 %v467_v40 }
 0x19a   :  { %825 = vmatprep.subr.mxu1 %v466_v41 }
 0x19b   :  { %826 = vmatpush3.msra.mxu1 %v466_v41 }
 0x202   :  { %v310_v43 = vpop.xlane.xlu0 %309 }
 0x203   :  { %v356_v42 = vmul.f32 0.03125, %v310_v43 }
 0x205   :  { %v372_v46 = vadd.f32 1e-05, %v356_v42 }
 0x206   :  { %v313_v47 = vpop.xlane.xlu1 %312  ;;  %v316_v49 = vpop.xlane.xlu0 %315 }
 0x207   :  { %851 = vrsqrt.f32 %v372_v46  ;;  %v357_v50 = vmul.f32 0.03125, %v313_v47  ;;  %v358_v51 = vmul.f32 0.03125, %v316_v49 }
 0x209   :  { %v373_v53 = vadd.f32 1e-05, %v357_v50  ;;  %v374_v55 = vadd.f32 1e-05, %v358_v51 }
 0x20a   :  { %v319_v48 = vpop.xlane.xlu1 %318  ;;  %v322_v57 = vpop.xlane.xlu0 %321 }
 0x20b   :  { %853 = vrsqrt.f32 %v373_v53  ;;  %v359_v59 = vmul.f32 0.03125, %v319_v48  ;;  %v360_v61 = vmul.f32 0.03125, %v322_v57 }
 0x20c   :  { %855 = vrsqrt.f32 %v374_v55 }
 0x20d   :  { %v375_v62 = vadd.f32 1e-05, %v359_v59  ;;  %v376_v63 = vadd.f32 1e-05, %v360_v61 }
 0x20e   :  { %v325_v1 = vpop.xlane.xlu1 %324  ;;  %v328_v3 = vpop.xlane.xlu0 %327 }
 0x20f   :  { %857 = vrsqrt.f32 %v375_v62  ;;  %v361_v54 = vmul.f32 0.03125, %v325_v1  ;;  %v362_v5 = vmul.f32 0.03125, %v328_v3 }
 0x210   :  { %859 = vrsqrt.f32 %v376_v63 }
 0x211   :  { %v377_v7 = vadd.f32 1e-05, %v361_v54  ;;  %v378_v9 = vadd.f32 1e-05, %v362_v5 }
 0x212   :  { %v331_v10 = vpop.xlane.xlu1 %330  ;;  %v334_v11 = vpop.xlane.xlu0 %333 }
 0x213   :  { %861 = vrsqrt.f32 %v377_v7  ;;  %v363_v14 = vmul.f32 0.03125, %v331_v10  ;;  %v364_v15 = vmul.f32 0.03125, %v334_v11 }
 0x214   :  { %v852_v60 = vpop.eup %851  ;;  %863 = vrsqrt.f32 %v378_v9 }
 0x215   :  { %v379_v18 = vadd.f32 1e-05, %v363_v14  ;;  %v380_v20 = vadd.f32 1e-05, %v364_v15  ;;  %v404_v21 = vmul.f32 %v852_v60, %v1087_v19 }
 0x216   :  { %v337_v22 = vpop.xlane.xlu1 %336  ;;  %v340_v23 = vpop.xlane.xlu0 %339 }
 0x217   :  { %865 = vrsqrt.f32 %v379_v18  ;;  %v365_v2 = vmul.f32 0.03125, %v337_v22  ;;  %v366_v28 = vmul.f32 0.03125, %v340_v23  ;;  %v427_v29 = vmul.f32 %v1197_v17, %v404_v21 }
 0x218   :  { %v854_v30 = vpop.eup %853  ;;  %867 = vrsqrt.f32 %v380_v20 }
 0x219   :  { %v856_v31 = vpop.eup %855  ;;  %v381_v32 = vadd.f32 1e-05, %v365_v2  ;;  %v382_v33 = vadd.f32 1e-05, %v366_v28  ;;  %v450_v12 = vadd.f32 %v1203_v24, %v427_v29  ;;  %v405_v19 = vmul.f32 %v854_v30, %v1095_v26 }
 0x21a   :  { %v343_v36 = vpop.xlane.xlu1 %342  ;;  %v346_v37 = vpop.xlane.xlu0 %345  ;;  %v406_v38 = vmul.f32 %v856_v31, %v1092_v25 }
 0x21b   :  { %869 = vrsqrt.f32 %v381_v32  ;;  %v367_v39 = vmul.f32 0.03125, %v343_v36  ;;  %v368_v13 = vmul.f32 0.03125, %v346_v37  ;;  %827 = vmatprep.mubr.msk.f32.mxu1 %vm210_vm0, %v450_v12  ;;  %v428_v40 = vmul.f32 %v1197_v17, %v405_v19 }
 0x21c   :  { %v858_v41 = vpop.eup %857  ;;  %871 = vrsqrt.f32 %v382_v33  ;;  %v429_v43 = vmul.f32 %v1197_v17, %v406_v38 }
 0x21d   :  { %v860_v42 = vpop.eup %859  ;;  %v383_v46 = vadd.f32 1e-05, %v367_v39  ;;  %v384_v47 = vadd.f32 1e-05, %v368_v13  ;;  %v451_v26 = vadd.f32 %v1203_v24, %v428_v40  ;;  %v407_v49 = vmul.f32 %v858_v41, %v1103_v34 }
 0x21e   :  { %v349_v50 = vpop.xlane.xlu1 %348  ;;  %v352_v25 = vpop.xlane.xlu0 %351  ;;  %v452_v51 = vadd.f32 %v1203_v24, %v429_v43  ;;  %v408_v53 = vmul.f32 %v860_v42, %v1106_v35 }
 0x21f   :  { %873 = vrsqrt.f32 %v383_v46  ;;  %v369_v55 = vmul.f32 0.03125, %v349_v50  ;;  %v370_v48 = vmul.f32 0.03125, %v352_v25  ;;  %828 = vmatmul.mubr.msk.f32.vlgmr.msra.gmra.mxu1 %vm210_vm0, %v451_v26  ;;  %v430_v57 = vmul.f32 %v1197_v17, %v407_v49  ;;  %v694_v26 = vld [vmem:[%s1341_s6] ss:$0 sm:$0xff] }
 0x220   :  { %v862_v59 = vpop.eup %861  ;;  %875 = vrsqrt.f32 %v384_v47  ;;  %830 = vmatprep.mubr.msk.f32.mxu1 %vm210_vm0, %v452_v51  ;;  %v431_v61 = vmul.f32 %v1197_v17, %v408_v53 }
 0x221   :  { %v864_v34 = vpop.eup %863  ;;  %v385_v62 = vadd.f32 1e-05, %v369_v55  ;;  %v386_v63 = vadd.f32 1e-05, %v370_v48  ;;  %v453_v1 = vadd.f32 %v1203_v24, %v430_v57  ;;  %v409_v35 = vmul.f32 %v862_v59, %v1115_v44 }
 0x222   :  { %v355_v3 = vpop.xlane.xlu1 %354  ;;  %v454_v54 = vadd.f32 %v1203_v24, %v431_v61  ;;  %v410_v5 = vmul.f32 %v864_v34, %v1118_v45 }
 0x223   :  { %877 = vrsqrt.f32 %v385_v62  ;;  %v371_v7 = vmul.f32 0.03125, %v355_v3  ;;  %831 = vmatmul.mubr.msk.f32.gmra.mxu1 %vm210_vm0, %v453_v1  ;;  %v432_v9 = vmul.f32 %v1197_v17, %v409_v35 }
 0x224   :  { %v866_v10 = vpop.eup %865  ;;  %879 = vrsqrt.f32 %v386_v63  ;;  %833 = vmatprep.mubr.msk.f32.mxu1 %vm210_vm0, %v454_v54  ;;  %v433_v11 = vmul.f32 %v1197_v17, %v410_v5 }
 0x225   :  { %v868_v14 = vpop.eup %867  ;;  %v387_v15 = vadd.f32 1e-05, %v371_v7  ;;  %v455_v44 = vadd.f32 %v1203_v24, %v432_v9  ;;  %v411_v60 = vmul.f32 %v866_v10, %v1127_v56 }
 0x226   :  { %v456_v45 = vadd.f32 %v1203_v24, %v433_v11  ;;  %v412_v18 = vmul.f32 %v868_v14, %v1130_v52 }
 0x227   :  { %881 = vrsqrt.f32 %v387_v15  ;;  %834 = vmatmul.mubr.msk.f32.gmra.mxu1 %vm210_vm0, %v455_v44  ;;  %v434_v20 = vmul.f32 %v1197_v17, %v411_v60 }
 0x228   :  { %v870_v21 = vpop.eup %869  ;;  %836 = vmatprep.mubr.msk.f32.mxu1 %vm210_vm0, %v456_v45  ;;  %v435_v22 = vmul.f32 %v1197_v17, %v412_v18 }
 0x229   :  { %v872_v23 = vpop.eup %871  ;;  %v457_v2 = vadd.f32 %v1203_v24, %v434_v20  ;;  %v413_v28 = vmul.f32 %v870_v21, %v1139_v4 }
 0x22a   :  { %v458_v56 = vadd.f32 %v1203_v24, %v435_v22  ;;  %v414_v29 = vmul.f32 %v872_v23, %v1142_v58 }
 0x22b   :  { %837 = vmatmul.mubr.msk.f32.gmra.mxu1 %vm210_vm0, %v457_v2  ;;  %v436_v52 = vmul.f32 %v1197_v17, %v413_v28 }
 0x22c   :  { %v874_v30 = vpop.eup %873  ;;  %839 = vmatprep.mubr.msk.f32.mxu1 %vm210_vm0, %v458_v56  ;;  %v437_v31 = vmul.f32 %v1197_v17, %v414_v29 }
 0x22d   :  { %v876_v32 = vpop.eup %875  ;;  %v459_v33 = vadd.f32 %v1203_v24, %v436_v52  ;;  %v415_v12 = vmul.f32 %v874_v30, %v1151_v16 }
 0x22e   :  { %v460_v4 = vadd.f32 %v1203_v24, %v437_v31  ;;  %v416_v19 = vmul.f32 %v876_v32, %v1154_v0 }
 0x22f   :  { %840 = vmatmul.mubr.msk.f32.gmra.mxu1 %vm210_vm0, %v459_v33  ;;  %v438_v58 = vmul.f32 %v1197_v17, %v415_v12 }
 0x230   :  { %v878_v36 = vpop.eup %877  ;;  %842 = vmatprep.mubr.msk.f32.mxu1 %vm210_vm0, %v460_v4  ;;  %v439_v37 = vmul.f32 %v1197_v17, %v416_v19 }
 0x231   :  { %v880_v38 = vpop.eup %879  ;;  %v461_v39 = vadd.f32 %v1203_v24, %v438_v58  ;;  %v417_v13 = vmul.f32 %v878_v36, %v1163_v27 }
 0x232   :  { %v462_v16 = vadd.f32 %v1203_v24, %v439_v37  ;;  %v418_v40 = vmul.f32 %v880_v38, %v1166_v6 }
 0x233   :  { %843 = vmatmul.mubr.msk.f32.gmra.mxu1 %vm210_vm0, %v461_v39  ;;  %v440_v0 = vmul.f32 %v1197_v17, %v417_v13 }
 0x234   :  { %v882_v41 = vpop.eup %881  ;;  %845 = vmatprep.mubr.msk.f32.mxu1 %vm210_vm0, %v462_v16  ;;  %v441_v43 = vmul.f32 %v1197_v17, %v418_v40 }
 0x235   :  { %v463_v42 = vadd.f32 %v1203_v24, %v440_v0  ;;  %v419_v46 = vmul.f32 %v882_v41, %v1175_v8 }
 0x236   :  { %v464_v47 = vadd.f32 %v1203_v24, %v441_v43 }
 0x237   :  { %846 = vmatmul.mubr.msk.f32.gmra.mxu1 %vm210_vm0, %v463_v42  ;;  %v442_v27 = vmul.f32 %v1197_v17, %v419_v46 }
 0x238   :  { %848 = vmatprep.mubr.msk.f32.mxu1 %vm210_vm0, %v464_v47 }
 0x239   :  { %v465_v6 = vadd.f32 %v1203_v24, %v442_v27 }
 0x23b   :  { %849 = vmatmul.mubr.msk.f32.gmra.mxu1 %vm210_vm0, %v465_v6 }
 0x2df   :  { %v829_v49 = vpop.f32.mrf.mxu1 }
 0x2e0   :  { %v597_v50 = vadd.f32 %v829_v49, %v694_v26 }
 0x2e1   :  { %v591_v8 = vpop.f32.mrf.mxu1 }
 0x2e2   :  { %672 = vst.msk [vmem:[%s1342_s7 + $0x8] sm:$0xff] %vm670_vm1, %v597_v50  ;;  %v592_v17 = vadd.f32 %v694_v26, %v591_v8 }
 0x2e3   :  { %v832_v25 = vpop.f32.mrf.mxu1 }
 0x2e4   :  { %671 = vst.msk [vmem:[%s1342_s7] sm:$0xff] %vm670_vm1, %v592_v17  ;;  %v607_v24 = vadd.f32 %v832_v25, %v694_v26 }
 0x2e5   :  { %v601_v51 = vpop.f32.mrf.mxu1 }
 0x2e6   :  { %674 = vst.msk [vmem:[%s1342_s7 + $0x18] sm:$0xff] %vm670_vm1, %v607_v24  ;;  %v602_v53 = vadd.f32 %v694_v26, %v601_v51 }
 0x2e7   :  { %v835_v55 = vpop.f32.mrf.mxu1 }
 0x2e8   :  { %673 = vst.msk [vmem:[%s1342_s7 + $0x10] sm:$0xff] %vm670_vm1, %v602_v53  ;;  %v617_v48 = vadd.f32 %v835_v55, %v694_v26 }
 0x2e9   :  { %v611_v57 = vpop.f32.mrf.mxu1 }
 0x2ea   :  { %676 = vst.msk [vmem:[%s1342_s7 + $0x28] sm:$0xff] %vm670_vm1, %v617_v48  ;;  %v612_v59 = vadd.f32 %v694_v26, %v611_v57 }
 0x2eb   :  { %v838_v61 = vpop.f32.mrf.mxu1 }
 0x2ec   :  { %675 = vst.msk [vmem:[%s1342_s7 + $0x20] sm:$0xff] %vm670_vm1, %v612_v59  ;;  %v627_v34 = vadd.f32 %v838_v61, %v694_v26 }
 0x2ed   :  { %v621_v62 = vpop.f32.mrf.mxu1 }
 0x2ee   :  { %678 = vst.msk [vmem:[%s1342_s7 + $0x38] sm:$0xff] %vm670_vm1, %v627_v34  ;;  %v622_v63 = vadd.f32 %v694_v26, %v621_v62 }
 0x2ef   :  { %v841_v1 = vpop.f32.mrf.mxu1 }
 0x2f0   :  { %677 = vst.msk [vmem:[%s1342_s7 + $0x30] sm:$0xff] %vm670_vm1, %v622_v63  ;;  %v637_v35 = vadd.f32 %v841_v1, %v694_v26 }
 0x2f1   :  { %v631_v3 = vpop.f32.mrf.mxu1 }
 0x2f2   :  { %680 = vst.msk [vmem:[%s1342_s7 + $0x48] sm:$0xff] %vm670_vm1, %v637_v35  ;;  %v632_v54 = vadd.f32 %v694_v26, %v631_v3 }
 0x2f3   :  { %v844_v5 = vpop.f32.mrf.mxu1 }
 0x2f4   :  { %679 = vst.msk [vmem:[%s1342_s7 + $0x40] sm:$0xff] %vm670_vm1, %v632_v54  ;;  %v647_v7 = vadd.f32 %v844_v5, %v694_v26 }
 0x2f5   :  { %v641_v9 = vpop.f32.mrf.mxu1 }
 0x2f6   :  { %682 = vst.msk [vmem:[%s1342_s7 + $0x58] sm:$0xff] %vm670_vm1, %v647_v7  ;;  %v642_v10 = vadd.f32 %v694_v26, %v641_v9 }
 0x2f7   :  { %v847_v11 = vpop.f32.mrf.mxu1 }
 0x2f8   :  { %681 = vst.msk [vmem:[%s1342_s7 + $0x50] sm:$0xff] %vm670_vm1, %v642_v10  ;;  %v657_v14 = vadd.f32 %v847_v11, %v694_v26 }
 0x2f9   :  { %v651_v15 = vpop.f32.mrf.mxu1 }
 0x2fa   :  { %684 = vst.msk [vmem:[%s1342_s7 + $0x68] sm:$0xff] %vm670_vm1, %v657_v14  ;;  %v652_v44 = vadd.f32 %v694_v26, %v651_v15 }
 0x2fb   :  { %v850_v60 = vpop.f32.mrf.mxu1 }
 0x2fc   :  { %683 = vst.msk [vmem:[%s1342_s7 + $0x60] sm:$0xff] %vm670_vm1, %v652_v44  ;;  %v667_v45 = vadd.f32 %v850_v60, %v694_v26 }
 0x2fd   :  { %v661_v18 = vpop.f32.mrf.mxu1 }
 0x2fe   :  { %686 = vst.msk [vmem:[%s1342_s7 + $0x78] sm:$0xff] %vm670_vm1, %v667_v45  ;;  %v662_v20 = vadd.f32 %v694_v26, %v661_v18 }
 0x300   :  { %685 = vst.msk [vmem:[%s1342_s7 + $0x70] sm:$0xff] %vm670_vm1, %v662_v20 }

// kernel: transformer_block_forward.6
= control target key start
LH: loop header
LB: loop body
LE: loop exit
PB: predicated region body
PF: predicated region fallthrough
CT: control target
= control target key end

     0   :  { %vm86_vm0 = vcmask 261120   ;;  %s3899_s0 = inlined_call_operand.vmem [shape: f32[512,32], index: 0, kind: input, shape index: {}]   ;;  %s3900_s3 = inlined_call_operand.vmem [shape: f32[32,32], index: 3, kind: input, shape index: {}]   ;;  %s3901_s1 = inlined_call_operand.vmem [shape: f32[1,32], index: 1, kind: input, shape index: {}]   ;;  %s3902_s2 = inlined_call_operand.vmem [shape: f32[1,32], index: 2, kind: input, shape index: {}]   ;;  %s3903_s5 = inlined_call_operand.vmem [shape: f32[512,32], index: 5, kind: output, shape index: {0}]   ;;  %s3904_s4 = inlined_call_operand.vmem [shape: f32[1,32], index: 4, kind: input, shape index: {}]   ;;  %s3905_s6 = inlined_call_operand.vmem [shape: f32[512,32], index: 6, kind: output, shape index: {1}]  }
   0x1   :  { %v2201_v0 = vld [vmem:[%s3899_s0] sm:$0xff]  ;;  %v2206_v1 = vld [vmem:[%s3899_s0 + $0x8] sm:$0xff]  ;;  %v2229_v8 = vld [vmem:[%s3899_s0 + $0x10] sm:$0xff] }
   0x2   :  { %v2211_v2 = vld [vmem:[%s3899_s0 + $0x100] sm:$0xff]  ;;  %v87_v3 = vsel %vm86_vm0, %v2201_v0, 0.0  ;;  %v90_v4 = vsel %vm86_vm0, %v2206_v1, 0.0  ;;  %v2220_v5 = vld [vmem:[%s3899_s0 + $0x108] sm:$0xff]  ;;  %v2234_v9 = vld [vmem:[%s3899_s0 + $0x110] sm:$0xff]  ;;  %v93_v10 = vsel %vm86_vm0, %v2229_v8, 0.0 }
   0x3   :  { %88 = vadd.xlane.f32.xlu0 %v87_v3  ;;  %91 = vadd.xlane.f32.xlu1 %v90_v4  ;;  %v183_v6 = vsel %vm86_vm0, %v2211_v2, 0.0  ;;  %v186_v7 = vsel %vm86_vm0, %v2220_v5, 0.0  ;;  %v189_v11 = vsel %vm86_vm0, %v2234_v9, 0.0  ;;  %v2243_v12 = vld [vmem:[%s3899_s0 + $0x18] sm:$0xff]  ;;  %v2257_v16 = vld [vmem:[%s3899_s0 + $0x20] sm:$0xff]  ;;  %v2271_v20 = vld [vmem:[%s3899_s0 + $0x28] sm:$0xff] }
   0x4   :  { %v2248_v13 = vld [vmem:[%s3899_s0 + $0x118] sm:$0xff]  ;;  %v96_v14 = vsel %vm86_vm0, %v2243_v12, 0.0  ;;  %v2262_v17 = vld [vmem:[%s3899_s0 + $0x120] sm:$0xff]  ;;  %v99_v18 = vsel %vm86_vm0, %v2257_v16, 0.0  ;;  %v2276_v21 = vld [vmem:[%s3899_s0 + $0x128] sm:$0xff]  ;;  %v102_v22 = vsel %vm86_vm0, %v2271_v20, 0.0 }
   0x5   :  { %v192_v15 = vsel %vm86_vm0, %v2248_v13, 0.0  ;;  %v195_v19 = vsel %vm86_vm0, %v2262_v17, 0.0  ;;  %v198_v23 = vsel %vm86_vm0, %v2276_v21, 0.0  ;;  %v2285_v24 = vld [vmem:[%s3899_s0 + $0x30] sm:$0xff]  ;;  %v2299_v28 = vld [vmem:[%s3899_s0 + $0x38] sm:$0xff]  ;;  %v2313_v32 = vld [vmem:[%s3899_s0 + $0x40] sm:$0xff] }
   0x6   :  { %v2290_v25 = vld [vmem:[%s3899_s0 + $0x130] sm:$0xff]  ;;  %v105_v26 = vsel %vm86_vm0, %v2285_v24, 0.0  ;;  %v2304_v29 = vld [vmem:[%s3899_s0 + $0x138] sm:$0xff]  ;;  %v108_v30 = vsel %vm86_vm0, %v2299_v28, 0.0  ;;  %v2318_v33 = vld [vmem:[%s3899_s0 + $0x140] sm:$0xff]  ;;  %v111_v34 = vsel %vm86_vm0, %v2313_v32, 0.0 }
   0x7   :  { %184 = vadd.xlane.f32.xlu0 %v183_v6  ;;  %187 = vadd.xlane.f32.xlu1 %v186_v7  ;;  %v201_v27 = vsel %vm86_vm0, %v2290_v25, 0.0  ;;  %v204_v31 = vsel %vm86_vm0, %v2304_v29, 0.0  ;;  %v207_v35 = vsel %vm86_vm0, %v2318_v33, 0.0  ;;  %v2327_v36 = vld [vmem:[%s3899_s0 + $0x48] sm:$0xff]  ;;  %v2341_v40 = vld [vmem:[%s3899_s0 + $0x50] sm:$0xff]  ;;  %v2355_v44 = vld [vmem:[%s3899_s0 + $0x58] sm:$0xff] }
   0x8   :  { %v2332_v37 = vld [vmem:[%s3899_s0 + $0x148] sm:$0xff]  ;;  %v114_v38 = vsel %vm86_vm0, %v2327_v36, 0.0  ;;  %v2346_v41 = vld [vmem:[%s3899_s0 + $0x150] sm:$0xff]  ;;  %v117_v42 = vsel %vm86_vm0, %v2341_v40, 0.0  ;;  %v2360_v45 = vld [vmem:[%s3899_s0 + $0x158] sm:$0xff]  ;;  %v120_v46 = vsel %vm86_vm0, %v2355_v44, 0.0 }
   0x9   :  { %v210_v39 = vsel %vm86_vm0, %v2332_v37, 0.0  ;;  %v213_v43 = vsel %vm86_vm0, %v2346_v41, 0.0  ;;  %v216_v47 = vsel %vm86_vm0, %v2360_v45, 0.0  ;;  %v2369_v48 = vld [vmem:[%s3899_s0 + $0x60] sm:$0xff]  ;;  %v2383_v52 = vld [vmem:[%s3899_s0 + $0x68] sm:$0xff]  ;;  %v2397_v56 = vld [vmem:[%s3899_s0 + $0x70] sm:$0xff] }
   0xa   :  { %v2374_v49 = vld [vmem:[%s3899_s0 + $0x160] sm:$0xff]  ;;  %v123_v50 = vsel %vm86_vm0, %v2369_v48, 0.0  ;;  %v2388_v53 = vld [vmem:[%s3899_s0 + $0x168] sm:$0xff]  ;;  %v126_v54 = vsel %vm86_vm0, %v2383_v52, 0.0  ;;  %v2402_v57 = vld [vmem:[%s3899_s0 + $0x170] sm:$0xff]  ;;  %v129_v58 = vsel %vm86_vm0, %v2397_v56, 0.0 }
   0xb   :  { %94 = vadd.xlane.f32.xlu0 %v93_v10  ;;  %190 = vadd.xlane.f32.xlu1 %v189_v11  ;;  %v219_v51 = vsel %vm86_vm0, %v2374_v49, 0.0  ;;  %v222_v55 = vsel %vm86_vm0, %v2388_v53, 0.0  ;;  %v225_v59 = vsel %vm86_vm0, %v2402_v57, 0.0  ;;  %v2411_v60 = vld [vmem:[%s3899_s0 + $0x78] sm:$0xff]  ;;  %v2425_v3 = vld [vmem:[%s3899_s0 + $0x80] sm:$0xff]  ;;  %v2439_v10 = vld [vmem:[%s3899_s0 + $0x88] sm:$0xff] }
   0xc   :  { %v2416_v61 = vld [vmem:[%s3899_s0 + $0x178] sm:$0xff]  ;;  %v132_v62 = vsel %vm86_vm0, %v2411_v60, 0.0  ;;  %v2430_v4 = vld [vmem:[%s3899_s0 + $0x180] sm:$0xff]  ;;  %v135_v6 = vsel %vm86_vm0, %v2425_v3, 0.0  ;;  %v2444_v11 = vld [vmem:[%s3899_s0 + $0x188] sm:$0xff] }
   0xd   :  { %v228_v63 = vsel %vm86_vm0, %v2416_v61, 0.0  ;;  %v231_v7 = vsel %vm86_vm0, %v2430_v4, 0.0 }
   0xf   :  { %97 = vadd.xlane.f32.xlu0 %v96_v14  ;;  %193 = vadd.xlane.f32.xlu1 %v192_v15  ;;  %v138_v14 = vsel %vm86_vm0, %v2439_v10, 0.0  ;;  %v234_v15 = vsel %vm86_vm0, %v2444_v11, 0.0 }
  0x13   :  { %100 = vadd.xlane.f32.xlu0 %v99_v18  ;;  %196 = vadd.xlane.f32.xlu1 %v195_v19  ;;  %v2453_v18 = vld [vmem:[%s3899_s0 + $0x90] sm:$0xff] }
  0x14   :  { %v2458_v19 = vld [vmem:[%s3899_s0 + $0x190] sm:$0xff] }
  0x17   :  { %103 = vadd.xlane.f32.xlu0 %v102_v22  ;;  %199 = vadd.xlane.f32.xlu1 %v198_v23  ;;  %v141_v22 = vsel %vm86_vm0, %v2453_v18, 0.0  ;;  %v237_v23 = vsel %vm86_vm0, %v2458_v19, 0.0 }
  0x1b   :  { %106 = vadd.xlane.f32.xlu0 %v105_v26  ;;  %202 = vadd.xlane.f32.xlu1 %v201_v27  ;;  %v2467_v26 = vld [vmem:[%s3899_s0 + $0x98] sm:$0xff] }
  0x1c   :  { %v2472_v27 = vld [vmem:[%s3899_s0 + $0x198] sm:$0xff] }
  0x1f   :  { %109 = vadd.xlane.f32.xlu0 %v108_v30  ;;  %205 = vadd.xlane.f32.xlu1 %v204_v31  ;;  %v144_v30 = vsel %vm86_vm0, %v2467_v26, 0.0  ;;  %v240_v31 = vsel %vm86_vm0, %v2472_v27, 0.0 }
  0x23   :  { %112 = vadd.xlane.f32.xlu0 %v111_v34  ;;  %208 = vadd.xlane.f32.xlu1 %v207_v35  ;;  %v2481_v34 = vld [vmem:[%s3899_s0 + $0xa0] sm:$0xff] }
  0x24   :  { %v2486_v35 = vld [vmem:[%s3899_s0 + $0x1a0] sm:$0xff] }
  0x27   :  { %115 = vadd.xlane.f32.xlu0 %v114_v38  ;;  %211 = vadd.xlane.f32.xlu1 %v210_v39  ;;  %v147_v38 = vsel %vm86_vm0, %v2481_v34, 0.0  ;;  %v243_v39 = vsel %vm86_vm0, %v2486_v35, 0.0 }
  0x2b   :  { %118 = vadd.xlane.f32.xlu0 %v117_v42  ;;  %214 = vadd.xlane.f32.xlu1 %v213_v43  ;;  %v2495_v42 = vld [vmem:[%s3899_s0 + $0xa8] sm:$0xff] }
  0x2c   :  { %v2500_v43 = vld [vmem:[%s3899_s0 + $0x1a8] sm:$0xff] }
  0x2f   :  { %121 = vadd.xlane.f32.xlu0 %v120_v46  ;;  %217 = vadd.xlane.f32.xlu1 %v216_v47  ;;  %v150_v46 = vsel %vm86_vm0, %v2495_v42, 0.0  ;;  %v246_v47 = vsel %vm86_vm0, %v2500_v43, 0.0 }
  0x33   :  { %124 = vadd.xlane.f32.xlu0 %v123_v50  ;;  %220 = vadd.xlane.f32.xlu1 %v219_v51  ;;  %v2509_v50 = vld [vmem:[%s3899_s0 + $0xb0] sm:$0xff] }
  0x34   :  { %v2514_v51 = vld [vmem:[%s3899_s0 + $0x1b0] sm:$0xff] }
  0x37   :  { %127 = vadd.xlane.f32.xlu0 %v126_v54  ;;  %223 = vadd.xlane.f32.xlu1 %v222_v55  ;;  %v153_v54 = vsel %vm86_vm0, %v2509_v50, 0.0  ;;  %v249_v55 = vsel %vm86_vm0, %v2514_v51, 0.0 }
  0x3b   :  { %130 = vadd.xlane.f32.xlu0 %v129_v58  ;;  %226 = vadd.xlane.f32.xlu1 %v225_v59  ;;  %v2523_v58 = vld [vmem:[%s3899_s0 + $0xb8] sm:$0xff] }
  0x3c   :  { %v2528_v59 = vld [vmem:[%s3899_s0 + $0x1b8] sm:$0xff] }
  0x3f   :  { %133 = vadd.xlane.f32.xlu0 %v132_v62  ;;  %229 = vadd.xlane.f32.xlu1 %v228_v63  ;;  %v156_v62 = vsel %vm86_vm0, %v2523_v58, 0.0  ;;  %v252_v63 = vsel %vm86_vm0, %v2528_v59, 0.0 }
  0x43   :  { %136 = vadd.xlane.f32.xlu0 %v135_v6  ;;  %232 = vadd.xlane.f32.xlu1 %v231_v7  ;;  %v2537_v6 = vld [vmem:[%s3899_s0 + $0xc0] sm:$0xff] }
  0x44   :  { %v2542_v7 = vld [vmem:[%s3899_s0 + $0x1c0] sm:$0xff] }
  0x47   :  { %139 = vadd.xlane.f32.xlu0 %v138_v14  ;;  %235 = vadd.xlane.f32.xlu1 %v234_v15  ;;  %v159_v14 = vsel %vm86_vm0, %v2537_v6, 0.0  ;;  %v255_v15 = vsel %vm86_vm0, %v2542_v7, 0.0 }
  0x4b   :  { %142 = vadd.xlane.f32.xlu0 %v141_v22  ;;  %238 = vadd.xlane.f32.xlu1 %v237_v23  ;;  %v2551_v22 = vld [vmem:[%s3899_s0 + $0xc8] sm:$0xff] }
  0x4c   :  { %3939 = vst [vmem:[#allocation2_spill] sm:$0xff] %v2551_v22  ;;  %v2556_v23 = vld [vmem:[%s3899_s0 + $0x1c8] sm:$0xff] }
  0x4d   :  { %3940 = vst [vmem:[#allocation3_spill] sm:$0xff] %v2556_v23 }
  0x4f   :  { %145 = vadd.xlane.f32.xlu0 %v144_v30  ;;  %241 = vadd.xlane.f32.xlu1 %v240_v31  ;;  %v162_v30 = vsel %vm86_vm0, %v2551_v22, 0.0  ;;  %v258_v31 = vsel %vm86_vm0, %v2556_v23, 0.0 }
  0x53   :  { %148 = vadd.xlane.f32.xlu0 %v147_v38  ;;  %244 = vadd.xlane.f32.xlu1 %v243_v39  ;;  %v2565_v38 = vld [vmem:[%s3899_s0 + $0xd0] sm:$0xff] }
  0x54   :  { %3941 = vst [vmem:[#allocation4_spill] sm:$0xff] %v2565_v38  ;;  %v2570_v39 = vld [vmem:[%s3899_s0 + $0x1d0] sm:$0xff] }
  0x55   :  { %3942 = vst [vmem:[#allocation5_spill] sm:$0xff] %v2570_v39 }
  0x57   :  { %151 = vadd.xlane.f32.xlu0 %v150_v46  ;;  %247 = vadd.xlane.f32.xlu1 %v246_v47  ;;  %v165_v46 = vsel %vm86_vm0, %v2565_v38, 0.0  ;;  %v261_v47 = vsel %vm86_vm0, %v2570_v39, 0.0 }
  0x5b   :  { %154 = vadd.xlane.f32.xlu0 %v153_v54  ;;  %250 = vadd.xlane.f32.xlu1 %v249_v55  ;;  %v2579_v54 = vld [vmem:[%s3899_s0 + $0xd8] sm:$0xff] }
  0x5c   :  { %3943 = vst [vmem:[#allocation6_spill] sm:$0xff] %v2579_v54  ;;  %v2584_v55 = vld [vmem:[%s3899_s0 + $0x1d8] sm:$0xff] }
  0x5d   :  { %3944 = vst [vmem:[#allocation7_spill] sm:$0xff] %v2584_v55 }
  0x5f   :  { %157 = vadd.xlane.f32.xlu0 %v156_v62  ;;  %253 = vadd.xlane.f32.xlu1 %v252_v63  ;;  %v168_v62 = vsel %vm86_vm0, %v2579_v54, 0.0  ;;  %v264_v63 = vsel %vm86_vm0, %v2584_v55, 0.0 }
  0x63   :  { %160 = vadd.xlane.f32.xlu0 %v159_v14  ;;  %256 = vadd.xlane.f32.xlu1 %v255_v15  ;;  %v2593_v14 = vld [vmem:[%s3899_s0 + $0xe0] sm:$0xff] }
  0x64   :  { %3945 = vst [vmem:[#allocation8_spill] sm:$0xff] %v2593_v14  ;;  %v2598_v15 = vld [vmem:[%s3899_s0 + $0x1e0] sm:$0xff] }
  0x65   :  { %3946 = vst [vmem:[#allocation9_spill] sm:$0xff] %v2598_v15 }
  0x67   :  { %163 = vadd.xlane.f32.xlu0 %v162_v30  ;;  %259 = vadd.xlane.f32.xlu1 %v258_v31  ;;  %v171_v30 = vsel %vm86_vm0, %v2593_v14, 0.0  ;;  %v267_v31 = vsel %vm86_vm0, %v2598_v15, 0.0  ;;  %v2621_v15 = vld [vmem:[%s3899_s0 + $0xf0] sm:$0xff] }
  0x68   :  { %3949 = vst [vmem:[#allocation12_spill] sm:$0xff] %v2621_v15  ;;  %v2626_v14 = vld [vmem:[%s3899_s0 + $0x1f0] sm:$0xff] }
  0x69   :  { %3950 = vst [vmem:[#allocation13_spill] sm:$0xff] %v2626_v14 }
  0x6b   :  { %166 = vadd.xlane.f32.xlu0 %v165_v46  ;;  %262 = vadd.xlane.f32.xlu1 %v261_v47  ;;  %v2607_v46 = vld [vmem:[%s3899_s0 + $0xe8] sm:$0xff] }
  0x6c   :  { %3947 = vst [vmem:[#allocation10_spill] sm:$0xff] %v2607_v46  ;;  %v2612_v47 = vld [vmem:[%s3899_s0 + $0x1e8] sm:$0xff] }
  0x6d   :  { %3948 = vst [vmem:[#allocation11_spill] sm:$0xff] %v2612_v47 }
  0x6f   :  { %169 = vadd.xlane.f32.xlu0 %v168_v62  ;;  %265 = vadd.xlane.f32.xlu1 %v264_v63  ;;  %v174_v62 = vsel %vm86_vm0, %v2607_v46, 0.0  ;;  %v270_v63 = vsel %vm86_vm0, %v2612_v47, 0.0  ;;  %v2635_v47 = vld [vmem:[%s3899_s0 + $0xf8] sm:$0xff] }
  0x70   :  { %3951 = vst [vmem:[#allocation14_spill] sm:$0xff] %v2635_v47  ;;  %v2640_v46 = vld [vmem:[%s3899_s0 + $0x1f8] sm:$0xff] }
  0x73   :  { %172 = vadd.xlane.f32.xlu0 %v171_v30  ;;  %268 = vadd.xlane.f32.xlu1 %v267_v31  ;;  %v177_v30 = vsel %vm86_vm0, %v2621_v15, 0.0  ;;  %v273_v31 = vsel %vm86_vm0, %v2626_v14, 0.0 }
  0x77   :  { %175 = vadd.xlane.f32.xlu0 %v174_v62  ;;  %271 = vadd.xlane.f32.xlu1 %v270_v63  ;;  %v180_v62 = vsel %vm86_vm0, %v2635_v47, 0.0  ;;  %v276_v63 = vsel %vm86_vm0, %v2640_v46, 0.0 }
  0x7b   :  { %178 = vadd.xlane.f32.xlu0 %v177_v30  ;;  %274 = vadd.xlane.f32.xlu1 %v273_v31 }
  0x7f   :  { %181 = vadd.xlane.f32.xlu0 %v180_v62  ;;  %277 = vadd.xlane.f32.xlu1 %v276_v63 }
  0x8c   :  { %v89_v14 = vpop.xlane.xlu0 %88  ;;  %v92_v15 = vpop.xlane.xlu1 %91 }
  0x8d   :  { %v280_v55 = vmul.f32 0.03125, %v89_v14  ;;  %v281_v54 = vmul.f32 0.03125, %v92_v15 }
  0x8f   :  { %v2647_v39 = vsub.f32 %v2201_v0, %v280_v55  ;;  %v2650_v38 = vsub.f32 %v2206_v1, %v281_v54 }
  0x90   :  { %v185_v30 = vpop.xlane.xlu0 %184  ;;  %v188_v31 = vpop.xlane.xlu1 %187 }
  0x91   :  { %3952 = vst [vmem:[#allocation15_spill] sm:$0xff] %v2650_v38  ;;  %v312_v23 = vmul.f32 0.03125, %v185_v30  ;;  %v313_v22 = vmul.f32 0.03125, %v188_v31  ;;  %v408_v47 = vmul.f32 %v2647_v39, %v2647_v39  ;;  %v409_v62 = vmul.f32 %v2650_v38, %v2650_v38 }
  0x93   :  { %v2657_v63 = vsub.f32 %v2211_v2, %v312_v23  ;;  %v2660_v14 = vsub.f32 %v2220_v5, %v313_v22  ;;  %v472_v0 = vsel %vm86_vm0, %v408_v47, 0.0  ;;  %v475_v55 = vsel %vm86_vm0, %v409_v62, 0.0 }
  0x94   :  { %473 = vadd.xlane.f32.xlu0 %v472_v0  ;;  %v95_v1 = vpop.xlane.xlu0 %94  ;;  %v191_v54 = vpop.xlane.xlu1 %190 }
  0x95   :  { %v282_v15 = vmul.f32 0.03125, %v95_v1  ;;  %v314_v30 = vmul.f32 0.03125, %v191_v54  ;;  %v440_v31 = vmul.f32 %v2657_v63, %v2657_v63  ;;  %v441_v38 = vmul.f32 %v2660_v14, %v2660_v14 }
  0x97   :  { %v2669_v2 = vsub.f32 %v2229_v8, %v282_v15  ;;  %v2672_v5 = vsub.f32 %v2234_v9, %v314_v30  ;;  %v568_v22 = vsel %vm86_vm0, %v440_v31, 0.0  ;;  %v571_v62 = vsel %vm86_vm0, %v441_v38, 0.0 }
  0x98   :  { %476 = vadd.xlane.f32.xlu0 %v475_v55  ;;  %569 = vadd.xlane.f32.xlu1 %v568_v22  ;;  %v98_v23 = vpop.xlane.xlu0 %97  ;;  %v194_v47 = vpop.xlane.xlu1 %193 }
  0x99   :  { %v283_v0 = vmul.f32 0.03125, %v98_v23  ;;  %v315_v1 = vmul.f32 0.03125, %v194_v47  ;;  %v410_v54 = vmul.f32 %v2669_v2, %v2669_v2  ;;  %v442_v8 = vmul.f32 %v2672_v5, %v2672_v5 }
  0x9b   :  { %v2681_v15 = vsub.f32 %v2243_v12, %v283_v0  ;;  %v2684_v9 = vsub.f32 %v2248_v13, %v315_v1  ;;  %v478_v55 = vsel %vm86_vm0, %v410_v54, 0.0  ;;  %v574_v31 = vsel %vm86_vm0, %v442_v8, 0.0 }
  0x9c   :  { %572 = vadd.xlane.f32.xlu1 %v571_v62  ;;  %479 = vadd.xlane.f32.xlu0 %v478_v55  ;;  %v101_v30 = vpop.xlane.xlu0 %100  ;;  %v197_v38 = vpop.xlane.xlu1 %196 }
  0x9d   :  { %v284_v22 = vmul.f32 0.03125, %v101_v30  ;;  %v316_v23 = vmul.f32 0.03125, %v197_v38  ;;  %v411_v47 = vmul.f32 %v2681_v15, %v2681_v15  ;;  %v443_v12 = vmul.f32 %v2684_v9, %v2684_v9 }
  0x9f   :  { %v2693_v0 = vsub.f32 %v2257_v16, %v284_v22  ;;  %v2696_v13 = vsub.f32 %v2262_v17, %v316_v23  ;;  %v481_v62 = vsel %vm86_vm0, %v411_v47, 0.0  ;;  %v577_v8 = vsel %vm86_vm0, %v443_v12, 0.0 }
  0xa0   :  { %575 = vadd.xlane.f32.xlu1 %v574_v31  ;;  %482 = vadd.xlane.f32.xlu0 %v481_v62  ;;  %v104_v1 = vpop.xlane.xlu0 %103  ;;  %v200_v54 = vpop.xlane.xlu1 %199 }
  0xa1   :  { %v285_v55 = vmul.f32 0.03125, %v104_v1  ;;  %v317_v30 = vmul.f32 0.03125, %v200_v54  ;;  %v412_v38 = vmul.f32 %v2693_v0, %v2693_v0  ;;  %v444_v16 = vmul.f32 %v2696_v13, %v2696_v13 }
  0xa3   :  { %v2705_v22 = vsub.f32 %v2271_v20, %v285_v55  ;;  %v2708_v17 = vsub.f32 %v2276_v21, %v317_v30  ;;  %v484_v31 = vsel %vm86_vm0, %v412_v38, 0.0  ;;  %v580_v12 = vsel %vm86_vm0, %v444_v16, 0.0 }
  0xa4   :  { %578 = vadd.xlane.f32.xlu1 %v577_v8  ;;  %485 = vadd.xlane.f32.xlu0 %v484_v31  ;;  %v107_v23 = vpop.xlane.xlu0 %106  ;;  %v203_v47 = vpop.xlane.xlu1 %202 }
  0xa5   :  { %v286_v62 = vmul.f32 0.03125, %v107_v23  ;;  %v318_v1 = vmul.f32 0.03125, %v203_v47  ;;  %v413_v54 = vmul.f32 %v2705_v22, %v2705_v22  ;;  %v445_v20 = vmul.f32 %v2708_v17, %v2708_v17 }
  0xa7   :  { %v2717_v55 = vsub.f32 %v2285_v24, %v286_v62  ;;  %v2720_v21 = vsub.f32 %v2290_v25, %v318_v1  ;;  %v487_v8 = vsel %vm86_vm0, %v413_v54, 0.0  ;;  %v583_v16 = vsel %vm86_vm0, %v445_v20, 0.0 }
  0xa8   :  { %581 = vadd.xlane.f32.xlu1 %v580_v12  ;;  %488 = vadd.xlane.f32.xlu0 %v487_v8  ;;  %v110_v30 = vpop.xlane.xlu0 %109  ;;  %v206_v38 = vpop.xlane.xlu1 %205 }
  0xa9   :  { %v287_v31 = vmul.f32 0.03125, %v110_v30  ;;  %v319_v23 = vmul.f32 0.03125, %v206_v38  ;;  %v414_v47 = vmul.f32 %v2717_v55, %v2717_v55  ;;  %v446_v24 = vmul.f32 %v2720_v21, %v2720_v21 }
  0xab   :  { %v2729_v62 = vsub.f32 %v2299_v28, %v287_v31  ;;  %v2732_v25 = vsub.f32 %v2304_v29, %v319_v23  ;;  %v490_v12 = vsel %vm86_vm0, %v414_v47, 0.0  ;;  %v586_v20 = vsel %vm86_vm0, %v446_v24, 0.0 }
  0xac   :  { %584 = vadd.xlane.f32.xlu1 %v583_v16  ;;  %491 = vadd.xlane.f32.xlu0 %v490_v12  ;;  %v113_v1 = vpop.xlane.xlu0 %112  ;;  %v209_v54 = vpop.xlane.xlu1 %208 }
  0xad   :  { %v288_v8 = vmul.f32 0.03125, %v113_v1  ;;  %v320_v30 = vmul.f32 0.03125, %v209_v54  ;;  %v415_v38 = vmul.f32 %v2729_v62, %v2729_v62  ;;  %v447_v28 = vmul.f32 %v2732_v25, %v2732_v25 }
  0xaf   :  { %v2741_v31 = vsub.f32 %v2313_v32, %v288_v8  ;;  %v2744_v29 = vsub.f32 %v2318_v33, %v320_v30  ;;  %v493_v16 = vsel %vm86_vm0, %v415_v38, 0.0  ;;  %v589_v24 = vsel %vm86_vm0, %v447_v28, 0.0  ;;  %v1129_v33 = vld [vmem:[%s3900_s3 + $0x18] sm:$0xff] }
  0xb0   :  { %587 = vadd.xlane.f32.xlu1 %v586_v20  ;;  %494 = vadd.xlane.f32.xlu0 %v493_v16  ;;  %v116_v23 = vpop.xlane.xlu0 %115  ;;  %v212_v47 = vpop.xlane.xlu1 %211 }
  0xb1   :  { %v289_v12 = vmul.f32 0.03125, %v116_v23  ;;  %v321_v1 = vmul.f32 0.03125, %v212_v47  ;;  %v416_v54 = vmul.f32 %v2741_v31, %v2741_v31  ;;  %v448_v32 = vmul.f32 %v2744_v29, %v2744_v29  ;;  %1921 = vmatprep.subr.mxu0 %v1129_v33  ;;  %2025 = vmatprep.subr.mxu1 %v1129_v33  ;;  %v1128_v23 = vld [vmem:[%s3900_s3 + $0x10] sm:$0xff] }
  0xb2   :  { %1922 = vmatpush3.msra.mxu0 %v1129_v33  ;;  %2029 = vmatpush3.msra.mxu1 %v1129_v33 }
  0xb3   :  { %v2756_v8 = vsub.f32 %v2327_v36, %v289_v12  ;;  %v2759_v20 = vsub.f32 %v2332_v37, %v321_v1  ;;  %v496_v30 = vsel %vm86_vm0, %v416_v54, 0.0  ;;  %v592_v16 = vsel %vm86_vm0, %v448_v32, 0.0  ;;  %1923 = vmatprep.subr.mxu0 %v1128_v23  ;;  %2026 = vmatprep.subr.mxu1 %v1128_v23 }
  0xb4   :  { %590 = vadd.xlane.f32.xlu1 %v589_v24  ;;  %497 = vadd.xlane.f32.xlu0 %v496_v30  ;;  %v119_v38 = vpop.xlane.xlu0 %118  ;;  %v215_v28 = vpop.xlane.xlu1 %214  ;;  %v1127_v24 = vld [vmem:[%s3900_s3 + $0x8] sm:$0xff] }
  0xb5   :  { %3953 = vst [vmem:[#allocation16_spill] sm:$0xff] %v2759_v20  ;;  %v290_v47 = vmul.f32 0.03125, %v119_v38  ;;  %v322_v36 = vmul.f32 0.03125, %v215_v28  ;;  %v417_v37 = vmul.f32 %v2756_v8, %v2756_v8  ;;  %v449_v12 = vmul.f32 %v2759_v20, %v2759_v20  ;;  %1924 = vmatpush3.msra.mxu0 %v1128_v23  ;;  %2030 = vmatpush3.msra.mxu1 %v1128_v23  ;;  %v1126_v28 = vld [vmem:[%s3900_s3] sm:$0xff] }
  0xb6   :  { %1925 = vmatprep.subr.mxu0 %v1127_v24  ;;  %2027 = vmatprep.subr.mxu1 %v1127_v24 }
  0xb7   :  { %v2774_v1 = vsub.f32 %v2341_v40, %v290_v47  ;;  %v2777_v54 = vsub.f32 %v2346_v41, %v322_v36  ;;  %v499_v32 = vsel %vm86_vm0, %v417_v37, 0.0  ;;  %v595_v38 = vsel %vm86_vm0, %v449_v12, 0.0  ;;  %1926 = vmatpush3.msra.mxu0 %v1127_v24  ;;  %2031 = vmatpush3.msra.mxu1 %v1127_v24 }
  0xb8   :  { %593 = vadd.xlane.f32.xlu1 %v592_v16  ;;  %500 = vadd.xlane.f32.xlu0 %v499_v32  ;;  %v122_v30 = vpop.xlane.xlu0 %121  ;;  %v218_v33 = vpop.xlane.xlu1 %217 }
  0xb9   :  { %v291_v20 = vmul.f32 0.03125, %v122_v30  ;;  %v323_v40 = vmul.f32 0.03125, %v218_v33  ;;  %v418_v41 = vmul.f32 %v2774_v1, %v2774_v1  ;;  %v450_v47 = vmul.f32 %v2777_v54, %v2777_v54  ;;  %1927 = vmatprep.subr.mxu0 %v1126_v28  ;;  %2028 = vmatprep.subr.mxu1 %v1126_v28 }
  0xba   :  { %1928 = vmatpush3.msra.mxu0 %v1126_v28  ;;  %2032 = vmatpush3.msra.mxu1 %v1126_v28 }
  0xbb   :  { %v2789_v16 = vsub.f32 %v2355_v44, %v291_v20  ;;  %v2792_v23 = vsub.f32 %v2360_v45, %v323_v40  ;;  %v502_v36 = vsel %vm86_vm0, %v418_v41, 0.0  ;;  %v598_v32 = vsel %vm86_vm0, %v450_v47, 0.0 }
  0xbc   :  { %596 = vadd.xlane.f32.xlu1 %v595_v38  ;;  %503 = vadd.xlane.f32.xlu0 %v502_v36  ;;  %v125_v37 = vpop.xlane.xlu0 %124  ;;  %v221_v12 = vpop.xlane.xlu1 %220 }
  0xbd   :  { %v292_v30 = vmul.f32 0.03125, %v125_v37  ;;  %v324_v33 = vmul.f32 0.03125, %v221_v12  ;;  %v419_v24 = vmul.f32 %v2789_v16, %v2789_v16  ;;  %v451_v44 = vmul.f32 %v2792_v23, %v2792_v23 }
  0xbf   :  { %v2801_v45 = vsub.f32 %v2369_v48, %v292_v30  ;;  %v2804_v20 = vsub.f32 %v2374_v49, %v324_v33  ;;  %v505_v38 = vsel %vm86_vm0, %v419_v24, 0.0  ;;  %v601_v47 = vsel %vm86_vm0, %v451_v44, 0.0 }
  0xc0   :  { %599 = vadd.xlane.f32.xlu1 %v598_v32  ;;  %506 = vadd.xlane.f32.xlu0 %v505_v38  ;;  %v128_v40 = vpop.xlane.xlu0 %127  ;;  %v224_v41 = vpop.xlane.xlu1 %223 }
  0xc1   :  { %v293_v36 = vmul.f32 0.03125, %v128_v40  ;;  %v325_v37 = vmul.f32 0.03125, %v224_v41  ;;  %v420_v12 = vmul.f32 %v2801_v45, %v2801_v45  ;;  %v452_v48 = vmul.f32 %v2804_v20, %v2804_v20 }
  0xc3   :  { %v2813_v28 = vsub.f32 %v2383_v52, %v293_v36  ;;  %v2816_v49 = vsub.f32 %v2388_v53, %v325_v37  ;;  %v508_v32 = vsel %vm86_vm0, %v420_v12, 0.0  ;;  %v604_v24 = vsel %vm86_vm0, %v452_v48, 0.0 }
  0xc4   :  { %602 = vadd.xlane.f32.xlu1 %v601_v47  ;;  %509 = vadd.xlane.f32.xlu0 %v508_v32  ;;  %v131_v30 = vpop.xlane.xlu0 %130  ;;  %v227_v33 = vpop.xlane.xlu1 %226 }
  0xc5   :  { %v294_v44 = vmul.f32 0.03125, %v131_v30  ;;  %v326_v38 = vmul.f32 0.03125, %v227_v33  ;;  %v421_v40 = vmul.f32 %v2813_v28, %v2813_v28  ;;  %v453_v52 = vmul.f32 %v2816_v49, %v2816_v49 }
  0xc7   :  { %v2825_v41 = vsub.f32 %v2397_v56, %v294_v44  ;;  %v2828_v53 = vsub.f32 %v2402_v57, %v326_v38  ;;  %v511_v47 = vsel %vm86_vm0, %v421_v40, 0.0  ;;  %v607_v12 = vsel %vm86_vm0, %v453_v52, 0.0 }
  0xc8   :  { %605 = vadd.xlane.f32.xlu1 %v604_v24  ;;  %512 = vadd.xlane.f32.xlu0 %v511_v47  ;;  %v134_v36 = vpop.xlane.xlu0 %133  ;;  %v230_v37 = vpop.xlane.xlu1 %229 }
  0xc9   :  { %v295_v48 = vmul.f32 0.03125, %v134_v36  ;;  %v327_v32 = vmul.f32 0.03125, %v230_v37  ;;  %v422_v30 = vmul.f32 %v2825_v41, %v2825_v41  ;;  %v454_v56 = vmul.f32 %v2828_v53, %v2828_v53 }
  0xcb   :  { %v2837_v33 = vsub.f32 %v2411_v60, %v295_v48  ;;  %v2840_v57 = vsub.f32 %v2416_v61, %v327_v32  ;;  %v514_v24 = vsel %vm86_vm0, %v422_v30, 0.0  ;;  %v610_v40 = vsel %vm86_vm0, %v454_v56, 0.0 }
  0xcc   :  { %608 = vadd.xlane.f32.xlu1 %v607_v12  ;;  %515 = vadd.xlane.f32.xlu0 %v514_v24  ;;  %v137_v44 = vpop.xlane.xlu0 %136  ;;  %v233_v38 = vpop.xlane.xlu1 %232 }
  0xcd   :  { %v296_v52 = vmul.f32 0.03125, %v137_v44  ;;  %v328_v47 = vmul.f32 0.03125, %v233_v38  ;;  %v423_v36 = vmul.f32 %v2837_v33, %v2837_v33  ;;  %v455_v60 = vmul.f32 %v2840_v57, %v2840_v57 }
  0xcf   :  { %v2849_v37 = vsub.f32 %v2425_v3, %v296_v52  ;;  %v2852_v61 = vsub.f32 %v2430_v4, %v328_v47  ;;  %v517_v12 = vsel %vm86_vm0, %v423_v36, 0.0  ;;  %v613_v30 = vsel %vm86_vm0, %v455_v60, 0.0 }
  0xd0   :  { %611 = vadd.xlane.f32.xlu1 %v610_v40  ;;  %518 = vadd.xlane.f32.xlu0 %v517_v12  ;;  %v140_v48 = vpop.xlane.xlu0 %139  ;;  %v236_v32 = vpop.xlane.xlu1 %235 }
  0xd1   :  { %v297_v56 = vmul.f32 0.03125, %v140_v48  ;;  %v329_v24 = vmul.f32 0.03125, %v236_v32  ;;  %v424_v44 = vmul.f32 %v2849_v37, %v2849_v37  ;;  %v456_v3 = vmul.f32 %v2852_v61, %v2852_v61 }
  0xd3   :  { %v2861_v38 = vsub.f32 %v2439_v10, %v297_v56  ;;  %v2864_v4 = vsub.f32 %v2444_v11, %v329_v24  ;;  %v520_v40 = vsel %vm86_vm0, %v424_v44, 0.0  ;;  %v616_v36 = vsel %vm86_vm0, %v456_v3, 0.0 }
  0xd4   :  { %614 = vadd.xlane.f32.xlu1 %v613_v30  ;;  %521 = vadd.xlane.f32.xlu0 %v520_v40  ;;  %v143_v52 = vpop.xlane.xlu0 %142  ;;  %v239_v47 = vpop.xlane.xlu1 %238 }
  0xd5   :  { %v298_v60 = vmul.f32 0.03125, %v143_v52  ;;  %v330_v12 = vmul.f32 0.03125, %v239_v47  ;;  %v425_v48 = vmul.f32 %v2861_v38, %v2861_v38  ;;  %v457_v10 = vmul.f32 %v2864_v4, %v2864_v4 }
  0xd7   :  { %v2873_v32 = vsub.f32 %v2453_v18, %v298_v60  ;;  %v2876_v11 = vsub.f32 %v2458_v19, %v330_v12  ;;  %v523_v30 = vsel %vm86_vm0, %v425_v48, 0.0  ;;  %v619_v44 = vsel %vm86_vm0, %v457_v10, 0.0 }
  0xd8   :  { %617 = vadd.xlane.f32.xlu1 %v616_v36  ;;  %524 = vadd.xlane.f32.xlu0 %v523_v30  ;;  %v146_v56 = vpop.xlane.xlu0 %145  ;;  %v242_v24 = vpop.xlane.xlu1 %241 }
  0xd9   :  { %v299_v3 = vmul.f32 0.03125, %v146_v56  ;;  %v331_v40 = vmul.f32 0.03125, %v242_v24  ;;  %v426_v52 = vmul.f32 %v2873_v32, %v2873_v32  ;;  %v458_v18 = vmul.f32 %v2876_v11, %v2876_v11 }
  0xdb   :  { %v2885_v47 = vsub.f32 %v2467_v26, %v299_v3  ;;  %v2888_v19 = vsub.f32 %v2472_v27, %v331_v40  ;;  %v526_v36 = vsel %vm86_vm0, %v426_v52, 0.0  ;;  %v622_v48 = vsel %vm86_vm0, %v458_v18, 0.0 }
  0xdc   :  { %620 = vadd.xlane.f32.xlu1 %v619_v44  ;;  %527 = vadd.xlane.f32.xlu0 %v526_v36  ;;  %v149_v60 = vpop.xlane.xlu0 %148  ;;  %v245_v12 = vpop.xlane.xlu1 %244 }
  0xdd   :  { %v300_v10 = vmul.f32 0.03125, %v149_v60  ;;  %v332_v30 = vmul.f32 0.03125, %v245_v12  ;;  %v427_v56 = vmul.f32 %v2885_v47, %v2885_v47  ;;  %v459_v26 = vmul.f32 %v2888_v19, %v2888_v19 }
  0xdf   :  { %v2897_v24 = vsub.f32 %v2481_v34, %v300_v10  ;;  %v2900_v27 = vsub.f32 %v2486_v35, %v332_v30  ;;  %v529_v44 = vsel %vm86_vm0, %v427_v56, 0.0  ;;  %v625_v52 = vsel %vm86_vm0, %v459_v26, 0.0 }
  0xe0   :  { %623 = vadd.xlane.f32.xlu1 %v622_v48  ;;  %530 = vadd.xlane.f32.xlu0 %v529_v44  ;;  %v152_v3 = vpop.xlane.xlu0 %151  ;;  %v248_v40 = vpop.xlane.xlu1 %247 }
  0xe1   :  { %v301_v18 = vmul.f32 0.03125, %v152_v3  ;;  %v333_v36 = vmul.f32 0.03125, %v248_v40  ;;  %v428_v60 = vmul.f32 %v2897_v24, %v2897_v24  ;;  %v460_v34 = vmul.f32 %v2900_v27, %v2900_v27 }
  0xe3   :  { %v2909_v12 = vsub.f32 %v2495_v42, %v301_v18  ;;  %v2912_v35 = vsub.f32 %v2500_v43, %v333_v36  ;;  %v532_v48 = vsel %vm86_vm0, %v428_v60, 0.0  ;;  %v628_v56 = vsel %vm86_vm0, %v460_v34, 0.0 }
  0xe4   :  { %626 = vadd.xlane.f32.xlu1 %v625_v52  ;;  %533 = vadd.xlane.f32.xlu0 %v532_v48  ;;  %v155_v10 = vpop.xlane.xlu0 %154  ;;  %v251_v30 = vpop.xlane.xlu1 %250 }
  0xe5   :  { %v302_v26 = vmul.f32 0.03125, %v155_v10  ;;  %v334_v44 = vmul.f32 0.03125, %v251_v30  ;;  %v429_v3 = vmul.f32 %v2909_v12, %v2909_v12  ;;  %v461_v42 = vmul.f32 %v2912_v35, %v2912_v35 }
  0xe7   :  { %v2921_v40 = vsub.f32 %v2509_v50, %v302_v26  ;;  %v2924_v43 = vsub.f32 %v2514_v51, %v334_v44  ;;  %v535_v52 = vsel %vm86_vm0, %v429_v3, 0.0  ;;  %v631_v60 = vsel %vm86_vm0, %v461_v42, 0.0 }
  0xe8   :  { %629 = vadd.xlane.f32.xlu1 %v628_v56  ;;  %536 = vadd.xlane.f32.xlu0 %v535_v52  ;;  %v158_v18 = vpop.xlane.xlu0 %157  ;;  %v254_v36 = vpop.xlane.xlu1 %253 }
  0xe9   :  { %v303_v34 = vmul.f32 0.03125, %v158_v18  ;;  %v335_v48 = vmul.f32 0.03125, %v254_v36  ;;  %v430_v10 = vmul.f32 %v2921_v40, %v2921_v40  ;;  %v462_v50 = vmul.f32 %v2924_v43, %v2924_v43 }
  0xeb   :  { %v2933_v30 = vsub.f32 %v2523_v58, %v303_v34  ;;  %v2936_v51 = vsub.f32 %v2528_v59, %v335_v48  ;;  %v538_v56 = vsel %vm86_vm0, %v430_v10, 0.0  ;;  %v634_v3 = vsel %vm86_vm0, %v462_v50, 0.0 }
  0xec   :  { %632 = vadd.xlane.f32.xlu1 %v631_v60  ;;  %539 = vadd.xlane.f32.xlu0 %v538_v56  ;;  %v161_v26 = vpop.xlane.xlu0 %160  ;;  %v257_v44 = vpop.xlane.xlu1 %256 }
  0xed   :  { %3954 = vst [vmem:[#allocation17_spill] sm:$0xff] %v2933_v30  ;;  %3955 = vst [vmem:[#allocation18_spill] sm:$0xff] %v2936_v51  ;;  %v304_v42 = vmul.f32 0.03125, %v161_v26  ;;  %v336_v52 = vmul.f32 0.03125, %v257_v44  ;;  %v431_v18 = vmul.f32 %v2933_v30, %v2933_v30  ;;  %v463_v58 = vmul.f32 %v2936_v51, %v2936_v51  ;;  %v3958_v44 = vld [vmem:[#allocation2_spill] sm:$0xff] }
  0xef   :  { %v2945_v36 = vsub.f32 %v2537_v6, %v304_v42  ;;  %v2948_v59 = vsub.f32 %v2542_v7, %v336_v52  ;;  %v541_v60 = vsel %vm86_vm0, %v431_v18, 0.0  ;;  %v637_v10 = vsel %vm86_vm0, %v463_v58, 0.0  ;;  %v3960_v7 = vld [vmem:[#allocation3_spill] sm:$0xff] }
  0xf0   :  { %635 = vadd.xlane.f32.xlu1 %v634_v3  ;;  %542 = vadd.xlane.f32.xlu0 %v541_v60  ;;  %v164_v34 = vpop.xlane.xlu0 %163  ;;  %v260_v48 = vpop.xlane.xlu1 %259 }
  0xf1   :  { %3956 = vst [vmem:[#allocation19_spill] sm:$0xff] %v2945_v36  ;;  %3957 = vst [vmem:[#allocation20_spill] sm:$0xff] %v2948_v59  ;;  %v305_v50 = vmul.f32 0.03125, %v164_v34  ;;  %v337_v56 = vmul.f32 0.03125, %v260_v48  ;;  %v432_v26 = vmul.f32 %v2945_v36, %v2945_v36  ;;  %v464_v6 = vmul.f32 %v2948_v59, %v2948_v59 }
  0xf3   :  { %v2957_v42 = vsub.f32 %v3958_v44, %v305_v50  ;;  %v2960_v52 = vsub.f32 %v3960_v7, %v337_v56  ;;  %v544_v3 = vsel %vm86_vm0, %v432_v26, 0.0  ;;  %v640_v60 = vsel %vm86_vm0, %v464_v6, 0.0  ;;  %v3962_v44 = vld [vmem:[#allocation4_spill] sm:$0xff]  ;;  %v3964_v56 = vld [vmem:[#allocation5_spill] sm:$0xff] }
  0xf4   :  { %638 = vadd.xlane.f32.xlu1 %v637_v10  ;;  %545 = vadd.xlane.f32.xlu0 %v544_v3  ;;  %v167_v18 = vpop.xlane.xlu0 %166  ;;  %v263_v58 = vpop.xlane.xlu1 %262 }
  0xf5   :  { %3959 = vst [vmem:[#allocation2_spill] sm:$0xff] %v2957_v42  ;;  %3961 = vst [vmem:[#allocation3_spill] sm:$0xff] %v2960_v52  ;;  %v306_v34 = vmul.f32 0.03125, %v167_v18  ;;  %v338_v48 = vmul.f32 0.03125, %v263_v58  ;;  %v433_v36 = vmul.f32 %v2957_v42, %v2957_v42  ;;  %v465_v50 = vmul.f32 %v2960_v52, %v2960_v52 }
  0xf7   :  { %v2969_v59 = vsub.f32 %v3962_v44, %v306_v34  ;;  %v2972_v7 = vsub.f32 %v3964_v56, %v338_v48  ;;  %v547_v10 = vsel %vm86_vm0, %v433_v36, 0.0  ;;  %v643_v3 = vsel %vm86_vm0, %v465_v50, 0.0  ;;  %v3966_v44 = vld [vmem:[#allocation6_spill] sm:$0xff]  ;;  %v3968_v48 = vld [vmem:[#allocation7_spill] sm:$0xff] }
  0xf8   :  { %641 = vadd.xlane.f32.xlu1 %v640_v60  ;;  %548 = vadd.xlane.f32.xlu0 %v547_v10  ;;  %v170_v26 = vpop.xlane.xlu0 %169  ;;  %v266_v6 = vpop.xlane.xlu1 %265 }
  0xf9   :  { %3963 = vst [vmem:[#allocation4_spill] sm:$0xff] %v2969_v59  ;;  %3965 = vst [vmem:[#allocation5_spill] sm:$0xff] %v2972_v7  ;;  %v307_v18 = vmul.f32 0.03125, %v170_v26  ;;  %v339_v58 = vmul.f32 0.03125, %v266_v6  ;;  %v434_v42 = vmul.f32 %v2969_v59, %v2969_v59  ;;  %v466_v34 = vmul.f32 %v2972_v7, %v2972_v7 }
  0xfb   :  { %v2981_v52 = vsub.f32 %v3966_v44, %v307_v18  ;;  %v2984_v56 = vsub.f32 %v3968_v48, %v339_v58  ;;  %v550_v36 = vsel %vm86_vm0, %v434_v42, 0.0  ;;  %v646_v10 = vsel %vm86_vm0, %v466_v34, 0.0  ;;  %v3970_v44 = vld [vmem:[#allocation8_spill] sm:$0xff]  ;;  %v3972_v58 = vld [vmem:[#allocation9_spill] sm:$0xff] }
  0xfc   :  { %644 = vadd.xlane.f32.xlu1 %v643_v3  ;;  %551 = vadd.xlane.f32.xlu0 %v550_v36  ;;  %v173_v60 = vpop.xlane.xlu0 %172  ;;  %v269_v50 = vpop.xlane.xlu1 %268 }
  0xfd   :  { %3967 = vst [vmem:[#allocation6_spill] sm:$0xff] %v2981_v52  ;;  %3969 = vst [vmem:[#allocation7_spill] sm:$0xff] %v2984_v56  ;;  %v308_v26 = vmul.f32 0.03125, %v173_v60  ;;  %v340_v6 = vmul.f32 0.03125, %v269_v50  ;;  %v435_v59 = vmul.f32 %v2981_v52, %v2981_v52  ;;  %v467_v18 = vmul.f32 %v2984_v56, %v2984_v56 }
  0xff   :  { %v2993_v7 = vsub.f32 %v3970_v44, %v308_v26  ;;  %v2996_v48 = vsub.f32 %v3972_v58, %v340_v6  ;;  %v553_v42 = vsel %vm86_vm0, %v435_v59, 0.0  ;;  %v649_v36 = vsel %vm86_vm0, %v467_v18, 0.0  ;;  %v3974_v44 = vld [vmem:[#allocation10_spill] sm:$0xff]  ;;  %v3976_v6 = vld [vmem:[#allocation11_spill] sm:$0xff] }
 0x100   :  { %647 = vadd.xlane.f32.xlu1 %v646_v10  ;;  %554 = vadd.xlane.f32.xlu0 %v553_v42  ;;  %v176_v3 = vpop.xlane.xlu0 %175  ;;  %v272_v34 = vpop.xlane.xlu1 %271 }
 0x101   :  { %3971 = vst [vmem:[#allocation8_spill] sm:$0xff] %v2993_v7  ;;  %3973 = vst [vmem:[#allocation9_spill] sm:$0xff] %v2996_v48  ;;  %v309_v60 = vmul.f32 0.03125, %v176_v3  ;;  %v341_v50 = vmul.f32 0.03125, %v272_v34  ;;  %v436_v52 = vmul.f32 %v2993_v7, %v2993_v7  ;;  %v468_v26 = vmul.f32 %v2996_v48, %v2996_v48 }
 0x103   :  { %v3005_v56 = vsub.f32 %v3974_v44, %v309_v60  ;;  %v3008_v58 = vsub.f32 %v3976_v6, %v341_v50  ;;  %v556_v59 = vsel %vm86_vm0, %v436_v52, 0.0  ;;  %v652_v42 = vsel %vm86_vm0, %v468_v26, 0.0  ;;  %v3978_v44 = vld [vmem:[#allocation12_spill] sm:$0xff]  ;;  %v3980_v50 = vld [vmem:[#allocation13_spill] sm:$0xff] }
 0x104   :  { %650 = vadd.xlane.f32.xlu1 %v649_v36  ;;  %557 = vadd.xlane.f32.xlu0 %v556_v59  ;;  %v179_v10 = vpop.xlane.xlu0 %178  ;;  %v275_v18 = vpop.xlane.xlu1 %274 }
 0x105   :  { %3975 = vst [vmem:[#allocation10_spill] sm:$0xff] %v3005_v56  ;;  %3977 = vst [vmem:[#allocation11_spill] sm:$0xff] %v3008_v58  ;;  %v310_v3 = vmul.f32 0.03125, %v179_v10  ;;  %v342_v34 = vmul.f32 0.03125, %v275_v18  ;;  %v437_v7 = vmul.f32 %v3005_v56, %v3005_v56  ;;  %v469_v60 = vmul.f32 %v3008_v58, %v3008_v58 }
 0x107   :  { %v3017_v48 = vsub.f32 %v3978_v44, %v310_v3  ;;  %v3020_v6 = vsub.f32 %v3980_v50, %v342_v34  ;;  %v559_v52 = vsel %vm86_vm0, %v437_v7, 0.0  ;;  %v655_v59 = vsel %vm86_vm0, %v469_v60, 0.0  ;;  %v3982_v44 = vld [vmem:[#allocation14_spill] sm:$0xff] }
 0x108   :  { %653 = vadd.xlane.f32.xlu1 %v652_v42  ;;  %560 = vadd.xlane.f32.xlu0 %v559_v52  ;;  %v182_v36 = vpop.xlane.xlu0 %181  ;;  %v278_v26 = vpop.xlane.xlu1 %277 }
 0x109   :  { %3979 = vst [vmem:[#allocation12_spill] sm:$0xff] %v3017_v48  ;;  %3981 = vst [vmem:[#allocation13_spill] sm:$0xff] %v3020_v6  ;;  %v311_v10 = vmul.f32 0.03125, %v182_v36  ;;  %v343_v18 = vmul.f32 0.03125, %v278_v26  ;;  %v438_v56 = vmul.f32 %v3017_v48, %v3017_v48  ;;  %v470_v3 = vmul.f32 %v3020_v6, %v3020_v6 }
 0x10b   :  { %v3029_v58 = vsub.f32 %v3982_v44, %v311_v10  ;;  %v3032_v34 = vsub.f32 %v2640_v46, %v343_v18  ;;  %v562_v7 = vsel %vm86_vm0, %v438_v56, 0.0  ;;  %v658_v42 = vsel %vm86_vm0, %v470_v3, 0.0 }
 0x10c   :  { %656 = vadd.xlane.f32.xlu1 %v655_v59  ;;  %563 = vadd.xlane.f32.xlu0 %v562_v7 }
 0x10d   :  { %3983 = vst [vmem:[#allocation14_spill] sm:$0xff] %v3029_v58  ;;  %3984 = vst [vmem:[#allocation21_spill] sm:$0xff] %v3032_v34  ;;  %v439_v60 = vmul.f32 %v3029_v58, %v3029_v58  ;;  %v471_v50 = vmul.f32 %v3032_v34, %v3032_v34 }
 0x10f   :  { %v565_v52 = vsel %vm86_vm0, %v439_v60, 0.0  ;;  %v661_v36 = vsel %vm86_vm0, %v471_v50, 0.0 }
 0x110   :  { %659 = vadd.xlane.f32.xlu1 %v658_v42  ;;  %566 = vadd.xlane.f32.xlu0 %v565_v52 }
 0x114   :  { %662 = vadd.xlane.f32.xlu1 %v661_v36 }
 0x11d   :  { %v474_v46 = vpop.xlane.xlu0 %473 }
 0x11e   :  { %v664_v26 = vmul.f32 0.03125, %v474_v46 }
 0x120   :  { %v728_v56 = vadd.f32 1e-06, %v664_v26 }
 0x121   :  { %v570_v59 = vpop.xlane.xlu1 %569  ;;  %v477_v10 = vpop.xlane.xlu0 %476 }
 0x122   :  { %2033 = vrsqrt.f32 %v728_v56  ;;  %v696_v18 = vmul.f32 0.03125, %v570_v59  ;;  %v665_v3 = vmul.f32 0.03125, %v477_v10 }
 0x124   :  { %v760_v44 = vadd.f32 1e-06, %v696_v18  ;;  %v729_v7 = vadd.f32 1e-06, %v665_v3 }
 0x125   :  { %v573_v58 = vpop.xlane.xlu1 %572  ;;  %v480_v6 = vpop.xlane.xlu0 %479 }
 0x126   :  { %2035 = vrsqrt.f32 %v760_v44  ;;  %v697_v34 = vmul.f32 0.03125, %v573_v58  ;;  %v666_v60 = vmul.f32 0.03125, %v480_v6  ;;  %v3045_v58 = vld [vmem:[%s3901_s1] ss:$0 sm:$0xff] }
 0x127   :  { %2037 = vrsqrt.f32 %v729_v7 }
 0x128   :  { %v761_v42 = vadd.f32 1e-06, %v697_v34  ;;  %v730_v52 = vadd.f32 1e-06, %v666_v60 }
 0x129   :  { %v576_v50 = vpop.xlane.xlu1 %575  ;;  %v483_v36 = vpop.xlane.xlu0 %482 }
 0x12a   :  { %2039 = vrsqrt.f32 %v761_v42  ;;  %v698_v46 = vmul.f32 0.03125, %v576_v50  ;;  %v667_v26 = vmul.f32 0.03125, %v483_v36  ;;  %v3051_v42 = vld [vmem:[%s3902_s2] ss:$0 sm:$0xff] }
 0x12b   :  { %2041 = vrsqrt.f32 %v730_v52 }
 0x12c   :  { %v762_v48 = vadd.f32 1e-06, %v698_v46  ;;  %v731_v56 = vadd.f32 1e-06, %v667_v26 }
 0x12d   :  { %v579_v59 = vpop.xlane.xlu1 %578  ;;  %v486_v10 = vpop.xlane.xlu0 %485 }
 0x12e   :  { %2043 = vrsqrt.f32 %v762_v48  ;;  %v699_v18 = vmul.f32 0.03125, %v579_v59  ;;  %v668_v3 = vmul.f32 0.03125, %v486_v10 }
 0x12f   :  { %v2034_v51 = vpop.eup %2033  ;;  %2045 = vrsqrt.f32 %v731_v56 }
 0x130   :  { %v763_v6 = vadd.f32 1e-06, %v699_v18  ;;  %v732_v34 = vadd.f32 1e-06, %v668_v3  ;;  %v856_v44 = vmul.f32 %v2034_v51, %v2647_v39  ;;  %v3985_v18 = vld [vmem:[#allocation15_spill] sm:$0xff] }
 0x131   :  { %v582_v7 = vpop.xlane.xlu1 %581  ;;  %v489_v60 = vpop.xlane.xlu0 %488 }
 0x132   :  { %2047 = vrsqrt.f32 %v763_v6  ;;  %v700_v48 = vmul.f32 0.03125, %v582_v7  ;;  %v669_v52 = vmul.f32 0.03125, %v489_v60  ;;  %v927_v50 = vmul.f32 %v3045_v58, %v856_v44 }
 0x133   :  { %v2036_v36 = vpop.eup %2035  ;;  %2049 = vrsqrt.f32 %v732_v34 }
 0x134   :  { %v2038_v46 = vpop.eup %2037  ;;  %v764_v26 = vadd.f32 1e-06, %v700_v48  ;;  %v733_v56 = vadd.f32 1e-06, %v669_v52  ;;  %v998_v59 = vadd.f32 %v3051_v42, %v927_v50  ;;  %v888_v39 = vmul.f32 %v2036_v36, %v2657_v63 }
 0x135   :  { %v585_v51 = vpop.xlane.xlu1 %584  ;;  %v492_v10 = vpop.xlane.xlu0 %491  ;;  %v857_v3 = vmul.f32 %v2038_v46, %v3985_v18 }
 0x136   :  { %2051 = vrsqrt.f32 %v764_v26  ;;  %v701_v30 = vmul.f32 0.03125, %v585_v51  ;;  %v670_v6 = vmul.f32 0.03125, %v492_v10  ;;  %1062 = vst.msk [vmem:[%s3903_s5] sm:$0xff] %vm86_vm0, %v998_v59  ;;  %1929 = vmatprep.mubr.msk.f32.mxu0 %vm86_vm0, %v998_v59  ;;  %v959_v34 = vmul.f32 %v3045_v58, %v888_v39 }
 0x137   :  { %v2040_v44 = vpop.eup %2039  ;;  %2053 = vrsqrt.f32 %v733_v56  ;;  %v928_v63 = vmul.f32 %v3045_v58, %v857_v3 }
 0x138   :  { %v2042_v7 = vpop.eup %2041  ;;  %v765_v60 = vadd.f32 1e-06, %v701_v30  ;;  %v734_v48 = vadd.f32 1e-06, %v670_v6  ;;  %v1030_v52 = vadd.f32 %v3051_v42, %v959_v34  ;;  %v889_v50 = vmul.f32 %v2040_v44, %v2660_v14 }
 0x139   :  { %v588_v36 = vpop.xlane.xlu1 %587  ;;  %v495_v46 = vpop.xlane.xlu0 %494  ;;  %v999_v26 = vadd.f32 %v3051_v42, %v928_v63  ;;  %v858_v51 = vmul.f32 %v2042_v7, %v2669_v2 }
 0x13a   :  { %2055 = vrsqrt.f32 %v765_v60  ;;  %v702_v59 = vmul.f32 0.03125, %v588_v36  ;;  %v671_v39 = vmul.f32 0.03125, %v495_v46  ;;  %1094 = vst.msk [vmem:[%s3903_s5 + $0x100] sm:$0xff] %vm86_vm0, %v1030_v52  ;;  %1977 = vmatprep.mubr.msk.f32.mxu1 %vm86_vm0, %v1030_v52  ;;  %v960_v30 = vmul.f32 %v3045_v58, %v889_v50 }
 0x13b   :  { %v2044_v56 = vpop.eup %2043  ;;  %2057 = vrsqrt.f32 %v734_v48  ;;  %1063 = vst.msk [vmem:[%s3903_s5 + $0x8] sm:$0xff] %vm86_vm0, %v999_v26  ;;  %1930 = vmatmul.mubr.msk.f32.vlgmr.msra.gmra.mxu0 %vm86_vm0, %v999_v26  ;;  %v929_v14 = vmul.f32 %v3045_v58, %v858_v51 }
 0x13c   :  { %v2046_v2 = vpop.eup %2045  ;;  %v766_v10 = vadd.f32 1e-06, %v702_v59  ;;  %v735_v18 = vadd.f32 1e-06, %v671_v39  ;;  %v1031_v3 = vadd.f32 %v3051_v42, %v960_v30  ;;  %v890_v6 = vmul.f32 %v2044_v56, %v2672_v5 }
 0x13d   :  { %v591_v34 = vpop.xlane.xlu1 %590  ;;  %v498_v44 = vpop.xlane.xlu0 %497  ;;  %v1000_v63 = vadd.f32 %v3051_v42, %v929_v14  ;;  %v859_v7 = vmul.f32 %v2046_v2, %v2681_v15 }
 0x13e   :  { %2059 = vrsqrt.f32 %v766_v10  ;;  %v703_v60 = vmul.f32 0.03125, %v591_v34  ;;  %v672_v48 = vmul.f32 0.03125, %v498_v44  ;;  %1095 = vst.msk [vmem:[%s3903_s5 + $0x108] sm:$0xff] %vm86_vm0, %v1031_v3  ;;  %1978 = vmatmul.mubr.msk.f32.vlgmr.msra.gmra.mxu1 %vm86_vm0, %v1031_v3  ;;  %v961_v52 = vmul.f32 %v3045_v58, %v890_v6 }
 0x13f   :  { %v2048_v50 = vpop.eup %2047  ;;  %2061 = vrsqrt.f32 %v735_v18  ;;  %1064 = vst.msk [vmem:[%s3903_s5 + $0x10] sm:$0xff] %vm86_vm0, %v1000_v63  ;;  %1932 = vmatprep.mubr.msk.f32.mxu0 %vm86_vm0, %v1000_v63  ;;  %v930_v5 = vmul.f32 %v3045_v58, %v859_v7 }
 0x140   :  { %v2050_v15 = vpop.eup %2049  ;;  %v767_v36 = vadd.f32 1e-06, %v703_v60  ;;  %v736_v46 = vadd.f32 1e-06, %v672_v48  ;;  %v1032_v26 = vadd.f32 %v3051_v42, %v961_v52  ;;  %v891_v51 = vmul.f32 %v2048_v50, %v2684_v9 }
 0x141   :  { %v594_v59 = vpop.xlane.xlu1 %593  ;;  %v501_v39 = vpop.xlane.xlu0 %500  ;;  %v1001_v30 = vadd.f32 %v3051_v42, %v930_v5  ;;  %v860_v56 = vmul.f32 %v2050_v15, %v2693_v0 }
 0x142   :  { %2063 = vrsqrt.f32 %v767_v36  ;;  %v704_v14 = vmul.f32 0.03125, %v594_v59  ;;  %v673_v2 = vmul.f32 0.03125, %v501_v39  ;;  %1096 = vst.msk [vmem:[%s3903_s5 + $0x110] sm:$0xff] %vm86_vm0, %v1032_v26  ;;  %1980 = vmatprep.mubr.msk.f32.mxu1 %vm86_vm0, %v1032_v26  ;;  %v962_v10 = vmul.f32 %v3045_v58, %v891_v51 }
 0x143   :  { %v2052_v18 = vpop.eup %2051  ;;  %2065 = vrsqrt.f32 %v736_v46  ;;  %1065 = vst.msk [vmem:[%s3903_s5 + $0x18] sm:$0xff] %vm86_vm0, %v1001_v30  ;;  %1933 = vmatmul.mubr.msk.f32.gmra.mxu0 %vm86_vm0, %v1001_v30  ;;  %v931_v9 = vmul.f32 %v3045_v58, %v860_v56 }
 0x144   :  { %v2054_v0 = vpop.eup %2053  ;;  %v768_v3 = vadd.f32 1e-06, %v704_v14  ;;  %v737_v6 = vadd.f32 1e-06, %v673_v2  ;;  %v1033_v34 = vadd.f32 %v3051_v42, %v962_v10  ;;  %v892_v44 = vmul.f32 %v2052_v18, %v2696_v13 }
 0x145   :  { %v597_v63 = vpop.xlane.xlu1 %596  ;;  %v504_v7 = vpop.xlane.xlu0 %503  ;;  %v1002_v60 = vadd.f32 %v3051_v42, %v931_v9  ;;  %v861_v48 = vmul.f32 %v2054_v0, %v2705_v22 }
 0x146   :  { %2067 = vrsqrt.f32 %v768_v3  ;;  %v705_v52 = vmul.f32 0.03125, %v597_v63  ;;  %v674_v50 = vmul.f32 0.03125, %v504_v7  ;;  %1097 = vst.msk [vmem:[%s3903_s5 + $0x118] sm:$0xff] %vm86_vm0, %v1033_v34  ;;  %1981 = vmatmul.mubr.msk.f32.gmra.mxu1 %vm86_vm0, %v1033_v34  ;;  %v963_v5 = vmul.f32 %v3045_v58, %v892_v44 }
 0x147   :  { %v2056_v15 = vpop.eup %2055  ;;  %2069 = vrsqrt.f32 %v737_v6  ;;  %1066 = vst.msk [vmem:[%s3903_s5 + $0x20] sm:$0xff] %vm86_vm0, %v1002_v60  ;;  %1935 = vmatprep.mubr.msk.f32.mxu0 %vm86_vm0, %v1002_v60  ;;  %v932_v13 = vmul.f32 %v3045_v58, %v861_v48 }
 0x148   :  { %v2058_v22 = vpop.eup %2057  ;;  %v769_v36 = vadd.f32 1e-06, %v705_v52  ;;  %v738_v46 = vadd.f32 1e-06, %v674_v50  ;;  %v1034_v26 = vadd.f32 %v3051_v42, %v963_v5  ;;  %v893_v51 = vmul.f32 %v2056_v15, %v2708_v17 }
 0x149   :  { %v600_v59 = vpop.xlane.xlu1 %599  ;;  %v507_v39 = vpop.xlane.xlu0 %506  ;;  %v1003_v30 = vadd.f32 %v3051_v42, %v932_v13  ;;  %v862_v56 = vmul.f32 %v2058_v22, %v2717_v55 }
 0x14a   :  { %2071 = vrsqrt.f32 %v769_v36  ;;  %v706_v14 = vmul.f32 0.03125, %v600_v59  ;;  %v675_v2 = vmul.f32 0.03125, %v507_v39  ;;  %1098 = vst.msk [vmem:[%s3903_s5 + $0x120] sm:$0xff] %vm86_vm0, %v1034_v26  ;;  %1983 = vmatprep.mubr.msk.f32.mxu1 %vm86_vm0, %v1034_v26  ;;  %v964_v10 = vmul.f32 %v3045_v58, %v893_v51 }
 0x14b   :  { %v2060_v18 = vpop.eup %2059  ;;  %2073 = vrsqrt.f32 %v738_v46  ;;  %1067 = vst.msk [vmem:[%s3903_s5 + $0x28] sm:$0xff] %vm86_vm0, %v1003_v30  ;;  %1936 = vmatmul.mubr.msk.f32.gmra.mxu0 %vm86_vm0, %v1003_v30  ;;  %v933_v17 = vmul.f32 %v3045_v58, %v862_v56 }
 0x14c   :  { %v2062_v55 = vpop.eup %2061  ;;  %v770_v9 = vadd.f32 1e-06, %v706_v14  ;;  %v739_v0 = vadd.f32 1e-06, %v675_v2  ;;  %v1035_v3 = vadd.f32 %v3051_v42, %v964_v10  ;;  %v894_v6 = vmul.f32 %v2060_v18, %v2720_v21 }
 0x14d   :  { %v603_v34 = vpop.xlane.xlu1 %602  ;;  %v510_v44 = vpop.xlane.xlu0 %509  ;;  %v1004_v63 = vadd.f32 %v3051_v42, %v933_v17  ;;  %v863_v7 = vmul.f32 %v2062_v55, %v2729_v62 }
 0x14e   :  { %2075 = vrsqrt.f32 %v770_v9  ;;  %v707_v60 = vmul.f32 0.03125, %v603_v34  ;;  %v676_v48 = vmul.f32 0.03125, %v510_v44  ;;  %1099 = vst.msk [vmem:[%s3903_s5 + $0x128] sm:$0xff] %vm86_vm0, %v1035_v3  ;;  %1984 = vmatmul.mubr.msk.f32.gmra.mxu1 %vm86_vm0, %v1035_v3  ;;  %v965_v52 = vmul.f32 %v3045_v58, %v894_v6 }
 0x14f   :  { %v2064_v50 = vpop.eup %2063  ;;  %2077 = vrsqrt.f32 %v739_v0  ;;  %1068 = vst.msk [vmem:[%s3903_s5 + $0x30] sm:$0xff] %vm86_vm0, %v1004_v63  ;;  %1938 = vmatprep.mubr.msk.f32.mxu0 %vm86_vm0, %v1004_v63  ;;  %v934_v21 = vmul.f32 %v3045_v58, %v863_v7 }
 0x150   :  { %v2066_v62 = vpop.eup %2065  ;;  %v771_v5 = vadd.f32 1e-06, %v707_v60  ;;  %v740_v15 = vadd.f32 1e-06, %v676_v48  ;;  %v1036_v13 = vadd.f32 %v3051_v42, %v965_v52  ;;  %v895_v22 = vmul.f32 %v2064_v50, %v2732_v25  ;;  %v3986_v48 = vld [vmem:[#allocation16_spill] sm:$0xff] }
 0x151   :  { %v606_v36 = vpop.xlane.xlu1 %605  ;;  %v513_v46 = vpop.xlane.xlu0 %512  ;;  %v1005_v26 = vadd.f32 %v3051_v42, %v934_v21  ;;  %v864_v51 = vmul.f32 %v2066_v62, %v2741_v31 }
 0x152   :  { %2079 = vrsqrt.f32 %v771_v5  ;;  %v708_v59 = vmul.f32 0.03125, %v606_v36  ;;  %v677_v39 = vmul.f32 0.03125, %v513_v46  ;;  %1100 = vst.msk [vmem:[%s3903_s5 + $0x130] sm:$0xff] %vm86_vm0, %v1036_v13  ;;  %1986 = vmatprep.mubr.msk.f32.mxu1 %vm86_vm0, %v1036_v13  ;;  %v966_v30 = vmul.f32 %v3045_v58, %v895_v22 }
 0x153   :  { %v2068_v56 = vpop.eup %2067  ;;  %2081 = vrsqrt.f32 %v740_v15  ;;  %1069 = vst.msk [vmem:[%s3903_s5 + $0x38] sm:$0xff] %vm86_vm0, %v1005_v26  ;;  %1939 = vmatmul.mubr.msk.f32.gmra.mxu0 %vm86_vm0, %v1005_v26  ;;  %v935_v25 = vmul.f32 %v3045_v58, %v864_v51 }
 0x154   :  { %v2070_v31 = vpop.eup %2069  ;;  %v772_v14 = vadd.f32 1e-06, %v708_v59  ;;  %v741_v2 = vadd.f32 1e-06, %v677_v39  ;;  %v1037_v10 = vadd.f32 %v3051_v42, %v966_v30  ;;  %v896_v18 = vmul.f32 %v2068_v56, %v2744_v29 }
 0x155   :  { %v609_v17 = vpop.xlane.xlu1 %608  ;;  %v516_v55 = vpop.xlane.xlu0 %515  ;;  %v1006_v9 = vadd.f32 %v3051_v42, %v935_v25  ;;  %v865_v0 = vmul.f32 %v2070_v31, %v2756_v8 }
 0x156   :  { %2083 = vrsqrt.f32 %v772_v14  ;;  %v709_v3 = vmul.f32 0.03125, %v609_v17  ;;  %v678_v6 = vmul.f32 0.03125, %v516_v55  ;;  %1101 = vst.msk [vmem:[%s3903_s5 + $0x138] sm:$0xff] %vm86_vm0, %v1037_v10  ;;  %1987 = vmatmul.mubr.msk.f32.gmra.mxu1 %vm86_vm0, %v1037_v10  ;;  %v967_v34 = vmul.f32 %v3045_v58, %v896_v18 }
 0x157   :  { %v2072_v44 = vpop.eup %2071  ;;  %2085 = vrsqrt.f32 %v741_v2  ;;  %1070 = vst.msk [vmem:[%s3903_s5 + $0x40] sm:$0xff] %vm86_vm0, %v1006_v9  ;;  %1941 = vmatprep.mubr.msk.f32.mxu0 %vm86_vm0, %v1006_v9  ;;  %v936_v29 = vmul.f32 %v3045_v58, %v865_v0 }
 0x158   :  { %v2074_v8 = vpop.eup %2073  ;;  %v773_v63 = vadd.f32 1e-06, %v709_v3  ;;  %v742_v7 = vadd.f32 1e-06, %v678_v6  ;;  %v1038_v60 = vadd.f32 %v3051_v42, %v967_v34  ;;  %v897_v52 = vmul.f32 %v2072_v44, %v3986_v48 }
 0x159   :  { %v612_v50 = vpop.xlane.xlu1 %611  ;;  %v519_v21 = vpop.xlane.xlu0 %518  ;;  %v1007_v62 = vadd.f32 %v3051_v42, %v936_v29  ;;  %v866_v5 = vmul.f32 %v2074_v8, %v2774_v1 }
 0x15a   :  { %2087 = vrsqrt.f32 %v773_v63  ;;  %v710_v15 = vmul.f32 0.03125, %v612_v50  ;;  %v679_v13 = vmul.f32 0.03125, %v519_v21  ;;  %1102 = vst.msk [vmem:[%s3903_s5 + $0x140] sm:$0xff] %vm86_vm0, %v1038_v60  ;;  %1989 = vmatprep.mubr.msk.f32.mxu1 %vm86_vm0, %v1038_v60  ;;  %v968_v22 = vmul.f32 %v3045_v58, %v897_v52 }
 0x15b   :  { %v2076_v36 = vpop.eup %2075  ;;  %2089 = vrsqrt.f32 %v742_v7  ;;  %1071 = vst.msk [vmem:[%s3903_s5 + $0x48] sm:$0xff] %vm86_vm0, %v1007_v62  ;;  %1942 = vmatmul.mubr.msk.f32.gmra.mxu0 %vm86_vm0, %v1007_v62  ;;  %v937_v1 = vmul.f32 %v3045_v58, %v866_v5 }
 0x15c   :  { %v2078_v46 = vpop.eup %2077  ;;  %v774_v26 = vadd.f32 1e-06, %v710_v15  ;;  %v743_v51 = vadd.f32 1e-06, %v679_v13  ;;  %v1039_v59 = vadd.f32 %v3051_v42, %v968_v22  ;;  %v898_v39 = vmul.f32 %v2076_v36, %v2777_v54 }
 0x15d   :  { %v615_v30 = vpop.xlane.xlu1 %614  ;;  %v522_v56 = vpop.xlane.xlu0 %521  ;;  %v1008_v25 = vadd.f32 %v3051_v42, %v937_v1  ;;  %v867_v31 = vmul.f32 %v2078_v46, %v2789_v16 }
 0x15e   :  { %2091 = vrsqrt.f32 %v774_v26  ;;  %v711_v14 = vmul.f32 0.03125, %v615_v30  ;;  %v680_v2 = vmul.f32 0.03125, %v522_v56  ;;  %1103 = vst.msk [vmem:[%s3903_s5 + $0x148] sm:$0xff] %vm86_vm0, %v1039_v59  ;;  %1990 = vmatmul.mubr.msk.f32.gmra.mxu1 %vm86_vm0, %v1039_v59  ;;  %v969_v10 = vmul.f32 %v3045_v58, %v898_v39 }
 0x15f   :  { %v2080_v18 = vpop.eup %2079  ;;  %2093 = vrsqrt.f32 %v743_v51  ;;  %1072 = vst.msk [vmem:[%s3903_s5 + $0x50] sm:$0xff] %vm86_vm0, %v1008_v25  ;;  %1944 = vmatprep.mubr.msk.f32.mxu0 %vm86_vm0, %v1008_v25  ;;  %v938_v54 = vmul.f32 %v3045_v58, %v867_v31 }
 0x160   :  { %v2082_v16 = vpop.eup %2081  ;;  %v775_v17 = vadd.f32 1e-06, %v711_v14  ;;  %v744_v55 = vadd.f32 1e-06, %v680_v2  ;;  %v1040_v9 = vadd.f32 %v3051_v42, %v969_v10  ;;  %v899_v0 = vmul.f32 %v2080_v18, %v2792_v23 }
 0x161   :  { %v618_v3 = vpop.xlane.xlu1 %617  ;;  %v525_v6 = vpop.xlane.xlu0 %524  ;;  %v1009_v34 = vadd.f32 %v3051_v42, %v938_v54  ;;  %v868_v44 = vmul.f32 %v2082_v16, %v2801_v45 }
 0x162   :  { %2095 = vrsqrt.f32 %v775_v17  ;;  %v712_v29 = vmul.f32 0.03125, %v618_v3  ;;  %v681_v8 = vmul.f32 0.03125, %v525_v6  ;;  %1104 = vst.msk [vmem:[%s3903_s5 + $0x150] sm:$0xff] %vm86_vm0, %v1040_v9  ;;  %1992 = vmatprep.mubr.msk.f32.mxu1 %vm86_vm0, %v1040_v9  ;;  %v970_v63 = vmul.f32 %v3045_v58, %v899_v0 }
 0x163   :  { %v2084_v7 = vpop.eup %2083  ;;  %2097 = vrsqrt.f32 %v744_v55  ;;  %1073 = vst.msk [vmem:[%s3903_s5 + $0x58] sm:$0xff] %vm86_vm0, %v1009_v34  ;;  %1945 = vmatmul.mubr.msk.f32.gmra.mxu0 %vm86_vm0, %v1009_v34  ;;  %v939_v23 = vmul.f32 %v3045_v58, %v868_v44 }
 0x164   :  { %v2086_v45 = vpop.eup %2085  ;;  %v776_v60 = vadd.f32 1e-06, %v712_v29  ;;  %v745_v48 = vadd.f32 1e-06, %v681_v8  ;;  %v1041_v52 = vadd.f32 %v3051_v42, %v970_v63  ;;  %v900_v50 = vmul.f32 %v2084_v7, %v2804_v20 }
 0x165   :  { %v621_v21 = vpop.xlane.xlu1 %620  ;;  %v528_v62 = vpop.xlane.xlu0 %527  ;;  %v1010_v5 = vadd.f32 %v3051_v42, %v939_v23  ;;  %v869_v15 = vmul.f32 %v2086_v45, %v2813_v28 }
 0x166   :  { %2099 = vrsqrt.f32 %v776_v60  ;;  %v713_v13 = vmul.f32 0.03125, %v621_v21  ;;  %v682_v22 = vmul.f32 0.03125, %v528_v62  ;;  %1105 = vst.msk [vmem:[%s3903_s5 + $0x158] sm:$0xff] %vm86_vm0, %v1041_v52  ;;  %1993 = vmatmul.mubr.msk.f32.gmra.mxu1 %vm86_vm0, %v1041_v52  ;;  %v971_v36 = vmul.f32 %v3045_v58, %v900_v50 }
 0x167   :  { %v2088_v1 = vpop.eup %2087  ;;  %2101 = vrsqrt.f32 %v745_v48  ;;  %1074 = vst.msk [vmem:[%s3903_s5 + $0x60] sm:$0xff] %vm86_vm0, %v1010_v5  ;;  %1947 = vmatprep.mubr.msk.f32.mxu0 %vm86_vm0, %v1010_v5  ;;  %v940_v20 = vmul.f32 %v3045_v58, %v869_v15 }
 0x168   :  { %v2090_v28 = vpop.eup %2089  ;;  %v777_v46 = vadd.f32 1e-06, %v713_v13  ;;  %v746_v26 = vadd.f32 1e-06, %v682_v22  ;;  %v1042_v51 = vadd.f32 %v3051_v42, %v971_v36  ;;  %v901_v59 = vmul.f32 %v2088_v1, %v2816_v49 }
 0x169   :  { %v624_v39 = vpop.xlane.xlu1 %623  ;;  %v531_v30 = vpop.xlane.xlu0 %530  ;;  %v1011_v56 = vadd.f32 %v3051_v42, %v940_v20  ;;  %v870_v25 = vmul.f32 %v2090_v28, %v2825_v41 }
 0x16a   :  { %2103 = vrsqrt.f32 %v777_v46  ;;  %v714_v31 = vmul.f32 0.03125, %v624_v39  ;;  %v683_v14 = vmul.f32 0.03125, %v531_v30  ;;  %1106 = vst.msk [vmem:[%s3903_s5 + $0x160] sm:$0xff] %vm86_vm0, %v1042_v51  ;;  %1995 = vmatprep.mubr.msk.f32.mxu1 %vm86_vm0, %v1042_v51  ;;  %v972_v2 = vmul.f32 %v3045_v58, %v901_v59 }
 0x16b   :  { %v2092_v10 = vpop.eup %2091  ;;  %2105 = vrsqrt.f32 %v746_v26  ;;  %1075 = vst.msk [vmem:[%s3903_s5 + $0x68] sm:$0xff] %vm86_vm0, %v1011_v56  ;;  %1948 = vmatmul.mubr.msk.f32.gmra.mxu0 %vm86_vm0, %v1011_v56  ;;  %v941_v49 = vmul.f32 %v3045_v58, %v870_v25 }
 0x16c   :  { %v2094_v41 = vpop.eup %2093  ;;  %v778_v18 = vadd.f32 1e-06, %v714_v31  ;;  %v747_v54 = vadd.f32 1e-06, %v683_v14  ;;  %v1043_v16 = vadd.f32 %v3051_v42, %v972_v2  ;;  %v902_v17 = vmul.f32 %v2092_v10, %v2828_v53 }
 0x16d   :  { %v627_v55 = vpop.xlane.xlu1 %626  ;;  %v534_v9 = vpop.xlane.xlu0 %533  ;;  %v1012_v0 = vadd.f32 %v3051_v42, %v941_v49  ;;  %v871_v3 = vmul.f32 %v2094_v41, %v2837_v33 }
 0x16e   :  { %2107 = vrsqrt.f32 %v778_v18  ;;  %v715_v6 = vmul.f32 0.03125, %v627_v55  ;;  %v684_v34 = vmul.f32 0.03125, %v534_v9  ;;  %1107 = vst.msk [vmem:[%s3903_s5 + $0x168] sm:$0xff] %vm86_vm0, %v1043_v16  ;;  %1996 = vmatmul.mubr.msk.f32.gmra.mxu1 %vm86_vm0, %v1043_v16  ;;  %v973_v44 = vmul.f32 %v3045_v58, %v902_v17 }
 0x16f   :  { %v2096_v29 = vpop.eup %2095  ;;  %2109 = vrsqrt.f32 %v747_v54  ;;  %1076 = vst.msk [vmem:[%s3903_s5 + $0x70] sm:$0xff] %vm86_vm0, %v1012_v0  ;;  %1950 = vmatprep.mubr.msk.f32.mxu0 %vm86_vm0, %v1012_v0  ;;  %v942_v53 = vmul.f32 %v3045_v58, %v871_v3 }
 0x170   :  { %v2098_v33 = vpop.eup %2097  ;;  %v779_v8 = vadd.f32 1e-06, %v715_v6  ;;  %v748_v63 = vadd.f32 1e-06, %v684_v34  ;;  %v1044_v7 = vadd.f32 %v3051_v42, %v973_v44  ;;  %v903_v23 = vmul.f32 %v2096_v29, %v2840_v57 }
 0x171   :  { %v630_v45 = vpop.xlane.xlu1 %629  ;;  %v537_v60 = vpop.xlane.xlu0 %536  ;;  %v1013_v48 = vadd.f32 %v3051_v42, %v942_v53  ;;  %v872_v52 = vmul.f32 %v2098_v33, %v2849_v37 }
 0x172   :  { %2111 = vrsqrt.f32 %v779_v8  ;;  %v716_v50 = vmul.f32 0.03125, %v630_v45  ;;  %v685_v21 = vmul.f32 0.03125, %v537_v60  ;;  %1108 = vst.msk [vmem:[%s3903_s5 + $0x170] sm:$0xff] %vm86_vm0, %v1044_v7  ;;  %1998 = vmatprep.mubr.msk.f32.mxu1 %vm86_vm0, %v1044_v7  ;;  %v974_v62 = vmul.f32 %v3045_v58, %v903_v23 }
 0x173   :  { %v2100_v5 = vpop.eup %2099  ;;  %2113 = vrsqrt.f32 %v748_v63  ;;  %1077 = vst.msk [vmem:[%s3903_s5 + $0x78] sm:$0xff] %vm86_vm0, %v1013_v48  ;;  %1951 = vmatmul.mubr.msk.f32.gmra.mxu0 %vm86_vm0, %v1013_v48  ;;  %v943_v57 = vmul.f32 %v3045_v58, %v872_v52 }
 0x174   :  { %v2102_v37 = vpop.eup %2101  ;;  %v780_v15 = vadd.f32 1e-06, %v716_v50  ;;  %v749_v13 = vadd.f32 1e-06, %v685_v21  ;;  %v1045_v22 = vadd.f32 %v3051_v42, %v974_v62  ;;  %v904_v36 = vmul.f32 %v2100_v5, %v2852_v61 }
 0x175   :  { %v633_v1 = vpop.xlane.xlu1 %632  ;;  %v540_v20 = vpop.xlane.xlu0 %539  ;;  %v1014_v28 = vadd.f32 %v3051_v42, %v943_v57  ;;  %v873_v46 = vmul.f32 %v2102_v37, %v2861_v38 }
 0x176   :  { %2115 = vrsqrt.f32 %v780_v15  ;;  %v717_v26 = vmul.f32 0.03125, %v633_v1  ;;  %v686_v51 = vmul.f32 0.03125, %v540_v20  ;;  %1109 = vst.msk [vmem:[%s3903_s5 + $0x178] sm:$0xff] %vm86_vm0, %v1045_v22  ;;  %1999 = vmatmul.mubr.msk.f32.gmra.mxu1 %vm86_vm0, %v1045_v22  ;;  %v975_v59 = vmul.f32 %v3045_v58, %v904_v36 }
 0x177   :  { %v2104_v39 = vpop.eup %2103  ;;  %2117 = vrsqrt.f32 %v749_v13  ;;  %1078 = vst.msk [vmem:[%s3903_s5 + $0x80] sm:$0xff] %vm86_vm0, %v1014_v28  ;;  %1953 = vmatprep.mubr.msk.f32.mxu0 %vm86_vm0, %v1014_v28  ;;  %v944_v61 = vmul.f32 %v3045_v58, %v873_v46 }
 0x178   :  { %v2106_v38 = vpop.eup %2105  ;;  %v781_v30 = vadd.f32 1e-06, %v717_v26  ;;  %v750_v56 = vadd.f32 1e-06, %v686_v51  ;;  %v1046_v25 = vadd.f32 %v3051_v42, %v975_v59  ;;  %v905_v31 = vmul.f32 %v2104_v39, %v2864_v4 }
 0x179   :  { %v636_v14 = vpop.xlane.xlu1 %635  ;;  %v543_v2 = vpop.xlane.xlu0 %542  ;;  %v1015_v10 = vadd.f32 %v3051_v42, %v944_v61  ;;  %v874_v49 = vmul.f32 %v2106_v38, %v2873_v32 }
 0x17a   :  { %2119 = vrsqrt.f32 %v781_v30  ;;  %v718_v41 = vmul.f32 0.03125, %v636_v14  ;;  %v687_v18 = vmul.f32 0.03125, %v543_v2  ;;  %1110 = vst.msk [vmem:[%s3903_s5 + $0x180] sm:$0xff] %vm86_vm0, %v1046_v25  ;;  %2001 = vmatprep.mubr.msk.f32.mxu1 %vm86_vm0, %v1046_v25  ;;  %v976_v54 = vmul.f32 %v3045_v58, %v905_v31 }
 0x17b   :  { %v2108_v16 = vpop.eup %2107  ;;  %2121 = vrsqrt.f32 %v750_v56  ;;  %1079 = vst.msk [vmem:[%s3903_s5 + $0x88] sm:$0xff] %vm86_vm0, %v1015_v10  ;;  %1954 = vmatmul.mubr.msk.f32.gmra.mxu0 %vm86_vm0, %v1015_v10  ;;  %v945_v4 = vmul.f32 %v3045_v58, %v874_v49 }
 0x17c   :  { %v2110_v32 = vpop.eup %2109  ;;  %v782_v17 = vadd.f32 1e-06, %v718_v41  ;;  %v751_v55 = vadd.f32 1e-06, %v687_v18  ;;  %v1047_v9 = vadd.f32 %v3051_v42, %v976_v54  ;;  %v906_v0 = vmul.f32 %v2108_v16, %v2876_v11 }
 0x17d   :  { %v639_v3 = vpop.xlane.xlu1 %638  ;;  %v546_v6 = vpop.xlane.xlu0 %545  ;;  %v1016_v34 = vadd.f32 %v3051_v42, %v945_v4  ;;  %v875_v44 = vmul.f32 %v2110_v32, %v2885_v47 }
 0x17e   :  { %2123 = vrsqrt.f32 %v782_v17  ;;  %v719_v29 = vmul.f32 0.03125, %v639_v3  ;;  %v688_v53 = vmul.f32 0.03125, %v546_v6  ;;  %1111 = vst.msk [vmem:[%s3903_s5 + $0x188] sm:$0xff] %vm86_vm0, %v1047_v9  ;;  %2002 = vmatmul.mubr.msk.f32.gmra.mxu1 %vm86_vm0, %v1047_v9  ;;  %v977_v33 = vmul.f32 %v3045_v58, %v906_v0  ;;  %v3987_v9 = vld [vmem:[#allocation17_spill] sm:$0xff] }
 0x17f   :  { %v2112_v8 = vpop.eup %2111  ;;  %2125 = vrsqrt.f32 %v751_v55  ;;  %1080 = vst.msk [vmem:[%s3903_s5 + $0x90] sm:$0xff] %vm86_vm0, %v1016_v34  ;;  %1956 = vmatprep.mubr.msk.f32.mxu0 %vm86_vm0, %v1016_v34  ;;  %v946_v11 = vmul.f32 %v3045_v58, %v875_v44 }
 0x180   :  { %v2114_v47 = vpop.eup %2113  ;;  %v783_v63 = vadd.f32 1e-06, %v719_v29  ;;  %v752_v7 = vadd.f32 1e-06, %v688_v53  ;;  %v1048_v23 = vadd.f32 %v3051_v42, %v977_v33  ;;  %v907_v45 = vmul.f32 %v2112_v8, %v2888_v19 }
 0x181   :  { %v642_v60 = vpop.xlane.xlu1 %641  ;;  %v549_v48 = vpop.xlane.xlu0 %548  ;;  %v1017_v52 = vadd.f32 %v3051_v42, %v946_v11  ;;  %v876_v50 = vmul.f32 %v2114_v47, %v2897_v24  ;;  %v3988_v11 = vld [vmem:[#allocation18_spill] sm:$0xff] }
 0x182   :  { %2127 = vrsqrt.f32 %v783_v63  ;;  %v720_v21 = vmul.f32 0.03125, %v642_v60  ;;  %v689_v62 = vmul.f32 0.03125, %v549_v48  ;;  %1112 = vst.msk [vmem:[%s3903_s5 + $0x190] sm:$0xff] %vm86_vm0, %v1048_v23  ;;  %2004 = vmatprep.mubr.msk.f32.mxu1 %vm86_vm0, %v1048_v23  ;;  %v978_v5 = vmul.f32 %v3045_v58, %v907_v45  ;;  %v3989_v45 = vld [vmem:[#allocation19_spill] sm:$0xff] }
 0x183   :  { %v2116_v57 = vpop.eup %2115  ;;  %2129 = vrsqrt.f32 %v752_v7  ;;  %1081 = vst.msk [vmem:[%s3903_s5 + $0x98] sm:$0xff] %vm86_vm0, %v1017_v52  ;;  %1957 = vmatmul.mubr.msk.f32.gmra.mxu0 %vm86_vm0, %v1017_v52  ;;  %v947_v19 = vmul.f32 %v3045_v58, %v876_v50 }
 0x184   :  { %v2118_v24 = vpop.eup %2117  ;;  %v784_v37 = vadd.f32 1e-06, %v720_v21  ;;  %v753_v15 = vadd.f32 1e-06, %v689_v62  ;;  %v1049_v13 = vadd.f32 %v3051_v42, %v978_v5  ;;  %v908_v22 = vmul.f32 %v2116_v57, %v2900_v27 }
 0x185   :  { %v645_v36 = vpop.xlane.xlu1 %644  ;;  %v552_v1 = vpop.xlane.xlu0 %551  ;;  %v1018_v20 = vadd.f32 %v3051_v42, %v947_v19  ;;  %v877_v28 = vmul.f32 %v2118_v24, %v2909_v12 }
 0x186   :  { %2131 = vrsqrt.f32 %v784_v37  ;;  %v721_v46 = vmul.f32 0.03125, %v645_v36  ;;  %v690_v26 = vmul.f32 0.03125, %v552_v1  ;;  %1113 = vst.msk [vmem:[%s3903_s5 + $0x198] sm:$0xff] %vm86_vm0, %v1049_v13  ;;  %2005 = vmatmul.mubr.msk.f32.gmra.mxu1 %vm86_vm0, %v1049_v13  ;;  %v979_v51 = vmul.f32 %v3045_v58, %v908_v22  ;;  %v3990_v37 = vld [vmem:[#allocation20_spill] sm:$0xff]  ;;  %v3991_v1 = vld [vmem:[#allocation2_spill] sm:$0xff] }
 0x187   :  { %v2120_v59 = vpop.eup %2119  ;;  %2133 = vrsqrt.f32 %v753_v15  ;;  %1082 = vst.msk [vmem:[%s3903_s5 + $0xa0] sm:$0xff] %vm86_vm0, %v1018_v20  ;;  %1959 = vmatprep.mubr.msk.f32.mxu0 %vm86_vm0, %v1018_v20  ;;  %v948_v27 = vmul.f32 %v3045_v58, %v877_v28 }
 0x188   :  { %v2122_v12 = vpop.eup %2121  ;;  %v785_v39 = vadd.f32 1e-06, %v721_v46  ;;  %v754_v61 = vadd.f32 1e-06, %v690_v26  ;;  %v1050_v38 = vadd.f32 %v3051_v42, %v979_v51  ;;  %v909_v30 = vmul.f32 %v2120_v59, %v2912_v35 }
 0x189   :  { %v648_v56 = vpop.xlane.xlu1 %647  ;;  %v555_v25 = vpop.xlane.xlu0 %554  ;;  %v1019_v31 = vadd.f32 %v3051_v42, %v948_v27  ;;  %v878_v14 = vmul.f32 %v2122_v12, %v2921_v40 }
 0x18a   :  { %2135 = vrsqrt.f32 %v785_v39  ;;  %v722_v2 = vmul.f32 0.03125, %v648_v56  ;;  %v691_v10 = vmul.f32 0.03125, %v555_v25  ;;  %1114 = vst.msk [vmem:[%s3903_s5 + $0x1a0] sm:$0xff] %vm86_vm0, %v1050_v38  ;;  %2007 = vmatprep.mubr.msk.f32.mxu1 %vm86_vm0, %v1050_v38  ;;  %v980_v49 = vmul.f32 %v3045_v58, %v909_v30  ;;  %v3992_v38 = vld [vmem:[#allocation3_spill] sm:$0xff] }
 0x18b   :  { %v2124_v41 = vpop.eup %2123  ;;  %2137 = vrsqrt.f32 %v754_v61  ;;  %1083 = vst.msk [vmem:[%s3903_s5 + $0xa8] sm:$0xff] %vm86_vm0, %v1019_v31  ;;  %1960 = vmatmul.mubr.msk.f32.gmra.mxu0 %vm86_vm0, %v1019_v31  ;;  %v949_v35 = vmul.f32 %v3045_v58, %v878_v14  ;;  %v3453_v31 = vld [vmem:[%s3902_s2] ss:$0 sm:$0xff] }
 0x18c   :  { %v2126_v40 = vpop.eup %2125  ;;  %v786_v18 = vadd.f32 1e-06, %v722_v2  ;;  %v755_v54 = vadd.f32 1e-06, %v691_v10  ;;  %v1051_v16 = vadd.f32 %v3051_v42, %v980_v49  ;;  %v910_v4 = vmul.f32 %v2124_v41, %v2924_v43  ;;  %v3993_v2 = vld [vmem:[#allocation4_spill] sm:$0xff] }
 0x18d   :  { %v651_v32 = vpop.xlane.xlu1 %650  ;;  %v558_v17 = vpop.xlane.xlu0 %557  ;;  %v1020_v55 = vadd.f32 %v3051_v42, %v949_v35  ;;  %v879_v0 = vmul.f32 %v2126_v40, %v3987_v9 }
 0x18e   :  { %2139 = vrsqrt.f32 %v786_v18  ;;  %v723_v3 = vmul.f32 0.03125, %v651_v32  ;;  %v692_v6 = vmul.f32 0.03125, %v558_v17  ;;  %1115 = vst.msk [vmem:[%s3903_s5 + $0x1a8] sm:$0xff] %vm86_vm0, %v1051_v16  ;;  %2008 = vmatmul.mubr.msk.f32.gmra.mxu1 %vm86_vm0, %v1051_v16  ;;  %v981_v34 = vmul.f32 %v3045_v58, %v910_v4  ;;  %v3994_v32 = vld [vmem:[#allocation5_spill] sm:$0xff] }
 0x18f   :  { %v2128_v44 = vpop.eup %2127  ;;  %2141 = vrsqrt.f32 %v755_v54  ;;  %1084 = vst.msk [vmem:[%s3903_s5 + $0xb0] sm:$0xff] %vm86_vm0, %v1020_v55  ;;  %1962 = vmatprep.mubr.msk.f32.mxu0 %vm86_vm0, %v1020_v55  ;;  %v950_v43 = vmul.f32 %v3045_v58, %v879_v0  ;;  %v3995_v0 = vld [vmem:[#allocation6_spill] sm:$0xff] }
 0x190   :  { %v2130_v29 = vpop.eup %2129  ;;  %v787_v53 = vadd.f32 1e-06, %v723_v3  ;;  %v756_v33 = vadd.f32 1e-06, %v692_v6  ;;  %v1052_v8 = vadd.f32 %v3051_v42, %v981_v34  ;;  %v911_v47 = vmul.f32 %v2128_v44, %v3988_v11 }
 0x191   :  { %v654_v63 = vpop.xlane.xlu1 %653  ;;  %v561_v7 = vpop.xlane.xlu0 %560  ;;  %v1021_v23 = vadd.f32 %v3051_v42, %v950_v43  ;;  %v880_v60 = vmul.f32 %v2130_v29, %v3989_v45 }
 0x192   :  { %2143 = vrsqrt.f32 %v787_v53  ;;  %v724_v48 = vmul.f32 0.03125, %v654_v63  ;;  %v693_v52 = vmul.f32 0.03125, %v561_v7  ;;  %1116 = vst.msk [vmem:[%s3903_s5 + $0x1b0] sm:$0xff] %vm86_vm0, %v1052_v8  ;;  %2010 = vmatprep.mubr.msk.f32.mxu1 %vm86_vm0, %v1052_v8  ;;  %v982_v50 = vmul.f32 %v3045_v58, %v911_v47  ;;  %v3996_v8 = vld [vmem:[#allocation7_spill] sm:$0xff]  ;;  %v3997_v63 = vld [vmem:[#allocation8_spill] sm:$0xff] }
 0x193   :  { %v2132_v21 = vpop.eup %2131  ;;  %2145 = vrsqrt.f32 %v756_v33  ;;  %1085 = vst.msk [vmem:[%s3903_s5 + $0xb8] sm:$0xff] %vm86_vm0, %v1021_v23  ;;  %1963 = vmatmul.mubr.msk.f32.gmra.mxu0 %vm86_vm0, %v1021_v23  ;;  %v951_v62 = vmul.f32 %v3045_v58, %v880_v60 }
 0x194   :  { %v2134_v5 = vpop.eup %2133  ;;  %v788_v57 = vadd.f32 1e-06, %v724_v48  ;;  %v757_v19 = vadd.f32 1e-06, %v693_v52  ;;  %v1053_v24 = vadd.f32 %v3051_v42, %v982_v50  ;;  %v912_v15 = vmul.f32 %v2132_v21, %v3990_v37  ;;  %v3998_v50 = vld [vmem:[#allocation9_spill] sm:$0xff] }
 0x195   :  { %v657_v13 = vpop.xlane.xlu1 %656  ;;  %v564_v22 = vpop.xlane.xlu0 %563  ;;  %v1022_v36 = vadd.f32 %v3051_v42, %v951_v62  ;;  %v881_v20 = vmul.f32 %v2134_v5, %v3991_v1  ;;  %v3999_v5 = vld [vmem:[#allocation10_spill] sm:$0xff] }
 0x196   :  { %2147 = vrsqrt.f32 %v788_v57  ;;  %v725_v28 = vmul.f32 0.03125, %v657_v13  ;;  %v694_v46 = vmul.f32 0.03125, %v564_v22  ;;  %1117 = vst.msk [vmem:[%s3903_s5 + $0x1b8] sm:$0xff] %vm86_vm0, %v1053_v24  ;;  %2011 = vmatmul.mubr.msk.f32.gmra.mxu1 %vm86_vm0, %v1053_v24  ;;  %v983_v26 = vmul.f32 %v3045_v58, %v912_v15  ;;  %v4000_v22 = vld [vmem:[#allocation11_spill] sm:$0xff] }
 0x197   :  { %v2136_v51 = vpop.eup %2135  ;;  %2149 = vrsqrt.f32 %v757_v19  ;;  %1086 = vst.msk [vmem:[%s3903_s5 + $0xc0] sm:$0xff] %vm86_vm0, %v1022_v36  ;;  %1965 = vmatprep.mubr.msk.f32.mxu0 %vm86_vm0, %v1022_v36  ;;  %v952_v59 = vmul.f32 %v3045_v58, %v881_v20  ;;  %v4001_v20 = vld [vmem:[#allocation12_spill] sm:$0xff] }
 0x198   :  { %v2138_v27 = vpop.eup %2137  ;;  %v789_v12 = vadd.f32 1e-06, %v725_v28  ;;  %v758_v39 = vadd.f32 1e-06, %v694_v46  ;;  %v1054_v61 = vadd.f32 %v3051_v42, %v983_v26  ;;  %v913_v30 = vmul.f32 %v2136_v51, %v3992_v38  ;;  %v3465_v42 = vld [vmem:[%s3901_s1] ss:$0 sm:$0xff] }
 0x199   :  { %v660_v56 = vpop.xlane.xlu1 %659  ;;  %v567_v25 = vpop.xlane.xlu0 %566  ;;  %v1023_v14 = vadd.f32 %v3453_v31, %v952_v59  ;;  %v882_v10 = vmul.f32 %v2138_v27, %v3993_v2  ;;  %v4003_v38 = vld [vmem:[#allocation14_spill] sm:$0xff] }
 0x19a   :  { %2151 = vrsqrt.f32 %v789_v12  ;;  %v726_v58 = vmul.f32 0.03125, %v660_v56  ;;  %v695_v49 = vmul.f32 0.03125, %v567_v25  ;;  %1118 = vst.msk [vmem:[%s3903_s5 + $0x1c0] sm:$0xff] %vm86_vm0, %v1054_v61  ;;  %2013 = vmatprep.mubr.msk.f32.mxu1 %vm86_vm0, %v1054_v61  ;;  %v984_v41 = vmul.f32 %v3465_v42, %v913_v30  ;;  %v4002_v12 = vld [vmem:[#allocation13_spill] sm:$0xff] }
 0x19b   :  { %v2140_v35 = vpop.eup %2139  ;;  %2153 = vrsqrt.f32 %v758_v39  ;;  %1087 = vst.msk [vmem:[%s3903_s5 + $0xc8] sm:$0xff] %vm86_vm0, %v1023_v14  ;;  %1966 = vmatmul.mubr.msk.f32.gmra.mxu0 %vm86_vm0, %v1023_v14  ;;  %v953_v40 = vmul.f32 %v3465_v42, %v882_v10  ;;  %v4004_v10 = vld [vmem:[#allocation21_spill] sm:$0xff] }
 0x19c   :  { %v2142_v18 = vpop.eup %2141  ;;  %v790_v54 = vadd.f32 1e-06, %v726_v58  ;;  %v759_v16 = vadd.f32 1e-06, %v695_v49  ;;  %v1055_v4 = vadd.f32 %v3453_v31, %v984_v41  ;;  %v914_v17 = vmul.f32 %v2140_v35, %v3994_v32 }
 0x19d   :  { %v663_v55 = vpop.xlane.xlu1 %662  ;;  %v1024_v9 = vadd.f32 %v3453_v31, %v953_v40  ;;  %v883_v3 = vmul.f32 %v2142_v18, %v3995_v0 }
 0x19e   :  { %2155 = vrsqrt.f32 %v790_v54  ;;  %v727_v6 = vmul.f32 0.03125, %v663_v55  ;;  %1119 = vst.msk [vmem:[%s3903_s5 + $0x1c8] sm:$0xff] %vm86_vm0, %v1055_v4  ;;  %2014 = vmatmul.mubr.msk.f32.gmra.mxu1 %vm86_vm0, %v1055_v4  ;;  %v985_v34 = vmul.f32 %v3465_v42, %v914_v17 }
 0x19f   :  { %v2144_v44 = vpop.eup %2143  ;;  %2157 = vrsqrt.f32 %v759_v16  ;;  %1088 = vst.msk [vmem:[%s3903_s5 + $0xd0] sm:$0xff] %vm86_vm0, %v1024_v9  ;;  %1968 = vmatprep.mubr.msk.f32.mxu0 %vm86_vm0, %v1024_v9  ;;  %v954_v43 = vmul.f32 %v3465_v42, %v883_v3 }
 0x1a0   :  { %v2146_v29 = vpop.eup %2145  ;;  %v791_v53 = vadd.f32 1e-06, %v727_v6  ;;  %v1056_v33 = vadd.f32 %v3453_v31, %v985_v34  ;;  %v915_v11 = vmul.f32 %v2144_v44, %v3996_v8 }
 0x1a1   :  { %v1025_v47 = vadd.f32 %v3453_v31, %v954_v43  ;;  %v884_v7 = vmul.f32 %v2146_v29, %v3997_v63 }
 0x1a2   :  { %2159 = vrsqrt.f32 %v791_v53  ;;  %1120 = vst.msk [vmem:[%s3903_s5 + $0x1d0] sm:$0xff] %vm86_vm0, %v1056_v33  ;;  %2016 = vmatprep.mubr.msk.f32.mxu1 %vm86_vm0, %v1056_v33  ;;  %v986_v23 = vmul.f32 %v3465_v42, %v915_v11 }
 0x1a3   :  { %v2148_v45 = vpop.eup %2147  ;;  %1089 = vst.msk [vmem:[%s3903_s5 + $0xd8] sm:$0xff] %vm86_vm0, %v1025_v47  ;;  %1969 = vmatmul.mubr.msk.f32.gmra.mxu0 %vm86_vm0, %v1025_v47  ;;  %v955_v60 = vmul.f32 %v3465_v42, %v884_v7 }
 0x1a4   :  { %v2150_v48 = vpop.eup %2149  ;;  %v1057_v52 = vadd.f32 %v3453_v31, %v986_v23  ;;  %v916_v21 = vmul.f32 %v2148_v45, %v3998_v50 }
 0x1a5   :  { %v1026_v62 = vadd.f32 %v3453_v31, %v955_v60  ;;  %v885_v57 = vmul.f32 %v2150_v48, %v3999_v5 }
 0x1a6   :  { %1121 = vst.msk [vmem:[%s3903_s5 + $0x1d8] sm:$0xff] %vm86_vm0, %v1057_v52  ;;  %2017 = vmatmul.mubr.msk.f32.gmra.mxu1 %vm86_vm0, %v1057_v52  ;;  %v987_v19 = vmul.f32 %v3465_v42, %v916_v21 }
 0x1a7   :  { %v2152_v24 = vpop.eup %2151  ;;  %1090 = vst.msk [vmem:[%s3903_s5 + $0xe0] sm:$0xff] %vm86_vm0, %v1026_v62  ;;  %1971 = vmatprep.mubr.msk.f32.mxu0 %vm86_vm0, %v1026_v62  ;;  %v956_v37 = vmul.f32 %v3465_v42, %v885_v57 }
 0x1a8   :  { %v2154_v15 = vpop.eup %2153  ;;  %v1058_v13 = vadd.f32 %v3453_v31, %v987_v19  ;;  %v917_v36 = vmul.f32 %v2152_v24, %v4000_v22 }
 0x1a9   :  { %v1027_v1 = vadd.f32 %v3453_v31, %v956_v37  ;;  %v886_v28 = vmul.f32 %v2154_v15, %v4001_v20 }
 0x1aa   :  { %1122 = vst.msk [vmem:[%s3903_s5 + $0x1e0] sm:$0xff] %vm86_vm0, %v1058_v13  ;;  %2019 = vmatprep.mubr.msk.f32.mxu1 %vm86_vm0, %v1058_v13  ;;  %v988_v46 = vmul.f32 %v3465_v42, %v917_v36 }
 0x1ab   :  { %v2156_v26 = vpop.eup %2155  ;;  %1091 = vst.msk [vmem:[%s3903_s5 + $0xe8] sm:$0xff] %vm86_vm0, %v1027_v1  ;;  %1972 = vmatmul.mubr.msk.f32.gmra.mxu0 %vm86_vm0, %v1027_v1  ;;  %v957_v51 = vmul.f32 %v3465_v42, %v886_v28 }
 0x1ac   :  { %v2158_v59 = vpop.eup %2157  ;;  %v1059_v27 = vadd.f32 %v3453_v31, %v988_v46  ;;  %v918_v39 = vmul.f32 %v2156_v26, %v4002_v12 }
 0x1ad   :  { %v1028_v61 = vadd.f32 %v3453_v31, %v957_v51  ;;  %v887_v30 = vmul.f32 %v2158_v59, %v4003_v38 }
 0x1ae   :  { %1123 = vst.msk [vmem:[%s3903_s5 + $0x1e8] sm:$0xff] %vm86_vm0, %v1059_v27  ;;  %2020 = vmatmul.mubr.msk.f32.gmra.mxu1 %vm86_vm0, %v1059_v27  ;;  %v989_v56 = vmul.f32 %v3465_v42, %v918_v39 }
 0x1af   :  { %v2160_v25 = vpop.eup %2159  ;;  %1092 = vst.msk [vmem:[%s3903_s5 + $0xf0] sm:$0xff] %vm86_vm0, %v1028_v61  ;;  %1974 = vmatprep.mubr.msk.f32.mxu0 %vm86_vm0, %v1028_v61  ;;  %v958_v14 = vmul.f32 %v3465_v42, %v887_v30 }
 0x1b0   :  { %v1060_v2 = vadd.f32 %v3453_v31, %v989_v56  ;;  %v919_v58 = vmul.f32 %v2160_v25, %v4004_v10 }
 0x1b1   :  { %v1029_v49 = vadd.f32 %v3453_v31, %v958_v14 }
 0x1b2   :  { %1124 = vst.msk [vmem:[%s3903_s5 + $0x1f0] sm:$0xff] %vm86_vm0, %v1060_v2  ;;  %2022 = vmatprep.mubr.msk.f32.mxu1 %vm86_vm0, %v1060_v2  ;;  %v990_v41 = vmul.f32 %v3465_v42, %v919_v58  ;;  %v3577_v42 = vld [vmem:[%s3904_s4] ss:$0 sm:$0xff] }
 0x1b3   :  { %1093 = vst.msk [vmem:[%s3903_s5 + $0xf8] sm:$0xff] %vm86_vm0, %v1029_v49  ;;  %1975 = vmatmul.mubr.msk.f32.gmra.mxu0 %vm86_vm0, %v1029_v49 }
 0x1b4   :  { %v1061_v35 = vadd.f32 %v3453_v31, %v990_v41 }
 0x1b6   :  { %1125 = vst.msk [vmem:[%s3903_s5 + $0x1f8] sm:$0xff] %vm86_vm0, %v1061_v35  ;;  %2023 = vmatmul.mubr.msk.f32.gmra.mxu1 %vm86_vm0, %v1061_v35 }
 0x1fb   :  { %v1931_v40 = vpop.f32.mrf.mxu0 }
 0x1fc   :  { %v1401_v18 = vadd.f32 %v1931_v40, %v3577_v42 }
 0x1fd   :  { %v1395_v54 = vpop.f32.mrf.mxu0 }
 0x1fe   :  { %1715 = vst.msk [vmem:[%s3905_s6 + $0x8] sm:$0xff] %vm86_vm0, %v1401_v18  ;;  %v1396_v31 = vadd.f32 %v3577_v42, %v1395_v54  ;;  %v1979_v16 = vpop.f32.mrf.mxu1 }
 0x1ff   :  { %v1561_v4 = vadd.f32 %v1979_v16, %v3577_v42 }
 0x200   :  { %1714 = vst.msk [vmem:[%s3905_s6] sm:$0xff] %vm86_vm0, %v1396_v31  ;;  %v1555_v32 = vpop.f32.mrf.mxu1 }
 0x201   :  { %1747 = vst.msk [vmem:[%s3905_s6 + $0x108] sm:$0xff] %vm86_vm0, %v1561_v4  ;;  %v1556_v17 = vadd.f32 %v3577_v42, %v1555_v32 }
 0x203   :  { %1746 = vst.msk [vmem:[%s3905_s6 + $0x100] sm:$0xff] %vm86_vm0, %v1556_v17  ;;  %v1934_v55 = vpop.f32.mrf.mxu0 }
 0x204   :  { %v1411_v9 = vadd.f32 %v1934_v55, %v3577_v42 }
 0x205   :  { %v1405_v0 = vpop.f32.mrf.mxu0 }
 0x206   :  { %1717 = vst.msk [vmem:[%s3905_s6 + $0x18] sm:$0xff] %vm86_vm0, %v1411_v9  ;;  %v1406_v3 = vadd.f32 %v3577_v42, %v1405_v0  ;;  %v1982_v6 = vpop.f32.mrf.mxu1 }
 0x207   :  { %v1571_v34 = vadd.f32 %v1982_v6, %v3577_v42 }
 0x208   :  { %1716 = vst.msk [vmem:[%s3905_s6 + $0x10] sm:$0xff] %vm86_vm0, %v1406_v3  ;;  %v1565_v44 = vpop.f32.mrf.mxu1 }
 0x209   :  { %1749 = vst.msk [vmem:[%s3905_s6 + $0x118] sm:$0xff] %vm86_vm0, %v1571_v34  ;;  %v1566_v43 = vadd.f32 %v3577_v42, %v1565_v44 }
 0x20b   :  { %1748 = vst.msk [vmem:[%s3905_s6 + $0x110] sm:$0xff] %vm86_vm0, %v1566_v43  ;;  %v1937_v29 = vpop.f32.mrf.mxu0 }
 0x20c   :  { %v1421_v53 = vadd.f32 %v1937_v29, %v3577_v42 }
 0x20d   :  { %v1415_v33 = vpop.f32.mrf.mxu0 }
 0x20e   :  { %1719 = vst.msk [vmem:[%s3905_s6 + $0x28] sm:$0xff] %vm86_vm0, %v1421_v53  ;;  %v1416_v8 = vadd.f32 %v3577_v42, %v1415_v33  ;;  %v1985_v11 = vpop.f32.mrf.mxu1 }
 0x20f   :  { %v1581_v47 = vadd.f32 %v1985_v11, %v3577_v42 }
 0x210   :  { %1718 = vst.msk [vmem:[%s3905_s6 + $0x20] sm:$0xff] %vm86_vm0, %v1416_v8  ;;  %v1575_v63 = vpop.f32.mrf.mxu1 }
 0x211   :  { %1751 = vst.msk [vmem:[%s3905_s6 + $0x128] sm:$0xff] %vm86_vm0, %v1581_v47  ;;  %v1576_v7 = vadd.f32 %v3577_v42, %v1575_v63 }
 0x213   :  { %1750 = vst.msk [vmem:[%s3905_s6 + $0x120] sm:$0xff] %vm86_vm0, %v1576_v7  ;;  %v1940_v23 = vpop.f32.mrf.mxu0 }
 0x214   :  { %v1431_v45 = vadd.f32 %v1940_v23, %v3577_v42 }
 0x215   :  { %v1425_v60 = vpop.f32.mrf.mxu0 }
 0x216   :  { %1721 = vst.msk [vmem:[%s3905_s6 + $0x38] sm:$0xff] %vm86_vm0, %v1431_v45  ;;  %v1426_v48 = vadd.f32 %v3577_v42, %v1425_v60  ;;  %v1988_v52 = vpop.f32.mrf.mxu1 }
 0x217   :  { %v1591_v50 = vadd.f32 %v1988_v52, %v3577_v42 }
 0x218   :  { %1720 = vst.msk [vmem:[%s3905_s6 + $0x30] sm:$0xff] %vm86_vm0, %v1426_v48  ;;  %v1585_v21 = vpop.f32.mrf.mxu1 }
 0x219   :  { %1753 = vst.msk [vmem:[%s3905_s6 + $0x138] sm:$0xff] %vm86_vm0, %v1591_v50  ;;  %v1586_v62 = vadd.f32 %v3577_v42, %v1585_v21 }
 0x21b   :  { %1752 = vst.msk [vmem:[%s3905_s6 + $0x130] sm:$0xff] %vm86_vm0, %v1586_v62  ;;  %v1943_v5 = vpop.f32.mrf.mxu0 }
 0x21c   :  { %v1441_v57 = vadd.f32 %v1943_v5, %v3577_v42 }
 0x21d   :  { %v1435_v19 = vpop.f32.mrf.mxu0 }
 0x21e   :  { %1723 = vst.msk [vmem:[%s3905_s6 + $0x48] sm:$0xff] %vm86_vm0, %v1441_v57  ;;  %v1436_v24 = vadd.f32 %v3577_v42, %v1435_v19  ;;  %v1991_v37 = vpop.f32.mrf.mxu1 }
 0x21f   :  { %v1601_v15 = vadd.f32 %v1991_v37, %v3577_v42 }
 0x220   :  { %1722 = vst.msk [vmem:[%s3905_s6 + $0x40] sm:$0xff] %vm86_vm0, %v1436_v24  ;;  %v1595_v13 = vpop.f32.mrf.mxu1 }
 0x221   :  { %1755 = vst.msk [vmem:[%s3905_s6 + $0x148] sm:$0xff] %vm86_vm0, %v1601_v15  ;;  %v1596_v22 = vadd.f32 %v3577_v42, %v1595_v13 }
 0x223   :  { %1754 = vst.msk [vmem:[%s3905_s6 + $0x140] sm:$0xff] %vm86_vm0, %v1596_v22  ;;  %v1946_v36 = vpop.f32.mrf.mxu0 }
 0x224   :  { %v1451_v1 = vadd.f32 %v1946_v36, %v3577_v42 }
 0x225   :  { %v1445_v20 = vpop.f32.mrf.mxu0 }
 0x226   :  { %1725 = vst.msk [vmem:[%s3905_s6 + $0x58] sm:$0xff] %vm86_vm0, %v1451_v1  ;;  %v1446_v28 = vadd.f32 %v3577_v42, %v1445_v20  ;;  %v1994_v46 = vpop.f32.mrf.mxu1 }
 0x227   :  { %v1611_v26 = vadd.f32 %v1994_v46, %v3577_v42 }
 0x228   :  { %1724 = vst.msk [vmem:[%s3905_s6 + $0x50] sm:$0xff] %vm86_vm0, %v1446_v28  ;;  %v1605_v51 = vpop.f32.mrf.mxu1 }
 0x229   :  { %1757 = vst.msk [vmem:[%s3905_s6 + $0x158] sm:$0xff] %vm86_vm0, %v1611_v26  ;;  %v1606_v59 = vadd.f32 %v3577_v42, %v1605_v51 }
 0x22b   :  { %1756 = vst.msk [vmem:[%s3905_s6 + $0x150] sm:$0xff] %vm86_vm0, %v1606_v59  ;;  %v1949_v27 = vpop.f32.mrf.mxu0 }
 0x22c   :  { %v1461_v12 = vadd.f32 %v1949_v27, %v3577_v42 }
 0x22d   :  { %v1455_v39 = vpop.f32.mrf.mxu0 }
 0x22e   :  { %1727 = vst.msk [vmem:[%s3905_s6 + $0x68] sm:$0xff] %vm86_vm0, %v1461_v12  ;;  %v1456_v61 = vadd.f32 %v3577_v42, %v1455_v39  ;;  %v1997_v38 = vpop.f32.mrf.mxu1 }
 0x22f   :  { %v1621_v30 = vadd.f32 %v1997_v38, %v3577_v42 }
 0x230   :  { %1726 = vst.msk [vmem:[%s3905_s6 + $0x60] sm:$0xff] %vm86_vm0, %v1456_v61  ;;  %v1615_v56 = vpop.f32.mrf.mxu1 }
 0x231   :  { %1759 = vst.msk [vmem:[%s3905_s6 + $0x168] sm:$0xff] %vm86_vm0, %v1621_v30  ;;  %v1616_v25 = vadd.f32 %v3577_v42, %v1615_v56 }
 0x233   :  { %1758 = vst.msk [vmem:[%s3905_s6 + $0x160] sm:$0xff] %vm86_vm0, %v1616_v25  ;;  %v1952_v14 = vpop.f32.mrf.mxu0 }
 0x234   :  { %v1471_v2 = vadd.f32 %v1952_v14, %v3577_v42 }
 0x235   :  { %v1465_v10 = vpop.f32.mrf.mxu0 }
 0x236   :  { %1729 = vst.msk [vmem:[%s3905_s6 + $0x78] sm:$0xff] %vm86_vm0, %v1471_v2  ;;  %v1466_v58 = vadd.f32 %v3577_v42, %v1465_v10  ;;  %v2000_v49 = vpop.f32.mrf.mxu1 }
 0x237   :  { %v1631_v41 = vadd.f32 %v2000_v49, %v3577_v42 }
 0x238   :  { %1728 = vst.msk [vmem:[%s3905_s6 + $0x70] sm:$0xff] %vm86_vm0, %v1466_v58  ;;  %v1625_v35 = vpop.f32.mrf.mxu1 }
 0x239   :  { %1761 = vst.msk [vmem:[%s3905_s6 + $0x178] sm:$0xff] %vm86_vm0, %v1631_v41  ;;  %v1626_v40 = vadd.f32 %v3577_v42, %v1625_v35 }
 0x23b   :  { %1760 = vst.msk [vmem:[%s3905_s6 + $0x170] sm:$0xff] %vm86_vm0, %v1626_v40  ;;  %v1955_v18 = vpop.f32.mrf.mxu0 }
 0x23c   :  { %v1481_v54 = vadd.f32 %v1955_v18, %v3577_v42 }
 0x23d   :  { %v1475_v31 = vpop.f32.mrf.mxu0 }
 0x23e   :  { %1731 = vst.msk [vmem:[%s3905_s6 + $0x88] sm:$0xff] %vm86_vm0, %v1481_v54  ;;  %v1476_v16 = vadd.f32 %v3577_v42, %v1475_v31  ;;  %v2003_v4 = vpop.f32.mrf.mxu1 }
 0x23f   :  { %v1641_v32 = vadd.f32 %v2003_v4, %v3577_v42 }
 0x240   :  { %1730 = vst.msk [vmem:[%s3905_s6 + $0x80] sm:$0xff] %vm86_vm0, %v1476_v16  ;;  %v1635_v17 = vpop.f32.mrf.mxu1 }
 0x241   :  { %1763 = vst.msk [vmem:[%s3905_s6 + $0x188] sm:$0xff] %vm86_vm0, %v1641_v32  ;;  %v1636_v55 = vadd.f32 %v3577_v42, %v1635_v17 }
 0x243   :  { %1762 = vst.msk [vmem:[%s3905_s6 + $0x180] sm:$0xff] %vm86_vm0, %v1636_v55  ;;  %v1958_v9 = vpop.f32.mrf.mxu0 }
 0x244   :  { %v1491_v0 = vadd.f32 %v1958_v9, %v3577_v42 }
 0x245   :  { %v1485_v3 = vpop.f32.mrf.mxu0 }
 0x246   :  { %1733 = vst.msk [vmem:[%s3905_s6 + $0x98] sm:$0xff] %vm86_vm0, %v1491_v0  ;;  %v1486_v6 = vadd.f32 %v3577_v42, %v1485_v3  ;;  %v2006_v34 = vpop.f32.mrf.mxu1 }
 0x247   :  { %v1651_v44 = vadd.f32 %v2006_v34, %v3577_v42 }
 0x248   :  { %1732 = vst.msk [vmem:[%s3905_s6 + $0x90] sm:$0xff] %vm86_vm0, %v1486_v6  ;;  %v1645_v43 = vpop.f32.mrf.mxu1 }
 0x249   :  { %1765 = vst.msk [vmem:[%s3905_s6 + $0x198] sm:$0xff] %vm86_vm0, %v1651_v44  ;;  %v1646_v29 = vadd.f32 %v3577_v42, %v1645_v43 }
 0x24b   :  { %1764 = vst.msk [vmem:[%s3905_s6 + $0x190] sm:$0xff] %vm86_vm0, %v1646_v29  ;;  %v1961_v53 = vpop.f32.mrf.mxu0 }
 0x24c   :  { %v1501_v33 = vadd.f32 %v1961_v53, %v3577_v42 }
 0x24d   :  { %v1495_v8 = vpop.f32.mrf.mxu0 }
 0x24e   :  { %1735 = vst.msk [vmem:[%s3905_s6 + $0xa8] sm:$0xff] %vm86_vm0, %v1501_v33  ;;  %v1496_v11 = vadd.f32 %v3577_v42, %v1495_v8  ;;  %v2009_v47 = vpop.f32.mrf.mxu1 }
 0x24f   :  { %v1661_v63 = vadd.f32 %v2009_v47, %v3577_v42 }
 0x250   :  { %1734 = vst.msk [vmem:[%s3905_s6 + $0xa0] sm:$0xff] %vm86_vm0, %v1496_v11  ;;  %v1655_v7 = vpop.f32.mrf.mxu1 }
 0x251   :  { %1767 = vst.msk [vmem:[%s3905_s6 + $0x1a8] sm:$0xff] %vm86_vm0, %v1661_v63  ;;  %v1656_v23 = vadd.f32 %v3577_v42, %v1655_v7 }
 0x253   :  { %1766 = vst.msk [vmem:[%s3905_s6 + $0x1a0] sm:$0xff] %vm86_vm0, %v1656_v23  ;;  %v1964_v45 = vpop.f32.mrf.mxu0 }
 0x254   :  { %v1511_v60 = vadd.f32 %v1964_v45, %v3577_v42 }
 0x255   :  { %v1505_v48 = vpop.f32.mrf.mxu0 }
 0x256   :  { %1737 = vst.msk [vmem:[%s3905_s6 + $0xb8] sm:$0xff] %vm86_vm0, %v1511_v60  ;;  %v1506_v52 = vadd.f32 %v3577_v42, %v1505_v48  ;;  %v2012_v50 = vpop.f32.mrf.mxu1 }
 0x257   :  { %v1671_v21 = vadd.f32 %v2012_v50, %v3577_v42 }
 0x258   :  { %1736 = vst.msk [vmem:[%s3905_s6 + $0xb0] sm:$0xff] %vm86_vm0, %v1506_v52  ;;  %v1665_v62 = vpop.f32.mrf.mxu1 }
 0x259   :  { %1769 = vst.msk [vmem:[%s3905_s6 + $0x1b8] sm:$0xff] %vm86_vm0, %v1671_v21  ;;  %v1666_v5 = vadd.f32 %v3577_v42, %v1665_v62 }
 0x25b   :  { %1768 = vst.msk [vmem:[%s3905_s6 + $0x1b0] sm:$0xff] %vm86_vm0, %v1666_v5  ;;  %v1967_v57 = vpop.f32.mrf.mxu0 }
 0x25c   :  { %v1521_v19 = vadd.f32 %v1967_v57, %v3577_v42 }
 0x25d   :  { %v1515_v24 = vpop.f32.mrf.mxu0 }
 0x25e   :  { %1739 = vst.msk [vmem:[%s3905_s6 + $0xc8] sm:$0xff] %vm86_vm0, %v1521_v19  ;;  %v1516_v37 = vadd.f32 %v3577_v42, %v1515_v24  ;;  %v2015_v15 = vpop.f32.mrf.mxu1 }
 0x25f   :  { %v1681_v13 = vadd.f32 %v2015_v15, %v3577_v42 }
 0x260   :  { %1738 = vst.msk [vmem:[%s3905_s6 + $0xc0] sm:$0xff] %vm86_vm0, %v1516_v37  ;;  %v1675_v22 = vpop.f32.mrf.mxu1 }
 0x261   :  { %1771 = vst.msk [vmem:[%s3905_s6 + $0x1c8] sm:$0xff] %vm86_vm0, %v1681_v13  ;;  %v1676_v36 = vadd.f32 %v3577_v42, %v1675_v22 }
 0x263   :  { %1770 = vst.msk [vmem:[%s3905_s6 + $0x1c0] sm:$0xff] %vm86_vm0, %v1676_v36  ;;  %v1970_v1 = vpop.f32.mrf.mxu0 }
 0x264   :  { %v1531_v20 = vadd.f32 %v1970_v1, %v3577_v42 }
 0x265   :  { %v1525_v28 = vpop.f32.mrf.mxu0 }
 0x266   :  { %1741 = vst.msk [vmem:[%s3905_s6 + $0xd8] sm:$0xff] %vm86_vm0, %v1531_v20  ;;  %v1526_v46 = vadd.f32 %v3577_v42, %v1525_v28  ;;  %v2018_v26 = vpop.f32.mrf.mxu1 }
 0x267   :  { %v1691_v51 = vadd.f32 %v2018_v26, %v3577_v42 }
 0x268   :  { %1740 = vst.msk [vmem:[%s3905_s6 + $0xd0] sm:$0xff] %vm86_vm0, %v1526_v46  ;;  %v1685_v59 = vpop.f32.mrf.mxu1 }
 0x269   :  { %1773 = vst.msk [vmem:[%s3905_s6 + $0x1d8] sm:$0xff] %vm86_vm0, %v1691_v51  ;;  %v1686_v27 = vadd.f32 %v3577_v42, %v1685_v59 }
 0x26b   :  { %1772 = vst.msk [vmem:[%s3905_s6 + $0x1d0] sm:$0xff] %vm86_vm0, %v1686_v27  ;;  %v1973_v12 = vpop.f32.mrf.mxu0 }
 0x26c   :  { %v1541_v39 = vadd.f32 %v1973_v12, %v3577_v42 }
 0x26d   :  { %v1535_v61 = vpop.f32.mrf.mxu0 }
 0x26e   :  { %1743 = vst.msk [vmem:[%s3905_s6 + $0xe8] sm:$0xff] %vm86_vm0, %v1541_v39  ;;  %v1536_v38 = vadd.f32 %v3577_v42, %v1535_v61  ;;  %v2021_v30 = vpop.f32.mrf.mxu1 }
 0x26f   :  { %v1701_v56 = vadd.f32 %v2021_v30, %v3577_v42 }
 0x270   :  { %1742 = vst.msk [vmem:[%s3905_s6 + $0xe0] sm:$0xff] %vm86_vm0, %v1536_v38  ;;  %v1695_v25 = vpop.f32.mrf.mxu1 }
 0x271   :  { %1775 = vst.msk [vmem:[%s3905_s6 + $0x1e8] sm:$0xff] %vm86_vm0, %v1701_v56  ;;  %v1696_v14 = vadd.f32 %v3577_v42, %v1695_v25 }
 0x273   :  { %1774 = vst.msk [vmem:[%s3905_s6 + $0x1e0] sm:$0xff] %vm86_vm0, %v1696_v14  ;;  %v1976_v2 = vpop.f32.mrf.mxu0 }
 0x274   :  { %v1551_v10 = vadd.f32 %v1976_v2, %v3577_v42 }
 0x275   :  { %v1545_v58 = vpop.f32.mrf.mxu0 }
 0x276   :  { %1745 = vst.msk [vmem:[%s3905_s6 + $0xf8] sm:$0xff] %vm86_vm0, %v1551_v10  ;;  %v1546_v49 = vadd.f32 %v3577_v42, %v1545_v58  ;;  %v2024_v41 = vpop.f32.mrf.mxu1 }
 0x277   :  { %v1711_v35 = vadd.f32 %v2024_v41, %v3577_v42 }
 0x278   :  { %1744 = vst.msk [vmem:[%s3905_s6 + $0xf0] sm:$0xff] %vm86_vm0, %v1546_v49  ;;  %v1705_v40 = vpop.f32.mrf.mxu1 }
 0x279   :  { %1777 = vst.msk [vmem:[%s3905_s6 + $0x1f8] sm:$0xff] %vm86_vm0, %v1711_v35  ;;  %v1706_v18 = vadd.f32 %v3577_v42, %v1705_v40 }
 0x27b   :  { %1776 = vst.msk [vmem:[%s3905_s6 + $0x1f0] sm:$0xff] %vm86_vm0, %v1706_v18 }

// kernel: transformer_block_forward.8
= control target key start
LH: loop header
LB: loop body
LE: loop exit
PB: predicated region body
PF: predicated region fallthrough
CT: control target
= control target key end

     0   :  { %s2755_s18 = smov 0   ;;  %s2757_s19 = smov 0   ;;  %s3594_s0 = inlined_call_operand.vmem [shape: f32[2,256,32], index: 0, kind: input, shape index: {}]   ;;  %s3595_s1 = inlined_call_operand.vmem [shape: f32[2,64,64], index: 1, kind: input, shape index: {}]   ;;  %s3596_s2 = inlined_call_operand.vmem [shape: f32[32,32], index: 2, kind: input, shape index: {}]   ;;  %s3597_s3 = inlined_call_operand.vmem [shape: f32[1,32], index: 3, kind: input, shape index: {}]   ;;  %s3598_s4 = inlined_call_operand.vmem [shape: f32[2,256,32], index: 4, kind: input, shape index: {}]   ;;  %s3599_s5 = inlined_call_operand.vmem [shape: f32[2,256,32], index: 5, kind: output, shape index: {}]  }
   0x1   :  { %s2759_s20 = smov 0   ;;  %s2761_s21 = smov 0  }
   0x2   :  { %s2763_s22 = smov 0  }
   0x3 LB: > { %s24_s23 = sadd.s32 1, %s2711_s20  ;;  %s27_s24 = sadd.s32 1, %s2715_s21  ;;  %s2719_s22 = sphi %s2763_s22, %s15_s22   ;;  %s2715_s21 = sphi %s2761_s21, %s3603_s21   ;;  %s2711_s20 = sphi %s2759_s20, %s3602_s20   ;;  %s2707_s19 = sphi %s2757_s19, %s3601_s19   ;;  %s2703_s18 = sphi %s2755_s18, %s3600_s18  }
   0x4   : > { %p25_p0 = scmp.ge.s32.totalorder %s24_s23, 2  ;;  %p2079_p1 = scmp.ge.s32.totalorder %s2719_s22, 1 }
   0x5   : > { %p235_p2 = scmp.lt.s32.totalorder %s2719_s22, 5 }
   0x6   : > { %s3605_s23 = smov (%p25_p0, %s24_s23), 0  ;;  %s3607_s24 = smov (!%p25_p0, %s27_s24), %s2715_s21 }
   0x7   : > { %p236_p3 = pnand %p2079_p1, %p235_p2  ;;  %p29_p4 = scmp.ge.s32.totalorder %s3607_s24, 2 }
   0x8   : > { %s2080_s25 = sshll.u32 (!%p236_p3), %s2703_s18, 4  ;;  %p286_p5 = scmp.lt.s32.totalorder (!%p236_p3), %s2707_s19, 1 }
   0x9   : > { %s3609_s24 = smov (%p29_p4, %s3607_s24), 0  ;;  %239 = sbr.rel (%p236_p3) target bundleno = 1751 (0x6d7), region = 40 }
   0xa   : > { %p288_p6 = scmp.lt.s32.totalorder (!%p236_p3), %s2080_s25, 31  ;;  %s2721_s11 = smov (!%p236_p3), 96  }
   0xb   : > { %s2722_s12 = smov (!%p236_p3), 112   ;;  %s2723_s13 = smov (!%p236_p3), 80  }
   0xe   : > { %s3611_s19 = smov (!%p286_p5, %s2707_s19), 1  ;;  %s3613_s25 = smov (!%p288_p6, %s2080_s25), 31  ;;  %vm344_vm0 = vcmask 130048   ;;  %vm578_vm1 = vcmask 523264   ;;  %vm1713_vm2 = vcmask 261120  }
   0xf   : > { %s2081_s26 = sshll.u32 %s3611_s19, 5  ;;  %s2190_s27 = sshll.u32 %s3611_s19, 6 }
  0x10   : > { %s291_s28 = sadd.s32 %s2081_s26, %s3613_s25  ;;  %s2788_s6 = scalar_lea.vmem %s3595_s1, %s2190_s27 }
  0x11   : > { %s2790_s7 = sshll.u32 %s291_s28, 3  ;;  %v2793_v0 = vld [vmem:[%s2788_s6 + $0x38] sm:$0xff]  ;;  %v2796_v1 = vld [vmem:[%s2788_s6 + $0x30] sm:$0xff]  ;;  %v2818_v3 = vld [vmem:[%s2788_s6 + $0x28] sm:$0xff]  ;;  %s2724_s27 = smov 16  }
  0x12   : > { %s2802_s10 = scalar_lea.vmem %s3594_s0, %s2790_s7  ;;  %2307 = vmatprep.subr.msk.mxu0 %vm344_vm0, %v2793_v0  ;;  %769 = vrot.lane.b32.xlu0 %v2793_v0, %s2721_s11  ;;  %v2821_v4 = vld [vmem:[%s2788_s6 + $0x20] sm:$0xff]  ;;  %v2830_v5 = vld [vmem:[%s2788_s6 + $0x18] sm:$0xff]  ;;  %v2833_v6 = vld [vmem:[%s2788_s6 + $0x10] sm:$0xff]  ;;  %s3502_s30 = scalar_lea.vmem %s3598_s4, %s2790_s7 }
  0x13   : > { %2308 = vmatpush3.xpose.msk.msra.mxu0 %vm344_vm0, %v2793_v0  ;;  %v2810_v2 = vld [vmem:[%s2802_s10] sm:$0xff]  ;;  %767 = vrot.lane.b32.xlu1 %v2796_v1, %s2721_s11  ;;  %v2842_v7 = vld [vmem:[%s2788_s6 + $0x8] sm:$0xff]  ;;  %v2879_v10 = vld [vmem:[%s2802_s10 + $0x10] sm:$0xff] }
  0x14   : > { %2309 = vmatprep.subr.msk.mxu0 %vm344_vm0, %v2796_v1  ;;  %2323 = vmatprep.mubr.msk.f32.mxu0 %vm344_vm0, %v2810_v2  ;;  %v2845_v8 = vld [vmem:[%s2788_s6] sm:$0xff]  ;;  %v2876_v9 = vld [vmem:[%s2802_s10 + $0x8] sm:$0xff]  ;;  %v2886_v11 = vld [vmem:[%s2802_s10 + $0x18] sm:$0xff] }
  0x15   : > { %v2889_v12 = vld [vmem:[%s2802_s10 + $0x20] sm:$0xff]  ;;  %v2896_v13 = vld [vmem:[%s2802_s10 + $0x28] sm:$0xff]  ;;  %v2899_v14 = vld [vmem:[%s2802_s10 + $0x30] sm:$0xff] }
  0x16   : > { %765 = vrot.lane.b32.xlu0 %v2818_v3, %s2721_s11  ;;  %v2906_v15 = vld [vmem:[%s2802_s10 + $0x38] sm:$0xff]  ;;  %v2909_v16 = vld [vmem:[%s2802_s10 + $0x40] sm:$0xff]  ;;  %v2916_v17 = vld [vmem:[%s2802_s10 + $0x48] sm:$0xff] }
  0x17   : > { %2310 = vmatpush3.xpose.msk.msra.mxu0 %vm344_vm0, %v2796_v1  ;;  %763 = vrot.lane.b32.xlu1 %v2821_v4, %s2721_s11  ;;  %v2919_v18 = vld [vmem:[%s2802_s10 + $0x50] sm:$0xff]  ;;  %v2926_v19 = vld [vmem:[%s2802_s10 + $0x58] sm:$0xff]  ;;  %v2929_v20 = vld [vmem:[%s2802_s10 + $0x60] sm:$0xff] }
  0x18   : > { %2311 = vmatprep.subr.msk.mxu0 %vm344_vm0, %v2818_v3  ;;  %v2936_v21 = vld [vmem:[%s2802_s10 + $0x68] sm:$0xff]  ;;  %v2939_v22 = vld [vmem:[%s2802_s10 + $0x70] sm:$0xff]  ;;  %v2946_v23 = vld [vmem:[%s2802_s10 + $0x78] sm:$0xff] }
  0x1a   : > { %761 = vrot.lane.b32.xlu0 %v2830_v5, %s2721_s11 }
  0x1b   : > { %2312 = vmatpush3.xpose.msk.msra.mxu0 %vm344_vm0, %v2818_v3  ;;  %759 = vrot.lane.b32.xlu1 %v2833_v6, %s2721_s11 }
  0x1c   : > { %2313 = vmatprep.subr.msk.mxu0 %vm344_vm0, %v2821_v4 }
  0x1e   : > { %757 = vrot.lane.b32.xlu0 %v2842_v7, %s2721_s11 }
  0x1f   : > { %2314 = vmatpush3.xpose.msk.msra.mxu0 %vm344_vm0, %v2821_v4  ;;  %755 = vrot.lane.b32.xlu1 %v2845_v8, %s2721_s11  ;;  %s3515_s11 = scalar_lea.vmem %s3599_s5, %s2790_s7 }
  0x20   : > { %2315 = vmatprep.subr.msk.mxu0 %vm344_vm0, %v2830_v5 }
  0x22   : > { %1018 = vrot.lane.b32.xlu0 %v2793_v0, %s2722_s12 }
  0x23   : > { %2316 = vmatpush3.xpose.msk.msra.mxu0 %vm344_vm0, %v2830_v5  ;;  %1016 = vrot.lane.b32.xlu1 %v2796_v1, %s2722_s12 }
  0x24   : > { %2317 = vmatprep.subr.msk.mxu0 %vm344_vm0, %v2833_v6 }
  0x27   : > { %2318 = vmatpush3.xpose.msk.msra.mxu0 %vm344_vm0, %v2833_v6  ;;  %1014 = vrot.lane.b32.xlu1 %v2818_v3, %s2722_s12 }
  0x28   : > { %2319 = vmatprep.subr.msk.mxu0 %vm344_vm0, %v2842_v7 }
  0x2b   : > { %2320 = vmatpush3.xpose.msk.msra.mxu0 %vm344_vm0, %v2842_v7  ;;  %1012 = vrot.lane.b32.xlu1 %v2821_v4, %s2722_s12 }
  0x2c   : > { %2321 = vmatprep.subr.msk.mxu0 %vm344_vm0, %v2845_v8 }
  0x2f   : > { %2322 = vmatpush3.xpose.msk.msra.mxu0 %vm344_vm0, %v2845_v8 }
  0x32   : > { %2324 = vmatmul.mubr.msk.f32.vlgmr.msra.gmra.mxu0 %vm344_vm0, %v2876_v9 }
  0x33   : > { %2326 = vmatprep.mubr.msk.f32.mxu0 %vm344_vm0, %v2879_v10 }
  0x36   : > { %2327 = vmatmul.mubr.msk.f32.gmra.mxu0 %vm344_vm0, %v2886_v11 }
  0x37   : > { %2329 = vmatprep.mubr.msk.f32.mxu0 %vm344_vm0, %v2889_v12 }
  0x3a   : > { %2330 = vmatmul.mubr.msk.f32.gmra.mxu0 %vm344_vm0, %v2896_v13 }
  0x3b   : > { %2332 = vmatprep.mubr.msk.f32.mxu0 %vm344_vm0, %v2899_v14 }
  0x3e   : > { %2333 = vmatmul.mubr.msk.f32.gmra.mxu0 %vm344_vm0, %v2906_v15 }
  0x3f   : > { %2335 = vmatprep.mubr.msk.f32.mxu0 %vm344_vm0, %v2909_v16 }
  0x42   : > { %2336 = vmatmul.mubr.msk.f32.gmra.mxu0 %vm344_vm0, %v2916_v17 }
  0x43   : > { %2338 = vmatprep.mubr.msk.f32.mxu0 %vm344_vm0, %v2919_v18 }
  0x46   : > { %2339 = vmatmul.mubr.msk.f32.gmra.mxu0 %vm344_vm0, %v2926_v19 }
  0x47   : > { %2341 = vmatprep.mubr.msk.f32.mxu0 %vm344_vm0, %v2929_v20 }
  0x4a   : > { %2342 = vmatmul.mubr.msk.f32.gmra.mxu0 %vm344_vm0, %v2936_v21 }
  0x4b   : > { %2344 = vmatprep.mubr.msk.f32.mxu0 %vm344_vm0, %v2939_v22 }
  0x4e   : > { %2345 = vmatmul.mubr.msk.f32.gmra.mxu0 %vm344_vm0, %v2946_v23 }
  0x84   : > { %v770_v24 = vpop.permute.xlu0 %769 }
  0x85   : > { %v768_v25 = vpop.permute.xlu1 %767  ;;  %2347 = vmatprep.subr.mxu1 %v770_v24 }
  0x86   : > { %2348 = vmatpush3.msra.mxu1 %v770_v24 }
  0x87   : > { %2349 = vmatprep.subr.mxu1 %v768_v25 }
  0x88   : > { %2350 = vmatpush3.msra.mxu1 %v768_v25  ;;  %v766_v26 = vpop.permute.xlu0 %765 }
  0x89   : > { %v764_v27 = vpop.permute.xlu1 %763  ;;  %2351 = vmatprep.subr.mxu1 %v766_v26 }
  0x8a   : > { %2352 = vmatpush3.msra.mxu1 %v766_v26 }
  0x8b   : > { %2353 = vmatprep.subr.mxu1 %v764_v27 }
  0x8c   : > { %2354 = vmatpush3.msra.mxu1 %v764_v27  ;;  %v762_v28 = vpop.permute.xlu0 %761 }
  0x8d   : > { %v760_v29 = vpop.permute.xlu1 %759  ;;  %2355 = vmatprep.subr.mxu1 %v762_v28 }
  0x8e   : > { %2356 = vmatpush3.msra.mxu1 %v762_v28 }
  0x8f   : > { %2357 = vmatprep.subr.mxu1 %v760_v29 }
  0x90   : > { %2358 = vmatpush3.msra.mxu1 %v760_v29  ;;  %v758_v30 = vpop.permute.xlu0 %757 }
  0x91   : > { %v756_v31 = vpop.permute.xlu1 %755  ;;  %2359 = vmatprep.subr.mxu1 %v758_v30 }
  0x92   : > { %2360 = vmatpush3.msra.mxu1 %v758_v30 }
  0x93   : > { %2361 = vmatprep.subr.mxu1 %v756_v31 }
  0x94   : > { %2362 = vmatpush3.msra.mxu1 %v756_v31  ;;  %v2950_v32 = vpop.permute.xlu0 %1018 }
  0x95   : > { %2387 = vmatprep.subr.msk.mxu1 %vm344_vm0, %v2950_v32 }
  0xf2   : > { %v2325_v33 = vpop.f32.mrf.mxu0 }
  0xf3   : > { %v2954_v34 = vmul.f32 0.25, %v2325_v33 }
  0xf4   : > { %v483_v35 = vpop.f32.mrf.mxu0 }
  0xf5   : > { %v2956_v36 = vmul.f32 0.25, %v483_v35  ;;  %v582_v37 = vsel %vm578_vm1, %v2954_v34, -inf }
  0xf6   : > { %583 = vmax.xlane.f32.xlu0 %v582_v37  ;;  %v2328_v38 = vpop.f32.mrf.mxu0 }
  0xf7   : > { %v2960_v39 = vmul.f32 0.25, %v2328_v38  ;;  %v579_v42 = vsel %vm578_vm1, %v2956_v36, -inf }
  0xf8   : > { %v493_v40 = vpop.f32.mrf.mxu0 }
  0xf9   : > { %v2962_v41 = vmul.f32 0.25, %v493_v40  ;;  %v588_v43 = vsel %vm578_vm1, %v2960_v39, -inf }
  0xfa   : > { %580 = vmax.xlane.f32.xlu0 %v579_v42  ;;  %589 = vmax.xlane.f32.xlu1 %v588_v43  ;;  %v2331_v44 = vpop.f32.mrf.mxu0 }
  0xfb   : > { %v2968_v45 = vmul.f32 0.25, %v2331_v44  ;;  %v585_v48 = vsel %vm578_vm1, %v2962_v41, -inf }
  0xfc   : > { %v503_v46 = vpop.f32.mrf.mxu0 }
  0xfd   : > { %v2970_v47 = vmul.f32 0.25, %v503_v46  ;;  %v594_v52 = vsel %vm578_vm1, %v2968_v45, -inf }
  0xfe   : > { %586 = vmax.xlane.f32.xlu1 %v585_v48  ;;  %v2334_v49 = vpop.f32.mrf.mxu0  ;;  %v3022_v48 = vpop.permute.xlu1 %1016 }
  0xff   : > { %v2974_v50 = vmul.f32 0.25, %v2334_v49  ;;  %v591_v51 = vsel %vm578_vm1, %v2970_v47, -inf }
 0x100   : > { %592 = vmax.xlane.f32.xlu0 %v591_v51  ;;  %v513_v53 = vpop.f32.mrf.mxu0 }
 0x101   : > { %v2980_v54 = vmul.f32 0.25, %v513_v53  ;;  %v600_v58 = vsel %vm578_vm1, %v2974_v50, -inf }
 0x102   : > { %595 = vmax.xlane.f32.xlu1 %v594_v52  ;;  %v2337_v55 = vpop.f32.mrf.mxu0  ;;  %v3024_v49 = vpop.permute.xlu1 %1014 }
 0x103   : > { %v2982_v56 = vmul.f32 0.25, %v2337_v55  ;;  %v597_v57 = vsel %vm578_vm1, %v2980_v54, -inf }
 0x104   : > { %598 = vmax.xlane.f32.xlu0 %v597_v57  ;;  %v523_v59 = vpop.f32.mrf.mxu0 }
 0x105   : > { %v2988_v60 = vmul.f32 0.25, %v523_v59  ;;  %v606_v24 = vsel %vm578_vm1, %v2982_v56, -inf }
 0x106   : > { %601 = vmax.xlane.f32.xlu1 %v600_v58  ;;  %v2340_v61 = vpop.f32.mrf.mxu0  ;;  %v3026_v51 = vpop.permute.xlu1 %1012 }
 0x107   : > { %v2990_v62 = vmul.f32 0.25, %v2340_v61  ;;  %v603_v63 = vsel %vm578_vm1, %v2988_v60, -inf }
 0x108   : > { %604 = vmax.xlane.f32.xlu0 %v603_v63  ;;  %v533_v25 = vpop.f32.mrf.mxu0 }
 0x109   : > { %v2996_v26 = vmul.f32 0.25, %v533_v25  ;;  %v612_v30 = vsel %vm578_vm1, %v2990_v62, -inf }
 0x10a   : > { %607 = vmax.xlane.f32.xlu1 %v606_v24  ;;  %v2343_v27 = vpop.f32.mrf.mxu0 }
 0x10b   : > { %v2998_v28 = vmul.f32 0.25, %v2343_v27  ;;  %v609_v29 = vsel %vm578_vm1, %v2996_v26, -inf }
 0x10c   : > { %610 = vmax.xlane.f32.xlu0 %v609_v29  ;;  %v543_v31 = vpop.f32.mrf.mxu0 }
 0x10d   : > { %v3004_v33 = vmul.f32 0.25, %v543_v31  ;;  %v618_v40 = vsel %vm578_vm1, %v2998_v28, -inf }
 0x10e   : > { %613 = vmax.xlane.f32.xlu1 %v612_v30  ;;  %v2346_v35 = vpop.f32.mrf.mxu0 }
 0x10f   : > { %v3006_v37 = vmul.f32 0.25, %v2346_v35  ;;  %v615_v38 = vsel %vm578_vm1, %v3004_v33, -inf }
 0x110   : > { %616 = vmax.xlane.f32.xlu0 %v615_v38  ;;  %v553_v42 = vpop.f32.mrf.mxu0 }
 0x111   : > { %v3012_v43 = vmul.f32 0.25, %v553_v42  ;;  %v624_v46 = vsel %vm578_vm1, %v3006_v37, -inf }
 0x112   : > { %619 = vmax.xlane.f32.xlu1 %v618_v40 }
 0x113   : > { %v621_v44 = vsel %vm578_vm1, %v3012_v43, -inf }
 0x114   : > { %622 = vmax.xlane.f32.xlu0 %v621_v44 }
 0x116   : > { %625 = vmax.xlane.f32.xlu1 %v624_v46 }
 0x127   : > { %1008 = vrot.lane.b32.xlu1 %v2833_v6, %s2722_s12 }
 0x12a   : > { %1010 = vrot.lane.b32.xlu0 %v2830_v5, %s2722_s12 }
 0x17f   : > { %v584_v52 = vpop.xlane.xlu0 %583 }
 0x180   : > { %v628_v53 = vsub.f32 %v2954_v34, %v584_v52 }
 0x182   : > { %v645_v55 = vmul.f32 1.442695, %v628_v53 }
 0x183   : > { %v581_v57 = vpop.xlane.xlu0 %580  ;;  %v590_v58 = vpop.xlane.xlu1 %589 }
 0x184   : > { %2551 = vpow2.f32 %v645_v55  ;;  %v627_v59 = vsub.f32 %v2956_v36, %v581_v57  ;;  %v630_v61 = vsub.f32 %v2960_v39, %v590_v58 }
 0x186   : > { %v643_v63 = vmul.f32 1.442695, %v627_v59  ;;  %v649_v24 = vmul.f32 1.442695, %v630_v61 }
 0x187   : > { %v587_v25 = vpop.xlane.xlu1 %586 }
 0x188   : > { %2553 = vpow2.f32 %v643_v63  ;;  %v629_v27 = vsub.f32 %v2962_v41, %v587_v25 }
 0x189   : > { %2555 = vpow2.f32 %v649_v24  ;;  %v593_v29 = vpop.xlane.xlu0 %592 }
 0x18a   : > { %v647_v30 = vmul.f32 1.442695, %v629_v27  ;;  %v631_v31 = vsub.f32 %v2970_v47, %v593_v29 }
 0x18b   : > { %v596_v34 = vpop.xlane.xlu1 %595 }
 0x18c   : > { %2557 = vpow2.f32 %v647_v30  ;;  %v651_v35 = vmul.f32 1.442695, %v631_v31  ;;  %v632_v38 = vsub.f32 %v2968_v45, %v596_v34 }
 0x18d   : > { %v599_v40 = vpop.xlane.xlu0 %598 }
 0x18e   : > { %2559 = vpow2.f32 %v651_v35  ;;  %v653_v36 = vmul.f32 1.442695, %v632_v38  ;;  %v633_v39 = vsub.f32 %v2980_v54, %v599_v40 }
 0x18f   : > { %v602_v42 = vpop.xlane.xlu1 %601 }
 0x190   : > { %2561 = vpow2.f32 %v653_v36  ;;  %v655_v44 = vmul.f32 1.442695, %v633_v39  ;;  %v634_v41 = vsub.f32 %v2974_v50, %v602_v42 }
 0x191   : > { %v3036_v46 = vpop.eup %2551  ;;  %v605_v30 = vpop.xlane.xlu0 %604 }
 0x192   : > { %2563 = vpow2.f32 %v655_v44  ;;  %v657_v52 = vmul.f32 1.442695, %v634_v41  ;;  %v678_v47 = vsel %vm578_vm1, %v3036_v46, 0.0  ;;  %v635_v38 = vsub.f32 %v2988_v60, %v605_v30 }
 0x193   : > { %679 = vadd.xlane.f32.xlu1 %v678_v47  ;;  %v608_v31 = vpop.xlane.xlu1 %607 }
 0x194   : > { %2565 = vpow2.f32 %v657_v52  ;;  %v636_v40 = vsub.f32 %v2982_v56, %v608_v31  ;;  %v659_v39 = vmul.f32 1.442695, %v635_v38 }
 0x195   : > { %v3040_v45 = vpop.eup %2553  ;;  %v611_v34 = vpop.xlane.xlu0 %610 }
 0x196   : > { %v3042_v53 = vpop.eup %2555  ;;  %v675_v54 = vsel %vm578_vm1, %v3040_v45, 0.0  ;;  %v637_v42 = vsub.f32 %v2996_v26, %v611_v34  ;;  %v661_v41 = vmul.f32 1.442695, %v636_v40  ;;  %2567 = vpow2.f32 %v659_v39 }
 0x197   : > { %v684_v55 = vsel %vm578_vm1, %v3042_v53, 0.0  ;;  %676 = vadd.xlane.f32.xlu0 %v675_v54  ;;  %v614_v35 = vpop.xlane.xlu1 %613 }
 0x198   : > { %685 = vadd.xlane.f32.xlu1 %v684_v55  ;;  %v638_v52 = vsub.f32 %v2990_v62, %v614_v35  ;;  %2569 = vpow2.f32 %v661_v41 }
 0x199   : > { %v3048_v50 = vpop.eup %2557  ;;  %v617_v36 = vpop.xlane.xlu0 %616 }
 0x19a   : > { %v681_v57 = vsel %vm578_vm1, %v3048_v50, 0.0  ;;  %v639_v47 = vsub.f32 %v3004_v33, %v617_v36 }
 0x19b   : > { %v3052_v58 = vpop.eup %2559  ;;  %682 = vadd.xlane.f32.xlu0 %v681_v57  ;;  %v620_v44 = vpop.xlane.xlu1 %619 }
 0x19c   : > { %v687_v63 = vsel %vm578_vm1, %v3052_v58, 0.0  ;;  %v640_v54 = vsub.f32 %v2998_v28, %v620_v44  ;;  %v667_v56 = vmul.f32 1.442695, %v639_v47 }
 0x19d   : > { %v3054_v59 = vpop.eup %2561  ;;  %v623_v55 = vpop.xlane.xlu0 %622 }
 0x19e   : > { %v690_v61 = vsel %vm578_vm1, %v3054_v59, 0.0  ;;  %v641_v57 = vsub.f32 %v3012_v43, %v623_v55  ;;  %v669_v26 = vmul.f32 1.442695, %v640_v54 }
 0x19f   : > { %v3060_v24 = vpop.eup %2563  ;;  %691 = vadd.xlane.f32.xlu1 %v690_v61  ;;  %688 = vadd.xlane.f32.xlu0 %v687_v63  ;;  %v626_v60 = vpop.xlane.xlu1 %625 }
 0x1a0   : > { %v693_v29 = vsel %vm578_vm1, %v3060_v24, 0.0  ;;  %v642_v61 = vsub.f32 %v3006_v37, %v626_v60  ;;  %v671_v62 = vmul.f32 1.442695, %v641_v57 }
 0x1a1   : > { %v3062_v25 = vpop.eup %2565 }
 0x1a2   : > { %v696_v27 = vsel %vm578_vm1, %v3062_v25, 0.0  ;;  %v673_v63 = vmul.f32 1.442695, %v642_v61 }
 0x1a3   : > { %697 = vadd.xlane.f32.xlu1 %v696_v27  ;;  %694 = vadd.xlane.f32.xlu0 %v693_v29  ;;  %v3080_v33 = vpop.eup %2567 }
 0x1a4   : > { %v699_v29 = vsel %vm578_vm1, %v3080_v33, 0.0 }
 0x1a5   : > { %v3082_v27 = vpop.eup %2569 }
 0x1a6   : > { %v702_v43 = vsel %vm578_vm1, %v3082_v27, 0.0 }
 0x1b4   : > { %1004 = vrot.lane.b32.xlu1 %v2845_v8, %s2722_s12  ;;  %v663_v8 = vmul.f32 1.442695, %v637_v42 }
 0x1b6   : > { %2571 = vpow2.f32 %v663_v8 }
 0x1b9   : > { %1006 = vrot.lane.b32.xlu0 %v2842_v7, %s2722_s12  ;;  %v665_v7 = vmul.f32 1.442695, %v638_v52 }
 0x1bb   : > { %2573 = vpow2.f32 %v665_v7 }
 0x1bc   : > { %2575 = vpow2.f32 %v667_v56 }
 0x1bd   : > { %2577 = vpow2.f32 %v669_v26 }
 0x1be   : > { %2579 = vpow2.f32 %v671_v62 }
 0x1bf   : > { %2581 = vpow2.f32 %v673_v63 }
 0x1c3   : > { %v3084_v28 = vpop.eup %2571 }
 0x1c4   : > { %v705_v31 = vsel %vm578_vm1, %v3084_v28, 0.0 }
 0x1c8   : > { %v3090_v30 = vpop.eup %2573 }
 0x1c9   : > { %v3092_v37 = vpop.eup %2575  ;;  %v708_v34 = vsel %vm578_vm1, %v3090_v30, 0.0 }
 0x1ca   : > { %v3098_v35 = vpop.eup %2577  ;;  %v711_v40 = vsel %vm578_vm1, %v3092_v37, 0.0 }
 0x1cb   : > { %v3100_v38 = vpop.eup %2579  ;;  %v714_v36 = vsel %vm578_vm1, %v3098_v35, 0.0 }
 0x1cc   : > { %v3106_v39 = vpop.eup %2581  ;;  %v717_v44 = vsel %vm578_vm1, %v3100_v38, 0.0 }
 0x1cd   : > { %v720_v42 = vsel %vm578_vm1, %v3106_v39, 0.0 }
 0x1d8   : > { %700 = vadd.xlane.f32.xlu1 %v699_v29  ;;  %703 = vadd.xlane.f32.xlu0 %v702_v43 }
 0x1dc   : > { %706 = vadd.xlane.f32.xlu1 %v705_v31  ;;  %709 = vadd.xlane.f32.xlu0 %v708_v34 }
 0x1e0   : > { %712 = vadd.xlane.f32.xlu1 %v711_v40  ;;  %715 = vadd.xlane.f32.xlu0 %v714_v36 }
 0x1e4   : > { %721 = vadd.xlane.f32.xlu0 %v720_v42  ;;  %718 = vadd.xlane.f32.xlu1 %v717_v44 }
 0x1f5   : > { %974 = vrot.lane.b32.xlu1 %v2876_v9, %s2722_s12  ;;  %v1011_v9 = vpop.permute.xlu0 %1010 }
 0x1f9   : > { %978 = vrot.lane.b32.xlu1 %v2886_v11, %s2722_s12 }
 0x1fa   : > { %972 = vrot.lane.b32.xlu0 %v2810_v2, %s2722_s12  ;;  %v1009_v2 = vpop.permute.xlu1 %1008 }
 0x1fd   : > { %982 = vrot.lane.b32.xlu1 %v2896_v13, %s2722_s12 }
 0x1fe   : > { %976 = vrot.lane.b32.xlu0 %v2879_v10, %s2722_s12 }
 0x201   : > { %986 = vrot.lane.b32.xlu1 %v2906_v15, %s2722_s12 }
 0x202   : > { %980 = vrot.lane.b32.xlu0 %v2889_v12, %s2722_s12 }
 0x205   : > { %990 = vrot.lane.b32.xlu1 %v2916_v17, %s2722_s12 }
 0x206   : > { %984 = vrot.lane.b32.xlu0 %v2899_v14, %s2722_s12 }
 0x209   : > { %994 = vrot.lane.b32.xlu1 %v2926_v19, %s2722_s12 }
 0x20a   : > { %988 = vrot.lane.b32.xlu0 %v2909_v16, %s2722_s12 }
 0x20d   : > { %998 = vrot.lane.b32.xlu1 %v2936_v21, %s2722_s12 }
 0x20e   : > { %992 = vrot.lane.b32.xlu0 %v2919_v18, %s2722_s12 }
 0x211   : > { %1002 = vrot.lane.b32.xlu1 %v2946_v23, %s2722_s12 }
 0x212   : > { %996 = vrot.lane.b32.xlu0 %v2929_v20, %s2722_s12 }
 0x215   : > { %1417 = vrot.lane.b32.xlu1 %v2796_v1, %s2723_s13 }
 0x216   : > { %1000 = vrot.lane.b32.xlu0 %v2939_v22, %s2722_s12 }
 0x219   : > { %1413 = vrot.lane.b32.xlu1 %v2821_v4, %s2723_s13 }
 0x21a   : > { %1419 = vrot.lane.b32.xlu0 %v2793_v0, %s2723_s13 }
 0x21c   : > { %v680_v10 = vpop.xlane.xlu1 %679 }
 0x21d   : > { %2583 = vrcp.f32 %v680_v10 }
 0x21e   : > { %1415 = vrot.lane.b32.xlu0 %v2818_v3, %s2723_s13 }
 0x220   : > { %v677_v11 = vpop.xlane.xlu0 %676 }
 0x221   : > { %v686_v12 = vpop.xlane.xlu1 %685  ;;  %2585 = vrcp.f32 %v677_v11 }
 0x222   : > { %2587 = vrcp.f32 %v686_v12 }
 0x224   : > { %v683_v13 = vpop.xlane.xlu0 %682 }
 0x225   : > { %2589 = vrcp.f32 %v683_v13 }
 0x228   : > { %v692_v14 = vpop.xlane.xlu1 %691  ;;  %v689_v15 = vpop.xlane.xlu0 %688 }
 0x229   : > { %2591 = vrcp.f32 %v692_v14 }
 0x22a   : > { %2593 = vrcp.f32 %v689_v15  ;;  %v2584_v18 = vpop.eup %2583 }
 0x22b   : > { %v740_v21 = vmul.f32 %v2584_v18, %v3036_v46 }
 0x22c   : > { %v698_v16 = vpop.xlane.xlu1 %697  ;;  %v695_v17 = vpop.xlane.xlu0 %694 }
 0x22d   : > { %2595 = vrcp.f32 %v698_v16 }
 0x22e   : > { %v2586_v19 = vpop.eup %2585  ;;  %2597 = vrcp.f32 %v695_v17 }
 0x22f   : > { %v739_v20 = vmul.f32 %v2586_v19, %v3040_v45  ;;  %v2588_v22 = vpop.eup %2587 }
 0x230   : > { %v742_v52 = vmul.f32 %v2588_v22, %v3042_v53 }
 0x231   : > { %2363 = vmatprep.mubr.msk.f32.mxu1 %vm578_vm1, %v739_v20 }
 0x232   : > { %v2590_v23 = vpop.eup %2589  ;;  %2364 = vmatmul.mubr.msk.f32.vlgmr.msra.gmra.mxu1 %vm578_vm1, %v740_v21 }
 0x233   : > { %2388 = vmatpush3.xpose.msk.msra.mxu1 %vm344_vm0, %v2950_v32  ;;  %v741_v41 = vmul.f32 %v2590_v23, %v3048_v50 }
 0x234   : > { %2389 = vmatprep.subr.msk.mxu1 %vm344_vm0, %v3022_v48 }
 0x235   : > { %2366 = vmatprep.mubr.msk.f32.mxu1 %vm578_vm1, %v741_v41 }
 0x236   : > { %v2592_v45 = vpop.eup %2591  ;;  %2367 = vmatmul.mubr.msk.f32.gmra.mxu1 %vm578_vm1, %v742_v52 }
 0x237   : > { %v2594_v46 = vpop.eup %2593  ;;  %2390 = vmatpush3.xpose.msk.msra.mxu1 %vm344_vm0, %v3022_v48  ;;  %v744_v8 = vmul.f32 %v2592_v45, %v3054_v59 }
 0x238   : > { %2391 = vmatprep.subr.msk.mxu1 %vm344_vm0, %v3024_v49  ;;  %v743_v32 = vmul.f32 %v2594_v46, %v3052_v58  ;;  %v1007_v58 = vpop.permute.xlu0 %1006 }
 0x23a   : > { %v2596_v50 = vpop.eup %2595  ;;  %2369 = vmatprep.mubr.msk.f32.mxu1 %vm578_vm1, %v743_v32 }
 0x23b   : > { %v2598_v53 = vpop.eup %2597  ;;  %2370 = vmatmul.mubr.msk.f32.gmra.mxu1 %vm578_vm1, %v744_v8  ;;  %v746_v47 = vmul.f32 %v2596_v50, %v3062_v25 }
 0x23c   : > { %2392 = vmatpush3.xpose.msk.msra.mxu1 %vm344_vm0, %v3024_v49  ;;  %v745_v48 = vmul.f32 %v2598_v53, %v3060_v24  ;;  %v1005_v49 = vpop.permute.xlu1 %1004 }
 0x23d   : > { %2393 = vmatprep.subr.msk.mxu1 %vm344_vm0, %v3026_v51 }
 0x23e   : > { %2372 = vmatprep.mubr.msk.f32.mxu1 %vm578_vm1, %v745_v48 }
 0x23f   : > { %2373 = vmatmul.mubr.msk.f32.gmra.mxu1 %vm578_vm1, %v746_v47 }
 0x240   : > { %2394 = vmatpush3.xpose.msk.msra.mxu1 %vm344_vm0, %v3026_v51 }
 0x241   : > { %2395 = vmatprep.subr.msk.mxu1 %vm344_vm0, %v1011_v9 }
 0x244   : > { %2396 = vmatpush3.xpose.msk.msra.mxu1 %vm344_vm0, %v1011_v9 }
 0x245   : > { %2397 = vmatprep.subr.msk.mxu1 %vm344_vm0, %v1009_v2 }
 0x248   : > { %2398 = vmatpush3.xpose.msk.msra.mxu1 %vm344_vm0, %v1009_v2 }
 0x249   : > { %2399 = vmatprep.subr.msk.mxu1 %vm344_vm0, %v1007_v58 }
 0x24c   : > { %2400 = vmatpush3.xpose.msk.msra.mxu1 %vm344_vm0, %v1007_v58 }
 0x24d   : > { %2401 = vmatprep.subr.msk.mxu1 %vm344_vm0, %v1005_v49 }
 0x250   : > { %2402 = vmatpush3.xpose.msk.msra.mxu1 %vm344_vm0, %v1005_v49 }
 0x261   : > { %v701_v59 = vpop.xlane.xlu1 %700  ;;  %v704_v51 = vpop.xlane.xlu0 %703 }
 0x262   : > { %2599 = vrcp.f32 %v701_v59 }
 0x263   : > { %2601 = vrcp.f32 %v704_v51 }
 0x265   : > { %v707_v24 = vpop.xlane.xlu1 %706  ;;  %v710_v25 = vpop.xlane.xlu0 %709 }
 0x266   : > { %2603 = vrcp.f32 %v707_v24 }
 0x267   : > { %2605 = vrcp.f32 %v710_v25 }
 0x269   : > { %v713_v7 = vpop.xlane.xlu1 %712  ;;  %v716_v54 = vpop.xlane.xlu0 %715 }
 0x26a   : > { %2607 = vrcp.f32 %v713_v7 }
 0x26b   : > { %2609 = vrcp.f32 %v716_v54 }
 0x26d   : > { %v719_v55 = vpop.xlane.xlu1 %718  ;;  %v722_v60 = vpop.xlane.xlu0 %721 }
 0x26e   : > { %2611 = vrcp.f32 %v719_v55 }
 0x26f   : > { %v2600_v56 = vpop.eup %2599  ;;  %2613 = vrcp.f32 %v722_v60 }
 0x270   : > { %v2602_v57 = vpop.eup %2601  ;;  %v747_v26 = vmul.f32 %v2600_v56, %v3080_v33 }
 0x271   : > { %v748_v61 = vmul.f32 %v2602_v57, %v3082_v27  ;;  %v973_v62 = vpop.permute.xlu0 %972  ;;  %v975_v63 = vpop.permute.xlu1 %974 }
 0x272   : > { %2375 = vmatprep.mubr.msk.f32.mxu1 %vm578_vm1, %v747_v26 }
 0x273   : > { %v2604_v29 = vpop.eup %2603  ;;  %2376 = vmatmul.mubr.msk.f32.gmra.mxu1 %vm578_vm1, %v748_v61 }
 0x274   : > { %v2606_v43 = vpop.eup %2605  ;;  %v749_v31 = vmul.f32 %v2604_v29, %v3084_v28 }
 0x275   : > { %v750_v34 = vmul.f32 %v2606_v43, %v3090_v30  ;;  %v977_v40 = vpop.permute.xlu0 %976  ;;  %v979_v42 = vpop.permute.xlu1 %978 }
 0x276   : > { %2378 = vmatprep.mubr.msk.f32.mxu1 %vm578_vm1, %v749_v31 }
 0x277   : > { %v2608_v36 = vpop.eup %2607  ;;  %2379 = vmatmul.mubr.msk.f32.gmra.mxu1 %vm578_vm1, %v750_v34 }
 0x278   : > { %v2610_v33 = vpop.eup %2609  ;;  %v751_v27 = vmul.f32 %v2608_v36, %v3092_v37 }
 0x279   : > { %v752_v44 = vmul.f32 %v2610_v33, %v3098_v35  ;;  %v981_v28 = vpop.permute.xlu0 %980  ;;  %v983_v11 = vpop.permute.xlu1 %982 }
 0x27a   : > { %2381 = vmatprep.mubr.msk.f32.mxu1 %vm578_vm1, %v751_v27 }
 0x27b   : > { %v2612_v2 = vpop.eup %2611  ;;  %2382 = vmatmul.mubr.msk.f32.gmra.mxu1 %vm578_vm1, %v752_v44 }
 0x27c   : > { %v2614_v9 = vpop.eup %2613  ;;  %v753_v30 = vmul.f32 %v2612_v2, %v3100_v38 }
 0x27d   : > { %v754_v10 = vmul.f32 %v2614_v9, %v3106_v39  ;;  %v985_v37 = vpop.permute.xlu0 %984  ;;  %v987_v35 = vpop.permute.xlu1 %986 }
 0x27e   : > { %2384 = vmatprep.mubr.msk.f32.mxu1 %vm578_vm1, %v753_v30 }
 0x27f   : > { %2385 = vmatmul.mubr.msk.f32.gmra.mxu1 %vm578_vm1, %v754_v10 }
 0x280   : > { %2403 = vmatprep.mubr.msk.f32.mxu1 %vm344_vm0, %v973_v62 }
 0x281   : > { %v989_v38 = vpop.permute.xlu0 %988  ;;  %v991_v1 = vpop.permute.xlu1 %990 }
 0x283   : > { %2404 = vmatmul.mubr.msk.f32.vlgmr.msra.gmra.mxu1 %vm344_vm0, %v975_v63 }
 0x284   : > { %2406 = vmatprep.mubr.msk.f32.mxu1 %vm344_vm0, %v977_v40 }
 0x285   : > { %v993_v0 = vpop.permute.xlu0 %992  ;;  %v995_v39 = vpop.permute.xlu1 %994 }
 0x287   : > { %2407 = vmatmul.mubr.msk.f32.gmra.mxu1 %vm344_vm0, %v979_v42 }
 0x288   : > { %2409 = vmatprep.mubr.msk.f32.mxu1 %vm344_vm0, %v981_v28 }
 0x289   : > { %v997_v4 = vpop.permute.xlu0 %996  ;;  %v999_v3 = vpop.permute.xlu1 %998 }
 0x28b   : > { %2410 = vmatmul.mubr.msk.f32.gmra.mxu1 %vm344_vm0, %v983_v11 }
 0x28c   : > { %2412 = vmatprep.mubr.msk.f32.mxu1 %vm344_vm0, %v985_v37 }
 0x28d   : > { %v1001_v12 = vpop.permute.xlu0 %1000  ;;  %v1003_v13 = vpop.permute.xlu1 %1002 }
 0x28f   : > { %2413 = vmatmul.mubr.msk.f32.gmra.mxu1 %vm344_vm0, %v987_v35 }
 0x290   : > { %2415 = vmatprep.mubr.msk.f32.mxu1 %vm344_vm0, %v989_v38 }
 0x291   : > { %v1420_v14 = vpop.permute.xlu0 %1419  ;;  %v1418_v15 = vpop.permute.xlu1 %1417 }
 0x292   : > { %2427 = vmatprep.subr.mxu0 %v1420_v14 }
 0x293   : > { %2416 = vmatmul.mubr.msk.f32.gmra.mxu1 %vm344_vm0, %v991_v1  ;;  %2428 = vmatpush3.msra.mxu0 %v1420_v14 }
 0x294   : > { %2418 = vmatprep.mubr.msk.f32.mxu1 %vm344_vm0, %v993_v0  ;;  %2429 = vmatprep.subr.mxu0 %v1418_v15 }
 0x295   : > { %2430 = vmatpush3.msra.mxu0 %v1418_v15  ;;  %v1416_v16 = vpop.permute.xlu0 %1415  ;;  %v1414_v17 = vpop.permute.xlu1 %1413 }
 0x296   : > { %2431 = vmatprep.subr.mxu0 %v1416_v16 }
 0x297   : > { %2419 = vmatmul.mubr.msk.f32.gmra.mxu1 %vm344_vm0, %v995_v39  ;;  %2432 = vmatpush3.msra.mxu0 %v1416_v16 }
 0x298   : > { %2421 = vmatprep.mubr.msk.f32.mxu1 %vm344_vm0, %v997_v4  ;;  %2433 = vmatprep.subr.mxu0 %v1414_v17 }
 0x299   : > { %2434 = vmatpush3.msra.mxu0 %v1414_v17 }
 0x29b   : > { %2422 = vmatmul.mubr.msk.f32.gmra.mxu1 %vm344_vm0, %v999_v3 }
 0x29c   : > { %2424 = vmatprep.mubr.msk.f32.mxu1 %vm344_vm0, %v1001_v12 }
 0x29f   : > { %2425 = vmatmul.mubr.msk.f32.gmra.mxu1 %vm344_vm0, %v1003_v13 }
 0x2f2   : > { %v3222_v18 = vpop.f32.mrf.mxu1 }
 0x2f4   : > { %v3224_v19 = vpop.f32.mrf.mxu1 }
 0x2f6   : > { %v3226_v20 = vpop.f32.mrf.mxu1 }
 0x2f8   : > { %v3228_v21 = vpop.f32.mrf.mxu1 }
 0x2fb   : > { %v3230_v22 = vpop.f32.mrf.mxu1 }
 0x2fd   : > { %v3232_v23 = vpop.f32.mrf.mxu1 }
 0x2ff   : > { %v3234_v41 = vpop.f32.mrf.mxu1 }
 0x301   : > { %v3236_v52 = vpop.f32.mrf.mxu1 }
 0x333   : > { %v3238_v45 = vpop.f32.mrf.mxu1 }
 0x335   : > { %v3240_v46 = vpop.f32.mrf.mxu1 }
 0x337   : > { %v3242_v8 = vpop.f32.mrf.mxu1 }
 0x339   : > { %v3244_v32 = vpop.f32.mrf.mxu1 }
 0x33b   : > { %v3246_v50 = vpop.f32.mrf.mxu1 }
 0x33d   : > { %v3248_v53 = vpop.f32.mrf.mxu1 }
 0x33f   : > { %v3250_v47 = vpop.f32.mrf.mxu1 }
 0x341   : > { %v3252_v48 = vpop.f32.mrf.mxu1 }
 0x343   : > { %v2405_v58 = vpop.f32.mrf.mxu1 }
 0x344   : > { %v3254_v49 = vmul.f32 0.25, %v2405_v58 }
 0x345   : > { %v1134_v59 = vpop.f32.mrf.mxu1 }
 0x346   : > { %v3256_v51 = vmul.f32 0.25, %v1134_v59  ;;  %v1232_v24 = vsel %vm578_vm1, %v3254_v49, -inf }
 0x347   : > { %1233 = vmax.xlane.f32.xlu1 %v1232_v24  ;;  %v2408_v25 = vpop.f32.mrf.mxu1 }
 0x348   : > { %v3260_v7 = vmul.f32 0.25, %v2408_v25  ;;  %v1229_v54 = vsel %vm578_vm1, %v3256_v51, -inf }
 0x349   : > { %1230 = vmax.xlane.f32.xlu0 %v1229_v54  ;;  %v1144_v55 = vpop.f32.mrf.mxu1 }
 0x34a   : > { %v1238_v60 = vsel %vm578_vm1, %v3260_v7, -inf  ;;  %v3266_v57 = vmul.f32 0.25, %v1144_v55 }
 0x34b   : > { %v2411_v56 = vpop.f32.mrf.mxu1 }
 0x34c   : > { %v3268_v26 = vmul.f32 0.25, %v2411_v56  ;;  %v1235_v31 = vsel %vm578_vm1, %v3266_v57, -inf }
 0x34d   : > { %1239 = vmax.xlane.f32.xlu0 %v1238_v60  ;;  %v1154_v61 = vpop.f32.mrf.mxu1 }
 0x34e   : > { %v1244_v62 = vsel %vm578_vm1, %v3268_v26, -inf  ;;  %v3272_v29 = vmul.f32 0.25, %v1154_v61 }
 0x34f   : > { %1245 = vmax.xlane.f32.xlu1 %v1244_v62  ;;  %v2414_v63 = vpop.f32.mrf.mxu1 }
 0x350   : > { %v3274_v43 = vmul.f32 0.25, %v2414_v63  ;;  %v1241_v42 = vsel %vm578_vm1, %v3272_v29, -inf }
 0x351   : > { %1236 = vmax.xlane.f32.xlu0 %v1235_v31  ;;  %v1164_v34 = vpop.f32.mrf.mxu1 }
 0x352   : > { %v1250_v40 = vsel %vm578_vm1, %v3274_v43, -inf  ;;  %v3280_v33 = vmul.f32 0.25, %v1164_v34 }
 0x353   : > { %1251 = vmax.xlane.f32.xlu1 %v1250_v40  ;;  %v2417_v36 = vpop.f32.mrf.mxu1 }
 0x354   : > { %v3282_v27 = vmul.f32 0.25, %v2417_v36  ;;  %v1247_v10 = vsel %vm578_vm1, %v3280_v33, -inf }
 0x355   : > { %1242 = vmax.xlane.f32.xlu0 %v1241_v42  ;;  %v1174_v44 = vpop.f32.mrf.mxu1 }
 0x356   : > { %v3286_v2 = vmul.f32 0.25, %v1174_v44  ;;  %v1256_v28 = vsel %vm578_vm1, %v3282_v27, -inf }
 0x357   : > { %1257 = vmax.xlane.f32.xlu1 %v1256_v28  ;;  %v2420_v9 = vpop.f32.mrf.mxu1 }
 0x358   : > { %v3290_v30 = vmul.f32 0.25, %v2420_v9  ;;  %v1253_v38 = vsel %vm578_vm1, %v3286_v2, -inf }
 0x359   : > { %1248 = vmax.xlane.f32.xlu0 %v1247_v10  ;;  %v1184_v11 = vpop.f32.mrf.mxu1 }
 0x35a   : > { %v3294_v37 = vmul.f32 0.25, %v1184_v11  ;;  %v1262_v35 = vsel %vm578_vm1, %v3290_v30, -inf }
 0x35b   : > { %1263 = vmax.xlane.f32.xlu1 %v1262_v35  ;;  %v2423_v1 = vpop.f32.mrf.mxu1 }
 0x35c   : > { %v3300_v0 = vmul.f32 0.25, %v2423_v1  ;;  %v1259_v12 = vsel %vm578_vm1, %v3294_v37, -inf }
 0x35d   : > { %1254 = vmax.xlane.f32.xlu0 %v1253_v38  ;;  %v1194_v39 = vpop.f32.mrf.mxu1 }
 0x35e   : > { %v3302_v4 = vmul.f32 0.25, %v1194_v39  ;;  %v1268_v3 = vsel %vm578_vm1, %v3300_v0, -inf }
 0x35f   : > { %1269 = vmax.xlane.f32.xlu1 %v1268_v3  ;;  %v2426_v13 = vpop.f32.mrf.mxu1 }
 0x360   : > { %v3308_v14 = vmul.f32 0.25, %v2426_v13  ;;  %v1265_v17 = vsel %vm578_vm1, %v3302_v4, -inf }
 0x361   : > { %1260 = vmax.xlane.f32.xlu0 %v1259_v12  ;;  %v1204_v15 = vpop.f32.mrf.mxu1 }
 0x362   : > { %v1274_v16 = vsel %vm578_vm1, %v3308_v14, -inf  ;;  %v3314_v58 = vmul.f32 0.25, %v1204_v15 }
 0x363   : > { %1275 = vmax.xlane.f32.xlu1 %v1274_v16 }
 0x364   : > { %v1271_v59 = vsel %vm578_vm1, %v3314_v58, -inf }
 0x365   : > { %1266 = vmax.xlane.f32.xlu0 %v1265_v17 }
 0x369   : > { %1272 = vmax.xlane.f32.xlu0 %v1271_v59 }
 0x374   : > { %1409 = vrot.lane.b32.xlu1 %v2833_v6, %s2723_s13 }
 0x37f   : > { %1411 = vrot.lane.b32.xlu0 %v2830_v5, %s2723_s13 }
 0x3d0   : > { %v1234_v24 = vpop.xlane.xlu1 %1233 }
 0x3d1   : > { %v1278_v25 = vsub.f32 %v3254_v49, %v1234_v24 }
 0x3d2   : > { %v1231_v54 = vpop.xlane.xlu0 %1230 }
 0x3d3   : > { %v1295_v55 = vmul.f32 1.442695, %v1278_v25  ;;  %v1277_v60 = vsub.f32 %v3256_v51, %v1231_v54 }
 0x3d5   : > { %2615 = vpow2.f32 %v1295_v55  ;;  %v1293_v56 = vmul.f32 1.442695, %v1277_v60 }
 0x3d6   : > { %v1240_v61 = vpop.xlane.xlu0 %1239 }
 0x3d7   : > { %2617 = vpow2.f32 %v1293_v56  ;;  %v1280_v62 = vsub.f32 %v3260_v7, %v1240_v61 }
 0x3d8   : > { %v1246_v63 = vpop.xlane.xlu1 %1245 }
 0x3d9   : > { %v1299_v31 = vmul.f32 1.442695, %v1280_v62  ;;  %v1282_v6 = vsub.f32 %v3268_v26, %v1246_v63 }
 0x3da   : > { %v1237_v34 = vpop.xlane.xlu0 %1236 }
 0x3db   : > { %2619 = vpow2.f32 %v1299_v31  ;;  %v1303_v5 = vmul.f32 1.442695, %v1282_v6  ;;  %v1279_v40 = vsub.f32 %v3266_v57, %v1237_v34  ;;  %v2679_v6 = vld [vmem:[%s2788_s6] sm:$0xff]  ;;  %v2680_v34 = vld [vmem:[%s2788_s6 + $0x8] sm:$0xff] }
 0x3dc   : > { %v1252_v49 = vpop.xlane.xlu1 %1251 }
 0x3dd   : > { %2621 = vpow2.f32 %v1303_v5  ;;  %v1297_v36 = vmul.f32 1.442695, %v1279_v40  ;;  %v1284_v51 = vsub.f32 %v3274_v43, %v1252_v49 }
 0x3de   : > { %v1243_v42 = vpop.xlane.xlu0 %1242 }
 0x3df   : > { %2623 = vpow2.f32 %v1297_v36  ;;  %v1307_v44 = vmul.f32 1.442695, %v1284_v51  ;;  %v1281_v28 = vsub.f32 %v3272_v29, %v1243_v42 }
 0x3e0   : > { %v1258_v7 = vpop.xlane.xlu1 %1257 }
 0x3e1   : > { %2625 = vpow2.f32 %v1307_v44  ;;  %v1301_v9 = vmul.f32 1.442695, %v1281_v28  ;;  %v1286_v40 = vsub.f32 %v3282_v27, %v1258_v7 }
 0x3e2   : > { %v3329_v10 = vpop.eup %2615  ;;  %v1249_v26 = vpop.xlane.xlu0 %1248 }
 0x3e3   : > { %2627 = vpow2.f32 %v1301_v9  ;;  %v1283_v11 = vsub.f32 %v3280_v33, %v1249_v26  ;;  %v1328_v57 = vsel %vm578_vm1, %v3329_v10, 0.0  ;;  %v1311_v51 = vmul.f32 1.442695, %v1286_v40 }
 0x3e4   : > { %v3334_v35 = vpop.eup %2617  ;;  %1329 = vadd.xlane.f32.xlu1 %v1328_v57  ;;  %v1264_v29 = vpop.xlane.xlu1 %1263 }
 0x3e5   : > { %v1305_v43 = vmul.f32 1.442695, %v1283_v11  ;;  %v1325_v38 = vsel %vm578_vm1, %v3334_v35, 0.0  ;;  %v1288_v42 = vsub.f32 %v3290_v30, %v1264_v29 }
 0x3e6   : > { %1326 = vadd.xlane.f32.xlu0 %v1325_v38  ;;  %v1255_v1 = vpop.xlane.xlu0 %1254 }
 0x3e7   : > { %2629 = vpow2.f32 %v1305_v43  ;;  %v1285_v5 = vsub.f32 %v3286_v2, %v1255_v1  ;;  %v1315_v9 = vmul.f32 1.442695, %v1288_v42 }
 0x3e8   : > { %v3338_v39 = vpop.eup %2619  ;;  %v1270_v15 = vpop.xlane.xlu1 %1269 }
 0x3e9   : > { %v1334_v3 = vsel %vm578_vm1, %v3338_v39, 0.0  ;;  %v1309_v49 = vmul.f32 1.442695, %v1285_v5  ;;  %v1290_v26 = vsub.f32 %v3300_v0, %v1270_v15 }
 0x3ea   : > { %v3342_v33 = vpop.eup %2621  ;;  %1335 = vadd.xlane.f32.xlu1 %v1334_v3  ;;  %v1261_v12 = vpop.xlane.xlu0 %1260 }
 0x3eb   : > { %v1340_v16 = vsel %vm578_vm1, %v3342_v33, 0.0  ;;  %v1287_v36 = vsub.f32 %v3294_v37, %v1261_v12  ;;  %2631 = vpow2.f32 %v1309_v49  ;;  %v1319_v27 = vmul.f32 1.442695, %v1290_v26 }
 0x3ec   : > { %v3344_v13 = vpop.eup %2623  ;;  %v1276_v60 = vpop.xlane.xlu1 %1275  ;;  %2633 = vpow2.f32 %v1311_v51 }
 0x3ed   : > { %v1331_v17 = vsel %vm578_vm1, %v3344_v13, 0.0  ;;  %v1313_v44 = vmul.f32 1.442695, %v1287_v36  ;;  %v1292_v7 = vsub.f32 %v3308_v14, %v1276_v60 }
 0x3ee   : > { %v3350_v59 = vpop.eup %2625  ;;  %1341 = vadd.xlane.f32.xlu1 %v1340_v16  ;;  %1332 = vadd.xlane.f32.xlu0 %v1331_v17  ;;  %v1267_v24 = vpop.xlane.xlu0 %1266 }
 0x3ef   : > { %v1346_v54 = vsel %vm578_vm1, %v3350_v59, 0.0  ;;  %v1289_v28 = vsub.f32 %v3302_v4, %v1267_v24  ;;  %2635 = vpow2.f32 %v1313_v44  ;;  %v1323_v30 = vmul.f32 1.442695, %v1292_v7 }
 0x3f0   : > { %v3352_v25 = vpop.eup %2627  ;;  %v1410_v31 = vpop.permute.xlu1 %1409  ;;  %2637 = vpow2.f32 %v1315_v9 }
 0x3f1   : > { %v1337_v55 = vsel %vm578_vm1, %v3352_v25, 0.0  ;;  %v1317_v11 = vmul.f32 1.442695, %v1289_v28 }
 0x3f2   : > { %1347 = vadd.xlane.f32.xlu1 %v1346_v54  ;;  %1338 = vadd.xlane.f32.xlu0 %v1337_v55  ;;  %v1273_v56 = vpop.xlane.xlu0 %1272 }
 0x3f3   : > { %v1291_v2 = vsub.f32 %v3314_v58, %v1273_v56  ;;  %2639 = vpow2.f32 %v1317_v11 }
 0x3f4   : > { %v3358_v61 = vpop.eup %2629  ;;  %2641 = vpow2.f32 %v1319_v27 }
 0x3f5   : > { %v1343_v62 = vsel %vm578_vm1, %v3358_v61, 0.0  ;;  %v1321_v37 = vmul.f32 1.442695, %v1291_v2 }
 0x3f6   : > { %1344 = vadd.xlane.f32.xlu0 %v1343_v62  ;;  %v1412_v63 = vpop.permute.xlu0 %1411 }
 0x3f7   : > { %2435 = vmatprep.subr.mxu0 %v1412_v63  ;;  %2643 = vpow2.f32 %v1321_v37 }
 0x3f8   : > { %2436 = vmatpush3.msra.mxu0 %v1412_v63  ;;  %v3374_v57 = vpop.eup %2631  ;;  %2645 = vpow2.f32 %v1323_v30 }
 0x3f9   : > { %2437 = vmatprep.subr.mxu0 %v1410_v31  ;;  %v3376_v4 = vpop.eup %2633  ;;  %v1349_v0 = vsel %vm578_vm1, %v3374_v57, 0.0 }
 0x3fa   : > { %2438 = vmatpush3.msra.mxu0 %v1410_v31  ;;  %v1352_v14 = vsel %vm578_vm1, %v3376_v4, 0.0 }
 0x3fc   : > { %v3380_v43 = vpop.eup %2635 }
 0x3fd   : > { %v3382_v58 = vpop.eup %2637  ;;  %v1355_v38 = vsel %vm578_vm1, %v3380_v43, 0.0 }
 0x3fe   : > { %v1358_v3 = vsel %vm578_vm1, %v3382_v58, 0.0 }
 0x400   : > { %v3388_v29 = vpop.eup %2639 }
 0x401   : > { %v3390_v1 = vpop.eup %2641  ;;  %v1361_v12 = vsel %vm578_vm1, %v3388_v29, 0.0 }
 0x402   : > { %v1364_v16 = vsel %vm578_vm1, %v3390_v1, 0.0 }
 0x403   : > { %1405 = vrot.lane.b32.xlu1 %v2679_v6, %s2723_s13 }
 0x404   : > { %v3396_v15 = vpop.eup %2643 }
 0x405   : > { %v1367_v17 = vsel %vm578_vm1, %v3396_v15, 0.0  ;;  %v3402_v24 = vpop.eup %2645 }
 0x406   : > { %v1370_v54 = vsel %vm578_vm1, %v3402_v24, 0.0 }
 0x40c   : > { %1407 = vrot.lane.b32.xlu0 %v2680_v34, %s2723_s13 }
 0x427   : > { %1350 = vadd.xlane.f32.xlu1 %v1349_v0 }
 0x42b   : > { %1353 = vadd.xlane.f32.xlu0 %v1352_v14  ;;  %1356 = vadd.xlane.f32.xlu1 %v1355_v38 }
 0x42f   : > { %1359 = vadd.xlane.f32.xlu0 %v1358_v3  ;;  %1362 = vadd.xlane.f32.xlu1 %v1361_v12 }
 0x433   : > { %1365 = vadd.xlane.f32.xlu0 %v1364_v16  ;;  %1368 = vadd.xlane.f32.xlu1 %v1367_v17 }
 0x437   : > { %1371 = vadd.xlane.f32.xlu0 %v1370_v54 }
 0x46d   : > { %v1330_v55 = vpop.xlane.xlu1 %1329 }
 0x46f   : > { %v1327_v60 = vpop.xlane.xlu0 %1326 }
 0x470   : > { %2647 = vrcp.f32 %v1327_v60 }
 0x471   : > { %2649 = vrcp.f32 %v1330_v55 }
 0x473   : > { %v1336_v56 = vpop.xlane.xlu1 %1335 }
 0x477   : > { %v1333_v62 = vpop.xlane.xlu0 %1332  ;;  %v1342_v63 = vpop.xlane.xlu1 %1341 }
 0x478   : > { %2651 = vrcp.f32 %v1333_v62 }
 0x479   : > { %2653 = vrcp.f32 %v1336_v56 }
 0x47b   : > { %v1339_v31 = vpop.xlane.xlu0 %1338  ;;  %v1348_v5 = vpop.xlane.xlu1 %1347 }
 0x47c   : > { %2655 = vrcp.f32 %v1339_v31 }
 0x47d   : > { %v2648_v6 = vpop.eup %2647  ;;  %2657 = vrcp.f32 %v1342_v63 }
 0x47e   : > { %v1389_v34 = vmul.f32 %v2648_v6, %v3334_v35  ;;  %v2650_v49 = vpop.eup %2649 }
 0x47f   : > { %v1345_v40 = vpop.xlane.xlu0 %1344  ;;  %v1406_v51 = vpop.permute.xlu1 %1405  ;;  %v1390_v44 = vmul.f32 %v2650_v49, %v3329_v10 }
 0x480   : > { %2659 = vrcp.f32 %v1345_v40  ;;  %2443 = vmatprep.mubr.msk.f32.mxu0 %vm578_vm1, %v1389_v34 }
 0x481   : > { %2661 = vrcp.f32 %v1348_v5 }
 0x483   : > { %v1408_v36 = vpop.permute.xlu0 %1407 }
 0x484   : > { %2439 = vmatprep.subr.mxu0 %v1408_v36 }
 0x485   : > { %2440 = vmatpush3.msra.mxu0 %v1408_v36  ;;  %v2652_v42 = vpop.eup %2651 }
 0x486   : > { %2441 = vmatprep.subr.mxu0 %v1406_v51  ;;  %v2654_v28 = vpop.eup %2653  ;;  %v1391_v9 = vmul.f32 %v2652_v42, %v3344_v13 }
 0x487   : > { %2442 = vmatpush3.msra.mxu0 %v1406_v51  ;;  %v1392_v26 = vmul.f32 %v2654_v28, %v3338_v39 }
 0x488   : > { %2444 = vmatmul.mubr.msk.f32.vlgmr.msra.gmra.mxu0 %vm578_vm1, %v1390_v44 }
 0x489   : > { %2446 = vmatprep.mubr.msk.f32.mxu0 %vm578_vm1, %v1391_v9  ;;  %v2656_v35 = vpop.eup %2655 }
 0x48a   : > { %v2658_v11 = vpop.eup %2657  ;;  %v1393_v2 = vmul.f32 %v2656_v35, %v3352_v25 }
 0x48b   : > { %v1394_v10 = vmul.f32 %v2658_v11, %v3342_v33 }
 0x48c   : > { %2447 = vmatmul.mubr.msk.f32.gmra.mxu0 %vm578_vm1, %v1392_v26 }
 0x48d   : > { %v2660_v27 = vpop.eup %2659  ;;  %2449 = vmatprep.mubr.msk.f32.mxu0 %vm578_vm1, %v1393_v2 }
 0x48e   : > { %v1395_v7 = vmul.f32 %v2660_v27, %v3358_v61  ;;  %v2662_v13 = vpop.eup %2661 }
 0x48f   : > { %v1396_v37 = vmul.f32 %v2662_v13, %v3350_v59 }
 0x490   : > { %2450 = vmatmul.mubr.msk.f32.gmra.mxu0 %vm578_vm1, %v1394_v10 }
 0x491   : > { %2452 = vmatprep.mubr.msk.f32.mxu0 %vm578_vm1, %v1395_v7 }
 0x494   : > { %2453 = vmatmul.mubr.msk.f32.gmra.mxu0 %vm578_vm1, %v1396_v37 }
 0x4b0   : > { %v1351_v39 = vpop.xlane.xlu1 %1350 }
 0x4b1   : > { %2663 = vrcp.f32 %v1351_v39 }
 0x4b4   : > { %v1357_v25 = vpop.xlane.xlu1 %1356  ;;  %v1354_v30 = vpop.xlane.xlu0 %1353 }
 0x4b5   : > { %2665 = vrcp.f32 %v1357_v25 }
 0x4b6   : > { %2667 = vrcp.f32 %v1354_v30 }
 0x4b8   : > { %v1363_v0 = vpop.xlane.xlu1 %1362  ;;  %v1360_v14 = vpop.xlane.xlu0 %1359 }
 0x4b9   : > { %2669 = vrcp.f32 %v1363_v0 }
 0x4ba   : > { %2671 = vrcp.f32 %v1360_v14 }
 0x4bc   : > { %v1369_v33 = vpop.xlane.xlu1 %1368  ;;  %v1366_v61 = vpop.xlane.xlu0 %1365 }
 0x4bd   : > { %2673 = vrcp.f32 %v1369_v33 }
 0x4be   : > { %v2664_v38 = vpop.eup %2663  ;;  %2675 = vrcp.f32 %v1366_v61 }
 0x4bf   : > { %v1397_v3 = vmul.f32 %v2664_v38, %v3374_v57 }
 0x4c0   : > { %v1372_v59 = vpop.xlane.xlu0 %1371 }
 0x4c1   : > { %2677 = vrcp.f32 %v1372_v59  ;;  %2455 = vmatprep.mubr.msk.f32.mxu0 %vm578_vm1, %v1397_v3 }
 0x4c2   : > { %v2666_v12 = vpop.eup %2665 }
 0x4c3   : > { %v2668_v16 = vpop.eup %2667  ;;  %v1399_v17 = vmul.f32 %v2666_v12, %v3380_v43 }
 0x4c4   : > { %v1398_v54 = vmul.f32 %v2668_v16, %v3376_v4 }
 0x4c6   : > { %v2670_v55 = vpop.eup %2669  ;;  %2456 = vmatmul.mubr.msk.f32.gmra.mxu0 %vm578_vm1, %v1398_v54 }
 0x4c7   : > { %v2672_v60 = vpop.eup %2671  ;;  %2458 = vmatprep.mubr.msk.f32.mxu0 %vm578_vm1, %v1399_v17  ;;  %v1401_v56 = vmul.f32 %v2670_v55, %v3388_v29  ;;  %v1704_v29 = vld [vmem:[%s3596_s2 + $0x10] sm:$0xff] }
 0x4c8   : > { %v1400_v57 = vmul.f32 %v2672_v60, %v3382_v58  ;;  %v1705_v58 = vld [vmem:[%s3596_s2 + $0x18] sm:$0xff]  ;;  %v1912_v60 = vld [vmem:[%s3502_s30 + $0x28] sm:$0xff] }
 0x4c9   : > { %2499 = vmatprep.subr.mxu1 %v1705_v58  ;;  %2467 = vmatprep.subr.mxu0 %v1705_v58 }
 0x4ca   : > { %v2674_v62 = vpop.eup %2673  ;;  %2459 = vmatmul.mubr.msk.f32.gmra.mxu0 %vm578_vm1, %v1400_v57  ;;  %2503 = vmatpush3.msra.mxu1 %v1705_v58  ;;  %v1911_v57 = vld [vmem:[%s3502_s30 + $0x20] sm:$0xff] }
 0x4cb   : > { %v2676_v63 = vpop.eup %2675  ;;  %2461 = vmatprep.mubr.msk.f32.mxu0 %vm578_vm1, %v1401_v56  ;;  %v1403_v43 = vmul.f32 %v2674_v62, %v3396_v15  ;;  %2468 = vmatpush3.msra.mxu0 %v1705_v58  ;;  %v1702_v15 = vld [vmem:[%s3596_s2] sm:$0xff] }
 0x4cc   : > { %v1402_v4 = vmul.f32 %v2676_v63, %v3390_v1  ;;  %2500 = vmatprep.subr.mxu1 %v1704_v29  ;;  %2469 = vmatprep.subr.mxu0 %v1704_v29  ;;  %v1703_v1 = vld [vmem:[%s3596_s2 + $0x8] sm:$0xff] }
 0x4cd   : > { %2504 = vmatpush3.msra.mxu1 %v1704_v29  ;;  %2470 = vmatpush3.msra.mxu0 %v1704_v29  ;;  %v1913_v29 = vld [vmem:[%s3502_s30 + $0x30] sm:$0xff] }
 0x4ce   : > { %v2678_v31 = vpop.eup %2677  ;;  %2462 = vmatmul.mubr.msk.f32.gmra.mxu0 %vm578_vm1, %v1402_v4  ;;  %2501 = vmatprep.subr.mxu1 %v1703_v1 }
 0x4cf   : > { %2464 = vmatprep.mubr.msk.f32.mxu0 %vm578_vm1, %v1403_v43  ;;  %v1404_v6 = vmul.f32 %v2678_v31, %v3402_v24  ;;  %2471 = vmatprep.subr.mxu0 %v1703_v1  ;;  %v1914_v31 = vld [vmem:[%s3502_s30 + $0x38] sm:$0xff] }
 0x4d0   : > { %2505 = vmatpush3.msra.mxu1 %v1703_v1  ;;  %2472 = vmatpush3.msra.mxu0 %v1703_v1 }
 0x4d1   : > { %2502 = vmatprep.subr.mxu1 %v1702_v15  ;;  %2473 = vmatprep.subr.mxu0 %v1702_v15 }
 0x4d2   : > { %2465 = vmatmul.mubr.msk.f32.gmra.mxu0 %vm578_vm1, %v1404_v6  ;;  %2506 = vmatpush3.msra.mxu1 %v1702_v15 }
 0x4d3   : > { %2474 = vmatpush3.msra.mxu0 %v1702_v15 }
 0x548   : > { %v2445_v24 = vpop.f32.mrf.mxu0 }
 0x54a   : > { %v1543_v34 = vpop.f32.mrf.mxu0 }
 0x54c   : > { %v2448_v5 = vpop.f32.mrf.mxu0 }
 0x54e   : > { %v1553_v40 = vpop.f32.mrf.mxu0 }
 0x550   : > { %v2451_v49 = vpop.f32.mrf.mxu0 }
 0x551   : > { %1648 = vrot.lane.b32.xlu1 %v2451_v49, %s2724_s27 }
 0x552   : > { %v1563_v36 = vpop.f32.mrf.mxu0 }
 0x553   : > { %1646 = vrot.lane.b32.xlu0 %v1563_v36, %s2724_s27  ;;  %v1915_v36 = vld [vmem:[%s3502_s30 + $0x40] sm:$0xff] }
 0x554   : > { %v2454_v51 = vpop.f32.mrf.mxu0 }
 0x555   : > { %1652 = vrot.lane.b32.xlu1 %v2454_v51, %s2724_s27 }
 0x556   : > { %v1573_v42 = vpop.f32.mrf.mxu0 }
 0x557   : > { %1638 = vrot.lane.b32.xlu0 %v1543_v34, %s2724_s27 }
 0x559   : > { %1650 = vrot.lane.b32.xlu1 %v1573_v42, %s2724_s27 }
 0x586   : > { %v2457_v44 = vpop.f32.mrf.mxu0 }
 0x587   : > { %1656 = vrot.lane.b32.xlu1 %v2457_v44, %s2724_s27 }
 0x588   : > { %v1583_v28 = vpop.f32.mrf.mxu0 }
 0x589   : > { %1654 = vrot.lane.b32.xlu0 %v1583_v28, %s2724_s27  ;;  %v1918_v28 = vld [vmem:[%s3502_s30 + $0x58] sm:$0xff] }
 0x58a   : > { %v2460_v9 = vpop.f32.mrf.mxu0 }
 0x58b   : > { %1660 = vrot.lane.b32.xlu1 %v2460_v9, %s2724_s27 }
 0x58c   : > { %v1593_v35 = vpop.f32.mrf.mxu0 }
 0x58d   : > { %1658 = vrot.lane.b32.xlu0 %v1593_v35, %s2724_s27 }
 0x58e   : > { %v2463_v26 = vpop.f32.mrf.mxu0 }
 0x58f   : > { %1664 = vrot.lane.b32.xlu1 %v2463_v26, %s2724_s27 }
 0x590   : > { %v1603_v11 = vpop.f32.mrf.mxu0 }
 0x591   : > { %1640 = vrot.lane.b32.xlu0 %v2445_v24, %s2724_s27 }
 0x592   : > { %v2466_v2 = vpop.f32.mrf.mxu0 }
 0x593   : > { %1662 = vrot.lane.b32.xlu1 %v1603_v11, %s2724_s27  ;;  %v1917_v11 = vld [vmem:[%s3502_s30 + $0x50] sm:$0xff] }
 0x594   : > { %v1613_v27 = vpop.f32.mrf.mxu0 }
 0x595   : > { %1642 = vrot.lane.b32.xlu0 %v1553_v40, %s2724_s27 }
 0x597   : > { %1666 = vrot.lane.b32.xlu1 %v1613_v27, %s2724_s27 }
 0x599   : > { %1644 = vrot.lane.b32.xlu0 %v2448_v5, %s2724_s27  ;;  %v1916_v5 = vld [vmem:[%s3502_s30 + $0x48] sm:$0xff] }
 0x59b   : > { %1668 = vrot.lane.b32.xlu1 %v2466_v2, %s2724_s27 }
 0x5c3   : > { %v1649_v10 = vpop.permute.xlu1 %1648 }
 0x5c4   : > { %v1691_v37 = vsel %vm344_vm0, %v3230_v22, %v1649_v10 }
 0x5c5   : > { %v1647_v7 = vpop.permute.xlu0 %1646 }
 0x5c6   : > { %v1690_v13 = vsel %vm344_vm0, %v3232_v23, %v1647_v7  ;;  %v1908_v7 = vld [vmem:[%s3502_s30 + $0x8] sm:$0xff] }
 0x5c7   : > { %v1653_v39 = vpop.permute.xlu1 %1652  ;;  %2481 = vmatprep.mubr.msk.f32.mxu1 %vm1713_vm2, %v1690_v13 }
 0x5c8   : > { %2482 = vmatmul.mubr.msk.f32.vlgmr.msra.gmra.mxu1 %vm1713_vm2, %v1691_v37  ;;  %v1693_v23 = vsel %vm344_vm0, %v3234_v41, %v1653_v39 }
 0x5c9   : > { %v1639_v25 = vpop.permute.xlu0 %1638 }
 0x5ca   : > { %v1686_v30 = vsel %vm344_vm0, %v3224_v19, %v1639_v25  ;;  %v1907_v25 = vld [vmem:[%s3502_s30] sm:$0xff] }
 0x5cb   : > { %v1651_v0 = vpop.permute.xlu1 %1650  ;;  %2475 = vmatprep.mubr.msk.f32.mxu0 %vm1713_vm2, %v1686_v30 }
 0x5cc   : > { %v1692_v14 = vsel %vm344_vm0, %v3236_v52, %v1651_v0 }
 0x5cd   : > { %2484 = vmatprep.mubr.msk.f32.mxu1 %vm1713_vm2, %v1692_v14 }
 0x5ce   : > { %2485 = vmatmul.mubr.msk.f32.gmra.mxu1 %vm1713_vm2, %v1693_v23  ;;  %v1920_v23 = vld [vmem:[%s3502_s30 + $0x68] sm:$0xff] }
 0x5f9   : > { %v1657_v22 = vpop.permute.xlu1 %1656 }
 0x5fa   : > { %v1695_v19 = vsel %vm344_vm0, %v3238_v45, %v1657_v22 }
 0x5fb   : > { %v1655_v33 = vpop.permute.xlu0 %1654 }
 0x5fc   : > { %v1694_v61 = vsel %vm344_vm0, %v3240_v46, %v1655_v33 }
 0x5fd   : > { %v1661_v38 = vpop.permute.xlu1 %1660  ;;  %2487 = vmatprep.mubr.msk.f32.mxu1 %vm1713_vm2, %v1694_v61 }
 0x5fe   : > { %2488 = vmatmul.mubr.msk.f32.gmra.mxu1 %vm1713_vm2, %v1695_v19  ;;  %v1697_v3 = vsel %vm344_vm0, %v3242_v8, %v1661_v38  ;;  %v1919_v19 = vld [vmem:[%s3502_s30 + $0x60] sm:$0xff] }
 0x5ff   : > { %v1659_v52 = vpop.permute.xlu0 %1658 }
 0x600   : > { %v1696_v41 = vsel %vm344_vm0, %v3244_v32, %v1659_v52 }
 0x601   : > { %v1665_v59 = vpop.permute.xlu1 %1664  ;;  %2490 = vmatprep.mubr.msk.f32.mxu1 %vm1713_vm2, %v1696_v41 }
 0x602   : > { %2491 = vmatmul.mubr.msk.f32.gmra.mxu1 %vm1713_vm2, %v1697_v3  ;;  %v1699_v32 = vsel %vm344_vm0, %v3246_v50, %v1665_v59  ;;  %v1910_v59 = vld [vmem:[%s3502_s30 + $0x18] sm:$0xff] }
 0x603   : > { %v1641_v46 = vpop.permute.xlu0 %1640 }
 0x604   : > { %v1687_v45 = vsel %vm344_vm0, %v3222_v18, %v1641_v46 }
 0x605   : > { %v1663_v12 = vpop.permute.xlu1 %1662  ;;  %2476 = vmatmul.mubr.msk.f32.vlgmr.msra.gmra.mxu0 %vm1713_vm2, %v1687_v45 }
 0x606   : > { %v1698_v16 = vsel %vm344_vm0, %v3248_v53, %v1663_v12  ;;  %v1909_v12 = vld [vmem:[%s3502_s30 + $0x10] sm:$0xff] }
 0x607   : > { %2493 = vmatprep.mubr.msk.f32.mxu1 %vm1713_vm2, %v1698_v16  ;;  %v1643_v8 = vpop.permute.xlu0 %1642 }
 0x608   : > { %v1688_v17 = vsel %vm344_vm0, %v3228_v21, %v1643_v8  ;;  %2494 = vmatmul.mubr.msk.f32.gmra.mxu1 %vm1713_vm2, %v1699_v32  ;;  %v1922_v32 = vld [vmem:[%s3502_s30 + $0x78] sm:$0xff] }
 0x609   : > { %v1667_v18 = vpop.permute.xlu1 %1666  ;;  %2478 = vmatprep.mubr.msk.f32.mxu0 %vm1713_vm2, %v1688_v17 }
 0x60a   : > { %v1700_v54 = vsel %vm344_vm0, %v3252_v48, %v1667_v18 }
 0x60b   : > { %2496 = vmatprep.mubr.msk.f32.mxu1 %vm1713_vm2, %v1700_v54  ;;  %v1645_v53 = vpop.permute.xlu0 %1644 }
 0x60c   : > { %v1689_v50 = vsel %vm344_vm0, %v3226_v20, %v1645_v53  ;;  %v3507_v20 = vld [vmem:[%s3597_s3] ss:$0 sm:$0xff]  ;;  %v1921_v53 = vld [vmem:[%s3502_s30 + $0x70] sm:$0xff] }
 0x60d   : > { %v1669_v55 = vpop.permute.xlu1 %1668  ;;  %2479 = vmatmul.mubr.msk.f32.gmra.mxu0 %vm1713_vm2, %v1689_v50 }
 0x60e   : > { %v1701_v21 = vsel %vm344_vm0, %v3250_v47, %v1669_v55 }
 0x60f   : > { %2497 = vmatmul.mubr.msk.f32.gmra.mxu1 %vm1713_vm2, %v1701_v21 }
 0x688   : > { %v2483_v48 = vpop.f32.mrf.mxu1 }
 0x689   : > { %v1854_v47 = vadd.f32 %v2483_v48, %v3507_v20 }
 0x68a   : > { %v1848_v56 = vpop.f32.mrf.mxu1 }
 0x68b   : > { %v1928_v62 = vadd.f32 %v1912_v60, %v1854_v47  ;;  %v1849_v63 = vadd.f32 %v3507_v20, %v1848_v56 }
 0x68d   : > { %1944 = vst.msk [vmem:[%s3515_s11 + $0x28] sm:$0xff] %vm1713_vm2, %v1928_v62  ;;  %v1927_v43 = vadd.f32 %v1911_v57, %v1849_v63 }
 0x68e   : > { %v2486_v4 = vpop.f32.mrf.mxu1 }
 0x68f   : > { %1943 = vst.msk [vmem:[%s3515_s11 + $0x20] sm:$0xff] %vm1713_vm2, %v1927_v43  ;;  %v1864_v6 = vadd.f32 %v2486_v4, %v3507_v20 }
 0x690   : > { %v1858_v58 = vpop.f32.mrf.mxu1 }
 0x691   : > { %v1930_v1 = vadd.f32 %v1914_v31, %v1864_v6  ;;  %v1859_v15 = vadd.f32 %v3507_v20, %v1858_v58 }
 0x693   : > { %1946 = vst.msk [vmem:[%s3515_s11 + $0x38] sm:$0xff] %vm1713_vm2, %v1930_v1  ;;  %v1929_v24 = vadd.f32 %v1913_v29, %v1859_v15 }
 0x695   : > { %1945 = vst.msk [vmem:[%s3515_s11 + $0x30] sm:$0xff] %vm1713_vm2, %v1929_v24 }
 0x6be   : > { %v2489_v34 = vpop.f32.mrf.mxu1 }
 0x6bf   : > { %v1874_v40 = vadd.f32 %v2489_v34, %v3507_v20 }
 0x6c0   : > { %v1868_v49 = vpop.f32.mrf.mxu1 }
 0x6c1   : > { %v1932_v51 = vadd.f32 %v1916_v5, %v1874_v40  ;;  %v1869_v42 = vadd.f32 %v3507_v20, %v1868_v49 }
 0x6c2   : > { %v2492_v44 = vpop.f32.mrf.mxu1 }
 0x6c3   : > { %1948 = vst.msk [vmem:[%s3515_s11 + $0x48] sm:$0xff] %vm1713_vm2, %v1932_v51  ;;  %v1931_v9 = vadd.f32 %v1915_v36, %v1869_v42  ;;  %v1884_v35 = vadd.f32 %v2492_v44, %v3507_v20 }
 0x6c4   : > { %v1878_v26 = vpop.f32.mrf.mxu1 }
 0x6c5   : > { %1947 = vst.msk [vmem:[%s3515_s11 + $0x40] sm:$0xff] %vm1713_vm2, %v1931_v9  ;;  %v1934_v2 = vadd.f32 %v1918_v28, %v1884_v35  ;;  %v1879_v27 = vadd.f32 %v3507_v20, %v1878_v26  ;;  %v2477_v10 = vpop.f32.mrf.mxu0 }
 0x6c6   : > { %v1834_v13 = vadd.f32 %v2477_v10, %v3507_v20 }
 0x6c7   : > { %1950 = vst.msk [vmem:[%s3515_s11 + $0x58] sm:$0xff] %vm1713_vm2, %v1934_v2  ;;  %v1933_v37 = vadd.f32 %v1917_v11, %v1879_v27  ;;  %v1828_v39 = vpop.f32.mrf.mxu0 }
 0x6c8   : > { %v1924_v30 = vadd.f32 %v1908_v7, %v1834_v13  ;;  %v1829_v0 = vadd.f32 %v3507_v20, %v1828_v39  ;;  %v2495_v14 = vpop.f32.mrf.mxu1 }
 0x6c9   : > { %1949 = vst.msk [vmem:[%s3515_s11 + $0x50] sm:$0xff] %vm1713_vm2, %v1933_v37  ;;  %v1894_v22 = vadd.f32 %v2495_v14, %v3507_v20 }
 0x6ca   : > { %1940 = vst.msk [vmem:[%s3515_s11 + $0x8] sm:$0xff] %vm1713_vm2, %v1924_v30  ;;  %v1923_v33 = vadd.f32 %v1907_v25, %v1829_v0  ;;  %v1888_v61 = vpop.f32.mrf.mxu1 }
 0x6cb   : > { %v1936_v38 = vadd.f32 %v1920_v23, %v1894_v22  ;;  %v1889_v52 = vadd.f32 %v3507_v20, %v1888_v61 }
 0x6cc   : > { %1939 = vst.msk [vmem:[%s3515_s11] sm:$0xff] %vm1713_vm2, %v1923_v33 }
 0x6cd   : > { %1952 = vst.msk [vmem:[%s3515_s11 + $0x68] sm:$0xff] %vm1713_vm2, %v1936_v38  ;;  %v1935_v41 = vadd.f32 %v1919_v19, %v1889_v52  ;;  %v2480_v3 = vpop.f32.mrf.mxu0 }
 0x6ce   : > { %v1844_v46 = vadd.f32 %v2480_v3, %v3507_v20 }
 0x6cf   : > { %1951 = vst.msk [vmem:[%s3515_s11 + $0x60] sm:$0xff] %vm1713_vm2, %v1935_v41  ;;  %v1838_v45 = vpop.f32.mrf.mxu0  ;;  %v2498_v16 = vpop.f32.mrf.mxu1 }
 0x6d0   : > { %v1926_v8 = vadd.f32 %v1910_v59, %v1844_v46  ;;  %v1839_v17 = vadd.f32 %v3507_v20, %v1838_v45  ;;  %v1904_v18 = vadd.f32 %v2498_v16, %v3507_v20 }
 0x6d1   : > { %v1898_v54 = vpop.f32.mrf.mxu1 }
 0x6d2   : > { %1942 = vst.msk [vmem:[%s3515_s11 + $0x18] sm:$0xff] %vm1713_vm2, %v1926_v8  ;;  %v1925_v50 = vadd.f32 %v1909_v12, %v1839_v17  ;;  %v1938_v55 = vadd.f32 %v1922_v32, %v1904_v18  ;;  %v1899_v21 = vadd.f32 %v3507_v20, %v1898_v54 }
 0x6d4   : > { %1941 = vst.msk [vmem:[%s3515_s11 + $0x10] sm:$0xff] %vm1713_vm2, %v1925_v50  ;;  %1954 = vst.msk [vmem:[%s3515_s11 + $0x78] sm:$0xff] %vm1713_vm2, %v1938_v55  ;;  %v1937_v48 = vadd.f32 %v1921_v53, %v1899_v21 }
 0x6d6   : > { %1953 = vst.msk [vmem:[%s3515_s11 + $0x70] sm:$0xff] %vm1713_vm2, %v1937_v48 }
 0x6d7 PF: > { %s15_s22 = sadd.s32 1, %s2719_s22   ;;  %s3600_s18 = smov %s2711_s20 }
 0x6d8   : > { %p12_p7 = scmp.ge.s32.totalorder %s15_s22, 6   ;;  %s3601_s19 = smov %s2715_s21 }
 0x6d9   : > { %s3602_s20 = smov %s3605_s23  ;;  %s3603_s21 = smov %s3609_s24 }
 0x6da   :  { %14 = sbr.rel (!%p12_p7) target bundleno = 3 (0x3), region = 76 }

// kernel: transformer_block_forward.9
= control target key start
LH: loop header
LB: loop body
LE: loop exit
PB: predicated region body
PF: predicated region fallthrough
CT: control target
= control target key end

     0   :  { %vm84_vm0 = vcmask 261120   ;;  %s3486_s0 = inlined_call_operand.vmem [shape: f32[512,32], index: 0, kind: input, shape index: {}]   ;;  %s3487_s3 = inlined_call_operand.vmem [shape: f32[32,128], index: 3, kind: input, shape index: {}]   ;;  %s3488_s1 = inlined_call_operand.vmem [shape: f32[1,32], index: 1, kind: input, shape index: {}]   ;;  %s3489_s2 = inlined_call_operand.vmem [shape: f32[1,32], index: 2, kind: input, shape index: {}]   ;;  %s3490_s4 = inlined_call_operand.vmem [shape: f32[1,128], index: 4, kind: input, shape index: {}]   ;;  %s3491_s5 = inlined_call_operand.vmem [shape: f32[512,128], index: 5, kind: output, shape index: {}]  }
   0x1   :  { %v2126_v0 = vld [vmem:[%s3486_s0] sm:$0xff]  ;;  %v2131_v1 = vld [vmem:[%s3486_s0 + $0x8] sm:$0xff]  ;;  %v2154_v8 = vld [vmem:[%s3486_s0 + $0x10] sm:$0xff] }
   0x2   :  { %v2136_v2 = vld [vmem:[%s3486_s0 + $0x100] sm:$0xff]  ;;  %v85_v3 = vsel %vm84_vm0, %v2126_v0, 0.0  ;;  %v88_v4 = vsel %vm84_vm0, %v2131_v1, 0.0  ;;  %v2145_v5 = vld [vmem:[%s3486_s0 + $0x108] sm:$0xff]  ;;  %v2159_v9 = vld [vmem:[%s3486_s0 + $0x110] sm:$0xff]  ;;  %v91_v10 = vsel %vm84_vm0, %v2154_v8, 0.0 }
   0x3   :  { %86 = vadd.xlane.f32.xlu0 %v85_v3  ;;  %89 = vadd.xlane.f32.xlu1 %v88_v4  ;;  %v181_v6 = vsel %vm84_vm0, %v2136_v2, 0.0  ;;  %v184_v7 = vsel %vm84_vm0, %v2145_v5, 0.0  ;;  %v187_v11 = vsel %vm84_vm0, %v2159_v9, 0.0  ;;  %v2168_v12 = vld [vmem:[%s3486_s0 + $0x18] sm:$0xff]  ;;  %v2182_v16 = vld [vmem:[%s3486_s0 + $0x20] sm:$0xff]  ;;  %v2196_v20 = vld [vmem:[%s3486_s0 + $0x28] sm:$0xff] }
   0x4   :  { %v2173_v13 = vld [vmem:[%s3486_s0 + $0x118] sm:$0xff]  ;;  %v94_v14 = vsel %vm84_vm0, %v2168_v12, 0.0  ;;  %v2187_v17 = vld [vmem:[%s3486_s0 + $0x120] sm:$0xff]  ;;  %v97_v18 = vsel %vm84_vm0, %v2182_v16, 0.0  ;;  %v2201_v21 = vld [vmem:[%s3486_s0 + $0x128] sm:$0xff]  ;;  %v100_v22 = vsel %vm84_vm0, %v2196_v20, 0.0 }
   0x5   :  { %v190_v15 = vsel %vm84_vm0, %v2173_v13, 0.0  ;;  %v193_v19 = vsel %vm84_vm0, %v2187_v17, 0.0  ;;  %v196_v23 = vsel %vm84_vm0, %v2201_v21, 0.0  ;;  %v2210_v24 = vld [vmem:[%s3486_s0 + $0x30] sm:$0xff]  ;;  %v2224_v28 = vld [vmem:[%s3486_s0 + $0x38] sm:$0xff]  ;;  %v2238_v32 = vld [vmem:[%s3486_s0 + $0x40] sm:$0xff] }
   0x6   :  { %v2215_v25 = vld [vmem:[%s3486_s0 + $0x130] sm:$0xff]  ;;  %v103_v26 = vsel %vm84_vm0, %v2210_v24, 0.0  ;;  %v2229_v29 = vld [vmem:[%s3486_s0 + $0x138] sm:$0xff]  ;;  %v106_v30 = vsel %vm84_vm0, %v2224_v28, 0.0  ;;  %v2243_v33 = vld [vmem:[%s3486_s0 + $0x140] sm:$0xff]  ;;  %v109_v34 = vsel %vm84_vm0, %v2238_v32, 0.0 }
   0x7   :  { %182 = vadd.xlane.f32.xlu0 %v181_v6  ;;  %185 = vadd.xlane.f32.xlu1 %v184_v7  ;;  %v199_v27 = vsel %vm84_vm0, %v2215_v25, 0.0  ;;  %v202_v31 = vsel %vm84_vm0, %v2229_v29, 0.0  ;;  %v205_v35 = vsel %vm84_vm0, %v2243_v33, 0.0  ;;  %v2252_v36 = vld [vmem:[%s3486_s0 + $0x48] sm:$0xff]  ;;  %v2266_v40 = vld [vmem:[%s3486_s0 + $0x50] sm:$0xff]  ;;  %v2280_v44 = vld [vmem:[%s3486_s0 + $0x58] sm:$0xff] }
   0x8   :  { %v2257_v37 = vld [vmem:[%s3486_s0 + $0x148] sm:$0xff]  ;;  %v112_v38 = vsel %vm84_vm0, %v2252_v36, 0.0  ;;  %v2271_v41 = vld [vmem:[%s3486_s0 + $0x150] sm:$0xff]  ;;  %v115_v42 = vsel %vm84_vm0, %v2266_v40, 0.0  ;;  %v2285_v45 = vld [vmem:[%s3486_s0 + $0x158] sm:$0xff]  ;;  %v118_v46 = vsel %vm84_vm0, %v2280_v44, 0.0 }
   0x9   :  { %v208_v39 = vsel %vm84_vm0, %v2257_v37, 0.0  ;;  %v211_v43 = vsel %vm84_vm0, %v2271_v41, 0.0  ;;  %v214_v47 = vsel %vm84_vm0, %v2285_v45, 0.0  ;;  %v2294_v48 = vld [vmem:[%s3486_s0 + $0x60] sm:$0xff]  ;;  %v2308_v52 = vld [vmem:[%s3486_s0 + $0x68] sm:$0xff]  ;;  %v2322_v56 = vld [vmem:[%s3486_s0 + $0x70] sm:$0xff] }
   0xa   :  { %v2299_v49 = vld [vmem:[%s3486_s0 + $0x160] sm:$0xff]  ;;  %v121_v50 = vsel %vm84_vm0, %v2294_v48, 0.0  ;;  %v2313_v53 = vld [vmem:[%s3486_s0 + $0x168] sm:$0xff]  ;;  %v124_v54 = vsel %vm84_vm0, %v2308_v52, 0.0  ;;  %v2327_v57 = vld [vmem:[%s3486_s0 + $0x170] sm:$0xff]  ;;  %v127_v58 = vsel %vm84_vm0, %v2322_v56, 0.0 }
   0xb   :  { %92 = vadd.xlane.f32.xlu0 %v91_v10  ;;  %188 = vadd.xlane.f32.xlu1 %v187_v11  ;;  %v217_v51 = vsel %vm84_vm0, %v2299_v49, 0.0  ;;  %v220_v55 = vsel %vm84_vm0, %v2313_v53, 0.0  ;;  %v223_v59 = vsel %vm84_vm0, %v2327_v57, 0.0  ;;  %v2336_v60 = vld [vmem:[%s3486_s0 + $0x78] sm:$0xff]  ;;  %v2350_v3 = vld [vmem:[%s3486_s0 + $0x80] sm:$0xff]  ;;  %v2364_v10 = vld [vmem:[%s3486_s0 + $0x88] sm:$0xff] }
   0xc   :  { %v2341_v61 = vld [vmem:[%s3486_s0 + $0x178] sm:$0xff]  ;;  %v130_v62 = vsel %vm84_vm0, %v2336_v60, 0.0  ;;  %v2355_v4 = vld [vmem:[%s3486_s0 + $0x180] sm:$0xff]  ;;  %v133_v6 = vsel %vm84_vm0, %v2350_v3, 0.0  ;;  %v2369_v11 = vld [vmem:[%s3486_s0 + $0x188] sm:$0xff] }
   0xd   :  { %v226_v63 = vsel %vm84_vm0, %v2341_v61, 0.0  ;;  %v229_v7 = vsel %vm84_vm0, %v2355_v4, 0.0 }
   0xf   :  { %95 = vadd.xlane.f32.xlu0 %v94_v14  ;;  %191 = vadd.xlane.f32.xlu1 %v190_v15  ;;  %v136_v14 = vsel %vm84_vm0, %v2364_v10, 0.0  ;;  %v232_v15 = vsel %vm84_vm0, %v2369_v11, 0.0 }
  0x13   :  { %98 = vadd.xlane.f32.xlu0 %v97_v18  ;;  %194 = vadd.xlane.f32.xlu1 %v193_v19  ;;  %v2378_v18 = vld [vmem:[%s3486_s0 + $0x90] sm:$0xff] }
  0x14   :  { %v2383_v19 = vld [vmem:[%s3486_s0 + $0x190] sm:$0xff] }
  0x17   :  { %101 = vadd.xlane.f32.xlu0 %v100_v22  ;;  %197 = vadd.xlane.f32.xlu1 %v196_v23  ;;  %v139_v22 = vsel %vm84_vm0, %v2378_v18, 0.0  ;;  %v235_v23 = vsel %vm84_vm0, %v2383_v19, 0.0 }
  0x1b   :  { %104 = vadd.xlane.f32.xlu0 %v103_v26  ;;  %200 = vadd.xlane.f32.xlu1 %v199_v27  ;;  %v2392_v26 = vld [vmem:[%s3486_s0 + $0x98] sm:$0xff] }
  0x1c   :  { %v2397_v27 = vld [vmem:[%s3486_s0 + $0x198] sm:$0xff] }
  0x1f   :  { %107 = vadd.xlane.f32.xlu0 %v106_v30  ;;  %203 = vadd.xlane.f32.xlu1 %v202_v31  ;;  %v142_v30 = vsel %vm84_vm0, %v2392_v26, 0.0  ;;  %v238_v31 = vsel %vm84_vm0, %v2397_v27, 0.0 }
  0x23   :  { %110 = vadd.xlane.f32.xlu0 %v109_v34  ;;  %206 = vadd.xlane.f32.xlu1 %v205_v35  ;;  %v2406_v34 = vld [vmem:[%s3486_s0 + $0xa0] sm:$0xff] }
  0x24   :  { %v2411_v35 = vld [vmem:[%s3486_s0 + $0x1a0] sm:$0xff] }
  0x27   :  { %113 = vadd.xlane.f32.xlu0 %v112_v38  ;;  %209 = vadd.xlane.f32.xlu1 %v208_v39  ;;  %v145_v38 = vsel %vm84_vm0, %v2406_v34, 0.0  ;;  %v241_v39 = vsel %vm84_vm0, %v2411_v35, 0.0 }
  0x2b   :  { %116 = vadd.xlane.f32.xlu0 %v115_v42  ;;  %212 = vadd.xlane.f32.xlu1 %v211_v43  ;;  %v2420_v42 = vld [vmem:[%s3486_s0 + $0xa8] sm:$0xff] }
  0x2c   :  { %v2425_v43 = vld [vmem:[%s3486_s0 + $0x1a8] sm:$0xff] }
  0x2f   :  { %119 = vadd.xlane.f32.xlu0 %v118_v46  ;;  %215 = vadd.xlane.f32.xlu1 %v214_v47  ;;  %v148_v46 = vsel %vm84_vm0, %v2420_v42, 0.0  ;;  %v244_v47 = vsel %vm84_vm0, %v2425_v43, 0.0 }
  0x33   :  { %122 = vadd.xlane.f32.xlu0 %v121_v50  ;;  %218 = vadd.xlane.f32.xlu1 %v217_v51  ;;  %v2434_v50 = vld [vmem:[%s3486_s0 + $0xb0] sm:$0xff] }
  0x34   :  { %v2439_v51 = vld [vmem:[%s3486_s0 + $0x1b0] sm:$0xff] }
  0x37   :  { %125 = vadd.xlane.f32.xlu0 %v124_v54  ;;  %221 = vadd.xlane.f32.xlu1 %v220_v55  ;;  %v151_v54 = vsel %vm84_vm0, %v2434_v50, 0.0  ;;  %v247_v55 = vsel %vm84_vm0, %v2439_v51, 0.0 }
  0x3b   :  { %128 = vadd.xlane.f32.xlu0 %v127_v58  ;;  %224 = vadd.xlane.f32.xlu1 %v223_v59  ;;  %v2448_v58 = vld [vmem:[%s3486_s0 + $0xb8] sm:$0xff] }
  0x3c   :  { %v2453_v59 = vld [vmem:[%s3486_s0 + $0x1b8] sm:$0xff] }
  0x3f   :  { %131 = vadd.xlane.f32.xlu0 %v130_v62  ;;  %227 = vadd.xlane.f32.xlu1 %v226_v63  ;;  %v154_v62 = vsel %vm84_vm0, %v2448_v58, 0.0  ;;  %v250_v63 = vsel %vm84_vm0, %v2453_v59, 0.0 }
  0x43   :  { %134 = vadd.xlane.f32.xlu0 %v133_v6  ;;  %230 = vadd.xlane.f32.xlu1 %v229_v7  ;;  %v2462_v6 = vld [vmem:[%s3486_s0 + $0xc0] sm:$0xff] }
  0x44   :  { %v2467_v7 = vld [vmem:[%s3486_s0 + $0x1c0] sm:$0xff] }
  0x47   :  { %137 = vadd.xlane.f32.xlu0 %v136_v14  ;;  %233 = vadd.xlane.f32.xlu1 %v232_v15  ;;  %v157_v14 = vsel %vm84_vm0, %v2462_v6, 0.0  ;;  %v253_v15 = vsel %vm84_vm0, %v2467_v7, 0.0 }
  0x4b   :  { %140 = vadd.xlane.f32.xlu0 %v139_v22  ;;  %236 = vadd.xlane.f32.xlu1 %v235_v23  ;;  %v2476_v22 = vld [vmem:[%s3486_s0 + $0xc8] sm:$0xff] }
  0x4c   :  { %3525 = vst [vmem:[#allocation2_spill] sm:$0xff] %v2476_v22  ;;  %v2481_v23 = vld [vmem:[%s3486_s0 + $0x1c8] sm:$0xff] }
  0x4d   :  { %3526 = vst [vmem:[#allocation3_spill] sm:$0xff] %v2481_v23 }
  0x4f   :  { %143 = vadd.xlane.f32.xlu0 %v142_v30  ;;  %239 = vadd.xlane.f32.xlu1 %v238_v31  ;;  %v160_v30 = vsel %vm84_vm0, %v2476_v22, 0.0  ;;  %v256_v31 = vsel %vm84_vm0, %v2481_v23, 0.0 }
  0x53   :  { %146 = vadd.xlane.f32.xlu0 %v145_v38  ;;  %242 = vadd.xlane.f32.xlu1 %v241_v39  ;;  %v2490_v38 = vld [vmem:[%s3486_s0 + $0xd0] sm:$0xff] }
  0x54   :  { %3527 = vst [vmem:[#allocation4_spill] sm:$0xff] %v2490_v38  ;;  %v2495_v39 = vld [vmem:[%s3486_s0 + $0x1d0] sm:$0xff] }
  0x55   :  { %3528 = vst [vmem:[#allocation5_spill] sm:$0xff] %v2495_v39 }
  0x57   :  { %149 = vadd.xlane.f32.xlu0 %v148_v46  ;;  %245 = vadd.xlane.f32.xlu1 %v244_v47  ;;  %v163_v46 = vsel %vm84_vm0, %v2490_v38, 0.0  ;;  %v259_v47 = vsel %vm84_vm0, %v2495_v39, 0.0 }
  0x5b   :  { %152 = vadd.xlane.f32.xlu0 %v151_v54  ;;  %248 = vadd.xlane.f32.xlu1 %v247_v55  ;;  %v2504_v54 = vld [vmem:[%s3486_s0 + $0xd8] sm:$0xff] }
  0x5c   :  { %3529 = vst [vmem:[#allocation6_spill] sm:$0xff] %v2504_v54  ;;  %v2509_v55 = vld [vmem:[%s3486_s0 + $0x1d8] sm:$0xff] }
  0x5d   :  { %3530 = vst [vmem:[#allocation7_spill] sm:$0xff] %v2509_v55 }
  0x5f   :  { %155 = vadd.xlane.f32.xlu0 %v154_v62  ;;  %251 = vadd.xlane.f32.xlu1 %v250_v63  ;;  %v166_v62 = vsel %vm84_vm0, %v2504_v54, 0.0  ;;  %v262_v63 = vsel %vm84_vm0, %v2509_v55, 0.0 }
  0x63   :  { %158 = vadd.xlane.f32.xlu0 %v157_v14  ;;  %254 = vadd.xlane.f32.xlu1 %v253_v15  ;;  %v2518_v14 = vld [vmem:[%s3486_s0 + $0xe0] sm:$0xff] }
  0x64   :  { %3531 = vst [vmem:[#allocation8_spill] sm:$0xff] %v2518_v14  ;;  %v2523_v15 = vld [vmem:[%s3486_s0 + $0x1e0] sm:$0xff] }
  0x65   :  { %3532 = vst [vmem:[#allocation9_spill] sm:$0xff] %v2523_v15 }
  0x67   :  { %161 = vadd.xlane.f32.xlu0 %v160_v30  ;;  %257 = vadd.xlane.f32.xlu1 %v256_v31  ;;  %v169_v30 = vsel %vm84_vm0, %v2518_v14, 0.0  ;;  %v265_v31 = vsel %vm84_vm0, %v2523_v15, 0.0  ;;  %v2546_v15 = vld [vmem:[%s3486_s0 + $0xf0] sm:$0xff] }
  0x68   :  { %3535 = vst [vmem:[#allocation12_spill] sm:$0xff] %v2546_v15  ;;  %v2551_v14 = vld [vmem:[%s3486_s0 + $0x1f0] sm:$0xff] }
  0x69   :  { %3536 = vst [vmem:[#allocation13_spill] sm:$0xff] %v2551_v14 }
  0x6b   :  { %164 = vadd.xlane.f32.xlu0 %v163_v46  ;;  %260 = vadd.xlane.f32.xlu1 %v259_v47  ;;  %v2532_v46 = vld [vmem:[%s3486_s0 + $0xe8] sm:$0xff] }
  0x6c   :  { %3533 = vst [vmem:[#allocation10_spill] sm:$0xff] %v2532_v46  ;;  %v2537_v47 = vld [vmem:[%s3486_s0 + $0x1e8] sm:$0xff] }
  0x6d   :  { %3534 = vst [vmem:[#allocation11_spill] sm:$0xff] %v2537_v47 }
  0x6f   :  { %167 = vadd.xlane.f32.xlu0 %v166_v62  ;;  %263 = vadd.xlane.f32.xlu1 %v262_v63  ;;  %v172_v62 = vsel %vm84_vm0, %v2532_v46, 0.0  ;;  %v268_v63 = vsel %vm84_vm0, %v2537_v47, 0.0  ;;  %v2560_v47 = vld [vmem:[%s3486_s0 + $0xf8] sm:$0xff] }
  0x70   :  { %3537 = vst [vmem:[#allocation14_spill] sm:$0xff] %v2560_v47  ;;  %v2565_v46 = vld [vmem:[%s3486_s0 + $0x1f8] sm:$0xff] }
  0x73   :  { %170 = vadd.xlane.f32.xlu0 %v169_v30  ;;  %266 = vadd.xlane.f32.xlu1 %v265_v31  ;;  %v175_v30 = vsel %vm84_vm0, %v2546_v15, 0.0  ;;  %v271_v31 = vsel %vm84_vm0, %v2551_v14, 0.0 }
  0x77   :  { %173 = vadd.xlane.f32.xlu0 %v172_v62  ;;  %269 = vadd.xlane.f32.xlu1 %v268_v63  ;;  %v178_v62 = vsel %vm84_vm0, %v2560_v47, 0.0  ;;  %v274_v63 = vsel %vm84_vm0, %v2565_v46, 0.0 }
  0x7b   :  { %176 = vadd.xlane.f32.xlu0 %v175_v30  ;;  %272 = vadd.xlane.f32.xlu1 %v271_v31 }
  0x7f   :  { %179 = vadd.xlane.f32.xlu0 %v178_v62  ;;  %275 = vadd.xlane.f32.xlu1 %v274_v63 }
  0x8c   :  { %v87_v14 = vpop.xlane.xlu0 %86  ;;  %v90_v15 = vpop.xlane.xlu1 %89 }
  0x8d   :  { %v278_v55 = vmul.f32 0.03125, %v87_v14  ;;  %v279_v54 = vmul.f32 0.03125, %v90_v15 }
  0x8f   :  { %v2572_v39 = vsub.f32 %v2126_v0, %v278_v55  ;;  %v2575_v38 = vsub.f32 %v2131_v1, %v279_v54 }
  0x90   :  { %v183_v30 = vpop.xlane.xlu0 %182  ;;  %v186_v31 = vpop.xlane.xlu1 %185 }
  0x91   :  { %3538 = vst [vmem:[#allocation15_spill] sm:$0xff] %v2575_v38  ;;  %v310_v23 = vmul.f32 0.03125, %v183_v30  ;;  %v311_v22 = vmul.f32 0.03125, %v186_v31  ;;  %v406_v47 = vmul.f32 %v2572_v39, %v2572_v39  ;;  %v407_v62 = vmul.f32 %v2575_v38, %v2575_v38 }
  0x93   :  { %v2582_v63 = vsub.f32 %v2136_v2, %v310_v23  ;;  %v2585_v14 = vsub.f32 %v2145_v5, %v311_v22  ;;  %v470_v0 = vsel %vm84_vm0, %v406_v47, 0.0  ;;  %v473_v55 = vsel %vm84_vm0, %v407_v62, 0.0 }
  0x94   :  { %471 = vadd.xlane.f32.xlu0 %v470_v0  ;;  %v93_v1 = vpop.xlane.xlu0 %92  ;;  %v189_v54 = vpop.xlane.xlu1 %188 }
  0x95   :  { %v280_v15 = vmul.f32 0.03125, %v93_v1  ;;  %v312_v30 = vmul.f32 0.03125, %v189_v54  ;;  %v438_v31 = vmul.f32 %v2582_v63, %v2582_v63  ;;  %v439_v38 = vmul.f32 %v2585_v14, %v2585_v14 }
  0x97   :  { %v2594_v2 = vsub.f32 %v2154_v8, %v280_v15  ;;  %v2597_v5 = vsub.f32 %v2159_v9, %v312_v30  ;;  %v566_v22 = vsel %vm84_vm0, %v438_v31, 0.0  ;;  %v569_v62 = vsel %vm84_vm0, %v439_v38, 0.0 }
  0x98   :  { %474 = vadd.xlane.f32.xlu0 %v473_v55  ;;  %567 = vadd.xlane.f32.xlu1 %v566_v22  ;;  %v96_v23 = vpop.xlane.xlu0 %95  ;;  %v192_v47 = vpop.xlane.xlu1 %191 }
  0x99   :  { %v281_v0 = vmul.f32 0.03125, %v96_v23  ;;  %v313_v1 = vmul.f32 0.03125, %v192_v47  ;;  %v408_v54 = vmul.f32 %v2594_v2, %v2594_v2  ;;  %v440_v8 = vmul.f32 %v2597_v5, %v2597_v5 }
  0x9b   :  { %v2606_v15 = vsub.f32 %v2168_v12, %v281_v0  ;;  %v2609_v9 = vsub.f32 %v2173_v13, %v313_v1  ;;  %v476_v55 = vsel %vm84_vm0, %v408_v54, 0.0  ;;  %v572_v31 = vsel %vm84_vm0, %v440_v8, 0.0 }
  0x9c   :  { %570 = vadd.xlane.f32.xlu1 %v569_v62  ;;  %477 = vadd.xlane.f32.xlu0 %v476_v55  ;;  %v99_v30 = vpop.xlane.xlu0 %98  ;;  %v195_v38 = vpop.xlane.xlu1 %194 }
  0x9d   :  { %v282_v22 = vmul.f32 0.03125, %v99_v30  ;;  %v314_v23 = vmul.f32 0.03125, %v195_v38  ;;  %v409_v47 = vmul.f32 %v2606_v15, %v2606_v15  ;;  %v441_v12 = vmul.f32 %v2609_v9, %v2609_v9 }
  0x9f   :  { %v2618_v0 = vsub.f32 %v2182_v16, %v282_v22  ;;  %v2621_v13 = vsub.f32 %v2187_v17, %v314_v23  ;;  %v479_v62 = vsel %vm84_vm0, %v409_v47, 0.0  ;;  %v575_v8 = vsel %vm84_vm0, %v441_v12, 0.0 }
  0xa0   :  { %573 = vadd.xlane.f32.xlu1 %v572_v31  ;;  %480 = vadd.xlane.f32.xlu0 %v479_v62  ;;  %v102_v1 = vpop.xlane.xlu0 %101  ;;  %v198_v54 = vpop.xlane.xlu1 %197 }
  0xa1   :  { %v283_v55 = vmul.f32 0.03125, %v102_v1  ;;  %v315_v30 = vmul.f32 0.03125, %v198_v54  ;;  %v410_v38 = vmul.f32 %v2618_v0, %v2618_v0  ;;  %v442_v16 = vmul.f32 %v2621_v13, %v2621_v13 }
  0xa3   :  { %v2630_v22 = vsub.f32 %v2196_v20, %v283_v55  ;;  %v2633_v17 = vsub.f32 %v2201_v21, %v315_v30  ;;  %v482_v31 = vsel %vm84_vm0, %v410_v38, 0.0  ;;  %v578_v12 = vsel %vm84_vm0, %v442_v16, 0.0 }
  0xa4   :  { %576 = vadd.xlane.f32.xlu1 %v575_v8  ;;  %483 = vadd.xlane.f32.xlu0 %v482_v31  ;;  %v105_v23 = vpop.xlane.xlu0 %104  ;;  %v201_v47 = vpop.xlane.xlu1 %200 }
  0xa5   :  { %v284_v62 = vmul.f32 0.03125, %v105_v23  ;;  %v316_v1 = vmul.f32 0.03125, %v201_v47  ;;  %v411_v54 = vmul.f32 %v2630_v22, %v2630_v22  ;;  %v443_v20 = vmul.f32 %v2633_v17, %v2633_v17 }
  0xa7   :  { %v2642_v55 = vsub.f32 %v2210_v24, %v284_v62  ;;  %v2645_v21 = vsub.f32 %v2215_v25, %v316_v1  ;;  %v485_v8 = vsel %vm84_vm0, %v411_v54, 0.0  ;;  %v581_v16 = vsel %vm84_vm0, %v443_v20, 0.0 }
  0xa8   :  { %579 = vadd.xlane.f32.xlu1 %v578_v12  ;;  %486 = vadd.xlane.f32.xlu0 %v485_v8  ;;  %v108_v30 = vpop.xlane.xlu0 %107  ;;  %v204_v38 = vpop.xlane.xlu1 %203 }
  0xa9   :  { %v285_v31 = vmul.f32 0.03125, %v108_v30  ;;  %v317_v23 = vmul.f32 0.03125, %v204_v38  ;;  %v412_v47 = vmul.f32 %v2642_v55, %v2642_v55  ;;  %v444_v24 = vmul.f32 %v2645_v21, %v2645_v21 }
  0xab   :  { %v2654_v62 = vsub.f32 %v2224_v28, %v285_v31  ;;  %v2657_v25 = vsub.f32 %v2229_v29, %v317_v23  ;;  %v488_v12 = vsel %vm84_vm0, %v412_v47, 0.0  ;;  %v584_v20 = vsel %vm84_vm0, %v444_v24, 0.0 }
  0xac   :  { %582 = vadd.xlane.f32.xlu1 %v581_v16  ;;  %489 = vadd.xlane.f32.xlu0 %v488_v12  ;;  %v111_v1 = vpop.xlane.xlu0 %110  ;;  %v207_v54 = vpop.xlane.xlu1 %206 }
  0xad   :  { %v286_v8 = vmul.f32 0.03125, %v111_v1  ;;  %v318_v30 = vmul.f32 0.03125, %v207_v54  ;;  %v413_v38 = vmul.f32 %v2654_v62, %v2654_v62  ;;  %v445_v28 = vmul.f32 %v2657_v25, %v2657_v25 }
  0xaf   :  { %v2666_v31 = vsub.f32 %v2238_v32, %v286_v8  ;;  %v2669_v29 = vsub.f32 %v2243_v33, %v318_v30  ;;  %v491_v16 = vsel %vm84_vm0, %v413_v38, 0.0  ;;  %v587_v24 = vsel %vm84_vm0, %v445_v28, 0.0  ;;  %v1063_v33 = vld [vmem:[%s3487_s3 + $0x18] sm:$0xff] }
  0xb0   :  { %585 = vadd.xlane.f32.xlu1 %v584_v20  ;;  %492 = vadd.xlane.f32.xlu0 %v491_v16  ;;  %v114_v23 = vpop.xlane.xlu0 %113  ;;  %v210_v47 = vpop.xlane.xlu1 %209 }
  0xb1   :  { %v287_v12 = vmul.f32 0.03125, %v114_v23  ;;  %v319_v1 = vmul.f32 0.03125, %v210_v47  ;;  %v414_v54 = vmul.f32 %v2666_v31, %v2666_v31  ;;  %v446_v32 = vmul.f32 %v2669_v29, %v2669_v29  ;;  %1851 = vmatprep.subr.mxu0 %v1063_v33  ;;  %1955 = vmatprep.subr.mxu1 %v1063_v33  ;;  %v1062_v23 = vld [vmem:[%s3487_s3 + $0x10] sm:$0xff] }
  0xb2   :  { %1852 = vmatpush3.msra.mxu0 %v1063_v33  ;;  %1959 = vmatpush3.msra.mxu1 %v1063_v33 }
  0xb3   :  { %v2681_v8 = vsub.f32 %v2252_v36, %v287_v12  ;;  %v2684_v20 = vsub.f32 %v2257_v37, %v319_v1  ;;  %v494_v30 = vsel %vm84_vm0, %v414_v54, 0.0  ;;  %v590_v16 = vsel %vm84_vm0, %v446_v32, 0.0  ;;  %1853 = vmatprep.subr.mxu0 %v1062_v23  ;;  %1956 = vmatprep.subr.mxu1 %v1062_v23 }
  0xb4   :  { %588 = vadd.xlane.f32.xlu1 %v587_v24  ;;  %495 = vadd.xlane.f32.xlu0 %v494_v30  ;;  %v117_v38 = vpop.xlane.xlu0 %116  ;;  %v213_v28 = vpop.xlane.xlu1 %212  ;;  %v1061_v24 = vld [vmem:[%s3487_s3 + $0x8] sm:$0xff] }
  0xb5   :  { %3539 = vst [vmem:[#allocation16_spill] sm:$0xff] %v2684_v20  ;;  %v288_v47 = vmul.f32 0.03125, %v117_v38  ;;  %v320_v36 = vmul.f32 0.03125, %v213_v28  ;;  %v415_v37 = vmul.f32 %v2681_v8, %v2681_v8  ;;  %v447_v12 = vmul.f32 %v2684_v20, %v2684_v20  ;;  %1854 = vmatpush3.msra.mxu0 %v1062_v23  ;;  %1960 = vmatpush3.msra.mxu1 %v1062_v23  ;;  %v1060_v28 = vld [vmem:[%s3487_s3] sm:$0xff] }
  0xb6   :  { %1855 = vmatprep.subr.mxu0 %v1061_v24  ;;  %1957 = vmatprep.subr.mxu1 %v1061_v24 }
  0xb7   :  { %v2699_v1 = vsub.f32 %v2266_v40, %v288_v47  ;;  %v2702_v54 = vsub.f32 %v2271_v41, %v320_v36  ;;  %v497_v32 = vsel %vm84_vm0, %v415_v37, 0.0  ;;  %v593_v38 = vsel %vm84_vm0, %v447_v12, 0.0  ;;  %1856 = vmatpush3.msra.mxu0 %v1061_v24  ;;  %1961 = vmatpush3.msra.mxu1 %v1061_v24 }
  0xb8   :  { %591 = vadd.xlane.f32.xlu1 %v590_v16  ;;  %498 = vadd.xlane.f32.xlu0 %v497_v32  ;;  %v120_v30 = vpop.xlane.xlu0 %119  ;;  %v216_v33 = vpop.xlane.xlu1 %215 }
  0xb9   :  { %v289_v20 = vmul.f32 0.03125, %v120_v30  ;;  %v321_v40 = vmul.f32 0.03125, %v216_v33  ;;  %v416_v41 = vmul.f32 %v2699_v1, %v2699_v1  ;;  %v448_v47 = vmul.f32 %v2702_v54, %v2702_v54  ;;  %1857 = vmatprep.subr.mxu0 %v1060_v28  ;;  %1958 = vmatprep.subr.mxu1 %v1060_v28 }
  0xba   :  { %1858 = vmatpush3.msra.mxu0 %v1060_v28  ;;  %1962 = vmatpush3.msra.mxu1 %v1060_v28 }
  0xbb   :  { %v2714_v16 = vsub.f32 %v2280_v44, %v289_v20  ;;  %v2717_v23 = vsub.f32 %v2285_v45, %v321_v40  ;;  %v500_v36 = vsel %vm84_vm0, %v416_v41, 0.0  ;;  %v596_v32 = vsel %vm84_vm0, %v448_v47, 0.0 }
  0xbc   :  { %594 = vadd.xlane.f32.xlu1 %v593_v38  ;;  %501 = vadd.xlane.f32.xlu0 %v500_v36  ;;  %v123_v37 = vpop.xlane.xlu0 %122  ;;  %v219_v12 = vpop.xlane.xlu1 %218 }
  0xbd   :  { %v290_v30 = vmul.f32 0.03125, %v123_v37  ;;  %v322_v33 = vmul.f32 0.03125, %v219_v12  ;;  %v417_v24 = vmul.f32 %v2714_v16, %v2714_v16  ;;  %v449_v44 = vmul.f32 %v2717_v23, %v2717_v23 }
  0xbf   :  { %v2726_v45 = vsub.f32 %v2294_v48, %v290_v30  ;;  %v2729_v20 = vsub.f32 %v2299_v49, %v322_v33  ;;  %v503_v38 = vsel %vm84_vm0, %v417_v24, 0.0  ;;  %v599_v47 = vsel %vm84_vm0, %v449_v44, 0.0 }
  0xc0   :  { %597 = vadd.xlane.f32.xlu1 %v596_v32  ;;  %504 = vadd.xlane.f32.xlu0 %v503_v38  ;;  %v126_v40 = vpop.xlane.xlu0 %125  ;;  %v222_v41 = vpop.xlane.xlu1 %221 }
  0xc1   :  { %v291_v36 = vmul.f32 0.03125, %v126_v40  ;;  %v323_v37 = vmul.f32 0.03125, %v222_v41  ;;  %v418_v12 = vmul.f32 %v2726_v45, %v2726_v45  ;;  %v450_v48 = vmul.f32 %v2729_v20, %v2729_v20 }
  0xc3   :  { %v2738_v28 = vsub.f32 %v2308_v52, %v291_v36  ;;  %v2741_v49 = vsub.f32 %v2313_v53, %v323_v37  ;;  %v506_v32 = vsel %vm84_vm0, %v418_v12, 0.0  ;;  %v602_v24 = vsel %vm84_vm0, %v450_v48, 0.0 }
  0xc4   :  { %600 = vadd.xlane.f32.xlu1 %v599_v47  ;;  %507 = vadd.xlane.f32.xlu0 %v506_v32  ;;  %v129_v30 = vpop.xlane.xlu0 %128  ;;  %v225_v33 = vpop.xlane.xlu1 %224 }
  0xc5   :  { %v292_v44 = vmul.f32 0.03125, %v129_v30  ;;  %v324_v38 = vmul.f32 0.03125, %v225_v33  ;;  %v419_v40 = vmul.f32 %v2738_v28, %v2738_v28  ;;  %v451_v52 = vmul.f32 %v2741_v49, %v2741_v49 }
  0xc7   :  { %v2750_v41 = vsub.f32 %v2322_v56, %v292_v44  ;;  %v2753_v53 = vsub.f32 %v2327_v57, %v324_v38  ;;  %v509_v47 = vsel %vm84_vm0, %v419_v40, 0.0  ;;  %v605_v12 = vsel %vm84_vm0, %v451_v52, 0.0 }
  0xc8   :  { %603 = vadd.xlane.f32.xlu1 %v602_v24  ;;  %510 = vadd.xlane.f32.xlu0 %v509_v47  ;;  %v132_v36 = vpop.xlane.xlu0 %131  ;;  %v228_v37 = vpop.xlane.xlu1 %227 }
  0xc9   :  { %v293_v48 = vmul.f32 0.03125, %v132_v36  ;;  %v325_v32 = vmul.f32 0.03125, %v228_v37  ;;  %v420_v30 = vmul.f32 %v2750_v41, %v2750_v41  ;;  %v452_v56 = vmul.f32 %v2753_v53, %v2753_v53 }
  0xcb   :  { %v2762_v33 = vsub.f32 %v2336_v60, %v293_v48  ;;  %v2765_v57 = vsub.f32 %v2341_v61, %v325_v32  ;;  %v512_v24 = vsel %vm84_vm0, %v420_v30, 0.0  ;;  %v608_v40 = vsel %vm84_vm0, %v452_v56, 0.0 }
  0xcc   :  { %606 = vadd.xlane.f32.xlu1 %v605_v12  ;;  %513 = vadd.xlane.f32.xlu0 %v512_v24  ;;  %v135_v44 = vpop.xlane.xlu0 %134  ;;  %v231_v38 = vpop.xlane.xlu1 %230 }
  0xcd   :  { %v294_v52 = vmul.f32 0.03125, %v135_v44  ;;  %v326_v47 = vmul.f32 0.03125, %v231_v38  ;;  %v421_v36 = vmul.f32 %v2762_v33, %v2762_v33  ;;  %v453_v60 = vmul.f32 %v2765_v57, %v2765_v57 }
  0xcf   :  { %v2774_v37 = vsub.f32 %v2350_v3, %v294_v52  ;;  %v2777_v61 = vsub.f32 %v2355_v4, %v326_v47  ;;  %v515_v12 = vsel %vm84_vm0, %v421_v36, 0.0  ;;  %v611_v30 = vsel %vm84_vm0, %v453_v60, 0.0 }
  0xd0   :  { %609 = vadd.xlane.f32.xlu1 %v608_v40  ;;  %516 = vadd.xlane.f32.xlu0 %v515_v12  ;;  %v138_v48 = vpop.xlane.xlu0 %137  ;;  %v234_v32 = vpop.xlane.xlu1 %233 }
  0xd1   :  { %v295_v56 = vmul.f32 0.03125, %v138_v48  ;;  %v327_v24 = vmul.f32 0.03125, %v234_v32  ;;  %v422_v44 = vmul.f32 %v2774_v37, %v2774_v37  ;;  %v454_v3 = vmul.f32 %v2777_v61, %v2777_v61 }
  0xd3   :  { %v2786_v38 = vsub.f32 %v2364_v10, %v295_v56  ;;  %v2789_v4 = vsub.f32 %v2369_v11, %v327_v24  ;;  %v518_v40 = vsel %vm84_vm0, %v422_v44, 0.0  ;;  %v614_v36 = vsel %vm84_vm0, %v454_v3, 0.0 }
  0xd4   :  { %612 = vadd.xlane.f32.xlu1 %v611_v30  ;;  %519 = vadd.xlane.f32.xlu0 %v518_v40  ;;  %v141_v52 = vpop.xlane.xlu0 %140  ;;  %v237_v47 = vpop.xlane.xlu1 %236 }
  0xd5   :  { %v296_v60 = vmul.f32 0.03125, %v141_v52  ;;  %v328_v12 = vmul.f32 0.03125, %v237_v47  ;;  %v423_v48 = vmul.f32 %v2786_v38, %v2786_v38  ;;  %v455_v10 = vmul.f32 %v2789_v4, %v2789_v4 }
  0xd7   :  { %v2798_v32 = vsub.f32 %v2378_v18, %v296_v60  ;;  %v2801_v11 = vsub.f32 %v2383_v19, %v328_v12  ;;  %v521_v30 = vsel %vm84_vm0, %v423_v48, 0.0  ;;  %v617_v44 = vsel %vm84_vm0, %v455_v10, 0.0 }
  0xd8   :  { %615 = vadd.xlane.f32.xlu1 %v614_v36  ;;  %522 = vadd.xlane.f32.xlu0 %v521_v30  ;;  %v144_v56 = vpop.xlane.xlu0 %143  ;;  %v240_v24 = vpop.xlane.xlu1 %239 }
  0xd9   :  { %v297_v3 = vmul.f32 0.03125, %v144_v56  ;;  %v329_v40 = vmul.f32 0.03125, %v240_v24  ;;  %v424_v52 = vmul.f32 %v2798_v32, %v2798_v32  ;;  %v456_v18 = vmul.f32 %v2801_v11, %v2801_v11 }
  0xdb   :  { %v2810_v47 = vsub.f32 %v2392_v26, %v297_v3  ;;  %v2813_v19 = vsub.f32 %v2397_v27, %v329_v40  ;;  %v524_v36 = vsel %vm84_vm0, %v424_v52, 0.0  ;;  %v620_v48 = vsel %vm84_vm0, %v456_v18, 0.0 }
  0xdc   :  { %618 = vadd.xlane.f32.xlu1 %v617_v44  ;;  %525 = vadd.xlane.f32.xlu0 %v524_v36  ;;  %v147_v60 = vpop.xlane.xlu0 %146  ;;  %v243_v12 = vpop.xlane.xlu1 %242 }
  0xdd   :  { %v298_v10 = vmul.f32 0.03125, %v147_v60  ;;  %v330_v30 = vmul.f32 0.03125, %v243_v12  ;;  %v425_v56 = vmul.f32 %v2810_v47, %v2810_v47  ;;  %v457_v26 = vmul.f32 %v2813_v19, %v2813_v19 }
  0xdf   :  { %v2822_v24 = vsub.f32 %v2406_v34, %v298_v10  ;;  %v2825_v27 = vsub.f32 %v2411_v35, %v330_v30  ;;  %v527_v44 = vsel %vm84_vm0, %v425_v56, 0.0  ;;  %v623_v52 = vsel %vm84_vm0, %v457_v26, 0.0 }
  0xe0   :  { %621 = vadd.xlane.f32.xlu1 %v620_v48  ;;  %528 = vadd.xlane.f32.xlu0 %v527_v44  ;;  %v150_v3 = vpop.xlane.xlu0 %149  ;;  %v246_v40 = vpop.xlane.xlu1 %245 }
  0xe1   :  { %v299_v18 = vmul.f32 0.03125, %v150_v3  ;;  %v331_v36 = vmul.f32 0.03125, %v246_v40  ;;  %v426_v60 = vmul.f32 %v2822_v24, %v2822_v24  ;;  %v458_v34 = vmul.f32 %v2825_v27, %v2825_v27 }
  0xe3   :  { %v2834_v12 = vsub.f32 %v2420_v42, %v299_v18  ;;  %v2837_v35 = vsub.f32 %v2425_v43, %v331_v36  ;;  %v530_v48 = vsel %vm84_vm0, %v426_v60, 0.0  ;;  %v626_v56 = vsel %vm84_vm0, %v458_v34, 0.0 }
  0xe4   :  { %624 = vadd.xlane.f32.xlu1 %v623_v52  ;;  %531 = vadd.xlane.f32.xlu0 %v530_v48  ;;  %v153_v10 = vpop.xlane.xlu0 %152  ;;  %v249_v30 = vpop.xlane.xlu1 %248 }
  0xe5   :  { %v300_v26 = vmul.f32 0.03125, %v153_v10  ;;  %v332_v44 = vmul.f32 0.03125, %v249_v30  ;;  %v427_v3 = vmul.f32 %v2834_v12, %v2834_v12  ;;  %v459_v42 = vmul.f32 %v2837_v35, %v2837_v35 }
  0xe7   :  { %v2846_v40 = vsub.f32 %v2434_v50, %v300_v26  ;;  %v2849_v43 = vsub.f32 %v2439_v51, %v332_v44  ;;  %v533_v52 = vsel %vm84_vm0, %v427_v3, 0.0  ;;  %v629_v60 = vsel %vm84_vm0, %v459_v42, 0.0 }
  0xe8   :  { %627 = vadd.xlane.f32.xlu1 %v626_v56  ;;  %534 = vadd.xlane.f32.xlu0 %v533_v52  ;;  %v156_v18 = vpop.xlane.xlu0 %155  ;;  %v252_v36 = vpop.xlane.xlu1 %251 }
  0xe9   :  { %v301_v34 = vmul.f32 0.03125, %v156_v18  ;;  %v333_v48 = vmul.f32 0.03125, %v252_v36  ;;  %v428_v10 = vmul.f32 %v2846_v40, %v2846_v40  ;;  %v460_v50 = vmul.f32 %v2849_v43, %v2849_v43 }
  0xeb   :  { %v2858_v30 = vsub.f32 %v2448_v58, %v301_v34  ;;  %v2861_v51 = vsub.f32 %v2453_v59, %v333_v48  ;;  %v536_v56 = vsel %vm84_vm0, %v428_v10, 0.0  ;;  %v632_v3 = vsel %vm84_vm0, %v460_v50, 0.0 }
  0xec   :  { %630 = vadd.xlane.f32.xlu1 %v629_v60  ;;  %537 = vadd.xlane.f32.xlu0 %v536_v56  ;;  %v159_v26 = vpop.xlane.xlu0 %158  ;;  %v255_v44 = vpop.xlane.xlu1 %254 }
  0xed   :  { %3540 = vst [vmem:[#allocation17_spill] sm:$0xff] %v2858_v30  ;;  %3541 = vst [vmem:[#allocation18_spill] sm:$0xff] %v2861_v51  ;;  %v302_v42 = vmul.f32 0.03125, %v159_v26  ;;  %v334_v52 = vmul.f32 0.03125, %v255_v44  ;;  %v429_v18 = vmul.f32 %v2858_v30, %v2858_v30  ;;  %v461_v58 = vmul.f32 %v2861_v51, %v2861_v51  ;;  %v3544_v44 = vld [vmem:[#allocation2_spill] sm:$0xff] }
  0xef   :  { %v2870_v36 = vsub.f32 %v2462_v6, %v302_v42  ;;  %v2873_v59 = vsub.f32 %v2467_v7, %v334_v52  ;;  %v539_v60 = vsel %vm84_vm0, %v429_v18, 0.0  ;;  %v635_v10 = vsel %vm84_vm0, %v461_v58, 0.0  ;;  %v3546_v7 = vld [vmem:[#allocation3_spill] sm:$0xff] }
  0xf0   :  { %633 = vadd.xlane.f32.xlu1 %v632_v3  ;;  %540 = vadd.xlane.f32.xlu0 %v539_v60  ;;  %v162_v34 = vpop.xlane.xlu0 %161  ;;  %v258_v48 = vpop.xlane.xlu1 %257 }
  0xf1   :  { %3542 = vst [vmem:[#allocation19_spill] sm:$0xff] %v2870_v36  ;;  %3543 = vst [vmem:[#allocation20_spill] sm:$0xff] %v2873_v59  ;;  %v303_v50 = vmul.f32 0.03125, %v162_v34  ;;  %v335_v56 = vmul.f32 0.03125, %v258_v48  ;;  %v430_v26 = vmul.f32 %v2870_v36, %v2870_v36  ;;  %v462_v6 = vmul.f32 %v2873_v59, %v2873_v59 }
  0xf3   :  { %v2882_v42 = vsub.f32 %v3544_v44, %v303_v50  ;;  %v2885_v52 = vsub.f32 %v3546_v7, %v335_v56  ;;  %v542_v3 = vsel %vm84_vm0, %v430_v26, 0.0  ;;  %v638_v60 = vsel %vm84_vm0, %v462_v6, 0.0  ;;  %v3548_v44 = vld [vmem:[#allocation4_spill] sm:$0xff]  ;;  %v3550_v56 = vld [vmem:[#allocation5_spill] sm:$0xff] }
  0xf4   :  { %636 = vadd.xlane.f32.xlu1 %v635_v10  ;;  %543 = vadd.xlane.f32.xlu0 %v542_v3  ;;  %v165_v18 = vpop.xlane.xlu0 %164  ;;  %v261_v58 = vpop.xlane.xlu1 %260 }
  0xf5   :  { %3545 = vst [vmem:[#allocation2_spill] sm:$0xff] %v2882_v42  ;;  %3547 = vst [vmem:[#allocation3_spill] sm:$0xff] %v2885_v52  ;;  %v304_v34 = vmul.f32 0.03125, %v165_v18  ;;  %v336_v48 = vmul.f32 0.03125, %v261_v58  ;;  %v431_v36 = vmul.f32 %v2882_v42, %v2882_v42  ;;  %v463_v50 = vmul.f32 %v2885_v52, %v2885_v52 }
  0xf7   :  { %v2894_v59 = vsub.f32 %v3548_v44, %v304_v34  ;;  %v2897_v7 = vsub.f32 %v3550_v56, %v336_v48  ;;  %v545_v10 = vsel %vm84_vm0, %v431_v36, 0.0  ;;  %v641_v3 = vsel %vm84_vm0, %v463_v50, 0.0  ;;  %v3552_v44 = vld [vmem:[#allocation6_spill] sm:$0xff]  ;;  %v3554_v48 = vld [vmem:[#allocation7_spill] sm:$0xff] }
  0xf8   :  { %639 = vadd.xlane.f32.xlu1 %v638_v60  ;;  %546 = vadd.xlane.f32.xlu0 %v545_v10  ;;  %v168_v26 = vpop.xlane.xlu0 %167  ;;  %v264_v6 = vpop.xlane.xlu1 %263 }
  0xf9   :  { %3549 = vst [vmem:[#allocation4_spill] sm:$0xff] %v2894_v59  ;;  %3551 = vst [vmem:[#allocation5_spill] sm:$0xff] %v2897_v7  ;;  %v305_v18 = vmul.f32 0.03125, %v168_v26  ;;  %v337_v58 = vmul.f32 0.03125, %v264_v6  ;;  %v432_v42 = vmul.f32 %v2894_v59, %v2894_v59  ;;  %v464_v34 = vmul.f32 %v2897_v7, %v2897_v7 }
  0xfb   :  { %v2906_v52 = vsub.f32 %v3552_v44, %v305_v18  ;;  %v2909_v56 = vsub.f32 %v3554_v48, %v337_v58  ;;  %v548_v36 = vsel %vm84_vm0, %v432_v42, 0.0  ;;  %v644_v10 = vsel %vm84_vm0, %v464_v34, 0.0  ;;  %v3556_v44 = vld [vmem:[#allocation8_spill] sm:$0xff]  ;;  %v3558_v58 = vld [vmem:[#allocation9_spill] sm:$0xff] }
  0xfc   :  { %642 = vadd.xlane.f32.xlu1 %v641_v3  ;;  %549 = vadd.xlane.f32.xlu0 %v548_v36  ;;  %v171_v60 = vpop.xlane.xlu0 %170  ;;  %v267_v50 = vpop.xlane.xlu1 %266 }
  0xfd   :  { %3553 = vst [vmem:[#allocation6_spill] sm:$0xff] %v2906_v52  ;;  %3555 = vst [vmem:[#allocation7_spill] sm:$0xff] %v2909_v56  ;;  %v306_v26 = vmul.f32 0.03125, %v171_v60  ;;  %v338_v6 = vmul.f32 0.03125, %v267_v50  ;;  %v433_v59 = vmul.f32 %v2906_v52, %v2906_v52  ;;  %v465_v18 = vmul.f32 %v2909_v56, %v2909_v56 }
  0xff   :  { %v2918_v7 = vsub.f32 %v3556_v44, %v306_v26  ;;  %v2921_v48 = vsub.f32 %v3558_v58, %v338_v6  ;;  %v551_v42 = vsel %vm84_vm0, %v433_v59, 0.0  ;;  %v647_v36 = vsel %vm84_vm0, %v465_v18, 0.0  ;;  %v3560_v44 = vld [vmem:[#allocation10_spill] sm:$0xff]  ;;  %v3562_v6 = vld [vmem:[#allocation11_spill] sm:$0xff] }
 0x100   :  { %645 = vadd.xlane.f32.xlu1 %v644_v10  ;;  %552 = vadd.xlane.f32.xlu0 %v551_v42  ;;  %v174_v3 = vpop.xlane.xlu0 %173  ;;  %v270_v34 = vpop.xlane.xlu1 %269 }
 0x101   :  { %3557 = vst [vmem:[#allocation8_spill] sm:$0xff] %v2918_v7  ;;  %3559 = vst [vmem:[#allocation9_spill] sm:$0xff] %v2921_v48  ;;  %v307_v60 = vmul.f32 0.03125, %v174_v3  ;;  %v339_v50 = vmul.f32 0.03125, %v270_v34  ;;  %v434_v52 = vmul.f32 %v2918_v7, %v2918_v7  ;;  %v466_v26 = vmul.f32 %v2921_v48, %v2921_v48 }
 0x103   :  { %v2930_v56 = vsub.f32 %v3560_v44, %v307_v60  ;;  %v2933_v58 = vsub.f32 %v3562_v6, %v339_v50  ;;  %v554_v59 = vsel %vm84_vm0, %v434_v52, 0.0  ;;  %v650_v42 = vsel %vm84_vm0, %v466_v26, 0.0  ;;  %v3564_v44 = vld [vmem:[#allocation12_spill] sm:$0xff]  ;;  %v3566_v50 = vld [vmem:[#allocation13_spill] sm:$0xff] }
 0x104   :  { %648 = vadd.xlane.f32.xlu1 %v647_v36  ;;  %555 = vadd.xlane.f32.xlu0 %v554_v59  ;;  %v177_v10 = vpop.xlane.xlu0 %176  ;;  %v273_v18 = vpop.xlane.xlu1 %272 }
 0x105   :  { %3561 = vst [vmem:[#allocation10_spill] sm:$0xff] %v2930_v56  ;;  %3563 = vst [vmem:[#allocation11_spill] sm:$0xff] %v2933_v58  ;;  %v308_v3 = vmul.f32 0.03125, %v177_v10  ;;  %v340_v34 = vmul.f32 0.03125, %v273_v18  ;;  %v435_v7 = vmul.f32 %v2930_v56, %v2930_v56  ;;  %v467_v60 = vmul.f32 %v2933_v58, %v2933_v58 }
 0x107   :  { %v2942_v48 = vsub.f32 %v3564_v44, %v308_v3  ;;  %v2945_v6 = vsub.f32 %v3566_v50, %v340_v34  ;;  %v557_v52 = vsel %vm84_vm0, %v435_v7, 0.0  ;;  %v653_v59 = vsel %vm84_vm0, %v467_v60, 0.0  ;;  %v3568_v44 = vld [vmem:[#allocation14_spill] sm:$0xff] }
 0x108   :  { %651 = vadd.xlane.f32.xlu1 %v650_v42  ;;  %558 = vadd.xlane.f32.xlu0 %v557_v52  ;;  %v180_v36 = vpop.xlane.xlu0 %179  ;;  %v276_v26 = vpop.xlane.xlu1 %275 }
 0x109   :  { %3565 = vst [vmem:[#allocation12_spill] sm:$0xff] %v2942_v48  ;;  %3567 = vst [vmem:[#allocation13_spill] sm:$0xff] %v2945_v6  ;;  %v309_v10 = vmul.f32 0.03125, %v180_v36  ;;  %v341_v18 = vmul.f32 0.03125, %v276_v26  ;;  %v436_v56 = vmul.f32 %v2942_v48, %v2942_v48  ;;  %v468_v3 = vmul.f32 %v2945_v6, %v2945_v6 }
 0x10b   :  { %v2954_v58 = vsub.f32 %v3568_v44, %v309_v10  ;;  %v2957_v34 = vsub.f32 %v2565_v46, %v341_v18  ;;  %v560_v7 = vsel %vm84_vm0, %v436_v56, 0.0  ;;  %v656_v42 = vsel %vm84_vm0, %v468_v3, 0.0 }
 0x10c   :  { %654 = vadd.xlane.f32.xlu1 %v653_v59  ;;  %561 = vadd.xlane.f32.xlu0 %v560_v7 }
 0x10d   :  { %3569 = vst [vmem:[#allocation14_spill] sm:$0xff] %v2954_v58  ;;  %3570 = vst [vmem:[#allocation21_spill] sm:$0xff] %v2957_v34  ;;  %v437_v60 = vmul.f32 %v2954_v58, %v2954_v58  ;;  %v469_v50 = vmul.f32 %v2957_v34, %v2957_v34 }
 0x10f   :  { %v563_v52 = vsel %vm84_vm0, %v437_v60, 0.0  ;;  %v659_v36 = vsel %vm84_vm0, %v469_v50, 0.0 }
 0x110   :  { %657 = vadd.xlane.f32.xlu1 %v656_v42  ;;  %564 = vadd.xlane.f32.xlu0 %v563_v52 }
 0x114   :  { %660 = vadd.xlane.f32.xlu1 %v659_v36 }
 0x11d   :  { %v472_v46 = vpop.xlane.xlu0 %471 }
 0x11e   :  { %v662_v26 = vmul.f32 0.03125, %v472_v46 }
 0x120   :  { %v726_v56 = vadd.f32 1e-06, %v662_v26 }
 0x121   :  { %v568_v59 = vpop.xlane.xlu1 %567  ;;  %v475_v10 = vpop.xlane.xlu0 %474 }
 0x122   :  { %1963 = vrsqrt.f32 %v726_v56  ;;  %v694_v18 = vmul.f32 0.03125, %v568_v59  ;;  %v663_v3 = vmul.f32 0.03125, %v475_v10 }
 0x124   :  { %v758_v44 = vadd.f32 1e-06, %v694_v18  ;;  %v727_v7 = vadd.f32 1e-06, %v663_v3 }
 0x125   :  { %v571_v58 = vpop.xlane.xlu1 %570  ;;  %v478_v6 = vpop.xlane.xlu0 %477 }
 0x126   :  { %1965 = vrsqrt.f32 %v758_v44  ;;  %v695_v34 = vmul.f32 0.03125, %v571_v58  ;;  %v664_v60 = vmul.f32 0.03125, %v478_v6  ;;  %v2970_v58 = vld [vmem:[%s3488_s1] ss:$0 sm:$0xff] }
 0x127   :  { %1967 = vrsqrt.f32 %v727_v7 }
 0x128   :  { %v759_v42 = vadd.f32 1e-06, %v695_v34  ;;  %v728_v52 = vadd.f32 1e-06, %v664_v60 }
 0x129   :  { %v574_v50 = vpop.xlane.xlu1 %573  ;;  %v481_v36 = vpop.xlane.xlu0 %480 }
 0x12a   :  { %1969 = vrsqrt.f32 %v759_v42  ;;  %v696_v46 = vmul.f32 0.03125, %v574_v50  ;;  %v665_v26 = vmul.f32 0.03125, %v481_v36  ;;  %v2976_v42 = vld [vmem:[%s3489_s2] ss:$0 sm:$0xff] }
 0x12b   :  { %1971 = vrsqrt.f32 %v728_v52 }
 0x12c   :  { %v760_v48 = vadd.f32 1e-06, %v696_v46  ;;  %v729_v56 = vadd.f32 1e-06, %v665_v26 }
 0x12d   :  { %v577_v59 = vpop.xlane.xlu1 %576  ;;  %v484_v10 = vpop.xlane.xlu0 %483 }
 0x12e   :  { %1973 = vrsqrt.f32 %v760_v48  ;;  %v697_v18 = vmul.f32 0.03125, %v577_v59  ;;  %v666_v3 = vmul.f32 0.03125, %v484_v10 }
 0x12f   :  { %v1964_v51 = vpop.eup %1963  ;;  %1975 = vrsqrt.f32 %v729_v56 }
 0x130   :  { %v761_v6 = vadd.f32 1e-06, %v697_v18  ;;  %v730_v34 = vadd.f32 1e-06, %v666_v3  ;;  %v854_v44 = vmul.f32 %v1964_v51, %v2572_v39  ;;  %v3571_v18 = vld [vmem:[#allocation15_spill] sm:$0xff] }
 0x131   :  { %v580_v7 = vpop.xlane.xlu1 %579  ;;  %v487_v60 = vpop.xlane.xlu0 %486 }
 0x132   :  { %1977 = vrsqrt.f32 %v761_v6  ;;  %v698_v48 = vmul.f32 0.03125, %v580_v7  ;;  %v667_v52 = vmul.f32 0.03125, %v487_v60  ;;  %v925_v50 = vmul.f32 %v2970_v58, %v854_v44 }
 0x133   :  { %v1966_v36 = vpop.eup %1965  ;;  %1979 = vrsqrt.f32 %v730_v34 }
 0x134   :  { %v1968_v46 = vpop.eup %1967  ;;  %v762_v26 = vadd.f32 1e-06, %v698_v48  ;;  %v731_v56 = vadd.f32 1e-06, %v667_v52  ;;  %v996_v59 = vadd.f32 %v2976_v42, %v925_v50  ;;  %v886_v39 = vmul.f32 %v1966_v36, %v2582_v63 }
 0x135   :  { %v583_v51 = vpop.xlane.xlu1 %582  ;;  %v490_v10 = vpop.xlane.xlu0 %489  ;;  %v855_v3 = vmul.f32 %v1968_v46, %v3571_v18 }
 0x136   :  { %1981 = vrsqrt.f32 %v762_v26  ;;  %v699_v30 = vmul.f32 0.03125, %v583_v51  ;;  %v668_v6 = vmul.f32 0.03125, %v490_v10  ;;  %1859 = vmatprep.mubr.msk.f32.mxu0 %vm84_vm0, %v996_v59  ;;  %v957_v44 = vmul.f32 %v2970_v58, %v886_v39 }
 0x137   :  { %v1970_v7 = vpop.eup %1969  ;;  %1983 = vrsqrt.f32 %v731_v56  ;;  %v926_v34 = vmul.f32 %v2970_v58, %v855_v3 }
 0x138   :  { %v1972_v60 = vpop.eup %1971  ;;  %v763_v48 = vadd.f32 1e-06, %v699_v30  ;;  %v732_v52 = vadd.f32 1e-06, %v668_v6  ;;  %v1028_v63 = vadd.f32 %v2976_v42, %v957_v44  ;;  %v887_v50 = vmul.f32 %v1970_v7, %v2585_v14 }
 0x139   :  { %v586_v36 = vpop.xlane.xlu1 %585  ;;  %v493_v46 = vpop.xlane.xlu0 %492  ;;  %v997_v26 = vadd.f32 %v2976_v42, %v926_v34  ;;  %v856_v51 = vmul.f32 %v1972_v60, %v2594_v2 }
 0x13a   :  { %1985 = vrsqrt.f32 %v763_v48  ;;  %v700_v59 = vmul.f32 0.03125, %v586_v36  ;;  %v669_v39 = vmul.f32 0.03125, %v493_v46  ;;  %1907 = vmatprep.mubr.msk.f32.mxu1 %vm84_vm0, %v1028_v63  ;;  %v958_v56 = vmul.f32 %v2970_v58, %v887_v50 }
 0x13b   :  { %v1974_v10 = vpop.eup %1973  ;;  %1987 = vrsqrt.f32 %v732_v52  ;;  %1860 = vmatmul.mubr.msk.f32.vlgmr.msra.gmra.mxu0 %vm84_vm0, %v997_v26  ;;  %v927_v30 = vmul.f32 %v2970_v58, %v856_v51 }
 0x13c   :  { %v1976_v14 = vpop.eup %1975  ;;  %v764_v18 = vadd.f32 1e-06, %v700_v59  ;;  %v733_v3 = vadd.f32 1e-06, %v669_v39  ;;  %v1029_v6 = vadd.f32 %v2976_v42, %v958_v56  ;;  %v888_v2 = vmul.f32 %v1974_v10, %v2597_v5 }
 0x13d   :  { %v589_v44 = vpop.xlane.xlu1 %588  ;;  %v496_v7 = vpop.xlane.xlu0 %495  ;;  %v998_v34 = vadd.f32 %v2976_v42, %v927_v30  ;;  %v857_v60 = vmul.f32 %v1976_v14, %v2606_v15 }
 0x13e   :  { %1989 = vrsqrt.f32 %v764_v18  ;;  %v701_v48 = vmul.f32 0.03125, %v589_v44  ;;  %v670_v52 = vmul.f32 0.03125, %v496_v7  ;;  %1908 = vmatmul.mubr.msk.f32.vlgmr.msra.gmra.mxu1 %vm84_vm0, %v1029_v6  ;;  %v959_v63 = vmul.f32 %v2970_v58, %v888_v2 }
 0x13f   :  { %v1978_v50 = vpop.eup %1977  ;;  %1991 = vrsqrt.f32 %v733_v3  ;;  %1862 = vmatprep.mubr.msk.f32.mxu0 %vm84_vm0, %v998_v34  ;;  %v928_v36 = vmul.f32 %v2970_v58, %v857_v60 }
 0x140   :  { %v1980_v5 = vpop.eup %1979  ;;  %v765_v46 = vadd.f32 1e-06, %v701_v48  ;;  %v734_v26 = vadd.f32 1e-06, %v670_v52  ;;  %v1030_v51 = vadd.f32 %v2976_v42, %v959_v63  ;;  %v889_v15 = vmul.f32 %v1978_v50, %v2609_v9 }
 0x141   :  { %v592_v59 = vpop.xlane.xlu1 %591  ;;  %v499_v39 = vpop.xlane.xlu0 %498  ;;  %v999_v56 = vadd.f32 %v2976_v42, %v928_v36  ;;  %v858_v10 = vmul.f32 %v1980_v5, %v2618_v0 }
 0x142   :  { %1993 = vrsqrt.f32 %v765_v46  ;;  %v702_v30 = vmul.f32 0.03125, %v592_v59  ;;  %v671_v14 = vmul.f32 0.03125, %v499_v39  ;;  %1910 = vmatprep.mubr.msk.f32.mxu1 %vm84_vm0, %v1030_v51  ;;  %v960_v18 = vmul.f32 %v2970_v58, %v889_v15 }
 0x143   :  { %v1982_v3 = vpop.eup %1981  ;;  %1995 = vrsqrt.f32 %v734_v26  ;;  %1863 = vmatmul.mubr.msk.f32.gmra.mxu0 %vm84_vm0, %v999_v56  ;;  %v929_v6 = vmul.f32 %v2970_v58, %v858_v10 }
 0x144   :  { %v1984_v9 = vpop.eup %1983  ;;  %v766_v2 = vadd.f32 1e-06, %v702_v30  ;;  %v735_v44 = vadd.f32 1e-06, %v671_v14  ;;  %v1031_v7 = vadd.f32 %v2976_v42, %v960_v18  ;;  %v890_v0 = vmul.f32 %v1982_v3, %v2621_v13 }
 0x145   :  { %v595_v34 = vpop.xlane.xlu1 %594  ;;  %v502_v60 = vpop.xlane.xlu0 %501  ;;  %v1000_v48 = vadd.f32 %v2976_v42, %v929_v6  ;;  %v859_v52 = vmul.f32 %v1984_v9, %v2630_v22 }
 0x146   :  { %1997 = vrsqrt.f32 %v766_v2  ;;  %v703_v63 = vmul.f32 0.03125, %v595_v34  ;;  %v672_v50 = vmul.f32 0.03125, %v502_v60  ;;  %1911 = vmatmul.mubr.msk.f32.gmra.mxu1 %vm84_vm0, %v1031_v7  ;;  %v961_v36 = vmul.f32 %v2970_v58, %v890_v0 }
 0x147   :  { %v1986_v5 = vpop.eup %1985  ;;  %1999 = vrsqrt.f32 %v735_v44  ;;  %1865 = vmatprep.mubr.msk.f32.mxu0 %vm84_vm0, %v1000_v48  ;;  %v930_v46 = vmul.f32 %v2970_v58, %v859_v52 }
 0x148   :  { %v1988_v13 = vpop.eup %1987  ;;  %v767_v26 = vadd.f32 1e-06, %v703_v63  ;;  %v736_v51 = vadd.f32 1e-06, %v672_v50  ;;  %v1032_v15 = vadd.f32 %v2976_v42, %v961_v36  ;;  %v891_v22 = vmul.f32 %v1986_v5, %v2633_v17 }
 0x149   :  { %v598_v59 = vpop.xlane.xlu1 %597  ;;  %v505_v39 = vpop.xlane.xlu0 %504  ;;  %v1001_v56 = vadd.f32 %v2976_v42, %v930_v46  ;;  %v860_v10 = vmul.f32 %v1988_v13, %v2642_v55 }
 0x14a   :  { %2001 = vrsqrt.f32 %v767_v26  ;;  %v704_v30 = vmul.f32 0.03125, %v598_v59  ;;  %v673_v14 = vmul.f32 0.03125, %v505_v39  ;;  %1913 = vmatprep.mubr.msk.f32.mxu1 %vm84_vm0, %v1032_v15  ;;  %v962_v18 = vmul.f32 %v2970_v58, %v891_v22 }
 0x14b   :  { %v1990_v3 = vpop.eup %1989  ;;  %2003 = vrsqrt.f32 %v736_v51  ;;  %1866 = vmatmul.mubr.msk.f32.gmra.mxu0 %vm84_vm0, %v1001_v56  ;;  %v931_v6 = vmul.f32 %v2970_v58, %v860_v10 }
 0x14c   :  { %v1992_v17 = vpop.eup %1991  ;;  %v768_v9 = vadd.f32 1e-06, %v704_v30  ;;  %v737_v2 = vadd.f32 1e-06, %v673_v14  ;;  %v1033_v44 = vadd.f32 %v2976_v42, %v962_v18  ;;  %v892_v55 = vmul.f32 %v1990_v3, %v2645_v21 }
 0x14d   :  { %v601_v7 = vpop.xlane.xlu1 %600  ;;  %v508_v0 = vpop.xlane.xlu0 %507  ;;  %v1002_v34 = vadd.f32 %v2976_v42, %v931_v6  ;;  %v861_v60 = vmul.f32 %v1992_v17, %v2654_v62 }
 0x14e   :  { %2005 = vrsqrt.f32 %v768_v9  ;;  %v705_v48 = vmul.f32 0.03125, %v601_v7  ;;  %v674_v52 = vmul.f32 0.03125, %v508_v0  ;;  %1914 = vmatmul.mubr.msk.f32.gmra.mxu1 %vm84_vm0, %v1033_v44  ;;  %v963_v63 = vmul.f32 %v2970_v58, %v892_v55 }
 0x14f   :  { %v1994_v50 = vpop.eup %1993  ;;  %2007 = vrsqrt.f32 %v737_v2  ;;  %1868 = vmatprep.mubr.msk.f32.mxu0 %vm84_vm0, %v1002_v34  ;;  %v932_v36 = vmul.f32 %v2970_v58, %v861_v60 }
 0x150   :  { %v1996_v21 = vpop.eup %1995  ;;  %v769_v5 = vadd.f32 1e-06, %v705_v48  ;;  %v738_v46 = vadd.f32 1e-06, %v674_v52  ;;  %v1034_v13 = vadd.f32 %v2976_v42, %v963_v63  ;;  %v893_v62 = vmul.f32 %v1994_v50, %v2657_v25  ;;  %v3572_v63 = vld [vmem:[#allocation16_spill] sm:$0xff] }
 0x151   :  { %v604_v26 = vpop.xlane.xlu1 %603  ;;  %v511_v51 = vpop.xlane.xlu0 %510  ;;  %v1003_v15 = vadd.f32 %v2976_v42, %v932_v36  ;;  %v862_v22 = vmul.f32 %v1996_v21, %v2666_v31 }
 0x152   :  { %2009 = vrsqrt.f32 %v769_v5  ;;  %v706_v59 = vmul.f32 0.03125, %v604_v26  ;;  %v675_v39 = vmul.f32 0.03125, %v511_v51  ;;  %1916 = vmatprep.mubr.msk.f32.mxu1 %vm84_vm0, %v1034_v13  ;;  %v964_v56 = vmul.f32 %v2970_v58, %v893_v62 }
 0x153   :  { %v1998_v10 = vpop.eup %1997  ;;  %2011 = vrsqrt.f32 %v738_v46  ;;  %1869 = vmatmul.mubr.msk.f32.gmra.mxu0 %vm84_vm0, %v1003_v15  ;;  %v933_v30 = vmul.f32 %v2970_v58, %v862_v22 }
 0x154   :  { %v2000_v25 = vpop.eup %1999  ;;  %v770_v14 = vadd.f32 1e-06, %v706_v59  ;;  %v739_v18 = vadd.f32 1e-06, %v675_v39  ;;  %v1035_v3 = vadd.f32 %v2976_v42, %v964_v56  ;;  %v894_v31 = vmul.f32 %v1998_v10, %v2669_v29 }
 0x155   :  { %v607_v6 = vpop.xlane.xlu1 %606  ;;  %v514_v17 = vpop.xlane.xlu0 %513  ;;  %v1004_v9 = vadd.f32 %v2976_v42, %v933_v30  ;;  %v863_v2 = vmul.f32 %v2000_v25, %v2681_v8 }
 0x156   :  { %2013 = vrsqrt.f32 %v770_v14  ;;  %v707_v44 = vmul.f32 0.03125, %v607_v6  ;;  %v676_v55 = vmul.f32 0.03125, %v514_v17  ;;  %1917 = vmatmul.mubr.msk.f32.gmra.mxu1 %vm84_vm0, %v1035_v3  ;;  %v965_v7 = vmul.f32 %v2970_v58, %v894_v31 }
 0x157   :  { %v2002_v0 = vpop.eup %2001  ;;  %2015 = vrsqrt.f32 %v739_v18  ;;  %1871 = vmatprep.mubr.msk.f32.mxu0 %vm84_vm0, %v1004_v9  ;;  %v934_v34 = vmul.f32 %v2970_v58, %v863_v2 }
 0x158   :  { %v2004_v29 = vpop.eup %2003  ;;  %v771_v60 = vadd.f32 1e-06, %v707_v44  ;;  %v740_v48 = vadd.f32 1e-06, %v676_v55  ;;  %v1036_v52 = vadd.f32 %v2976_v42, %v965_v7  ;;  %v895_v8 = vmul.f32 %v2002_v0, %v3572_v63 }
 0x159   :  { %v610_v50 = vpop.xlane.xlu1 %609  ;;  %v517_v36 = vpop.xlane.xlu0 %516  ;;  %v1005_v21 = vadd.f32 %v2976_v42, %v934_v34  ;;  %v864_v5 = vmul.f32 %v2004_v29, %v2699_v1 }
 0x15a   :  { %2017 = vrsqrt.f32 %v771_v60  ;;  %v708_v46 = vmul.f32 0.03125, %v610_v50  ;;  %v677_v13 = vmul.f32 0.03125, %v517_v36  ;;  %1919 = vmatprep.mubr.msk.f32.mxu1 %vm84_vm0, %v1036_v52  ;;  %v966_v62 = vmul.f32 %v2970_v58, %v895_v8 }
 0x15b   :  { %v2006_v26 = vpop.eup %2005  ;;  %2019 = vrsqrt.f32 %v740_v48  ;;  %1872 = vmatmul.mubr.msk.f32.gmra.mxu0 %vm84_vm0, %v1005_v21  ;;  %v935_v51 = vmul.f32 %v2970_v58, %v864_v5 }
 0x15c   :  { %v2008_v15 = vpop.eup %2007  ;;  %v772_v22 = vadd.f32 1e-06, %v708_v46  ;;  %v741_v59 = vadd.f32 1e-06, %v677_v13  ;;  %v1037_v39 = vadd.f32 %v2976_v42, %v966_v62  ;;  %v896_v1 = vmul.f32 %v2006_v26, %v2702_v54 }
 0x15d   :  { %v613_v56 = vpop.xlane.xlu1 %612  ;;  %v520_v10 = vpop.xlane.xlu0 %519  ;;  %v1006_v30 = vadd.f32 %v2976_v42, %v935_v51  ;;  %v865_v25 = vmul.f32 %v2008_v15, %v2714_v16 }
 0x15e   :  { %2021 = vrsqrt.f32 %v772_v22  ;;  %v709_v14 = vmul.f32 0.03125, %v613_v56  ;;  %v678_v18 = vmul.f32 0.03125, %v520_v10  ;;  %1920 = vmatmul.mubr.msk.f32.gmra.mxu1 %vm84_vm0, %v1037_v39  ;;  %v967_v3 = vmul.f32 %v2970_v58, %v896_v1 }
 0x15f   :  { %v2010_v31 = vpop.eup %2009  ;;  %2023 = vrsqrt.f32 %v741_v59  ;;  %1874 = vmatprep.mubr.msk.f32.mxu0 %vm84_vm0, %v1006_v30  ;;  %v936_v6 = vmul.f32 %v2970_v58, %v865_v25 }
 0x160   :  { %v2012_v54 = vpop.eup %2011  ;;  %v773_v17 = vadd.f32 1e-06, %v709_v14  ;;  %v742_v9 = vadd.f32 1e-06, %v678_v18  ;;  %v1038_v2 = vadd.f32 %v2976_v42, %v967_v3  ;;  %v897_v16 = vmul.f32 %v2010_v31, %v2717_v23 }
 0x161   :  { %v616_v44 = vpop.xlane.xlu1 %615  ;;  %v523_v55 = vpop.xlane.xlu0 %522  ;;  %v1007_v7 = vadd.f32 %v2976_v42, %v936_v6  ;;  %v866_v0 = vmul.f32 %v2012_v54, %v2726_v45 }
 0x162   :  { %2025 = vrsqrt.f32 %v773_v17  ;;  %v710_v34 = vmul.f32 0.03125, %v616_v44  ;;  %v679_v29 = vmul.f32 0.03125, %v523_v55  ;;  %1922 = vmatprep.mubr.msk.f32.mxu1 %vm84_vm0, %v1038_v2  ;;  %v968_v60 = vmul.f32 %v2970_v58, %v897_v16 }
 0x163   :  { %v2014_v48 = vpop.eup %2013  ;;  %2027 = vrsqrt.f32 %v742_v9  ;;  %1875 = vmatmul.mubr.msk.f32.gmra.mxu0 %vm84_vm0, %v1007_v7  ;;  %v937_v52 = vmul.f32 %v2970_v58, %v866_v0 }
 0x164   :  { %v2016_v23 = vpop.eup %2015  ;;  %v774_v63 = vadd.f32 1e-06, %v710_v34  ;;  %v743_v8 = vadd.f32 1e-06, %v679_v29  ;;  %v1039_v50 = vadd.f32 %v2976_v42, %v968_v60  ;;  %v898_v45 = vmul.f32 %v2014_v48, %v2729_v20 }
 0x165   :  { %v619_v36 = vpop.xlane.xlu1 %618  ;;  %v526_v21 = vpop.xlane.xlu0 %525  ;;  %v1008_v5 = vadd.f32 %v2976_v42, %v937_v52  ;;  %v867_v46 = vmul.f32 %v2016_v23, %v2738_v28 }
 0x166   :  { %2029 = vrsqrt.f32 %v774_v63  ;;  %v711_v13 = vmul.f32 0.03125, %v619_v36  ;;  %v680_v62 = vmul.f32 0.03125, %v526_v21  ;;  %1923 = vmatmul.mubr.msk.f32.gmra.mxu1 %vm84_vm0, %v1039_v50  ;;  %v969_v26 = vmul.f32 %v2970_v58, %v898_v45 }
 0x167   :  { %v2018_v51 = vpop.eup %2017  ;;  %2031 = vrsqrt.f32 %v743_v8  ;;  %1877 = vmatprep.mubr.msk.f32.mxu0 %vm84_vm0, %v1008_v5  ;;  %v938_v15 = vmul.f32 %v2970_v58, %v867_v46 }
 0x168   :  { %v2020_v20 = vpop.eup %2019  ;;  %v775_v22 = vadd.f32 1e-06, %v711_v13  ;;  %v744_v59 = vadd.f32 1e-06, %v680_v62  ;;  %v1040_v39 = vadd.f32 %v2976_v42, %v969_v26  ;;  %v899_v28 = vmul.f32 %v2018_v51, %v2741_v49 }
 0x169   :  { %v622_v1 = vpop.xlane.xlu1 %621  ;;  %v529_v56 = vpop.xlane.xlu0 %528  ;;  %v1009_v10 = vadd.f32 %v2976_v42, %v938_v15  ;;  %v868_v30 = vmul.f32 %v2020_v20, %v2750_v41 }
 0x16a   :  { %2033 = vrsqrt.f32 %v775_v22  ;;  %v712_v25 = vmul.f32 0.03125, %v622_v1  ;;  %v681_v14 = vmul.f32 0.03125, %v529_v56  ;;  %1925 = vmatprep.mubr.msk.f32.mxu1 %vm84_vm0, %v1040_v39  ;;  %v970_v18 = vmul.f32 %v2970_v58, %v899_v28 }
 0x16b   :  { %v2022_v3 = vpop.eup %2021  ;;  %2035 = vrsqrt.f32 %v744_v59  ;;  %1878 = vmatmul.mubr.msk.f32.gmra.mxu0 %vm84_vm0, %v1009_v10  ;;  %v939_v31 = vmul.f32 %v2970_v58, %v868_v30 }
 0x16c   :  { %v2024_v49 = vpop.eup %2023  ;;  %v776_v6 = vadd.f32 1e-06, %v712_v25  ;;  %v745_v54 = vadd.f32 1e-06, %v681_v14  ;;  %v1041_v17 = vadd.f32 %v2976_v42, %v970_v18  ;;  %v900_v41 = vmul.f32 %v2022_v3, %v2753_v53 }
 0x16d   :  { %v625_v9 = vpop.xlane.xlu1 %624  ;;  %v532_v2 = vpop.xlane.xlu0 %531  ;;  %v1010_v16 = vadd.f32 %v2976_v42, %v939_v31  ;;  %v869_v44 = vmul.f32 %v2024_v49, %v2762_v33 }
 0x16e   :  { %2037 = vrsqrt.f32 %v776_v6  ;;  %v713_v55 = vmul.f32 0.03125, %v625_v9  ;;  %v682_v7 = vmul.f32 0.03125, %v532_v2  ;;  %1926 = vmatmul.mubr.msk.f32.gmra.mxu1 %vm84_vm0, %v1041_v17  ;;  %v971_v0 = vmul.f32 %v2970_v58, %v900_v41 }
 0x16f   :  { %v2026_v34 = vpop.eup %2025  ;;  %2039 = vrsqrt.f32 %v745_v54  ;;  %1880 = vmatprep.mubr.msk.f32.mxu0 %vm84_vm0, %v1010_v16  ;;  %v940_v29 = vmul.f32 %v2970_v58, %v869_v44 }
 0x170   :  { %v2028_v53 = vpop.eup %2027  ;;  %v777_v60 = vadd.f32 1e-06, %v713_v55  ;;  %v746_v48 = vadd.f32 1e-06, %v682_v7  ;;  %v1042_v52 = vadd.f32 %v2976_v42, %v971_v0  ;;  %v901_v33 = vmul.f32 %v2026_v34, %v2765_v57 }
 0x171   :  { %v628_v23 = vpop.xlane.xlu1 %627  ;;  %v535_v63 = vpop.xlane.xlu0 %534  ;;  %v1011_v8 = vadd.f32 %v2976_v42, %v940_v29  ;;  %v870_v50 = vmul.f32 %v2028_v53, %v2774_v37 }
 0x172   :  { %2041 = vrsqrt.f32 %v777_v60  ;;  %v714_v45 = vmul.f32 0.03125, %v628_v23  ;;  %v683_v36 = vmul.f32 0.03125, %v535_v63  ;;  %1928 = vmatprep.mubr.msk.f32.mxu1 %vm84_vm0, %v1042_v52  ;;  %v972_v21 = vmul.f32 %v2970_v58, %v901_v33 }
 0x173   :  { %v2030_v5 = vpop.eup %2029  ;;  %2043 = vrsqrt.f32 %v746_v48  ;;  %1881 = vmatmul.mubr.msk.f32.gmra.mxu0 %vm84_vm0, %v1011_v8  ;;  %v941_v46 = vmul.f32 %v2970_v58, %v870_v50 }
 0x174   :  { %v2032_v57 = vpop.eup %2031  ;;  %v778_v13 = vadd.f32 1e-06, %v714_v45  ;;  %v747_v62 = vadd.f32 1e-06, %v683_v36  ;;  %v1043_v26 = vadd.f32 %v2976_v42, %v972_v21  ;;  %v902_v37 = vmul.f32 %v2030_v5, %v2777_v61 }
 0x175   :  { %v631_v51 = vpop.xlane.xlu1 %630  ;;  %v538_v15 = vpop.xlane.xlu0 %537  ;;  %v1012_v20 = vadd.f32 %v2976_v42, %v941_v46  ;;  %v871_v22 = vmul.f32 %v2032_v57, %v2786_v38 }
 0x176   :  { %2045 = vrsqrt.f32 %v778_v13  ;;  %v715_v59 = vmul.f32 0.03125, %v631_v51  ;;  %v684_v39 = vmul.f32 0.03125, %v538_v15  ;;  %1929 = vmatmul.mubr.msk.f32.gmra.mxu1 %vm84_vm0, %v1043_v26  ;;  %v973_v28 = vmul.f32 %v2970_v58, %v902_v37 }
 0x177   :  { %v2034_v1 = vpop.eup %2033  ;;  %2047 = vrsqrt.f32 %v747_v62  ;;  %1883 = vmatprep.mubr.msk.f32.mxu0 %vm84_vm0, %v1012_v20  ;;  %v942_v56 = vmul.f32 %v2970_v58, %v871_v22 }
 0x178   :  { %v2036_v61 = vpop.eup %2035  ;;  %v779_v10 = vadd.f32 1e-06, %v715_v59  ;;  %v748_v30 = vadd.f32 1e-06, %v684_v39  ;;  %v1044_v25 = vadd.f32 %v2976_v42, %v973_v28  ;;  %v903_v38 = vmul.f32 %v2034_v1, %v2789_v4 }
 0x179   :  { %v634_v14 = vpop.xlane.xlu1 %633  ;;  %v541_v18 = vpop.xlane.xlu0 %540  ;;  %v1013_v3 = vadd.f32 %v2976_v42, %v942_v56  ;;  %v872_v31 = vmul.f32 %v2036_v61, %v2798_v32 }
 0x17a   :  { %2049 = vrsqrt.f32 %v779_v10  ;;  %v716_v49 = vmul.f32 0.03125, %v634_v14  ;;  %v685_v6 = vmul.f32 0.03125, %v541_v18  ;;  %1931 = vmatprep.mubr.msk.f32.mxu1 %vm84_vm0, %v1044_v25  ;;  %v974_v54 = vmul.f32 %v2970_v58, %v903_v38 }
 0x17b   :  { %v2038_v17 = vpop.eup %2037  ;;  %2051 = vrsqrt.f32 %v748_v30  ;;  %1884 = vmatmul.mubr.msk.f32.gmra.mxu0 %vm84_vm0, %v1013_v3  ;;  %v943_v41 = vmul.f32 %v2970_v58, %v872_v31 }
 0x17c   :  { %v2040_v4 = vpop.eup %2039  ;;  %v780_v9 = vadd.f32 1e-06, %v716_v49  ;;  %v749_v2 = vadd.f32 1e-06, %v685_v6  ;;  %v1045_v16 = vadd.f32 %v2976_v42, %v974_v54  ;;  %v904_v32 = vmul.f32 %v2038_v17, %v2801_v11 }
 0x17d   :  { %v637_v44 = vpop.xlane.xlu1 %636  ;;  %v544_v55 = vpop.xlane.xlu0 %543  ;;  %v1014_v7 = vadd.f32 %v2976_v42, %v943_v41  ;;  %v873_v0 = vmul.f32 %v2040_v4, %v2810_v47 }
 0x17e   :  { %2053 = vrsqrt.f32 %v780_v9  ;;  %v717_v34 = vmul.f32 0.03125, %v637_v44  ;;  %v686_v29 = vmul.f32 0.03125, %v544_v55  ;;  %1932 = vmatmul.mubr.msk.f32.gmra.mxu1 %vm84_vm0, %v1045_v16  ;;  %v975_v53 = vmul.f32 %v2970_v58, %v904_v32  ;;  %v3573_v16 = vld [vmem:[#allocation17_spill] sm:$0xff] }
 0x17f   :  { %v2042_v60 = vpop.eup %2041  ;;  %2055 = vrsqrt.f32 %v749_v2  ;;  %1886 = vmatprep.mubr.msk.f32.mxu0 %vm84_vm0, %v1014_v7  ;;  %v944_v48 = vmul.f32 %v2970_v58, %v873_v0 }
 0x180   :  { %v2044_v11 = vpop.eup %2043  ;;  %v781_v52 = vadd.f32 1e-06, %v717_v34  ;;  %v750_v33 = vadd.f32 1e-06, %v686_v29  ;;  %v1046_v23 = vadd.f32 %v2976_v42, %v975_v53  ;;  %v905_v47 = vmul.f32 %v2042_v60, %v2813_v19 }
 0x181   :  { %v640_v63 = vpop.xlane.xlu1 %639  ;;  %v547_v8 = vpop.xlane.xlu0 %546  ;;  %v1015_v50 = vadd.f32 %v2976_v42, %v944_v48  ;;  %v874_v45 = vmul.f32 %v2044_v11, %v2822_v24  ;;  %v3574_v48 = vld [vmem:[#allocation18_spill] sm:$0xff] }
 0x182   :  { %2057 = vrsqrt.f32 %v781_v52  ;;  %v718_v36 = vmul.f32 0.03125, %v640_v63  ;;  %v687_v21 = vmul.f32 0.03125, %v547_v8  ;;  %1934 = vmatprep.mubr.msk.f32.mxu1 %vm84_vm0, %v1046_v23  ;;  %v976_v5 = vmul.f32 %v2970_v58, %v905_v47  ;;  %v3575_v47 = vld [vmem:[#allocation19_spill] sm:$0xff] }
 0x183   :  { %v2046_v46 = vpop.eup %2045  ;;  %2059 = vrsqrt.f32 %v750_v33  ;;  %1887 = vmatmul.mubr.msk.f32.gmra.mxu0 %vm84_vm0, %v1015_v50  ;;  %v945_v57 = vmul.f32 %v2970_v58, %v874_v45 }
 0x184   :  { %v2048_v19 = vpop.eup %2047  ;;  %v782_v13 = vadd.f32 1e-06, %v718_v36  ;;  %v751_v62 = vadd.f32 1e-06, %v687_v21  ;;  %v1047_v26 = vadd.f32 %v2976_v42, %v976_v5  ;;  %v906_v24 = vmul.f32 %v2046_v46, %v2825_v27 }
 0x185   :  { %v643_v37 = vpop.xlane.xlu1 %642  ;;  %v550_v51 = vpop.xlane.xlu0 %549  ;;  %v1016_v15 = vadd.f32 %v2976_v42, %v945_v57  ;;  %v875_v20 = vmul.f32 %v2048_v19, %v2834_v12 }
 0x186   :  { %2061 = vrsqrt.f32 %v782_v13  ;;  %v719_v22 = vmul.f32 0.03125, %v643_v37  ;;  %v688_v59 = vmul.f32 0.03125, %v550_v51  ;;  %1935 = vmatmul.mubr.msk.f32.gmra.mxu1 %vm84_vm0, %v1047_v26  ;;  %v977_v39 = vmul.f32 %v2970_v58, %v906_v24  ;;  %v3576_v13 = vld [vmem:[#allocation20_spill] sm:$0xff]  ;;  %v3577_v51 = vld [vmem:[#allocation2_spill] sm:$0xff] }
 0x187   :  { %v2050_v28 = vpop.eup %2049  ;;  %2063 = vrsqrt.f32 %v751_v62  ;;  %1889 = vmatprep.mubr.msk.f32.mxu0 %vm84_vm0, %v1016_v15  ;;  %v946_v1 = vmul.f32 %v2970_v58, %v875_v20 }
 0x188   :  { %v2052_v27 = vpop.eup %2051  ;;  %v783_v56 = vadd.f32 1e-06, %v719_v22  ;;  %v752_v61 = vadd.f32 1e-06, %v688_v59  ;;  %v1048_v10 = vadd.f32 %v2976_v42, %v977_v39  ;;  %v907_v12 = vmul.f32 %v2050_v28, %v2837_v35 }
 0x189   :  { %v646_v30 = vpop.xlane.xlu1 %645  ;;  %v553_v25 = vpop.xlane.xlu0 %552  ;;  %v1017_v38 = vadd.f32 %v2976_v42, %v946_v1  ;;  %v876_v14 = vmul.f32 %v2052_v27, %v2846_v40 }
 0x18a   :  { %2065 = vrsqrt.f32 %v783_v56  ;;  %v720_v18 = vmul.f32 0.03125, %v646_v30  ;;  %v689_v3 = vmul.f32 0.03125, %v553_v25  ;;  %1937 = vmatprep.mubr.msk.f32.mxu1 %vm84_vm0, %v1048_v10  ;;  %v978_v31 = vmul.f32 %v2970_v58, %v907_v12  ;;  %v3578_v10 = vld [vmem:[#allocation3_spill] sm:$0xff] }
 0x18b   :  { %v2054_v49 = vpop.eup %2053  ;;  %2067 = vrsqrt.f32 %v752_v61  ;;  %1890 = vmatmul.mubr.msk.f32.gmra.mxu0 %vm84_vm0, %v1017_v38  ;;  %v947_v6 = vmul.f32 %v2970_v58, %v876_v14  ;;  %v3579_v14 = vld [vmem:[#allocation4_spill] sm:$0xff] }
 0x18c   :  { %v2056_v35 = vpop.eup %2055  ;;  %v784_v54 = vadd.f32 1e-06, %v720_v18  ;;  %v753_v17 = vadd.f32 1e-06, %v689_v3  ;;  %v1049_v41 = vadd.f32 %v2976_v42, %v978_v31  ;;  %v908_v40 = vmul.f32 %v2054_v49, %v2849_v43 }
 0x18d   :  { %v649_v4 = vpop.xlane.xlu1 %648  ;;  %v556_v9 = vpop.xlane.xlu0 %555  ;;  %v1018_v2 = vadd.f32 %v2976_v42, %v947_v6  ;;  %v877_v32 = vmul.f32 %v2056_v35, %v3573_v16 }
 0x18e   :  { %2069 = vrsqrt.f32 %v784_v54  ;;  %v721_v44 = vmul.f32 0.03125, %v649_v4  ;;  %v690_v55 = vmul.f32 0.03125, %v556_v9  ;;  %1938 = vmatmul.mubr.msk.f32.gmra.mxu1 %vm84_vm0, %v1049_v41  ;;  %v979_v7 = vmul.f32 %v2970_v58, %v908_v40  ;;  %v3580_v4 = vld [vmem:[#allocation5_spill] sm:$0xff] }
 0x18f   :  { %v2058_v0 = vpop.eup %2057  ;;  %2071 = vrsqrt.f32 %v753_v17  ;;  %1892 = vmatprep.mubr.msk.f32.mxu0 %vm84_vm0, %v1018_v2  ;;  %v948_v34 = vmul.f32 %v2970_v58, %v877_v32  ;;  %v3581_v32 = vld [vmem:[#allocation6_spill] sm:$0xff] }
 0x190   :  { %v2060_v43 = vpop.eup %2059  ;;  %v785_v29 = vadd.f32 1e-06, %v721_v44  ;;  %v754_v53 = vadd.f32 1e-06, %v690_v55  ;;  %v1050_v60 = vadd.f32 %v2976_v42, %v979_v7  ;;  %v909_v11 = vmul.f32 %v2058_v0, %v3574_v48 }
 0x191   :  { %v652_v52 = vpop.xlane.xlu1 %651  ;;  %v559_v33 = vpop.xlane.xlu0 %558  ;;  %v1019_v23 = vadd.f32 %v2976_v42, %v948_v34  ;;  %v878_v63 = vmul.f32 %v2060_v43, %v3575_v47 }
 0x192   :  { %2073 = vrsqrt.f32 %v785_v29  ;;  %v722_v8 = vmul.f32 0.03125, %v652_v52  ;;  %v691_v50 = vmul.f32 0.03125, %v559_v33  ;;  %1940 = vmatprep.mubr.msk.f32.mxu1 %vm84_vm0, %v1050_v60  ;;  %v980_v45 = vmul.f32 %v2970_v58, %v909_v11  ;;  %v3582_v60 = vld [vmem:[#allocation7_spill] sm:$0xff]  ;;  %v3583_v52 = vld [vmem:[#allocation8_spill] sm:$0xff] }
 0x193   :  { %v2062_v36 = vpop.eup %2061  ;;  %2075 = vrsqrt.f32 %v754_v53  ;;  %1893 = vmatmul.mubr.msk.f32.gmra.mxu0 %vm84_vm0, %v1019_v23  ;;  %v949_v21 = vmul.f32 %v2970_v58, %v878_v63 }
 0x194   :  { %v2064_v5 = vpop.eup %2063  ;;  %v786_v46 = vadd.f32 1e-06, %v722_v8  ;;  %v755_v57 = vadd.f32 1e-06, %v691_v50  ;;  %v1051_v19 = vadd.f32 %v2976_v42, %v980_v45  ;;  %v910_v62 = vmul.f32 %v2062_v36, %v3576_v13  ;;  %v3584_v45 = vld [vmem:[#allocation9_spill] sm:$0xff] }
 0x195   :  { %v655_v26 = vpop.xlane.xlu1 %654  ;;  %v562_v24 = vpop.xlane.xlu0 %561  ;;  %v1020_v37 = vadd.f32 %v2976_v42, %v949_v21  ;;  %v879_v15 = vmul.f32 %v2064_v5, %v3577_v51  ;;  %v3585_v5 = vld [vmem:[#allocation10_spill] sm:$0xff] }
 0x196   :  { %2077 = vrsqrt.f32 %v786_v46  ;;  %v723_v20 = vmul.f32 0.03125, %v655_v26  ;;  %v692_v22 = vmul.f32 0.03125, %v562_v24  ;;  %1941 = vmatmul.mubr.msk.f32.gmra.mxu1 %vm84_vm0, %v1051_v19  ;;  %v981_v59 = vmul.f32 %v2970_v58, %v910_v62  ;;  %v2092_v26 = vld [vmem:[%s3489_s2] ss:$0 sm:$0xff] }
 0x197   :  { %v2066_v39 = vpop.eup %2065  ;;  %2079 = vrsqrt.f32 %v755_v57  ;;  %1895 = vmatprep.mubr.msk.f32.mxu0 %vm84_vm0, %v1020_v37  ;;  %v950_v28 = vmul.f32 %v2970_v58, %v879_v15  ;;  %v2091_v57 = vld [vmem:[%s3488_s1] ss:$0 sm:$0xff]  ;;  %v3587_v15 = vld [vmem:[#allocation12_spill] sm:$0xff] }
 0x198   :  { %v2068_v1 = vpop.eup %2067  ;;  %v787_v27 = vadd.f32 1e-06, %v723_v20  ;;  %v756_v56 = vadd.f32 1e-06, %v692_v22  ;;  %v1052_v61 = vadd.f32 %v2976_v42, %v981_v59  ;;  %v911_v12 = vmul.f32 %v2066_v39, %v3578_v10  ;;  %v3589_v10 = vld [vmem:[#allocation14_spill] sm:$0xff] }
 0x199   :  { %v658_v30 = vpop.xlane.xlu1 %657  ;;  %v565_v25 = vpop.xlane.xlu0 %564  ;;  %v1021_v38 = vadd.f32 %v2976_v42, %v950_v28  ;;  %v880_v18 = vmul.f32 %v2068_v1, %v3579_v14 }
 0x19a   :  { %2081 = vrsqrt.f32 %v787_v27  ;;  %v724_v3 = vmul.f32 0.03125, %v658_v30  ;;  %v693_v31 = vmul.f32 0.03125, %v565_v25  ;;  %1943 = vmatprep.mubr.msk.f32.mxu1 %vm84_vm0, %v1052_v61  ;;  %v982_v49 = vmul.f32 %v2970_v58, %v911_v12  ;;  %v3588_v27 = vld [vmem:[#allocation13_spill] sm:$0xff] }
 0x19b   :  { %v2070_v6 = vpop.eup %2069  ;;  %2083 = vrsqrt.f32 %v756_v56  ;;  %1896 = vmatmul.mubr.msk.f32.gmra.mxu0 %vm84_vm0, %v1021_v38  ;;  %v951_v35 = vmul.f32 %v2970_v58, %v880_v18  ;;  %v3590_v18 = vld [vmem:[#allocation21_spill] sm:$0xff] }
 0x19c   :  { %v2072_v54 = vpop.eup %2071  ;;  %v788_v17 = vadd.f32 1e-06, %v724_v3  ;;  %v757_v41 = vadd.f32 1e-06, %v693_v31  ;;  %v1053_v40 = vadd.f32 %v2976_v42, %v982_v49  ;;  %v912_v9 = vmul.f32 %v2070_v6, %v3580_v4 }
 0x19d   :  { %v661_v2 = vpop.xlane.xlu1 %660  ;;  %v1022_v16 = vadd.f32 %v2976_v42, %v951_v35  ;;  %v881_v44 = vmul.f32 %v2072_v54, %v3581_v32  ;;  %v3228_v35 = vld [vmem:[%s3490_s4] ss:$0 sm:$0xff] }
 0x19e   :  { %2085 = vrsqrt.f32 %v788_v17  ;;  %v725_v55 = vmul.f32 0.03125, %v661_v2  ;;  %1944 = vmatmul.mubr.msk.f32.gmra.mxu1 %vm84_vm0, %v1053_v40  ;;  %v983_v7 = vmul.f32 %v2970_v58, %v912_v9 }
 0x19f   :  { %v2074_v0 = vpop.eup %2073  ;;  %2087 = vrsqrt.f32 %v757_v41  ;;  %1898 = vmatprep.mubr.msk.f32.mxu0 %vm84_vm0, %v1022_v16  ;;  %v952_v34 = vmul.f32 %v2970_v58, %v881_v44 }
 0x1a0   :  { %v2076_v43 = vpop.eup %2075  ;;  %v789_v29 = vadd.f32 1e-06, %v725_v55  ;;  %v1054_v53 = vadd.f32 %v2976_v42, %v983_v7  ;;  %v913_v48 = vmul.f32 %v2074_v0, %v3582_v60 }
 0x1a1   :  { %v1023_v11 = vadd.f32 %v2976_v42, %v952_v34  ;;  %v882_v33 = vmul.f32 %v2076_v43, %v3583_v52 }
 0x1a2   :  { %2089 = vrsqrt.f32 %v789_v29  ;;  %1946 = vmatprep.mubr.msk.f32.mxu1 %vm84_vm0, %v1054_v53  ;;  %v984_v23 = vmul.f32 %v2970_v58, %v913_v48 }
 0x1a3   :  { %v2078_v47 = vpop.eup %2077  ;;  %1899 = vmatmul.mubr.msk.f32.gmra.mxu0 %vm84_vm0, %v1023_v11  ;;  %v953_v63 = vmul.f32 %v2970_v58, %v882_v33 }
 0x1a4   :  { %v2080_v8 = vpop.eup %2079  ;;  %v1055_v50 = vadd.f32 %v2976_v42, %v984_v23  ;;  %v914_v36 = vmul.f32 %v2078_v47, %v3584_v45 }
 0x1a5   :  { %v1024_v21 = vadd.f32 %v2976_v42, %v953_v63  ;;  %v883_v46 = vmul.f32 %v2080_v8, %v3585_v5  ;;  %v3586_v42 = vld [vmem:[#allocation11_spill] sm:$0xff] }
 0x1a6   :  { %1947 = vmatmul.mubr.msk.f32.gmra.mxu1 %vm84_vm0, %v1055_v50  ;;  %v985_v19 = vmul.f32 %v2091_v57, %v914_v36 }
 0x1a7   :  { %v2082_v13 = vpop.eup %2081  ;;  %1901 = vmatprep.mubr.msk.f32.mxu0 %vm84_vm0, %v1024_v21  ;;  %v954_v58 = vmul.f32 %v2091_v57, %v883_v46 }
 0x1a8   :  { %v2084_v62 = vpop.eup %2083  ;;  %v1056_v24 = vadd.f32 %v2092_v26, %v985_v19  ;;  %v915_v37 = vmul.f32 %v2082_v13, %v3586_v42 }
 0x1a9   :  { %v1025_v51 = vadd.f32 %v2092_v26, %v954_v58  ;;  %v884_v20 = vmul.f32 %v2084_v62, %v3587_v15 }
 0x1aa   :  { %1949 = vmatprep.mubr.msk.f32.mxu1 %vm84_vm0, %v1056_v24  ;;  %v986_v22 = vmul.f32 %v2091_v57, %v915_v37 }
 0x1ab   :  { %v2086_v59 = vpop.eup %2085  ;;  %1902 = vmatmul.mubr.msk.f32.gmra.mxu0 %vm84_vm0, %v1025_v51  ;;  %v955_v39 = vmul.f32 %v2091_v57, %v884_v20 }
 0x1ac   :  { %v2088_v28 = vpop.eup %2087  ;;  %v1057_v1 = vadd.f32 %v2092_v26, %v986_v22  ;;  %v916_v56 = vmul.f32 %v2086_v59, %v3588_v27 }
 0x1ad   :  { %v1026_v61 = vadd.f32 %v2092_v26, %v955_v39  ;;  %v885_v12 = vmul.f32 %v2088_v28, %v3589_v10 }
 0x1ae   :  { %1950 = vmatmul.mubr.msk.f32.gmra.mxu1 %vm84_vm0, %v1057_v1  ;;  %v987_v30 = vmul.f32 %v2091_v57, %v916_v56 }
 0x1af   :  { %v2090_v25 = vpop.eup %2089  ;;  %1904 = vmatprep.mubr.msk.f32.mxu0 %vm84_vm0, %v1026_v61  ;;  %v956_v38 = vmul.f32 %v2091_v57, %v885_v12 }
 0x1b0   :  { %v1058_v14 = vadd.f32 %v2092_v26, %v987_v30  ;;  %v917_v3 = vmul.f32 %v2090_v25, %v3590_v18 }
 0x1b1   :  { %v1027_v31 = vadd.f32 %v2092_v26, %v956_v38 }
 0x1b2   :  { %1952 = vmatprep.mubr.msk.f32.mxu1 %vm84_vm0, %v1058_v14  ;;  %v988_v49 = vmul.f32 %v2091_v57, %v917_v3 }
 0x1b3   :  { %1905 = vmatmul.mubr.msk.f32.gmra.mxu0 %vm84_vm0, %v1027_v31 }
 0x1b4   :  { %v1059_v6 = vadd.f32 %v2092_v26, %v988_v49 }
 0x1b6   :  { %1953 = vmatmul.mubr.msk.f32.gmra.mxu1 %vm84_vm0, %v1059_v6 }
 0x1fb   :  { %v1861_v54 = vpop.f32.mrf.mxu0 }
 0x1fc   :  { %v1335_v17 = vadd.f32 %v1861_v54, %v3228_v35 }
 0x1fd   :  { %v1329_v41 = vpop.f32.mrf.mxu0 }
 0x1fe   :  { %1649 = vst [vmem:[%s3491_s5 + $0x8] sm:$0xff] %v1335_v17  ;;  %v1330_v40 = vadd.f32 %v3228_v35, %v1329_v41  ;;  %v1909_v4 = vpop.f32.mrf.mxu1 }
 0x1ff   :  { %v1495_v9 = vadd.f32 %v1909_v4, %v3228_v35 }
 0x200   :  { %1648 = vst [vmem:[%s3491_s5] sm:$0xff] %v1330_v40  ;;  %v1489_v2 = vpop.f32.mrf.mxu1 }
 0x201   :  { %1681 = vst [vmem:[%s3491_s5 + $0x108] sm:$0xff] %v1495_v9  ;;  %v1490_v16 = vadd.f32 %v3228_v35, %v1489_v2 }
 0x203   :  { %1680 = vst [vmem:[%s3491_s5 + $0x100] sm:$0xff] %v1490_v16  ;;  %v1864_v32 = vpop.f32.mrf.mxu0 }
 0x204   :  { %v1345_v44 = vadd.f32 %v1864_v32, %v3228_v35 }
 0x205   :  { %v1339_v55 = vpop.f32.mrf.mxu0 }
 0x206   :  { %1651 = vst [vmem:[%s3491_s5 + $0x18] sm:$0xff] %v1345_v44  ;;  %v1340_v7 = vadd.f32 %v3228_v35, %v1339_v55  ;;  %v1912_v0 = vpop.f32.mrf.mxu1 }
 0x207   :  { %v1505_v34 = vadd.f32 %v1912_v0, %v3228_v35 }
 0x208   :  { %1650 = vst [vmem:[%s3491_s5 + $0x10] sm:$0xff] %v1340_v7  ;;  %v1499_v43 = vpop.f32.mrf.mxu1 }
 0x209   :  { %1683 = vst [vmem:[%s3491_s5 + $0x118] sm:$0xff] %v1505_v34  ;;  %v1500_v29 = vadd.f32 %v3228_v35, %v1499_v43 }
 0x20b   :  { %1682 = vst [vmem:[%s3491_s5 + $0x110] sm:$0xff] %v1500_v29  ;;  %v1867_v53 = vpop.f32.mrf.mxu0 }
 0x20c   :  { %v1355_v60 = vadd.f32 %v1867_v53, %v3228_v35 }
 0x20d   :  { %v1349_v48 = vpop.f32.mrf.mxu0 }
 0x20e   :  { %1653 = vst [vmem:[%s3491_s5 + $0x28] sm:$0xff] %v1355_v60  ;;  %v1350_v11 = vadd.f32 %v3228_v35, %v1349_v48  ;;  %v1915_v52 = vpop.f32.mrf.mxu1 }
 0x20f   :  { %v1515_v33 = vadd.f32 %v1915_v52, %v3228_v35 }
 0x210   :  { %1652 = vst [vmem:[%s3491_s5 + $0x20] sm:$0xff] %v1350_v11  ;;  %v1509_v23 = vpop.f32.mrf.mxu1 }
 0x211   :  { %1685 = vst [vmem:[%s3491_s5 + $0x128] sm:$0xff] %v1515_v33  ;;  %v1510_v47 = vadd.f32 %v3228_v35, %v1509_v23 }
 0x213   :  { %1684 = vst [vmem:[%s3491_s5 + $0x120] sm:$0xff] %v1510_v47  ;;  %v1870_v63 = vpop.f32.mrf.mxu0 }
 0x214   :  { %v1365_v8 = vadd.f32 %v1870_v63, %v3228_v35 }
 0x215   :  { %v1359_v50 = vpop.f32.mrf.mxu0 }
 0x216   :  { %1655 = vst [vmem:[%s3491_s5 + $0x38] sm:$0xff] %v1365_v8  ;;  %v1360_v45 = vadd.f32 %v3228_v35, %v1359_v50  ;;  %v1918_v36 = vpop.f32.mrf.mxu1 }
 0x217   :  { %v1525_v21 = vadd.f32 %v1918_v36, %v3228_v35 }
 0x218   :  { %1654 = vst [vmem:[%s3491_s5 + $0x30] sm:$0xff] %v1360_v45  ;;  %v1519_v5 = vpop.f32.mrf.mxu1 }
 0x219   :  { %1687 = vst [vmem:[%s3491_s5 + $0x138] sm:$0xff] %v1525_v21  ;;  %v1520_v46 = vadd.f32 %v3228_v35, %v1519_v5 }
 0x21b   :  { %1686 = vst [vmem:[%s3491_s5 + $0x130] sm:$0xff] %v1520_v46  ;;  %v1873_v57 = vpop.f32.mrf.mxu0 }
 0x21c   :  { %v1375_v19 = vadd.f32 %v1873_v57, %v3228_v35 }
 0x21d   :  { %v1369_v13 = vpop.f32.mrf.mxu0 }
 0x21e   :  { %1657 = vst [vmem:[%s3491_s5 + $0x48] sm:$0xff] %v1375_v19  ;;  %v1370_v58 = vadd.f32 %v3228_v35, %v1369_v13  ;;  %v1921_v62 = vpop.f32.mrf.mxu1 }
 0x21f   :  { %v1535_v26 = vadd.f32 %v1921_v62, %v3228_v35 }
 0x220   :  { %1656 = vst [vmem:[%s3491_s5 + $0x40] sm:$0xff] %v1370_v58  ;;  %v1529_v24 = vpop.f32.mrf.mxu1 }
 0x221   :  { %1689 = vst [vmem:[%s3491_s5 + $0x148] sm:$0xff] %v1535_v26  ;;  %v1530_v42 = vadd.f32 %v3228_v35, %v1529_v24 }
 0x223   :  { %1688 = vst [vmem:[%s3491_s5 + $0x140] sm:$0xff] %v1530_v42  ;;  %v1876_v37 = vpop.f32.mrf.mxu0 }
 0x224   :  { %v1385_v51 = vadd.f32 %v1876_v37, %v3228_v35 }
 0x225   :  { %v1379_v15 = vpop.f32.mrf.mxu0 }
 0x226   :  { %1659 = vst [vmem:[%s3491_s5 + $0x58] sm:$0xff] %v1385_v51  ;;  %v1380_v20 = vadd.f32 %v3228_v35, %v1379_v15  ;;  %v1924_v22 = vpop.f32.mrf.mxu1 }
 0x227   :  { %v1545_v59 = vadd.f32 %v1924_v22, %v3228_v35 }
 0x228   :  { %1658 = vst [vmem:[%s3491_s5 + $0x50] sm:$0xff] %v1380_v20  ;;  %v1539_v39 = vpop.f32.mrf.mxu1 }
 0x229   :  { %1691 = vst [vmem:[%s3491_s5 + $0x158] sm:$0xff] %v1545_v59  ;;  %v1540_v28 = vadd.f32 %v3228_v35, %v1539_v39 }
 0x22b   :  { %1690 = vst [vmem:[%s3491_s5 + $0x150] sm:$0xff] %v1540_v28  ;;  %v1879_v1 = vpop.f32.mrf.mxu0 }
 0x22c   :  { %v1395_v27 = vadd.f32 %v1879_v1, %v3228_v35 }
 0x22d   :  { %v1389_v56 = vpop.f32.mrf.mxu0 }
 0x22e   :  { %1661 = vst [vmem:[%s3491_s5 + $0x68] sm:$0xff] %v1395_v27  ;;  %v1390_v61 = vadd.f32 %v3228_v35, %v1389_v56  ;;  %v1927_v10 = vpop.f32.mrf.mxu1 }
 0x22f   :  { %v1555_v12 = vadd.f32 %v1927_v10, %v3228_v35 }
 0x230   :  { %1660 = vst [vmem:[%s3491_s5 + $0x60] sm:$0xff] %v1390_v61  ;;  %v1549_v30 = vpop.f32.mrf.mxu1 }
 0x231   :  { %1693 = vst [vmem:[%s3491_s5 + $0x168] sm:$0xff] %v1555_v12  ;;  %v1550_v25 = vadd.f32 %v3228_v35, %v1549_v30 }
 0x233   :  { %1692 = vst [vmem:[%s3491_s5 + $0x160] sm:$0xff] %v1550_v25  ;;  %v1882_v38 = vpop.f32.mrf.mxu0 }
 0x234   :  { %v1405_v14 = vadd.f32 %v1882_v38, %v3228_v35 }
 0x235   :  { %v1399_v18 = vpop.f32.mrf.mxu0 }
 0x236   :  { %1663 = vst [vmem:[%s3491_s5 + $0x78] sm:$0xff] %v1405_v14  ;;  %v1400_v3 = vadd.f32 %v3228_v35, %v1399_v18  ;;  %v1930_v31 = vpop.f32.mrf.mxu1 }
 0x237   :  { %v1565_v49 = vadd.f32 %v1930_v31, %v3228_v35 }
 0x238   :  { %1662 = vst [vmem:[%s3491_s5 + $0x70] sm:$0xff] %v1400_v3  ;;  %v1559_v6 = vpop.f32.mrf.mxu1 }
 0x239   :  { %1695 = vst [vmem:[%s3491_s5 + $0x178] sm:$0xff] %v1565_v49  ;;  %v1560_v54 = vadd.f32 %v3228_v35, %v1559_v6 }
 0x23b   :  { %1694 = vst [vmem:[%s3491_s5 + $0x170] sm:$0xff] %v1560_v54  ;;  %v1885_v17 = vpop.f32.mrf.mxu0 }
 0x23c   :  { %v1415_v41 = vadd.f32 %v1885_v17, %v3228_v35 }
 0x23d   :  { %v1409_v40 = vpop.f32.mrf.mxu0 }
 0x23e   :  { %1665 = vst [vmem:[%s3491_s5 + $0x88] sm:$0xff] %v1415_v41  ;;  %v1410_v4 = vadd.f32 %v3228_v35, %v1409_v40  ;;  %v1933_v9 = vpop.f32.mrf.mxu1 }
 0x23f   :  { %v1575_v2 = vadd.f32 %v1933_v9, %v3228_v35 }
 0x240   :  { %1664 = vst [vmem:[%s3491_s5 + $0x80] sm:$0xff] %v1410_v4  ;;  %v1569_v16 = vpop.f32.mrf.mxu1 }
 0x241   :  { %1697 = vst [vmem:[%s3491_s5 + $0x188] sm:$0xff] %v1575_v2  ;;  %v1570_v32 = vadd.f32 %v3228_v35, %v1569_v16 }
 0x243   :  { %1696 = vst [vmem:[%s3491_s5 + $0x180] sm:$0xff] %v1570_v32  ;;  %v1888_v44 = vpop.f32.mrf.mxu0 }
 0x244   :  { %v1425_v55 = vadd.f32 %v1888_v44, %v3228_v35 }
 0x245   :  { %v1419_v7 = vpop.f32.mrf.mxu0 }
 0x246   :  { %1667 = vst [vmem:[%s3491_s5 + $0x98] sm:$0xff] %v1425_v55  ;;  %v1420_v0 = vadd.f32 %v3228_v35, %v1419_v7  ;;  %v1936_v34 = vpop.f32.mrf.mxu1 }
 0x247   :  { %v1585_v43 = vadd.f32 %v1936_v34, %v3228_v35 }
 0x248   :  { %1666 = vst [vmem:[%s3491_s5 + $0x90] sm:$0xff] %v1420_v0  ;;  %v1579_v29 = vpop.f32.mrf.mxu1 }
 0x249   :  { %1699 = vst [vmem:[%s3491_s5 + $0x198] sm:$0xff] %v1585_v43  ;;  %v1580_v53 = vadd.f32 %v3228_v35, %v1579_v29 }
 0x24b   :  { %1698 = vst [vmem:[%s3491_s5 + $0x190] sm:$0xff] %v1580_v53  ;;  %v1891_v60 = vpop.f32.mrf.mxu0 }
 0x24c   :  { %v1435_v48 = vadd.f32 %v1891_v60, %v3228_v35 }
 0x24d   :  { %v1429_v11 = vpop.f32.mrf.mxu0 }
 0x24e   :  { %1669 = vst [vmem:[%s3491_s5 + $0xa8] sm:$0xff] %v1435_v48  ;;  %v1430_v52 = vadd.f32 %v3228_v35, %v1429_v11  ;;  %v1939_v33 = vpop.f32.mrf.mxu1 }
 0x24f   :  { %v1595_v23 = vadd.f32 %v1939_v33, %v3228_v35 }
 0x250   :  { %1668 = vst [vmem:[%s3491_s5 + $0xa0] sm:$0xff] %v1430_v52  ;;  %v1589_v47 = vpop.f32.mrf.mxu1 }
 0x251   :  { %1701 = vst [vmem:[%s3491_s5 + $0x1a8] sm:$0xff] %v1595_v23  ;;  %v1590_v63 = vadd.f32 %v3228_v35, %v1589_v47 }
 0x253   :  { %1700 = vst [vmem:[%s3491_s5 + $0x1a0] sm:$0xff] %v1590_v63  ;;  %v1894_v8 = vpop.f32.mrf.mxu0 }
 0x254   :  { %v1445_v50 = vadd.f32 %v1894_v8, %v3228_v35 }
 0x255   :  { %v1439_v45 = vpop.f32.mrf.mxu0 }
 0x256   :  { %1671 = vst [vmem:[%s3491_s5 + $0xb8] sm:$0xff] %v1445_v50  ;;  %v1440_v36 = vadd.f32 %v3228_v35, %v1439_v45  ;;  %v1942_v21 = vpop.f32.mrf.mxu1 }
 0x257   :  { %v1605_v5 = vadd.f32 %v1942_v21, %v3228_v35 }
 0x258   :  { %1670 = vst [vmem:[%s3491_s5 + $0xb0] sm:$0xff] %v1440_v36  ;;  %v1599_v46 = vpop.f32.mrf.mxu1 }
 0x259   :  { %1703 = vst [vmem:[%s3491_s5 + $0x1b8] sm:$0xff] %v1605_v5  ;;  %v1600_v57 = vadd.f32 %v3228_v35, %v1599_v46 }
 0x25b   :  { %1702 = vst [vmem:[%s3491_s5 + $0x1b0] sm:$0xff] %v1600_v57  ;;  %v1897_v19 = vpop.f32.mrf.mxu0 }
 0x25c   :  { %v1455_v13 = vadd.f32 %v1897_v19, %v3228_v35 }
 0x25d   :  { %v1449_v58 = vpop.f32.mrf.mxu0 }
 0x25e   :  { %1673 = vst [vmem:[%s3491_s5 + $0xc8] sm:$0xff] %v1455_v13  ;;  %v1450_v62 = vadd.f32 %v3228_v35, %v1449_v58  ;;  %v1945_v26 = vpop.f32.mrf.mxu1 }
 0x25f   :  { %v1615_v24 = vadd.f32 %v1945_v26, %v3228_v35 }
 0x260   :  { %1672 = vst [vmem:[%s3491_s5 + $0xc0] sm:$0xff] %v1450_v62  ;;  %v1609_v42 = vpop.f32.mrf.mxu1 }
 0x261   :  { %1705 = vst [vmem:[%s3491_s5 + $0x1c8] sm:$0xff] %v1615_v24  ;;  %v1610_v37 = vadd.f32 %v3228_v35, %v1609_v42 }
 0x263   :  { %1704 = vst [vmem:[%s3491_s5 + $0x1c0] sm:$0xff] %v1610_v37  ;;  %v1900_v51 = vpop.f32.mrf.mxu0 }
 0x264   :  { %v1465_v15 = vadd.f32 %v1900_v51, %v3228_v35 }
 0x265   :  { %v1459_v20 = vpop.f32.mrf.mxu0 }
 0x266   :  { %1675 = vst [vmem:[%s3491_s5 + $0xd8] sm:$0xff] %v1465_v15  ;;  %v1460_v22 = vadd.f32 %v3228_v35, %v1459_v20  ;;  %v1948_v59 = vpop.f32.mrf.mxu1 }
 0x267   :  { %v1625_v39 = vadd.f32 %v1948_v59, %v3228_v35 }
 0x268   :  { %1674 = vst [vmem:[%s3491_s5 + $0xd0] sm:$0xff] %v1460_v22  ;;  %v1619_v28 = vpop.f32.mrf.mxu1 }
 0x269   :  { %1707 = vst [vmem:[%s3491_s5 + $0x1d8] sm:$0xff] %v1625_v39  ;;  %v1620_v1 = vadd.f32 %v3228_v35, %v1619_v28 }
 0x26b   :  { %1706 = vst [vmem:[%s3491_s5 + $0x1d0] sm:$0xff] %v1620_v1  ;;  %v1903_v27 = vpop.f32.mrf.mxu0 }
 0x26c   :  { %v1475_v56 = vadd.f32 %v1903_v27, %v3228_v35 }
 0x26d   :  { %v1469_v61 = vpop.f32.mrf.mxu0 }
 0x26e   :  { %1677 = vst [vmem:[%s3491_s5 + $0xe8] sm:$0xff] %v1475_v56  ;;  %v1470_v10 = vadd.f32 %v3228_v35, %v1469_v61  ;;  %v1951_v12 = vpop.f32.mrf.mxu1 }
 0x26f   :  { %v1635_v30 = vadd.f32 %v1951_v12, %v3228_v35 }
 0x270   :  { %1676 = vst [vmem:[%s3491_s5 + $0xe0] sm:$0xff] %v1470_v10  ;;  %v1629_v25 = vpop.f32.mrf.mxu1 }
 0x271   :  { %1709 = vst [vmem:[%s3491_s5 + $0x1e8] sm:$0xff] %v1635_v30  ;;  %v1630_v38 = vadd.f32 %v3228_v35, %v1629_v25 }
 0x273   :  { %1708 = vst [vmem:[%s3491_s5 + $0x1e0] sm:$0xff] %v1630_v38  ;;  %v1906_v14 = vpop.f32.mrf.mxu0 }
 0x274   :  { %v1485_v18 = vadd.f32 %v1906_v14, %v3228_v35 }
 0x275   :  { %v1479_v3 = vpop.f32.mrf.mxu0 }
 0x276   :  { %1679 = vst [vmem:[%s3491_s5 + $0xf8] sm:$0xff] %v1485_v18  ;;  %v1480_v31 = vadd.f32 %v3228_v35, %v1479_v3  ;;  %v1954_v49 = vpop.f32.mrf.mxu1 }
 0x277   :  { %v1645_v6 = vadd.f32 %v1954_v49, %v3228_v35 }
 0x278   :  { %1678 = vst [vmem:[%s3491_s5 + $0xf0] sm:$0xff] %v1480_v31  ;;  %v1639_v54 = vpop.f32.mrf.mxu1 }
 0x279   :  { %1711 = vst [vmem:[%s3491_s5 + $0x1f8] sm:$0xff] %v1645_v6  ;;  %v1640_v17 = vadd.f32 %v3228_v35, %v1639_v54 }
 0x27b   :  { %1710 = vst [vmem:[%s3491_s5 + $0x1f0] sm:$0xff] %v1640_v17 }

// kernel: transformer_block_forward.11
= control target key start
LH: loop header
LB: loop body
LE: loop exit
PB: predicated region body
PF: predicated region fallthrough
CT: control target
= control target key end

     0   :  { %vm617_vm0 = vcmask 261120   ;;  %s1709_s1 = inlined_call_operand.vmem [shape: f32[128,32], index: 1, kind: input, shape index: {}]   ;;  %s1710_s0 = inlined_call_operand.vmem [shape: f32[512,128], index: 0, kind: input, shape index: {}]   ;;  %s1711_s2 = inlined_call_operand.vmem [shape: f32[1,32], index: 2, kind: input, shape index: {}]   ;;  %s1712_s3 = inlined_call_operand.vmem [shape: f32[512,32], index: 3, kind: input, shape index: {}]   ;;  %s1713_s4 = inlined_call_operand.vmem [shape: f32[512,32], index: 4, kind: output, shape index: {}]  }
   0x1   :  { %v96_v0 = vld [vmem:[%s1709_s1 + $0x78] sm:$0xff]  ;;  %v95_v1 = vld [vmem:[%s1709_s1 + $0x70] sm:$0xff]  ;;  %v94_v2 = vld [vmem:[%s1709_s1 + $0x68] sm:$0xff] }
   0x2   :  { %767 = vmatprep.subr.mxu0 %v96_v0  ;;  %895 = vmatprep.subr.mxu1 %v96_v0  ;;  %v93_v3 = vld [vmem:[%s1709_s1 + $0x60] sm:$0xff]  ;;  %v92_v4 = vld [vmem:[%s1709_s1 + $0x58] sm:$0xff]  ;;  %v91_v5 = vld [vmem:[%s1709_s1 + $0x50] sm:$0xff] }
   0x3   :  { %768 = vmatpush3.msra.mxu0 %v96_v0  ;;  %911 = vmatpush3.msra.mxu1 %v96_v0  ;;  %v90_v6 = vld [vmem:[%s1709_s1 + $0x48] sm:$0xff]  ;;  %v89_v7 = vld [vmem:[%s1709_s1 + $0x40] sm:$0xff]  ;;  %v88_v8 = vld [vmem:[%s1709_s1 + $0x38] sm:$0xff] }
   0x4   :  { %769 = vmatprep.subr.mxu0 %v95_v1  ;;  %896 = vmatprep.subr.mxu1 %v95_v1  ;;  %v87_v9 = vld [vmem:[%s1709_s1 + $0x30] sm:$0xff]  ;;  %v86_v10 = vld [vmem:[%s1709_s1 + $0x28] sm:$0xff]  ;;  %v85_v11 = vld [vmem:[%s1709_s1 + $0x20] sm:$0xff] }
   0x5   :  { %770 = vmatpush3.msra.mxu0 %v95_v1  ;;  %912 = vmatpush3.msra.mxu1 %v95_v1  ;;  %v84_v12 = vld [vmem:[%s1709_s1 + $0x18] sm:$0xff]  ;;  %v83_v13 = vld [vmem:[%s1709_s1 + $0x10] sm:$0xff]  ;;  %v82_v14 = vld [vmem:[%s1709_s1 + $0x8] sm:$0xff] }
   0x6   :  { %771 = vmatprep.subr.mxu0 %v94_v2  ;;  %897 = vmatprep.subr.mxu1 %v94_v2  ;;  %v81_v15 = vld [vmem:[%s1709_s1] sm:$0xff]  ;;  %v18_v18 = vld [vmem:[%s1710_s0 + $0x8] sm:$0xff]  ;;  %v19_v20 = vld [vmem:[%s1710_s0 + $0x10] sm:$0xff] }
   0x7   :  { %772 = vmatpush3.msra.mxu0 %v94_v2  ;;  %913 = vmatpush3.msra.mxu1 %v94_v2  ;;  %v17_v16 = vld [vmem:[%s1710_s0] sm:$0xff]  ;;  %v50_v19 = vld [vmem:[%s1710_s0 + $0x108] sm:$0xff]  ;;  %v51_v21 = vld [vmem:[%s1710_s0 + $0x110] sm:$0xff] }
   0x8   :  { %773 = vmatprep.subr.mxu0 %v93_v3  ;;  %898 = vmatprep.subr.mxu1 %v93_v3  ;;  %v49_v17 = vld [vmem:[%s1710_s0 + $0x100] sm:$0xff]  ;;  %v20_v22 = vld [vmem:[%s1710_s0 + $0x18] sm:$0xff]  ;;  %v22_v26 = vld [vmem:[%s1710_s0 + $0x28] sm:$0xff] }
   0x9   :  { %774 = vmatpush3.msra.mxu0 %v93_v3  ;;  %914 = vmatpush3.msra.mxu1 %v93_v3  ;;  %v52_v23 = vld [vmem:[%s1710_s0 + $0x118] sm:$0xff]  ;;  %v21_v24 = vld [vmem:[%s1710_s0 + $0x20] sm:$0xff]  ;;  %v54_v27 = vld [vmem:[%s1710_s0 + $0x128] sm:$0xff] }
   0xa   :  { %775 = vmatprep.subr.mxu0 %v92_v4  ;;  %899 = vmatprep.subr.mxu1 %v92_v4  ;;  %v53_v25 = vld [vmem:[%s1710_s0 + $0x120] sm:$0xff]  ;;  %v23_v28 = vld [vmem:[%s1710_s0 + $0x30] sm:$0xff]  ;;  %v24_v30 = vld [vmem:[%s1710_s0 + $0x38] sm:$0xff] }
   0xb   :  { %776 = vmatpush3.msra.mxu0 %v92_v4  ;;  %915 = vmatpush3.msra.mxu1 %v92_v4  ;;  %v55_v29 = vld [vmem:[%s1710_s0 + $0x130] sm:$0xff]  ;;  %v56_v31 = vld [vmem:[%s1710_s0 + $0x138] sm:$0xff]  ;;  %v25_v32 = vld [vmem:[%s1710_s0 + $0x40] sm:$0xff] }
   0xc   :  { %777 = vmatprep.subr.mxu0 %v91_v5  ;;  %900 = vmatprep.subr.mxu1 %v91_v5  ;;  %v57_v33 = vld [vmem:[%s1710_s0 + $0x140] sm:$0xff]  ;;  %v26_v34 = vld [vmem:[%s1710_s0 + $0x48] sm:$0xff]  ;;  %v27_v36 = vld [vmem:[%s1710_s0 + $0x50] sm:$0xff] }
   0xd   :  { %778 = vmatpush3.msra.mxu0 %v91_v5  ;;  %916 = vmatpush3.msra.mxu1 %v91_v5  ;;  %v58_v35 = vld [vmem:[%s1710_s0 + $0x148] sm:$0xff]  ;;  %v59_v37 = vld [vmem:[%s1710_s0 + $0x150] sm:$0xff]  ;;  %v28_v38 = vld [vmem:[%s1710_s0 + $0x58] sm:$0xff] }
   0xe   :  { %779 = vmatprep.subr.mxu0 %v90_v6  ;;  %901 = vmatprep.subr.mxu1 %v90_v6  ;;  %v60_v39 = vld [vmem:[%s1710_s0 + $0x158] sm:$0xff]  ;;  %v29_v40 = vld [vmem:[%s1710_s0 + $0x60] sm:$0xff]  ;;  %v30_v42 = vld [vmem:[%s1710_s0 + $0x68] sm:$0xff] }
   0xf   :  { %780 = vmatpush3.msra.mxu0 %v90_v6  ;;  %917 = vmatpush3.msra.mxu1 %v90_v6  ;;  %v61_v41 = vld [vmem:[%s1710_s0 + $0x160] sm:$0xff]  ;;  %v62_v43 = vld [vmem:[%s1710_s0 + $0x168] sm:$0xff]  ;;  %v31_v44 = vld [vmem:[%s1710_s0 + $0x70] sm:$0xff] }
  0x10   :  { %781 = vmatprep.subr.mxu0 %v89_v7  ;;  %902 = vmatprep.subr.mxu1 %v89_v7  ;;  %v63_v45 = vld [vmem:[%s1710_s0 + $0x170] sm:$0xff]  ;;  %v32_v46 = vld [vmem:[%s1710_s0 + $0x78] sm:$0xff]  ;;  %v33_v48 = vld [vmem:[%s1710_s0 + $0x80] sm:$0xff] }
  0x11   :  { %782 = vmatpush3.msra.mxu0 %v89_v7  ;;  %918 = vmatpush3.msra.mxu1 %v89_v7  ;;  %v64_v47 = vld [vmem:[%s1710_s0 + $0x178] sm:$0xff]  ;;  %v65_v49 = vld [vmem:[%s1710_s0 + $0x180] sm:$0xff]  ;;  %v34_v50 = vld [vmem:[%s1710_s0 + $0x88] sm:$0xff] }
  0x12   :  { %783 = vmatprep.subr.mxu0 %v88_v8  ;;  %903 = vmatprep.subr.mxu1 %v88_v8  ;;  %v66_v51 = vld [vmem:[%s1710_s0 + $0x188] sm:$0xff]  ;;  %v35_v52 = vld [vmem:[%s1710_s0 + $0x90] sm:$0xff]  ;;  %v36_v54 = vld [vmem:[%s1710_s0 + $0x98] sm:$0xff] }
  0x13   :  { %784 = vmatpush3.msra.mxu0 %v88_v8  ;;  %919 = vmatpush3.msra.mxu1 %v88_v8  ;;  %v67_v53 = vld [vmem:[%s1710_s0 + $0x190] sm:$0xff]  ;;  %v68_v55 = vld [vmem:[%s1710_s0 + $0x198] sm:$0xff]  ;;  %v37_v56 = vld [vmem:[%s1710_s0 + $0xa0] sm:$0xff] }
  0x14   :  { %785 = vmatprep.subr.mxu0 %v87_v9  ;;  %904 = vmatprep.subr.mxu1 %v87_v9  ;;  %v69_v57 = vld [vmem:[%s1710_s0 + $0x1a0] sm:$0xff]  ;;  %v38_v58 = vld [vmem:[%s1710_s0 + $0xa8] sm:$0xff]  ;;  %v39_v60 = vld [vmem:[%s1710_s0 + $0xb0] sm:$0xff] }
  0x15   :  { %786 = vmatpush3.msra.mxu0 %v87_v9  ;;  %920 = vmatpush3.msra.mxu1 %v87_v9  ;;  %v70_v59 = vld [vmem:[%s1710_s0 + $0x1a8] sm:$0xff]  ;;  %v71_v61 = vld [vmem:[%s1710_s0 + $0x1b0] sm:$0xff]  ;;  %v40_v62 = vld [vmem:[%s1710_s0 + $0xb8] sm:$0xff] }
  0x16   :  { %787 = vmatprep.subr.mxu0 %v86_v10  ;;  %905 = vmatprep.subr.mxu1 %v86_v10  ;;  %v72_v63 = vld [vmem:[%s1710_s0 + $0x1b8] sm:$0xff]  ;;  %v41_v0 = vld [vmem:[%s1710_s0 + $0xc0] sm:$0xff]  ;;  %v42_v2 = vld [vmem:[%s1710_s0 + $0xc8] sm:$0xff] }
  0x17   :  { %788 = vmatpush3.msra.mxu0 %v86_v10  ;;  %921 = vmatpush3.msra.mxu1 %v86_v10  ;;  %v73_v1 = vld [vmem:[%s1710_s0 + $0x1c0] sm:$0xff]  ;;  %v74_v3 = vld [vmem:[%s1710_s0 + $0x1c8] sm:$0xff]  ;;  %v43_v4 = vld [vmem:[%s1710_s0 + $0xd0] sm:$0xff] }
  0x18   :  { %789 = vmatprep.subr.mxu0 %v85_v11  ;;  %906 = vmatprep.subr.mxu1 %v85_v11  ;;  %v75_v5 = vld [vmem:[%s1710_s0 + $0x1d0] sm:$0xff]  ;;  %v44_v6 = vld [vmem:[%s1710_s0 + $0xd8] sm:$0xff]  ;;  %v45_v8 = vld [vmem:[%s1710_s0 + $0xe0] sm:$0xff] }
  0x19   :  { %790 = vmatpush3.msra.mxu0 %v85_v11  ;;  %922 = vmatpush3.msra.mxu1 %v85_v11  ;;  %v76_v7 = vld [vmem:[%s1710_s0 + $0x1d8] sm:$0xff]  ;;  %v77_v9 = vld [vmem:[%s1710_s0 + $0x1e0] sm:$0xff]  ;;  %v46_v10 = vld [vmem:[%s1710_s0 + $0xe8] sm:$0xff] }
  0x1a   :  { %791 = vmatprep.subr.mxu0 %v84_v12  ;;  %907 = vmatprep.subr.mxu1 %v84_v12  ;;  %v78_v11 = vld [vmem:[%s1710_s0 + $0x1e8] sm:$0xff] }
  0x1b   :  { %792 = vmatpush3.msra.mxu0 %v84_v12  ;;  %923 = vmatpush3.msra.mxu1 %v84_v12  ;;  %v47_v12 = vld [vmem:[%s1710_s0 + $0xf0] sm:$0xff] }
  0x1c   :  { %793 = vmatprep.subr.mxu0 %v83_v13  ;;  %908 = vmatprep.subr.mxu1 %v83_v13 }
  0x1d   :  { %794 = vmatpush3.msra.mxu0 %v83_v13  ;;  %924 = vmatpush3.msra.mxu1 %v83_v13  ;;  %v79_v13 = vld [vmem:[%s1710_s0 + $0x1f0] sm:$0xff] }
  0x1e   :  { %795 = vmatprep.subr.mxu0 %v82_v14  ;;  %909 = vmatprep.subr.mxu1 %v82_v14 }
  0x1f   :  { %796 = vmatpush3.msra.mxu0 %v82_v14  ;;  %925 = vmatpush3.msra.mxu1 %v82_v14  ;;  %v48_v14 = vld [vmem:[%s1710_s0 + $0xf8] sm:$0xff] }
  0x20   :  { %797 = vmatprep.subr.mxu0 %v81_v15  ;;  %910 = vmatprep.subr.mxu1 %v81_v15 }
  0x21   :  { %798 = vmatpush3.msra.mxu0 %v81_v15  ;;  %926 = vmatpush3.msra.mxu1 %v81_v15  ;;  %v80_v15 = vld [vmem:[%s1710_s0 + $0x1f8] sm:$0xff] }
  0x22   :  { %799 = vmatprep.mubr.f32.mxu0 %v17_v16  ;;  %847 = vmatprep.mubr.f32.mxu1 %v49_v17  ;;  %v1195_v16 = vld [vmem:[%s1711_s2] ss:$0 sm:$0xff] }
  0x23   :  { %800 = vmatmul.mubr.f32.vlgmr.msra.gmra.mxu0 %v18_v18  ;;  %848 = vmatmul.mubr.f32.vlgmr.msra.gmra.mxu1 %v50_v19  ;;  %v490_v18 = vld [vmem:[%s1712_s3 + $0x8] sm:$0xff] }
  0x24   :  { %802 = vmatprep.mubr.f32.mxu0 %v19_v20  ;;  %850 = vmatprep.mubr.f32.mxu1 %v51_v21  ;;  %v522_v20 = vld [vmem:[%s1712_s3 + $0x108] sm:$0xff] }
  0x27   :  { %803 = vmatmul.mubr.f32.gmra.mxu0 %v20_v22  ;;  %851 = vmatmul.mubr.f32.gmra.mxu1 %v52_v23 }
  0x28   :  { %805 = vmatprep.mubr.f32.mxu0 %v21_v24  ;;  %853 = vmatprep.mubr.f32.mxu1 %v53_v25  ;;  %v489_v24 = vld [vmem:[%s1712_s3] sm:$0xff] }
  0x2b   :  { %806 = vmatmul.mubr.f32.gmra.mxu0 %v22_v26  ;;  %854 = vmatmul.mubr.f32.gmra.mxu1 %v54_v27  ;;  %v521_v26 = vld [vmem:[%s1712_s3 + $0x100] sm:$0xff] }
  0x2c   :  { %808 = vmatprep.mubr.f32.mxu0 %v23_v28  ;;  %856 = vmatprep.mubr.f32.mxu1 %v55_v29 }
  0x2f   :  { %809 = vmatmul.mubr.f32.gmra.mxu0 %v24_v30  ;;  %857 = vmatmul.mubr.f32.gmra.mxu1 %v56_v31 }
  0x30   :  { %811 = vmatprep.mubr.f32.mxu0 %v25_v32  ;;  %859 = vmatprep.mubr.f32.mxu1 %v57_v33  ;;  %v492_v32 = vld [vmem:[%s1712_s3 + $0x18] sm:$0xff] }
  0x33   :  { %812 = vmatmul.mubr.f32.gmra.mxu0 %v26_v34  ;;  %860 = vmatmul.mubr.f32.gmra.mxu1 %v58_v35  ;;  %v524_v34 = vld [vmem:[%s1712_s3 + $0x118] sm:$0xff] }
  0x34   :  { %814 = vmatprep.mubr.f32.mxu0 %v27_v36  ;;  %862 = vmatprep.mubr.f32.mxu1 %v59_v37 }
  0x37   :  { %815 = vmatmul.mubr.f32.gmra.mxu0 %v28_v38  ;;  %863 = vmatmul.mubr.f32.gmra.mxu1 %v60_v39 }
  0x38   :  { %817 = vmatprep.mubr.f32.mxu0 %v29_v40  ;;  %865 = vmatprep.mubr.f32.mxu1 %v61_v41  ;;  %v491_v40 = vld [vmem:[%s1712_s3 + $0x10] sm:$0xff] }
  0x3b   :  { %818 = vmatmul.mubr.f32.gmra.mxu0 %v30_v42  ;;  %866 = vmatmul.mubr.f32.gmra.mxu1 %v62_v43  ;;  %v523_v42 = vld [vmem:[%s1712_s3 + $0x110] sm:$0xff] }
  0x3c   :  { %820 = vmatprep.mubr.f32.mxu0 %v31_v44  ;;  %868 = vmatprep.mubr.f32.mxu1 %v63_v45 }
  0x3f   :  { %821 = vmatmul.mubr.f32.gmra.mxu0 %v32_v46  ;;  %869 = vmatmul.mubr.f32.gmra.mxu1 %v64_v47 }
  0x40   :  { %823 = vmatprep.mubr.f32.mxu0 %v33_v48  ;;  %871 = vmatprep.mubr.f32.mxu1 %v65_v49  ;;  %v494_v48 = vld [vmem:[%s1712_s3 + $0x28] sm:$0xff] }
  0x43   :  { %824 = vmatmul.mubr.f32.gmra.mxu0 %v34_v50  ;;  %872 = vmatmul.mubr.f32.gmra.mxu1 %v66_v51  ;;  %v526_v50 = vld [vmem:[%s1712_s3 + $0x128] sm:$0xff] }
  0x44   :  { %826 = vmatprep.mubr.f32.mxu0 %v35_v52  ;;  %874 = vmatprep.mubr.f32.mxu1 %v67_v53 }
  0x47   :  { %827 = vmatmul.mubr.f32.gmra.mxu0 %v36_v54  ;;  %875 = vmatmul.mubr.f32.gmra.mxu1 %v68_v55 }
  0x48   :  { %829 = vmatprep.mubr.f32.mxu0 %v37_v56  ;;  %877 = vmatprep.mubr.f32.mxu1 %v69_v57  ;;  %v493_v56 = vld [vmem:[%s1712_s3 + $0x20] sm:$0xff] }
  0x4b   :  { %830 = vmatmul.mubr.f32.gmra.mxu0 %v38_v58  ;;  %878 = vmatmul.mubr.f32.gmra.mxu1 %v70_v59  ;;  %v525_v58 = vld [vmem:[%s1712_s3 + $0x120] sm:$0xff] }
  0x4c   :  { %832 = vmatprep.mubr.f32.mxu0 %v39_v60  ;;  %880 = vmatprep.mubr.f32.mxu1 %v71_v61 }
  0x4f   :  { %833 = vmatmul.mubr.f32.gmra.mxu0 %v40_v62  ;;  %881 = vmatmul.mubr.f32.gmra.mxu1 %v72_v63 }
  0x50   :  { %835 = vmatprep.mubr.f32.mxu0 %v41_v0  ;;  %883 = vmatprep.mubr.f32.mxu1 %v73_v1  ;;  %v496_v0 = vld [vmem:[%s1712_s3 + $0x38] sm:$0xff] }
  0x53   :  { %836 = vmatmul.mubr.f32.gmra.mxu0 %v42_v2  ;;  %884 = vmatmul.mubr.f32.gmra.mxu1 %v74_v3  ;;  %v528_v2 = vld [vmem:[%s1712_s3 + $0x138] sm:$0xff] }
  0x54   :  { %838 = vmatprep.mubr.f32.mxu0 %v43_v4  ;;  %886 = vmatprep.mubr.f32.mxu1 %v75_v5 }
  0x57   :  { %839 = vmatmul.mubr.f32.gmra.mxu0 %v44_v6  ;;  %887 = vmatmul.mubr.f32.gmra.mxu1 %v76_v7 }
  0x58   :  { %841 = vmatprep.mubr.f32.mxu0 %v45_v8  ;;  %889 = vmatprep.mubr.f32.mxu1 %v77_v9  ;;  %v495_v8 = vld [vmem:[%s1712_s3 + $0x30] sm:$0xff] }
  0x5b   :  { %842 = vmatmul.mubr.f32.gmra.mxu0 %v46_v10  ;;  %890 = vmatmul.mubr.f32.gmra.mxu1 %v78_v11  ;;  %v527_v10 = vld [vmem:[%s1712_s3 + $0x130] sm:$0xff] }
  0x5c   :  { %844 = vmatprep.mubr.f32.mxu0 %v47_v12  ;;  %892 = vmatprep.mubr.f32.mxu1 %v79_v13 }
  0x5f   :  { %845 = vmatmul.mubr.f32.gmra.mxu0 %v48_v14  ;;  %893 = vmatmul.mubr.f32.gmra.mxu1 %v80_v15 }
  0xe3   :  { %v801_v17 = vpop.f32.mrf.mxu0  ;;  %v849_v19 = vpop.f32.mrf.mxu1 }
  0xe4   :  { %v176_v21 = vadd.f32 %v801_v17, %v1195_v16  ;;  %v336_v22 = vadd.f32 %v849_v19, %v1195_v16  ;;  %v498_v17 = vld [vmem:[%s1712_s3 + $0x48] sm:$0xff] }
  0xe5   :  { %v170_v23 = vpop.f32.mrf.mxu0  ;;  %v330_v25 = vpop.f32.mrf.mxu1  ;;  %v530_v19 = vld [vmem:[%s1712_s3 + $0x148] sm:$0xff] }
  0xe6   :  { %v554_v27 = vadd.f32 %v490_v18, %v176_v21  ;;  %v586_v28 = vadd.f32 %v522_v20, %v336_v22  ;;  %v171_v29 = vadd.f32 %v1195_v16, %v170_v23  ;;  %v331_v30 = vadd.f32 %v1195_v16, %v330_v25  ;;  %v497_v25 = vld [vmem:[%s1712_s3 + $0x40] sm:$0xff] }
  0xe7   :  { %v804_v31 = vpop.f32.mrf.mxu0  ;;  %v852_v33 = vpop.f32.mrf.mxu1 }
  0xe8   :  { %619 = vst.msk [vmem:[%s1713_s4 + $0x8] sm:$0xff] %vm617_vm0, %v554_v27  ;;  %651 = vst.msk [vmem:[%s1713_s4 + $0x108] sm:$0xff] %vm617_vm0, %v586_v28  ;;  %v553_v35 = vadd.f32 %v489_v24, %v171_v29  ;;  %v585_v36 = vadd.f32 %v521_v26, %v331_v30  ;;  %v186_v37 = vadd.f32 %v804_v31, %v1195_v16  ;;  %v529_v27 = vld [vmem:[%s1712_s3 + $0x140] sm:$0xff] }
  0xe9   :  { %v346_v38 = vadd.f32 %v852_v33, %v1195_v16  ;;  %v180_v39 = vpop.f32.mrf.mxu0  ;;  %v340_v41 = vpop.f32.mrf.mxu1  ;;  %v500_v33 = vld [vmem:[%s1712_s3 + $0x58] sm:$0xff] }
  0xea   :  { %618 = vst.msk [vmem:[%s1713_s4] sm:$0xff] %vm617_vm0, %v553_v35  ;;  %650 = vst.msk [vmem:[%s1713_s4 + $0x100] sm:$0xff] %vm617_vm0, %v585_v36  ;;  %v556_v43 = vadd.f32 %v492_v32, %v186_v37  ;;  %v181_v45 = vadd.f32 %v1195_v16, %v180_v39  ;;  %v341_v46 = vadd.f32 %v1195_v16, %v340_v41  ;;  %v532_v35 = vld [vmem:[%s1712_s3 + $0x158] sm:$0xff]  ;;  %v499_v41 = vld [vmem:[%s1712_s3 + $0x50] sm:$0xff] }
  0xeb   :  { %v588_v44 = vadd.f32 %v524_v34, %v346_v38  ;;  %v807_v47 = vpop.f32.mrf.mxu0  ;;  %v855_v49 = vpop.f32.mrf.mxu1 }
  0xec   :  { %621 = vst.msk [vmem:[%s1713_s4 + $0x18] sm:$0xff] %vm617_vm0, %v556_v43  ;;  %v555_v51 = vadd.f32 %v491_v40, %v181_v45  ;;  %v587_v52 = vadd.f32 %v523_v42, %v341_v46  ;;  %v196_v53 = vadd.f32 %v807_v47, %v1195_v16  ;;  %v356_v54 = vadd.f32 %v855_v49, %v1195_v16  ;;  %v531_v43 = vld [vmem:[%s1712_s3 + $0x150] sm:$0xff]  ;;  %v502_v49 = vld [vmem:[%s1712_s3 + $0x68] sm:$0xff] }
  0xed   :  { %653 = vst.msk [vmem:[%s1713_s4 + $0x118] sm:$0xff] %vm617_vm0, %v588_v44  ;;  %v190_v55 = vpop.f32.mrf.mxu0  ;;  %v350_v57 = vpop.f32.mrf.mxu1 }
  0xee   :  { %620 = vst.msk [vmem:[%s1713_s4 + $0x10] sm:$0xff] %vm617_vm0, %v555_v51  ;;  %652 = vst.msk [vmem:[%s1713_s4 + $0x110] sm:$0xff] %vm617_vm0, %v587_v52  ;;  %v558_v59 = vadd.f32 %v494_v48, %v196_v53  ;;  %v590_v60 = vadd.f32 %v526_v50, %v356_v54  ;;  %v191_v61 = vadd.f32 %v1195_v16, %v190_v55  ;;  %v534_v51 = vld [vmem:[%s1712_s3 + $0x168] sm:$0xff] }
  0xef   :  { %v351_v62 = vadd.f32 %v1195_v16, %v350_v57  ;;  %v810_v63 = vpop.f32.mrf.mxu0  ;;  %v858_v1 = vpop.f32.mrf.mxu1  ;;  %v501_v57 = vld [vmem:[%s1712_s3 + $0x60] sm:$0xff] }
  0xf0   :  { %623 = vst.msk [vmem:[%s1713_s4 + $0x28] sm:$0xff] %vm617_vm0, %v558_v59  ;;  %655 = vst.msk [vmem:[%s1713_s4 + $0x128] sm:$0xff] %vm617_vm0, %v590_v60  ;;  %v557_v3 = vadd.f32 %v493_v56, %v191_v61  ;;  %v206_v5 = vadd.f32 %v810_v63, %v1195_v16  ;;  %v366_v6 = vadd.f32 %v858_v1, %v1195_v16  ;;  %v533_v59 = vld [vmem:[%s1712_s3 + $0x160] sm:$0xff]  ;;  %v504_v1 = vld [vmem:[%s1712_s3 + $0x78] sm:$0xff] }
  0xf1   :  { %v589_v4 = vadd.f32 %v525_v58, %v351_v62  ;;  %v200_v7 = vpop.f32.mrf.mxu0  ;;  %v360_v9 = vpop.f32.mrf.mxu1 }
  0xf2   :  { %622 = vst.msk [vmem:[%s1713_s4 + $0x20] sm:$0xff] %vm617_vm0, %v557_v3  ;;  %v560_v11 = vadd.f32 %v496_v0, %v206_v5  ;;  %v592_v12 = vadd.f32 %v528_v2, %v366_v6  ;;  %v201_v13 = vadd.f32 %v1195_v16, %v200_v7  ;;  %v361_v14 = vadd.f32 %v1195_v16, %v360_v9  ;;  %v536_v3 = vld [vmem:[%s1712_s3 + $0x178] sm:$0xff]  ;;  %v503_v9 = vld [vmem:[%s1712_s3 + $0x70] sm:$0xff] }
  0xf3   :  { %654 = vst.msk [vmem:[%s1713_s4 + $0x120] sm:$0xff] %vm617_vm0, %v589_v4  ;;  %v813_v15 = vpop.f32.mrf.mxu0  ;;  %v861_v18 = vpop.f32.mrf.mxu1 }
  0xf4   :  { %625 = vst.msk [vmem:[%s1713_s4 + $0x38] sm:$0xff] %vm617_vm0, %v560_v11  ;;  %657 = vst.msk [vmem:[%s1713_s4 + $0x138] sm:$0xff] %vm617_vm0, %v592_v12  ;;  %v559_v20 = vadd.f32 %v495_v8, %v201_v13  ;;  %v591_v21 = vadd.f32 %v527_v10, %v361_v14  ;;  %v216_v22 = vadd.f32 %v813_v15, %v1195_v16  ;;  %v535_v11 = vld [vmem:[%s1712_s3 + $0x170] sm:$0xff] }
  0xf5   :  { %v376_v23 = vadd.f32 %v861_v18, %v1195_v16  ;;  %v210_v24 = vpop.f32.mrf.mxu0  ;;  %v370_v26 = vpop.f32.mrf.mxu1  ;;  %v506_v18 = vld [vmem:[%s1712_s3 + $0x88] sm:$0xff] }
  0xf6   :  { %624 = vst.msk [vmem:[%s1713_s4 + $0x30] sm:$0xff] %vm617_vm0, %v559_v20  ;;  %656 = vst.msk [vmem:[%s1713_s4 + $0x130] sm:$0xff] %vm617_vm0, %v591_v21  ;;  %v562_v28 = vadd.f32 %v498_v17, %v216_v22  ;;  %v211_v30 = vadd.f32 %v1195_v16, %v210_v24  ;;  %v371_v31 = vadd.f32 %v1195_v16, %v370_v26  ;;  %v538_v20 = vld [vmem:[%s1712_s3 + $0x188] sm:$0xff]  ;;  %v505_v26 = vld [vmem:[%s1712_s3 + $0x80] sm:$0xff] }
  0xf7   :  { %v594_v29 = vadd.f32 %v530_v19, %v376_v23  ;;  %v816_v32 = vpop.f32.mrf.mxu0  ;;  %v864_v34 = vpop.f32.mrf.mxu1 }
  0xf8   :  { %627 = vst.msk [vmem:[%s1713_s4 + $0x48] sm:$0xff] %vm617_vm0, %v562_v28  ;;  %v561_v36 = vadd.f32 %v497_v25, %v211_v30  ;;  %v593_v37 = vadd.f32 %v529_v27, %v371_v31  ;;  %v226_v38 = vadd.f32 %v816_v32, %v1195_v16  ;;  %v386_v39 = vadd.f32 %v864_v34, %v1195_v16  ;;  %v537_v28 = vld [vmem:[%s1712_s3 + $0x180] sm:$0xff]  ;;  %v508_v34 = vld [vmem:[%s1712_s3 + $0x98] sm:$0xff] }
  0xf9   :  { %659 = vst.msk [vmem:[%s1713_s4 + $0x148] sm:$0xff] %vm617_vm0, %v594_v29  ;;  %v220_v40 = vpop.f32.mrf.mxu0  ;;  %v380_v42 = vpop.f32.mrf.mxu1 }
  0xfa   :  { %626 = vst.msk [vmem:[%s1713_s4 + $0x40] sm:$0xff] %vm617_vm0, %v561_v36  ;;  %658 = vst.msk [vmem:[%s1713_s4 + $0x140] sm:$0xff] %vm617_vm0, %v593_v37  ;;  %v564_v44 = vadd.f32 %v500_v33, %v226_v38  ;;  %v596_v45 = vadd.f32 %v532_v35, %v386_v39  ;;  %v221_v46 = vadd.f32 %v1195_v16, %v220_v40  ;;  %v540_v36 = vld [vmem:[%s1712_s3 + $0x198] sm:$0xff] }
  0xfb   :  { %v381_v47 = vadd.f32 %v1195_v16, %v380_v42  ;;  %v819_v48 = vpop.f32.mrf.mxu0  ;;  %v867_v50 = vpop.f32.mrf.mxu1  ;;  %v507_v42 = vld [vmem:[%s1712_s3 + $0x90] sm:$0xff] }
  0xfc   :  { %629 = vst.msk [vmem:[%s1713_s4 + $0x58] sm:$0xff] %vm617_vm0, %v564_v44  ;;  %661 = vst.msk [vmem:[%s1713_s4 + $0x158] sm:$0xff] %vm617_vm0, %v596_v45  ;;  %v563_v52 = vadd.f32 %v499_v41, %v221_v46  ;;  %v236_v54 = vadd.f32 %v819_v48, %v1195_v16  ;;  %v396_v55 = vadd.f32 %v867_v50, %v1195_v16  ;;  %v539_v44 = vld [vmem:[%s1712_s3 + $0x190] sm:$0xff]  ;;  %v510_v50 = vld [vmem:[%s1712_s3 + $0xa8] sm:$0xff] }
  0xfd   :  { %v595_v53 = vadd.f32 %v531_v43, %v381_v47  ;;  %v230_v56 = vpop.f32.mrf.mxu0  ;;  %v390_v58 = vpop.f32.mrf.mxu1 }
  0xfe   :  { %628 = vst.msk [vmem:[%s1713_s4 + $0x50] sm:$0xff] %vm617_vm0, %v563_v52  ;;  %v566_v60 = vadd.f32 %v502_v49, %v236_v54  ;;  %v598_v61 = vadd.f32 %v534_v51, %v396_v55  ;;  %v231_v62 = vadd.f32 %v1195_v16, %v230_v56  ;;  %v391_v63 = vadd.f32 %v1195_v16, %v390_v58  ;;  %v542_v52 = vld [vmem:[%s1712_s3 + $0x1a8] sm:$0xff]  ;;  %v509_v58 = vld [vmem:[%s1712_s3 + $0xa0] sm:$0xff] }
  0xff   :  { %660 = vst.msk [vmem:[%s1713_s4 + $0x150] sm:$0xff] %vm617_vm0, %v595_v53  ;;  %v822_v0 = vpop.f32.mrf.mxu0  ;;  %v870_v2 = vpop.f32.mrf.mxu1 }
 0x100   :  { %631 = vst.msk [vmem:[%s1713_s4 + $0x68] sm:$0xff] %vm617_vm0, %v566_v60  ;;  %663 = vst.msk [vmem:[%s1713_s4 + $0x168] sm:$0xff] %vm617_vm0, %v598_v61  ;;  %v565_v4 = vadd.f32 %v501_v57, %v231_v62  ;;  %v597_v5 = vadd.f32 %v533_v59, %v391_v63  ;;  %v246_v6 = vadd.f32 %v822_v0, %v1195_v16  ;;  %v541_v60 = vld [vmem:[%s1712_s3 + $0x1a0] sm:$0xff] }
 0x101   :  { %v406_v7 = vadd.f32 %v870_v2, %v1195_v16  ;;  %v240_v8 = vpop.f32.mrf.mxu0  ;;  %v400_v10 = vpop.f32.mrf.mxu1  ;;  %v512_v2 = vld [vmem:[%s1712_s3 + $0xb8] sm:$0xff] }
 0x102   :  { %630 = vst.msk [vmem:[%s1713_s4 + $0x60] sm:$0xff] %vm617_vm0, %v565_v4  ;;  %662 = vst.msk [vmem:[%s1713_s4 + $0x160] sm:$0xff] %vm617_vm0, %v597_v5  ;;  %v568_v12 = vadd.f32 %v504_v1, %v246_v6  ;;  %v241_v14 = vadd.f32 %v1195_v16, %v240_v8  ;;  %v401_v15 = vadd.f32 %v1195_v16, %v400_v10  ;;  %v544_v4 = vld [vmem:[%s1712_s3 + $0x1b8] sm:$0xff]  ;;  %v511_v10 = vld [vmem:[%s1712_s3 + $0xb0] sm:$0xff] }
 0x103   :  { %v600_v13 = vadd.f32 %v536_v3, %v406_v7  ;;  %v825_v17 = vpop.f32.mrf.mxu0  ;;  %v873_v19 = vpop.f32.mrf.mxu1 }
 0x104   :  { %633 = vst.msk [vmem:[%s1713_s4 + $0x78] sm:$0xff] %vm617_vm0, %v568_v12  ;;  %v567_v21 = vadd.f32 %v503_v9, %v241_v14  ;;  %v599_v22 = vadd.f32 %v535_v11, %v401_v15  ;;  %v256_v23 = vadd.f32 %v825_v17, %v1195_v16  ;;  %v416_v24 = vadd.f32 %v873_v19, %v1195_v16  ;;  %v543_v12 = vld [vmem:[%s1712_s3 + $0x1b0] sm:$0xff]  ;;  %v514_v19 = vld [vmem:[%s1712_s3 + $0xc8] sm:$0xff] }
 0x105   :  { %665 = vst.msk [vmem:[%s1713_s4 + $0x178] sm:$0xff] %vm617_vm0, %v600_v13  ;;  %v250_v25 = vpop.f32.mrf.mxu0  ;;  %v410_v27 = vpop.f32.mrf.mxu1 }
 0x106   :  { %632 = vst.msk [vmem:[%s1713_s4 + $0x70] sm:$0xff] %vm617_vm0, %v567_v21  ;;  %664 = vst.msk [vmem:[%s1713_s4 + $0x170] sm:$0xff] %vm617_vm0, %v599_v22  ;;  %v570_v29 = vadd.f32 %v506_v18, %v256_v23  ;;  %v602_v30 = vadd.f32 %v538_v20, %v416_v24  ;;  %v251_v31 = vadd.f32 %v1195_v16, %v250_v25  ;;  %v546_v21 = vld [vmem:[%s1712_s3 + $0x1c8] sm:$0xff] }
 0x107   :  { %v411_v32 = vadd.f32 %v1195_v16, %v410_v27  ;;  %v828_v33 = vpop.f32.mrf.mxu0  ;;  %v876_v35 = vpop.f32.mrf.mxu1  ;;  %v513_v27 = vld [vmem:[%s1712_s3 + $0xc0] sm:$0xff] }
 0x108   :  { %635 = vst.msk [vmem:[%s1713_s4 + $0x88] sm:$0xff] %vm617_vm0, %v570_v29  ;;  %667 = vst.msk [vmem:[%s1713_s4 + $0x188] sm:$0xff] %vm617_vm0, %v602_v30  ;;  %v569_v37 = vadd.f32 %v505_v26, %v251_v31  ;;  %v266_v39 = vadd.f32 %v828_v33, %v1195_v16  ;;  %v426_v40 = vadd.f32 %v876_v35, %v1195_v16  ;;  %v545_v29 = vld [vmem:[%s1712_s3 + $0x1c0] sm:$0xff]  ;;  %v516_v35 = vld [vmem:[%s1712_s3 + $0xd8] sm:$0xff] }
 0x109   :  { %v601_v38 = vadd.f32 %v537_v28, %v411_v32  ;;  %v260_v41 = vpop.f32.mrf.mxu0  ;;  %v420_v43 = vpop.f32.mrf.mxu1 }
 0x10a   :  { %634 = vst.msk [vmem:[%s1713_s4 + $0x80] sm:$0xff] %vm617_vm0, %v569_v37  ;;  %v572_v45 = vadd.f32 %v508_v34, %v266_v39  ;;  %v604_v46 = vadd.f32 %v540_v36, %v426_v40  ;;  %v261_v47 = vadd.f32 %v1195_v16, %v260_v41  ;;  %v421_v48 = vadd.f32 %v1195_v16, %v420_v43  ;;  %v548_v37 = vld [vmem:[%s1712_s3 + $0x1d8] sm:$0xff]  ;;  %v515_v43 = vld [vmem:[%s1712_s3 + $0xd0] sm:$0xff] }
 0x10b   :  { %666 = vst.msk [vmem:[%s1713_s4 + $0x180] sm:$0xff] %vm617_vm0, %v601_v38  ;;  %v831_v49 = vpop.f32.mrf.mxu0  ;;  %v879_v51 = vpop.f32.mrf.mxu1 }
 0x10c   :  { %637 = vst.msk [vmem:[%s1713_s4 + $0x98] sm:$0xff] %vm617_vm0, %v572_v45  ;;  %669 = vst.msk [vmem:[%s1713_s4 + $0x198] sm:$0xff] %vm617_vm0, %v604_v46  ;;  %v571_v53 = vadd.f32 %v507_v42, %v261_v47  ;;  %v603_v54 = vadd.f32 %v539_v44, %v421_v48  ;;  %v276_v55 = vadd.f32 %v831_v49, %v1195_v16  ;;  %v547_v45 = vld [vmem:[%s1712_s3 + $0x1d0] sm:$0xff] }
 0x10d   :  { %v436_v56 = vadd.f32 %v879_v51, %v1195_v16  ;;  %v270_v57 = vpop.f32.mrf.mxu0  ;;  %v430_v59 = vpop.f32.mrf.mxu1  ;;  %v518_v51 = vld [vmem:[%s1712_s3 + $0xe8] sm:$0xff] }
 0x10e   :  { %636 = vst.msk [vmem:[%s1713_s4 + $0x90] sm:$0xff] %vm617_vm0, %v571_v53  ;;  %668 = vst.msk [vmem:[%s1713_s4 + $0x190] sm:$0xff] %vm617_vm0, %v603_v54  ;;  %v574_v61 = vadd.f32 %v510_v50, %v276_v55  ;;  %v271_v63 = vadd.f32 %v1195_v16, %v270_v57  ;;  %v431_v0 = vadd.f32 %v1195_v16, %v430_v59  ;;  %v550_v53 = vld [vmem:[%s1712_s3 + $0x1e8] sm:$0xff]  ;;  %v517_v59 = vld [vmem:[%s1712_s3 + $0xe0] sm:$0xff] }
 0x10f   :  { %v606_v62 = vadd.f32 %v542_v52, %v436_v56  ;;  %v834_v1 = vpop.f32.mrf.mxu0  ;;  %v882_v3 = vpop.f32.mrf.mxu1 }
 0x110   :  { %639 = vst.msk [vmem:[%s1713_s4 + $0xa8] sm:$0xff] %vm617_vm0, %v574_v61  ;;  %v573_v5 = vadd.f32 %v509_v58, %v271_v63  ;;  %v605_v6 = vadd.f32 %v541_v60, %v431_v0  ;;  %v286_v7 = vadd.f32 %v834_v1, %v1195_v16  ;;  %v446_v8 = vadd.f32 %v882_v3, %v1195_v16  ;;  %v549_v61 = vld [vmem:[%s1712_s3 + $0x1e0] sm:$0xff]  ;;  %v520_v3 = vld [vmem:[%s1712_s3 + $0xf8] sm:$0xff] }
 0x111   :  { %671 = vst.msk [vmem:[%s1713_s4 + $0x1a8] sm:$0xff] %vm617_vm0, %v606_v62  ;;  %v280_v9 = vpop.f32.mrf.mxu0  ;;  %v440_v11 = vpop.f32.mrf.mxu1 }
 0x112   :  { %638 = vst.msk [vmem:[%s1713_s4 + $0xa0] sm:$0xff] %vm617_vm0, %v573_v5  ;;  %670 = vst.msk [vmem:[%s1713_s4 + $0x1a0] sm:$0xff] %vm617_vm0, %v605_v6  ;;  %v576_v13 = vadd.f32 %v512_v2, %v286_v7  ;;  %v608_v14 = vadd.f32 %v544_v4, %v446_v8  ;;  %v281_v15 = vadd.f32 %v1195_v16, %v280_v9  ;;  %v552_v5 = vld [vmem:[%s1712_s3 + $0x1f8] sm:$0xff] }
 0x113   :  { %v441_v17 = vadd.f32 %v1195_v16, %v440_v11  ;;  %v837_v18 = vpop.f32.mrf.mxu0  ;;  %v885_v20 = vpop.f32.mrf.mxu1  ;;  %v519_v11 = vld [vmem:[%s1712_s3 + $0xf0] sm:$0xff] }
 0x114   :  { %641 = vst.msk [vmem:[%s1713_s4 + $0xb8] sm:$0xff] %vm617_vm0, %v576_v13  ;;  %673 = vst.msk [vmem:[%s1713_s4 + $0x1b8] sm:$0xff] %vm617_vm0, %v608_v14  ;;  %v575_v22 = vadd.f32 %v511_v10, %v281_v15  ;;  %v296_v24 = vadd.f32 %v837_v18, %v1195_v16  ;;  %v456_v25 = vadd.f32 %v885_v20, %v1195_v16  ;;  %v551_v13 = vld [vmem:[%s1712_s3 + $0x1f0] sm:$0xff] }
 0x115   :  { %v607_v23 = vadd.f32 %v543_v12, %v441_v17  ;;  %v290_v26 = vpop.f32.mrf.mxu0  ;;  %v450_v28 = vpop.f32.mrf.mxu1 }
 0x116   :  { %640 = vst.msk [vmem:[%s1713_s4 + $0xb0] sm:$0xff] %vm617_vm0, %v575_v22  ;;  %v578_v30 = vadd.f32 %v514_v19, %v296_v24  ;;  %v610_v31 = vadd.f32 %v546_v21, %v456_v25  ;;  %v291_v32 = vadd.f32 %v1195_v16, %v290_v26  ;;  %v451_v33 = vadd.f32 %v1195_v16, %v450_v28 }
 0x117   :  { %672 = vst.msk [vmem:[%s1713_s4 + $0x1b0] sm:$0xff] %vm617_vm0, %v607_v23  ;;  %v840_v34 = vpop.f32.mrf.mxu0  ;;  %v888_v36 = vpop.f32.mrf.mxu1 }
 0x118   :  { %643 = vst.msk [vmem:[%s1713_s4 + $0xc8] sm:$0xff] %vm617_vm0, %v578_v30  ;;  %675 = vst.msk [vmem:[%s1713_s4 + $0x1c8] sm:$0xff] %vm617_vm0, %v610_v31  ;;  %v577_v38 = vadd.f32 %v513_v27, %v291_v32  ;;  %v609_v39 = vadd.f32 %v545_v29, %v451_v33  ;;  %v306_v40 = vadd.f32 %v840_v34, %v1195_v16 }
 0x119   :  { %v466_v41 = vadd.f32 %v888_v36, %v1195_v16  ;;  %v300_v42 = vpop.f32.mrf.mxu0  ;;  %v460_v44 = vpop.f32.mrf.mxu1 }
 0x11a   :  { %642 = vst.msk [vmem:[%s1713_s4 + $0xc0] sm:$0xff] %vm617_vm0, %v577_v38  ;;  %674 = vst.msk [vmem:[%s1713_s4 + $0x1c0] sm:$0xff] %vm617_vm0, %v609_v39  ;;  %v580_v46 = vadd.f32 %v516_v35, %v306_v40  ;;  %v301_v48 = vadd.f32 %v1195_v16, %v300_v42  ;;  %v461_v49 = vadd.f32 %v1195_v16, %v460_v44 }
 0x11b   :  { %v612_v47 = vadd.f32 %v548_v37, %v466_v41  ;;  %v843_v50 = vpop.f32.mrf.mxu0  ;;  %v891_v52 = vpop.f32.mrf.mxu1 }
 0x11c   :  { %645 = vst.msk [vmem:[%s1713_s4 + $0xd8] sm:$0xff] %vm617_vm0, %v580_v46  ;;  %v579_v54 = vadd.f32 %v515_v43, %v301_v48  ;;  %v611_v55 = vadd.f32 %v547_v45, %v461_v49  ;;  %v316_v56 = vadd.f32 %v843_v50, %v1195_v16  ;;  %v476_v57 = vadd.f32 %v891_v52, %v1195_v16 }
 0x11d   :  { %677 = vst.msk [vmem:[%s1713_s4 + $0x1d8] sm:$0xff] %vm617_vm0, %v612_v47  ;;  %v310_v58 = vpop.f32.mrf.mxu0  ;;  %v470_v60 = vpop.f32.mrf.mxu1 }
 0x11e   :  { %644 = vst.msk [vmem:[%s1713_s4 + $0xd0] sm:$0xff] %vm617_vm0, %v579_v54  ;;  %676 = vst.msk [vmem:[%s1713_s4 + $0x1d0] sm:$0xff] %vm617_vm0, %v611_v55  ;;  %v582_v62 = vadd.f32 %v518_v51, %v316_v56  ;;  %v614_v63 = vadd.f32 %v550_v53, %v476_v57  ;;  %v311_v0 = vadd.f32 %v1195_v16, %v310_v58 }
 0x11f   :  { %v471_v1 = vadd.f32 %v1195_v16, %v470_v60  ;;  %v846_v2 = vpop.f32.mrf.mxu0  ;;  %v894_v4 = vpop.f32.mrf.mxu1 }
 0x120   :  { %647 = vst.msk [vmem:[%s1713_s4 + $0xe8] sm:$0xff] %vm617_vm0, %v582_v62  ;;  %679 = vst.msk [vmem:[%s1713_s4 + $0x1e8] sm:$0xff] %vm617_vm0, %v614_v63  ;;  %v581_v6 = vadd.f32 %v517_v59, %v311_v0  ;;  %v326_v8 = vadd.f32 %v846_v2, %v1195_v16  ;;  %v486_v9 = vadd.f32 %v894_v4, %v1195_v16 }
 0x121   :  { %v613_v7 = vadd.f32 %v549_v61, %v471_v1  ;;  %v320_v10 = vpop.f32.mrf.mxu0  ;;  %v480_v12 = vpop.f32.mrf.mxu1 }
 0x122   :  { %646 = vst.msk [vmem:[%s1713_s4 + $0xe0] sm:$0xff] %vm617_vm0, %v581_v6  ;;  %v584_v14 = vadd.f32 %v520_v3, %v326_v8  ;;  %v616_v15 = vadd.f32 %v552_v5, %v486_v9  ;;  %v321_v17 = vadd.f32 %v1195_v16, %v320_v10  ;;  %v481_v18 = vadd.f32 %v1195_v16, %v480_v12 }
 0x123   :  { %678 = vst.msk [vmem:[%s1713_s4 + $0x1e0] sm:$0xff] %vm617_vm0, %v613_v7 }
 0x124   :  { %649 = vst.msk [vmem:[%s1713_s4 + $0xf8] sm:$0xff] %vm617_vm0, %v584_v14  ;;  %681 = vst.msk [vmem:[%s1713_s4 + $0x1f8] sm:$0xff] %vm617_vm0, %v616_v15  ;;  %v583_v19 = vadd.f32 %v519_v11, %v321_v17  ;;  %v615_v20 = vadd.f32 %v551_v13, %v481_v18 }
 0x126   :  { %648 = vst.msk [vmem:[%s1713_s4 + $0xf0] sm:$0xff] %vm617_vm0, %v583_v19  ;;  %680 = vst.msk [vmem:[%s1713_s4 + $0x1f0] sm:$0xff] %vm617_vm0, %v615_v20 }

// kernel: transformer_block_forward.10
= control target key start
LH: loop header
LB: loop body
LE: loop exit
PB: predicated region body
PF: predicated region fallthrough
CT: control target
= control target key end

     0   :  { %s1797_s12 = smov 0   ;;  %s2896_s0 = inlined_call_operand.vmem [shape: f32[2,18,18,128], index: 0, kind: input, shape index: {}]   ;;  %s2897_s1 = inlined_call_operand.vmem [shape: f32[9,128], index: 1, kind: input, shape index: {}]   ;;  %s2898_s2 = inlined_call_operand.vmem [shape: f32[1,128], index: 2, kind: input, shape index: {}]   ;;  %s2899_s3 = inlined_call_operand.vmem [shape: f32[2,16,16,128], index: 3, kind: output, shape index: {}]  }
   0x1 LB: > { %s1489_s13 = sadd.s32 4294967295, %s1775_s12   ;;  %p1493_p0 = scmp.ge.s32.totalorder %s1775_s12, 1  ;;  %s1775_s12 = sphi %s1797_s12, %s13_s12  }
   0x2   : > { %p137_p1 = scmp.lt.s32.totalorder %s1775_s12, 3 }
   0x4   : > { %p138_p2 = pnand %p1493_p0, %p137_p1 }
   0x5   : > { %p161_p3 = scmp.lt.s32.totalorder (!%p138_p2), %s1489_s13, 1 }
   0x6   : > { %141 = sbr.rel (%p138_p2) target bundleno = 264 (0x108), region = 32 }
   0xb   : > { %v205_v0 = vlaneseq  ;;  %s2901_s13 = smov (!%p161_p3, %s1489_s13), 1  ;;  %v171_v2 = vld [vmem:[%s2897_s1] sm:$0xff]  ;;  %v1843_v27 = vld [vmem:[%s2897_s1 + $0x8] ss:$0 sm:$0xff] }
   0xc   : > { %s1694_s16 = smul.u32 432, %s2901_s13  ;;  %s1693_s24 = sshll.u32 %s2901_s13, 8 }
   0xd   : > { %v206_v1 = vshrl.u32 %v205_v0, 7  ;;  %s2056_s27 = scalar_lea.vmem %s2899_s3, %s1693_s24 }
   0xe   : > { %s1814_s19 = scalar_lea.vmem %s2896_s0, %s1694_s16 }
   0xf   : > { %v207_v3 = vsub.s32 0, %v206_v1  ;;  %v307_v4 = vsub.s32 1, %v206_v1  ;;  %v407_v5 = vsub.s32 2, %v206_v1  ;;  %v508_v6 = vsub.s32 3, %v206_v1  ;;  %v173_v15 = vld [vmem:[%s1814_s19] sm:$0xff]  ;;  %v1497_v24 = vld [vmem:[%s1814_s19 + $0x18] sm:$0xff] }
  0x10   : > { %v608_v7 = vsub.s32 4, %v206_v1  ;;  %v708_v8 = vsub.s32 5, %v206_v1  ;;  %v809_v9 = vsub.s32 6, %v206_v1  ;;  %v909_v10 = vsub.s32 7, %v206_v1  ;;  %v273_v16 = vld [vmem:[%s1814_s19 + $0x1] sm:$0xff]  ;;  %v1529_v25 = vld [vmem:[%s1814_s19 + $0x19] sm:$0xff] }
  0x11   : > { %v1816_v11 = vrot.slane %v171_v2, %v207_v3  ;;  %v1818_v12 = vrot.slane %v171_v2, %v307_v4  ;;  %v1820_v13 = vrot.slane %v171_v2, %v407_v5  ;;  %v1822_v14 = vrot.slane %v171_v2, %v508_v6  ;;  %v373_v17 = vld [vmem:[%s1814_s19 + $0x2] sm:$0xff]  ;;  %v1561_v29 = vld [vmem:[%s1814_s19 + $0x1a] sm:$0xff]  ;;  %v374_v35 = vld [vmem:[%s1814_s19 + $0xa] sm:$0xff] }
  0x12   : > { %v1827_v18 = vrot.slane %v171_v2, %v608_v7  ;;  %v1829_v19 = vrot.slane %v171_v2, %v708_v8  ;;  %v1831_v20 = vrot.slane %v171_v2, %v809_v9  ;;  %v1838_v26 = vrot.slane %v171_v2, %v909_v10  ;;  %v174_v33 = vld [vmem:[%s1814_s19 + $0x8] sm:$0xff]  ;;  %v1593_v37 = vld [vmem:[%s1814_s19 + $0x30] sm:$0xff]  ;;  %v1498_v48 = vld [vmem:[%s1814_s19 + $0x20] sm:$0xff] }
  0x13   : > { %v209_v21 = vmul.f32 %v1816_v11, %v173_v15  ;;  %v309_v22 = vmul.f32 %v1818_v12, %v273_v16  ;;  %v409_v23 = vmul.f32 %v1820_v13, %v373_v17  ;;  %v510_v28 = vmul.f32 %v1497_v24, %v1822_v14  ;;  %v274_v34 = vld [vmem:[%s1814_s19 + $0x9] sm:$0xff]  ;;  %v1625_v38 = vld [vmem:[%s1814_s19 + $0x31] sm:$0xff]  ;;  %v1530_v49 = vld [vmem:[%s1814_s19 + $0x21] sm:$0xff] }
  0x14   : > { %v610_v31 = vmul.f32 %v1529_v25, %v1827_v18  ;;  %v710_v32 = vmul.f32 %v1561_v29, %v1829_v19  ;;  %v211_v36 = vmul.f32 %v1497_v24, %v1816_v11  ;;  %v1657_v39 = vld [vmem:[%s1814_s19 + $0x32] sm:$0xff]  ;;  %v210_v40 = vmul.f32 %v1816_v11, %v174_v33  ;;  %v1562_v50 = vld [vmem:[%s1814_s19 + $0x22] sm:$0xff]  ;;  %v1874_v58 = vld [vmem:[%s1814_s19 + $0x3a] sm:$0xff] }
  0x15   : > { %v341_v30 = vadd.f32 %v309_v22, %v209_v21  ;;  %v310_v41 = vmul.f32 %v1818_v12, %v274_v34  ;;  %v410_v42 = vmul.f32 %v1820_v13, %v374_v35  ;;  %v311_v43 = vmul.f32 %v1529_v25, %v1818_v12  ;;  %v1594_v56 = vld [vmem:[%s1814_s19 + $0x38] sm:$0xff]  ;;  %v1886_v7 = vld [vmem:[%s1814_s19 + $0x48] sm:$0xff] }
  0x16   : > { %v811_v45 = vmul.f32 %v1593_v37, %v1831_v20  ;;  %v911_v46 = vmul.f32 %v1625_v38, %v1838_v26  ;;  %v1011_v47 = vmul.f32 %v1843_v27, %v1657_v39  ;;  %v511_v52 = vmul.f32 %v1498_v48, %v1822_v14  ;;  %v1871_v57 = vld [vmem:[%s1814_s19 + $0x39] sm:$0xff]  ;;  %v1889_v8 = vld [vmem:[%s1814_s19 + $0x49] sm:$0xff] }
  0x17   : > { %v441_v44 = vadd.f32 %v409_v23, %v341_v30  ;;  %v342_v51 = vadd.f32 %v310_v41, %v210_v40  ;;  %v611_v53 = vmul.f32 %v1530_v49, %v1827_v18  ;;  %v711_v54 = vmul.f32 %v1562_v50, %v1829_v19  ;;  %v1899_v23 = vld [vmem:[%s1814_s19 + $0x4a] sm:$0xff] }
  0x18   : > { %v343_v59 = vadd.f32 %v311_v43, %v211_v36  ;;  %v411_v60 = vmul.f32 %v1561_v29, %v1820_v13  ;;  %v512_v61 = vmul.f32 %v1593_v37, %v1822_v14  ;;  %v812_v63 = vmul.f32 %v1594_v56, %v1831_v20  ;;  %v1909_v36 = vld [vmem:[%s1814_s19 + $0x50] sm:$0xff] }
  0x19   : > { %v542_v55 = vadd.f32 %v510_v28, %v441_v44  ;;  %v442_v62 = vadd.f32 %v410_v42, %v342_v51  ;;  %v912_v0 = vmul.f32 %v1871_v57, %v1838_v26  ;;  %v1012_v1 = vmul.f32 %v1843_v27, %v1874_v58  ;;  %v1922_v51 = vld [vmem:[%s1814_s19 + $0x51] sm:$0xff] }
  0x1a   : > { %v443_v3 = vadd.f32 %v411_v60, %v343_v59  ;;  %v612_v4 = vmul.f32 %v1625_v38, %v1827_v18  ;;  %v712_v5 = vmul.f32 %v1657_v39, %v1829_v19  ;;  %v212_v9 = vmul.f32 %v1498_v48, %v1816_v11  ;;  %v1919_v48 = vld [vmem:[%s2898_s2] ss:$0 sm:$0xff] }
  0x1b   : > { %v642_v2 = vadd.f32 %v610_v31, %v542_v55  ;;  %v543_v6 = vadd.f32 %v511_v52, %v442_v62  ;;  %v312_v10 = vmul.f32 %v1530_v49, %v1818_v12  ;;  %v412_v15 = vmul.f32 %v1562_v50, %v1820_v13  ;;  %v1925_v52 = vld [vmem:[%s1814_s19 + $0x52] sm:$0xff] }
  0x1c   : > { %v544_v17 = vadd.f32 %v512_v61, %v443_v3  ;;  %v813_v21 = vmul.f32 %v1886_v7, %v1831_v20  ;;  %v913_v22 = vmul.f32 %v1889_v8, %v1838_v26  ;;  %v1013_v25 = vmul.f32 %v1843_v27, %v1899_v23 }
  0x1d   : > { %v742_v16 = vadd.f32 %v710_v32, %v642_v2  ;;  %v643_v24 = vadd.f32 %v611_v53, %v543_v6  ;;  %v344_v28 = vadd.f32 %v312_v10, %v212_v9  ;;  %v513_v29 = vmul.f32 %v1594_v56, %v1822_v14  ;;  %v1940_v6 = vld [vmem:[%s1814_s19 + $0x60] sm:$0xff] }
  0x1e   : > { %v644_v31 = vadd.f32 %v612_v4, %v544_v17  ;;  %v613_v32 = vmul.f32 %v1871_v57, %v1827_v18  ;;  %v713_v33 = vmul.f32 %v1874_v58, %v1829_v19  ;;  %v213_v40 = vmul.f32 %v1593_v37, %v1816_v11 }
  0x1f   : > { %v843_v30 = vadd.f32 %v811_v45, %v742_v16  ;;  %v743_v34 = vadd.f32 %v711_v54, %v643_v24  ;;  %v444_v35 = vadd.f32 %v412_v15, %v344_v28  ;;  %v313_v41 = vmul.f32 %v1625_v38, %v1818_v12  ;;  %v1951_v28 = vld [vmem:[%s1814_s19 + $0x61] sm:$0xff] }
  0x20   : > { %v744_v43 = vadd.f32 %v712_v5, %v644_v31  ;;  %v814_v44 = vmul.f32 %v1909_v36, %v1831_v20  ;;  %v413_v45 = vmul.f32 %v1657_v39, %v1820_v13  ;;  %v514_v38 = vmul.f32 %v1886_v7, %v1822_v14 }
  0x21   : > { %v943_v42 = vadd.f32 %v911_v46, %v843_v30  ;;  %v844_v49 = vadd.f32 %v812_v63, %v743_v34  ;;  %v545_v50 = vadd.f32 %v513_v29, %v444_v35  ;;  %v345_v37 = vadd.f32 %v313_v41, %v213_v40 }
  0x22   : > { %v845_v53 = vadd.f32 %v813_v21, %v744_v43  ;;  %v914_v39 = vmul.f32 %v1922_v51, %v1838_v26  ;;  %v1014_v54 = vmul.f32 %v1843_v27, %v1925_v52  ;;  %v614_v61 = vmul.f32 %v1889_v8, %v1827_v18 }
  0x23   : > { %v1043_v46 = vadd.f32 %v1011_v47, %v943_v42  ;;  %v944_v55 = vadd.f32 %v912_v0, %v844_v49  ;;  %v645_v59 = vadd.f32 %v613_v32, %v545_v50  ;;  %v445_v60 = vadd.f32 %v413_v45, %v345_v37 }
  0x24   : > { %v945_v63 = vadd.f32 %v913_v22, %v845_v53  ;;  %v714_v2 = vmul.f32 %v1899_v23, %v1829_v19  ;;  %v214_v47 = vmul.f32 %v1594_v56, %v1816_v11  ;;  %v314_v0 = vmul.f32 %v1871_v57, %v1818_v12 }
  0x25   : > { %v1082_v62 = vadd.f32 %v1919_v48, %v1043_v46  ;;  %v1044_v3 = vadd.f32 %v1012_v1, %v944_v55  ;;  %v745_v4 = vadd.f32 %v713_v33, %v645_v59  ;;  %v546_v5 = vadd.f32 %v514_v38, %v445_v60  ;;  %v1958_v33 = vld [vmem:[%s1814_s19 + $0x62] sm:$0xff] }
  0x26   : > { %v1045_v10 = vadd.f32 %v1013_v25, %v945_v63  ;;  %v815_v15 = vmul.f32 %v1940_v6, %v1831_v20  ;;  %v414_v16 = vmul.f32 %v1874_v58, %v1820_v13  ;;  %v346_v21 = vadd.f32 %v314_v0, %v214_v47 }
  0x27   : > { %v1146_v9 = vmul.f32 %v1082_v62, %v1082_v62  ;;  %v1083_v56 = vadd.f32 %v1919_v48, %v1044_v3  ;;  %v846_v17 = vadd.f32 %v814_v44, %v745_v4  ;;  %v646_v1 = vadd.f32 %v614_v61, %v546_v5  ;;  %v1975_v61 = vld [vmem:[%s1814_s19 + $0x69] sm:$0xff] }
  0x28   : > { %v1084_v24 = vadd.f32 %v1919_v48, %v1045_v10  ;;  %v515_v57 = vmul.f32 %v1909_v36, %v1822_v14  ;;  %v915_v31 = vmul.f32 %v1951_v28, %v1838_v26  ;;  %v446_v34 = vadd.f32 %v414_v16, %v346_v21 }
  0x29   : > { %v1178_v22 = vmul.f32 %v1146_v9, %v1082_v62  ;;  %v1147_v25 = vmul.f32 %v1083_v56, %v1083_v56  ;;  %v946_v29 = vadd.f32 %v914_v39, %v846_v17  ;;  %v746_v30 = vadd.f32 %v714_v2, %v646_v1  ;;  %v1970_v39 = vld [vmem:[%s1814_s19 + $0x68] sm:$0xff] }
  0x2a   : > { %v1148_v32 = vmul.f32 %v1084_v24, %v1084_v24  ;;  %v615_v35 = vmul.f32 %v1922_v51, %v1827_v18  ;;  %v1015_v43 = vmul.f32 %v1843_v27, %v1958_v33  ;;  %v547_v49 = vadd.f32 %v515_v57, %v446_v34 }
  0x2b   : > { %v1210_v58 = vmul.f32 0.044715, %v1178_v22  ;;  %v1179_v40 = vmul.f32 %v1147_v25, %v1083_v56  ;;  %v1046_v41 = vadd.f32 %v1014_v54, %v946_v29  ;;  %v847_v42 = vadd.f32 %v815_v15, %v746_v30  ;;  %v1983_v15 = vld [vmem:[%s1814_s19 + $0x6a] sm:$0xff] }
  0x2c   : > { %v1180_v45 = vmul.f32 %v1148_v32, %v1084_v24  ;;  %v715_v50 = vmul.f32 %v1925_v52, %v1829_v19  ;;  %v1966_v37 = vmul.f32 0.5, %v1082_v62  ;;  %v647_v59 = vadd.f32 %v615_v35, %v547_v49 }
  0x2d   : > { %v1242_v44 = vadd.f32 %v1210_v58, %v1082_v62  ;;  %v1211_v38 = vmul.f32 0.044715, %v1179_v40  ;;  %v1085_v46 = vadd.f32 %v1919_v48, %v1046_v41  ;;  %v947_v53 = vadd.f32 %v915_v31, %v847_v42 }
  0x2e   : > { %v1212_v55 = vmul.f32 0.044715, %v1180_v45  ;;  %v816_v60 = vmul.f32 %v1970_v39, %v1831_v20  ;;  %v916_v62 = vmul.f32 %v1975_v61, %v1838_v26  ;;  %v747_v4 = vadd.f32 %v715_v50, %v647_v59 }
  0x2f   : > { %v1274_v54 = vmul.f32 0.7978846, %v1242_v44  ;;  %v1243_v63 = vadd.f32 %v1211_v38, %v1083_v56  ;;  %v1149_v2 = vmul.f32 %v1085_v46, %v1085_v46  ;;  %v1047_v47 = vadd.f32 %v1015_v43, %v947_v53 }
  0x30   : > { %v1244_v3 = vadd.f32 %v1212_v55, %v1084_v24  ;;  %v215_v5 = vmul.f32 %v1886_v7, %v1816_v11  ;;  %v315_v16 = vmul.f32 %v1889_v8, %v1818_v12  ;;  %v848_v1 = vadd.f32 %v816_v60, %v747_v4  ;;  %v2029_v60 = vld [vmem:[%s1814_s19 + $0x7a] sm:$0xff] }
  0x31   : > { %1703 = vtanh.f32 %v1274_v54  ;;  %v1275_v0 = vmul.f32 0.7978846, %v1243_v63  ;;  %v1181_v9 = vmul.f32 %v1149_v2, %v1085_v46  ;;  %v1086_v10 = vadd.f32 %v1919_v48, %v1047_v47 }
  0x32   : > { %v1276_v17 = vmul.f32 0.7978846, %v1244_v3  ;;  %v1016_v21 = vmul.f32 %v1843_v27, %v1983_v15  ;;  %v415_v22 = vmul.f32 %v1899_v23, %v1820_v13  ;;  %v1991_v57 = vmul.f32 0.5, %v1083_v56 }
  0x33   : > { %1705 = vtanh.f32 %v1275_v0  ;;  %v1213_v7 = vmul.f32 0.044715, %v1181_v9  ;;  %v1150_v25 = vmul.f32 %v1086_v10, %v1086_v10  ;;  %v948_v29 = vadd.f32 %v916_v62, %v848_v1 }
  0x34   : > { %1707 = vtanh.f32 %v1276_v17  ;;  %v347_v30 = vadd.f32 %v315_v16, %v215_v5  ;;  %v516_v31 = vmul.f32 %v1940_v6, %v1822_v14  ;;  %v1995_v8 = vmul.f32 0.5, %v1084_v24  ;;  %v2042_v16 = vld [vmem:[%s1814_s19 + $0x80] sm:$0xff] }
  0x35   : > { %v1997_v58 = vmul.f32 0.5, %v1085_v46  ;;  %v1245_v32 = vadd.f32 %v1213_v7, %v1085_v46  ;;  %v1182_v34 = vmul.f32 %v1150_v25, %v1086_v10  ;;  %v1999_v23 = vmul.f32 0.5, %v1086_v10  ;;  %v2015_v46 = vld [vmem:[%s1814_s19 + $0x78] sm:$0xff] }
  0x36   : > { %v1048_v56 = vadd.f32 %v1016_v21, %v948_v29  ;;  %v447_v35 = vadd.f32 %v415_v22, %v347_v30  ;;  %v616_v40 = vmul.f32 %v1951_v28, %v1827_v18  ;;  %v216_v43 = vmul.f32 %v1909_v36, %v1816_v11  ;;  %v2018_v36 = vld [vmem:[%s1814_s19 + $0x79] sm:$0xff]  ;;  %v2051_v29 = vld [vmem:[%s1814_s19 + $0x81] sm:$0xff] }
  0x37   : > { %v1277_v41 = vmul.f32 0.7978846, %v1245_v32  ;;  %v1214_v42 = vmul.f32 0.044715, %v1182_v34  ;;  %v316_v24 = vmul.f32 %v1922_v51, %v1818_v12  ;;  %v716_v49 = vmul.f32 %v1958_v33, %v1829_v19  ;;  %v2061_v30 = vld [vmem:[%s1814_s19 + $0x82] sm:$0xff] }
  0x38   : > { %v2008_v44 = vadd.f32 %v1919_v48, %v1048_v56  ;;  %v548_v45 = vadd.f32 %v516_v31, %v447_v35  ;;  %v416_v50 = vmul.f32 %v1925_v52, %v1820_v13  ;;  %v517_v51 = vmul.f32 %v1970_v39, %v1822_v14 }
  0x39   : > { %1709 = vtanh.f32 %v1277_v41  ;;  %v1246_v38 = vadd.f32 %v1214_v42, %v1086_v10  ;;  %v348_v53 = vadd.f32 %v316_v24, %v216_v43  ;;  %v817_v59 = vmul.f32 %v2015_v46, %v1831_v20 }
  0x3a   : > { %v1151_v54 = vmul.f32 %v2008_v44, %v2008_v44  ;;  %v648_v55 = vadd.f32 %v616_v40, %v548_v45  ;;  %v917_v52 = vmul.f32 %v2018_v36, %v1838_v26  ;;  %v1017_v2 = vmul.f32 %v1843_v27, %v2029_v60 }
  0x3b   : > { %v1278_v63 = vmul.f32 0.7978846, %v1246_v38  ;;  %v448_v47 = vadd.f32 %v416_v50, %v348_v53  ;;  %v617_v62 = vmul.f32 %v1975_v61, %v1827_v18  ;;  %v717_v5 = vmul.f32 %v1983_v15, %v1829_v19 }
  0x3c   : > { %v1183_v3 = vmul.f32 %v1151_v54, %v2008_v44  ;;  %v748_v4 = vadd.f32 %v716_v49, %v648_v55  ;;  %v217_v0 = vmul.f32 %v1940_v6, %v1816_v11  ;;  %v317_v17 = vmul.f32 %v1951_v28, %v1818_v12 }
  0x3d   : > { %1711 = vtanh.f32 %v1278_v63  ;;  %v549_v10 = vadd.f32 %v517_v51, %v448_v47  ;;  %v417_v1 = vmul.f32 %v1958_v33, %v1820_v13  ;;  %v818_v25 = vmul.f32 %v2042_v16, %v1831_v20  ;;  %v2082_v63 = vld [vmem:[%s1814_s19 + $0x90] sm:$0xff] }
  0x3e   : > { %v1704_v9 = vpop.eup %1703  ;;  %v1215_v22 = vmul.f32 0.044715, %v1183_v3  ;;  %v849_v7 = vadd.f32 %v817_v59, %v748_v4  ;;  %v918_v28 = vmul.f32 %v2051_v29, %v1838_v26  ;;  %v349_v33 = vadd.f32 %v317_v17, %v217_v0  ;;  %v2090_v3 = vld [vmem:[%s1814_s19 + $0x91] sm:$0xff] }
  0x3f   : > { %v1338_v21 = vadd.f32 1.0, %v1704_v9  ;;  %v649_v6 = vadd.f32 %v617_v62, %v549_v10  ;;  %v518_v31 = vmul.f32 %v2015_v46, %v1822_v14  ;;  %v1018_v40 = vmul.f32 %v1843_v27, %v2061_v30 }
  0x40   : > { %v1706_v32 = vpop.eup %1705  ;;  %v1247_v56 = vadd.f32 %v1215_v22, %v2008_v44  ;;  %v949_v35 = vadd.f32 %v917_v52, %v849_v7  ;;  %v449_v24 = vadd.f32 %v417_v1, %v349_v33  ;;  %v618_v45 = vmul.f32 %v2018_v36, %v1827_v18 }
  0x41   : > { %v1370_v34 = vmul.f32 %v1338_v21, %v1966_v37  ;;  %v1708_v41 = vpop.eup %1707  ;;  %v1339_v42 = vadd.f32 1.0, %v1706_v32  ;;  %v749_v43 = vadd.f32 %v717_v5, %v649_v6  ;;  %v718_v38 = vmul.f32 %v2029_v60, %v1829_v19  ;;  %v2100_v5 = vld [vmem:[%s1814_s19 + $0x92] sm:$0xff] }
  0x42   : > { %v1340_v49 = vadd.f32 1.0, %v1708_v41  ;;  %v1279_v50 = vmul.f32 0.7978846, %v1247_v56  ;;  %v1049_v37 = vadd.f32 %v1017_v2, %v949_v35  ;;  %v550_v54 = vadd.f32 %v518_v31, %v449_v24  ;;  %v2112_v6 = vld [vmem:[%s1814_s19 + $0x98] sm:$0xff] }
  0x43   : > { %1402 = vst [vmem:[%s2056_s27] sm:$0xff] %v1370_v34  ;;  %v1371_v53 = vmul.f32 %v1339_v42, %v1991_v57  ;;  %v850_v51 = vadd.f32 %v818_v25, %v749_v43  ;;  %v218_v55 = vmul.f32 %v1970_v39, %v1816_v11  ;;  %v318_v2 = vmul.f32 %v1975_v61, %v1818_v12 }
  0x44   : > { %v1372_v59 = vmul.f32 %v1340_v49, %v1995_v8  ;;  %1713 = vtanh.f32 %v1279_v50  ;;  %v2079_v52 = vadd.f32 %v1919_v48, %v1049_v37  ;;  %v650_v47 = vadd.f32 %v618_v45, %v550_v54 }
  0x45   : > { %1403 = vst [vmem:[%s2056_s27 + $0x8] sm:$0xff] %v1371_v53  ;;  %v950_v57 = vadd.f32 %v918_v28, %v850_v51  ;;  %v819_v62 = vmul.f32 %v2082_v63, %v1831_v20  ;;  %v418_v39 = vmul.f32 %v1983_v15, %v1820_v13  ;;  %v919_v61 = vmul.f32 %v2090_v3, %v1838_v26 }
  0x46   : > { %v1710_v8 = vpop.eup %1709  ;;  %1404 = vst [vmem:[%s2056_s27 + $0x10] sm:$0xff] %v1372_v59  ;;  %v1152_v4 = vmul.f32 %v2079_v52, %v2079_v52  ;;  %v350_v0 = vadd.f32 %v318_v2, %v218_v55  ;;  %v519_v9 = vmul.f32 %v2042_v16, %v1822_v14  ;;  %v750_v1 = vadd.f32 %v718_v38, %v650_v47  ;;  %v2140_v59 = vld [vmem:[%s1814_s19 + $0x9a] sm:$0xff] }
  0x47   : > { %v1341_v10 = vadd.f32 1.0, %v1710_v8  ;;  %v1050_v17 = vadd.f32 %v1018_v40, %v950_v57  ;;  %v1019_v15 = vmul.f32 %v1843_v27, %v2100_v5  ;;  %v619_v7 = vmul.f32 %v2051_v29, %v1827_v18  ;;  %v2121_v40 = vld [vmem:[%s1814_s19 + $0x99] sm:$0xff] }
  0x48   : > { %v1184_v21 = vmul.f32 %v1152_v4, %v2079_v52  ;;  %v450_v22 = vadd.f32 %v418_v39, %v350_v0  ;;  %v719_v25 = vmul.f32 %v2061_v30, %v1829_v19  ;;  %v851_v31 = vadd.f32 %v819_v62, %v750_v1 }
  0x49   : > { %v1373_v28 = vmul.f32 %v1341_v10, %v1997_v58  ;;  %v2116_v33 = vadd.f32 %v1919_v48, %v1050_v17  ;;  %v820_v32 = vmul.f32 %v2112_v6, %v1831_v20  ;;  %v219_v41 = vmul.f32 %v2015_v46, %v1816_v11 }
  0x4a   : > { %v1712_v34 = vpop.eup %1711  ;;  %v1216_v56 = vmul.f32 0.044715, %v1184_v21  ;;  %v551_v35 = vadd.f32 %v519_v9, %v450_v22  ;;  %v319_v42 = vmul.f32 %v2018_v36, %v1818_v12  ;;  %v951_v24 = vadd.f32 %v919_v61, %v851_v31  ;;  %v2152_v61 = vld [vmem:[%s1814_s19 + $0xa8] sm:$0xff] }
  0x4b   : > { %1405 = vst [vmem:[%s2056_s27 + $0x18] sm:$0xff] %v1373_v28  ;;  %v1342_v58 = vadd.f32 1.0, %v1712_v34  ;;  %v1153_v43 = vmul.f32 %v2116_v33, %v2116_v33  ;;  %v920_v45 = vmul.f32 %v2121_v40, %v1838_v26  ;;  %v419_v46 = vmul.f32 %v2029_v60, %v1820_v13 }
  0x4c   : > { %v1248_v49 = vadd.f32 %v1216_v56, %v2079_v52  ;;  %v651_v50 = vadd.f32 %v619_v7, %v551_v35  ;;  %v351_v37 = vadd.f32 %v319_v42, %v219_v41  ;;  %v1051_v53 = vadd.f32 %v1019_v15, %v951_v24  ;;  %v2169_v42 = vld [vmem:[%s1814_s19 + $0xaa] sm:$0xff] }
  0x4d   : > { %v1374_v36 = vmul.f32 %v1342_v58, %v1999_v23  ;;  %v1185_v38 = vmul.f32 %v1153_v43, %v2116_v33  ;;  %v520_v51 = vmul.f32 %v2082_v63, %v1822_v14  ;;  %v620_v57 = vmul.f32 %v2090_v3, %v1827_v18 }
  0x4e   : > { %v1280_v54 = vmul.f32 0.7978846, %v1248_v49  ;;  %v751_v55 = vadd.f32 %v719_v25, %v651_v50  ;;  %v451_v2 = vadd.f32 %v419_v46, %v351_v37  ;;  %v1119_v60 = vmul.f32 0.5, %v2008_v44  ;;  %v2160_v25 = vld [vmem:[%s1814_s19 + $0xa9] sm:$0xff] }
  0x4f   : > { %1406 = vst [vmem:[%s2056_s27 + $0x20] sm:$0xff] %v1374_v36  ;;  %v1217_v47 = vmul.f32 0.044715, %v1185_v38  ;;  %v1090_v23 = vadd.f32 %v1919_v48, %v1051_v53  ;;  %v1020_v62 = vmul.f32 %v1843_v27, %v2140_v59  ;;  %v720_v4 = vmul.f32 %v2100_v5, %v1829_v19 }
  0x50   : > { %1715 = vtanh.f32 %v1280_v54  ;;  %v852_v39 = vadd.f32 %v820_v32, %v751_v55  ;;  %v552_v8 = vadd.f32 %v520_v51, %v451_v2  ;;  %v821_v44 = vmul.f32 %v2152_v61, %v1831_v20  ;;  %v2192_v51 = vld [vmem:[%s1814_s19 + $0xb0] sm:$0xff] }
  0x51   : > { %v1714_v0 = vpop.eup %1713  ;;  %v1249_v9 = vadd.f32 %v1217_v47, %v2116_v33  ;;  %v1154_v10 = vmul.f32 %v1090_v23, %v1090_v23  ;;  %v220_v21 = vmul.f32 %v2042_v16, %v1816_v11  ;;  %v320_v28 = vmul.f32 %v2051_v29, %v1818_v12 }
  0x52   : > { %v1343_v17 = vadd.f32 1.0, %v1714_v0  ;;  %v952_v1 = vadd.f32 %v920_v45, %v852_v39  ;;  %v652_v15 = vadd.f32 %v620_v57, %v552_v8  ;;  %v420_v31 = vmul.f32 %v2061_v30, %v1820_v13  ;;  %v2207_v39 = vld [vmem:[%s1814_s19 + $0xb2] sm:$0xff] }
  0x53   : > { %v1281_v22 = vmul.f32 0.7978846, %v1249_v9  ;;  %v1186_v7 = vmul.f32 %v1154_v10, %v1090_v23  ;;  %v921_v35 = vmul.f32 %v2160_v25, %v1838_v26  ;;  %v352_v16 = vadd.f32 %v320_v28, %v220_v21 }
  0x54   : > { %v1375_v32 = vmul.f32 %v1343_v17, %v1119_v60  ;;  %v1052_v34 = vadd.f32 %v1020_v62, %v952_v1  ;;  %v752_v56 = vadd.f32 %v720_v4, %v652_v15  ;;  %v521_v58 = vmul.f32 %v2112_v6, %v1822_v14  ;;  %v2204_v62 = vld [vmem:[%s1814_s19 + $0xb1] sm:$0xff] }
  0x55   : > { %1717 = vtanh.f32 %v1281_v22  ;;  %v1218_v41 = vmul.f32 0.044715, %v1186_v7  ;;  %v1120_v29 = vmul.f32 0.5, %v2079_v52  ;;  %v1021_v24 = vmul.f32 %v1843_v27, %v2169_v42 }
  0x56   : > { %1407 = vst [vmem:[%s2056_s27 + $0x28] sm:$0xff] %v1375_v32  ;;  %v2176_v30 = vadd.f32 %v1919_v48, %v1052_v34  ;;  %v853_v43 = vadd.f32 %v821_v44, %v752_v56  ;;  %v2181_v45 = vmul.f32 0.5, %v2116_v33  ;;  %v452_v50 = vadd.f32 %v420_v31, %v352_v16  ;;  %v2228_v32 = vld [vmem:[%s1814_s19 + $0xc0] sm:$0xff] }
  0x57   : > { %v1250_v49 = vadd.f32 %v1218_v41, %v1090_v23  ;;  %v621_v37 = vmul.f32 %v2121_v40, %v1827_v18  ;;  %v721_v36 = vmul.f32 %v2140_v59, %v1829_v19  ;;  %v221_v38 = vmul.f32 %v2082_v63, %v1816_v11 }
  0x58   : > { %v1155_v46 = vmul.f32 %v2176_v30, %v2176_v30  ;;  %v953_v52 = vadd.f32 %v921_v35, %v853_v43  ;;  %v553_v33 = vadd.f32 %v521_v58, %v452_v50  ;;  %v321_v54 = vmul.f32 %v2090_v3, %v1818_v12 }
  0x59   : > { %v1282_v53 = vmul.f32 0.7978846, %v1250_v49  ;;  %v421_v55 = vmul.f32 %v2100_v5, %v1820_v13  ;;  %v2198_v2 = vmul.f32 0.5, %v1090_v23  ;;  %v822_v47 = vmul.f32 %v2192_v51, %v1831_v20 }
  0x5a   : > { %v1187_v57 = vmul.f32 %v1155_v46, %v2176_v30  ;;  %v1053_v60 = vadd.f32 %v1021_v24, %v953_v52  ;;  %v653_v63 = vadd.f32 %v621_v37, %v553_v33  ;;  %v353_v8 = vadd.f32 %v321_v54, %v221_v38  ;;  %v2238_v24 = vld [vmem:[%s1814_s19 + $0xc1] sm:$0xff] }
  0x5b   : > { %1719 = vtanh.f32 %v1282_v53  ;;  %v522_v3 = vmul.f32 %v2152_v61, %v1822_v14  ;;  %v922_v4 = vmul.f32 %v2204_v62, %v1838_v26  ;;  %v1022_v0 = vmul.f32 %v1843_v27, %v2207_v39  ;;  %v2248_v38 = vld [vmem:[%s1814_s19 + $0xc2] sm:$0xff] }
  0x5c   : > { %v1219_v5 = vmul.f32 0.044715, %v1187_v57  ;;  %v2212_v23 = vadd.f32 %v1919_v48, %v1053_v60  ;;  %v753_v10 = vadd.f32 %v721_v36, %v653_v63  ;;  %v453_v44 = vadd.f32 %v421_v55, %v353_v8 }
  0x5d   : > { %v1716_v9 = vpop.eup %1715  ;;  %v622_v17 = vmul.f32 %v2160_v25, %v1827_v18  ;;  %v222_v1 = vmul.f32 %v2112_v6, %v1816_v11  ;;  %v722_v7 = vmul.f32 %v2169_v42, %v1829_v19  ;;  %v322_v34 = vmul.f32 %v2121_v40, %v1818_v12 }
  0x5e   : > { %v1344_v15 = vadd.f32 1.0, %v1716_v9  ;;  %v1251_v21 = vadd.f32 %v1219_v5, %v2176_v30  ;;  %v1156_v22 = vmul.f32 %v2212_v23, %v2212_v23  ;;  %v854_v28 = vadd.f32 %v822_v47, %v753_v10 }
  0x5f   : > { %v554_v31 = vadd.f32 %v522_v3, %v453_v44  ;;  %v422_v6 = vmul.f32 %v2140_v59, %v1820_v13  ;;  %v823_v16 = vmul.f32 %v2228_v32, %v1831_v20  ;;  %v354_v49 = vadd.f32 %v322_v34, %v222_v1 }
  0x60   : > { %v1376_v56 = vmul.f32 %v1344_v15, %v1120_v29  ;;  %v1283_v35 = vmul.f32 0.7978846, %v1251_v21  ;;  %v1188_v41 = vmul.f32 %v1156_v22, %v2212_v23  ;;  %v954_v58 = vadd.f32 %v922_v4, %v854_v28  ;;  %v2263_v4 = vld [vmem:[%s1814_s19 + $0xc8] sm:$0xff] }
  0x61   : > { %v654_v43 = vadd.f32 %v622_v17, %v554_v31  ;;  %v523_v50 = vmul.f32 %v2192_v51, %v1822_v14  ;;  %v923_v29 = vmul.f32 %v2238_v24, %v1838_v26  ;;  %v623_v37 = vmul.f32 %v2204_v62, %v1827_v18  ;;  %v2283_v28 = vld [vmem:[%s1814_s19 + $0xca] sm:$0xff] }
  0x62   : > { %v1718_v40 = vpop.eup %1717  ;;  %1408 = vst [vmem:[%s2056_s27 + $0x30] sm:$0xff] %v1376_v56  ;;  %1721 = vtanh.f32 %v1283_v35  ;;  %v1220_v59 = vmul.f32 0.044715, %v1188_v41  ;;  %v1054_v52 = vadd.f32 %v1022_v0, %v954_v58  ;;  %v454_v53 = vadd.f32 %v422_v6, %v354_v49 }
  0x63   : > { %v1345_v46 = vadd.f32 1.0, %v1718_v40  ;;  %v754_v36 = vadd.f32 %v722_v7, %v654_v43  ;;  %v1023_v54 = vmul.f32 %v1843_v27, %v2248_v38  ;;  %v723_v55 = vmul.f32 %v2207_v39, %v1829_v19 }
  0x64   : > { %v1252_v33 = vadd.f32 %v1220_v59, %v2212_v23  ;;  %v223_v57 = vmul.f32 %v2152_v61, %v1816_v11  ;;  %v2259_v47 = vadd.f32 %v1919_v48, %v1054_v52  ;;  %v555_v8 = vadd.f32 %v523_v50, %v454_v53 }
  0x65   : > { %v1377_v60 = vmul.f32 %v1345_v46, %v2181_v45  ;;  %v855_v63 = vadd.f32 %v823_v16, %v754_v36  ;;  %v1123_v3 = vmul.f32 0.5, %v2176_v30  ;;  %v323_v0 = vmul.f32 %v2160_v25, %v1818_v12  ;;  %v2275_v30 = vld [vmem:[%s1814_s19 + $0xc9] sm:$0xff]  ;;  %v2307_v46 = vld [vmem:[%s1814_s19 + $0xd8] sm:$0xff] }
  0x66   : > { %v1284_v5 = vmul.f32 0.7978846, %v1252_v33  ;;  %v423_v9 = vmul.f32 %v2169_v42, %v1820_v13  ;;  %v1157_v61 = vmul.f32 %v2259_v47, %v2259_v47  ;;  %v655_v10 = vadd.f32 %v623_v37, %v555_v8 }
  0x67   : > { %1409 = vst [vmem:[%s2056_s27 + $0x38] sm:$0xff] %v1377_v60  ;;  %v955_v45 = vadd.f32 %v923_v29, %v855_v63  ;;  %v824_v44 = vmul.f32 %v2263_v4, %v1831_v20  ;;  %v924_v25 = vmul.f32 %v2275_v30, %v1838_v26  ;;  %v355_v1 = vadd.f32 %v323_v0, %v223_v57  ;;  %v2320_v63 = vld [vmem:[%s1814_s19 + $0xda] sm:$0xff] }
  0x68   : > { %v1720_v17 = vpop.eup %1719  ;;  %1723 = vtanh.f32 %v1284_v5  ;;  %v524_v42 = vmul.f32 %v2228_v32, %v1822_v14  ;;  %v1189_v21 = vmul.f32 %v1157_v61, %v2259_v47  ;;  %v755_v7 = vadd.f32 %v723_v55, %v655_v10 }
  0x69   : > { %v1346_v15 = vadd.f32 1.0, %v1720_v17  ;;  %v1055_v22 = vadd.f32 %v1023_v54, %v955_v45  ;;  %v1024_v31 = vmul.f32 %v1843_v27, %v2283_v28  ;;  %v455_v34 = vadd.f32 %v423_v9, %v355_v1 }
  0x6a   : > { %v624_v6 = vmul.f32 %v2238_v24, %v1827_v18  ;;  %v724_v56 = vmul.f32 %v2248_v38, %v1829_v19  ;;  %v1221_v41 = vmul.f32 0.044715, %v1189_v21  ;;  %v856_v58 = vadd.f32 %v824_v44, %v755_v7  ;;  %v2339_v7 = vld [vmem:[%s1814_s19 + $0xe1] sm:$0xff] }
  0x6b   : > { %v1378_v35 = vmul.f32 %v1346_v15, %v2198_v2  ;;  %v2293_v16 = vadd.f32 %v1919_v48, %v1055_v22  ;;  %v556_v43 = vadd.f32 %v524_v42, %v455_v34  ;;  %v224_v49 = vmul.f32 %v2192_v51, %v1816_v11 }
  0x6c   : > { %v324_v50 = vmul.f32 %v2204_v62, %v1818_v12  ;;  %v424_v40 = vmul.f32 %v2207_v39, %v1820_v13  ;;  %v1124_v59 = vmul.f32 0.5, %v2212_v23  ;;  %v1253_v2 = vadd.f32 %v1221_v41, %v2259_v47  ;;  %v2312_v62 = vld [vmem:[%s1814_s19 + $0xd9] sm:$0xff] }
  0x6d   : > { %1410 = vst [vmem:[%s2056_s27 + $0x40] sm:$0xff] %v1378_v35  ;;  %v1158_v29 = vmul.f32 %v2293_v16, %v2293_v16  ;;  %v956_v37 = vadd.f32 %v924_v25, %v856_v58  ;;  %v656_v52 = vadd.f32 %v624_v6, %v556_v43  ;;  %v825_v51 = vmul.f32 %v2307_v46, %v1831_v20  ;;  %v2330_v25 = vld [vmem:[%s1814_s19 + $0xe0] sm:$0xff] }
  0x6e   : > { %v356_v36 = vadd.f32 %v324_v50, %v224_v49  ;;  %v525_v39 = vmul.f32 %v2263_v4, %v1822_v14  ;;  %v1285_v53 = vmul.f32 0.7978846, %v1253_v2  ;;  %v925_v55 = vmul.f32 %v2312_v62, %v1838_v26  ;;  %v2350_v50 = vld [vmem:[%s1814_s19 + $0xe2] sm:$0xff] }
  0x6f   : > { %v1722_v23 = vpop.eup %1721  ;;  %v1190_v33 = vmul.f32 %v1158_v29, %v2293_v16  ;;  %v1056_v54 = vadd.f32 %v1024_v31, %v956_v37  ;;  %v756_v60 = vadd.f32 %v724_v56, %v656_v52  ;;  %v625_v5 = vmul.f32 %v2275_v30, %v1827_v18 }
  0x70   : > { %v1347_v57 = vadd.f32 1.0, %v1722_v23  ;;  %v456_v8 = vadd.f32 %v424_v40, %v356_v36  ;;  %1725 = vtanh.f32 %v1285_v53  ;;  %v1025_v61 = vmul.f32 %v1843_v27, %v2320_v63 }
  0x71   : > { %v1222_v0 = vmul.f32 0.044715, %v1190_v33  ;;  %v1095_v9 = vadd.f32 %v1919_v48, %v1056_v54  ;;  %v857_v10 = vadd.f32 %v825_v51, %v756_v60  ;;  %v725_v17 = vmul.f32 %v2283_v28, %v1829_v19 }
  0x72   : > { %v1379_v45 = vmul.f32 %v1347_v57, %v1123_v3  ;;  %v557_v44 = vadd.f32 %v525_v39, %v456_v8  ;;  %v826_v15 = vmul.f32 %v2330_v25, %v1831_v20  ;;  %v225_v21 = vmul.f32 %v2228_v32, %v1816_v11 }
  0x73   : > { %v1254_v1 = vadd.f32 %v1222_v0, %v2293_v16  ;;  %v1159_v42 = vmul.f32 %v1095_v9, %v1095_v9  ;;  %v957_v22 = vadd.f32 %v925_v55, %v857_v10  ;;  %v325_v31 = vmul.f32 %v2238_v24, %v1818_v12  ;;  %v2388_v10 = vld [vmem:[%s1814_s19 + $0xf2] sm:$0xff] }
  0x74   : > { %1411 = vst [vmem:[%s2056_s27 + $0x48] sm:$0xff] %v1379_v45  ;;  %v657_v3 = vadd.f32 %v625_v5, %v557_v44  ;;  %v425_v34 = vmul.f32 %v2248_v38, %v1820_v13  ;;  %v926_v41 = vmul.f32 %v2339_v7, %v1838_v26  ;;  %v526_v32 = vmul.f32 %v2307_v46, %v1822_v14  ;;  %v2383_v45 = vld [vmem:[%s1814_s19 + $0xf1] sm:$0xff] }
  0x75   : > { %v1724_v6 = vpop.eup %1723  ;;  %v1286_v56 = vmul.f32 0.7978846, %v1254_v1  ;;  %v1191_v35 = vmul.f32 %v1159_v42, %v1095_v9  ;;  %v1057_v43 = vadd.f32 %v1025_v61, %v957_v22  ;;  %v357_v40 = vadd.f32 %v325_v31, %v225_v21 }
  0x76   : > { %v1348_v58 = vadd.f32 1.0, %v1724_v6  ;;  %v757_v49 = vadd.f32 %v725_v17, %v657_v3  ;;  %v1026_v38 = vmul.f32 %v1843_v27, %v2350_v50  ;;  %v626_v2 = vmul.f32 %v2312_v62, %v1827_v18 }
  0x77   : > { %1727 = vtanh.f32 %v1286_v56  ;;  %v1223_v24 = vmul.f32 0.044715, %v1191_v35  ;;  %v2357_v37 = vadd.f32 %v1919_v48, %v1057_v43  ;;  %v457_v51 = vadd.f32 %v425_v34, %v357_v40 }
  0x78   : > { %v1380_v29 = vmul.f32 %v1348_v58, %v1124_v59  ;;  %v858_v52 = vadd.f32 %v826_v15, %v757_v49  ;;  %v1125_v36 = vmul.f32 0.5, %v2259_v47  ;;  %v2361_v39 = vmul.f32 0.5, %v2293_v16  ;;  %v2373_v16 = vld [vmem:[%s1814_s19 + $0xf0] sm:$0xff] }
  0x79   : > { %v1255_v23 = vadd.f32 %v1223_v24, %v1095_v9  ;;  %v226_v53 = vmul.f32 %v2263_v4, %v1816_v11  ;;  %v1160_v33 = vmul.f32 %v2357_v37, %v2357_v37  ;;  %v558_v54 = vadd.f32 %v526_v32, %v457_v51  ;;  %v2407_v32 = vld [vmem:[%s1814_s19 + $0xf8] sm:$0xff] }
  0x7a   : > { %1412 = vst [vmem:[%s2056_s27 + $0x50] sm:$0xff] %v1380_v29  ;;  %v958_v59 = vadd.f32 %v926_v41, %v858_v52  ;;  %v726_v55 = vmul.f32 %v2320_v63, %v1829_v19  ;;  %v2370_v57 = vmul.f32 0.5, %v1095_v9  ;;  %v326_v60 = vmul.f32 %v2275_v30, %v1818_v12  ;;  %v2423_v52 = vld [vmem:[%s1814_s19 + $0xfa] sm:$0xff] }
  0x7b   : > { %v1287_v47 = vmul.f32 0.7978846, %v1255_v23  ;;  %v426_v4 = vmul.f32 %v2283_v28, %v1820_v13  ;;  %v1192_v8 = vmul.f32 %v1160_v33, %v2357_v37  ;;  %v658_v0 = vadd.f32 %v626_v2, %v558_v54 }
  0x7c   : > { %v1058_v5 = vadd.f32 %v1026_v38, %v958_v59  ;;  %v827_v61 = vmul.f32 %v2373_v16, %v1831_v20  ;;  %v927_v9 = vmul.f32 %v2383_v45, %v1838_v26  ;;  %v358_v44 = vadd.f32 %v326_v60, %v226_v53  ;;  %v2417_v38 = vld [vmem:[%s1814_s19 + $0xf9] sm:$0xff]  ;;  %v2430_v53 = vld [vmem:[%s2897_s1 + $0x8] ss:$0 sm:$0xff] }
  0x7d   : > { %1729 = vtanh.f32 %v1287_v47  ;;  %v527_v30 = vmul.f32 %v2330_v25, %v1822_v14  ;;  %v1726_v28 = vpop.eup %1725  ;;  %v1224_v17 = vmul.f32 0.044715, %v1192_v8  ;;  %v758_v42 = vadd.f32 %v726_v55, %v658_v0 }
  0x7e   : > { %v2393_v1 = vadd.f32 %v1919_v48, %v1058_v5  ;;  %v1027_v15 = vmul.f32 %v1843_v27, %v2388_v10  ;;  %v1349_v21 = vadd.f32 1.0, %v1726_v28  ;;  %v458_v22 = vadd.f32 %v426_v4, %v358_v44  ;;  %v2446_v44 = vld [vmem:[%s1814_s19 + $0x108] sm:$0xff] }
  0x7f   : > { %v627_v3 = vmul.f32 %v2339_v7, %v1827_v18  ;;  %v227_v31 = vmul.f32 %v2307_v46, %v1816_v11  ;;  %v1256_v34 = vadd.f32 %v1224_v17, %v2357_v37  ;;  %v859_v56 = vadd.f32 %v827_v61, %v758_v42 }
  0x80   : > { %v1161_v6 = vmul.f32 %v2393_v1, %v2393_v1  ;;  %v727_v27 = vmul.f32 %v2350_v50, %v1829_v19  ;;  %v1381_v35 = vmul.f32 %v1349_v21, %v1125_v36  ;;  %v559_v41 = vadd.f32 %v527_v30, %v458_v22  ;;  %v2458_v21 = vld [vmem:[%s1814_s19 + $0x109] sm:$0xff] }
  0x81   : > { %v327_v58 = vmul.f32 %v2312_v62, %v1818_v12  ;;  %v427_v46 = vmul.f32 %v2320_v63, %v1820_v13  ;;  %v1288_v43 = vmul.f32 0.7978846, %v1256_v34  ;;  %v959_v40 = vadd.f32 %v927_v9, %v859_v56 }
  0x82   : > { %v1193_v49 = vmul.f32 %v1161_v6, %v2393_v1  ;;  %v828_v24 = vmul.f32 %v2407_v32, %v1831_v20  ;;  %1413 = vst [vmem:[%s2056_s27 + $0x58] sm:$0xff] %v1381_v35  ;;  %v659_v2 = vadd.f32 %v627_v3, %v559_v41  ;;  %v928_v29 = vmul.f32 %v2417_v38, %v1838_v26  ;;  %v2468_v35 = vld [vmem:[%s1814_s19 + $0x10a] sm:$0xff] }
  0x83   : > { %v359_v62 = vadd.f32 %v327_v58, %v227_v31  ;;  %v528_v63 = vmul.f32 %v2373_v16, %v1822_v14  ;;  %1731 = vtanh.f32 %v1288_v43  ;;  %v1059_v23 = vadd.f32 %v1027_v15, %v959_v40 }
  0x84   : > { %v1728_v51 = vpop.eup %1727  ;;  %v1225_v36 = vmul.f32 0.044715, %v1193_v49  ;;  %v1028_v33 = vmul.f32 %v2430_v53, %v2423_v52  ;;  %v759_v54 = vadd.f32 %v727_v27, %v659_v2  ;;  %v628_v47 = vmul.f32 %v2383_v45, %v1827_v18 }
  0x85   : > { %v1350_v59 = vadd.f32 1.0, %v1728_v51  ;;  %v459_v55 = vadd.f32 %v427_v46, %v359_v62  ;;  %v2438_v4 = vadd.f32 %v1919_v48, %v1059_v23  ;;  %v728_v8 = vmul.f32 %v2388_v10, %v1829_v19 }
  0x86   : > { %v1257_v60 = vadd.f32 %v1225_v36, %v2393_v1  ;;  %v228_v5 = vmul.f32 %v2330_v25, %v1816_v11  ;;  %v860_v61 = vadd.f32 %v828_v24, %v759_v54  ;;  %v328_v30 = vmul.f32 %v2339_v7, %v1818_v12 }
  0x87   : > { %v1382_v0 = vmul.f32 %v1350_v59, %v2361_v39  ;;  %v560_v9 = vadd.f32 %v528_v63, %v459_v55  ;;  %v1162_v17 = vmul.f32 %v2438_v4, %v2438_v4  ;;  %v829_v42 = vmul.f32 %v2446_v44, %v1831_v20  ;;  %v2481_v63 = vld [vmem:[%s1814_s19 + $0x110] sm:$0xff] }
  0x88   : > { %v1289_v28 = vmul.f32 0.7978846, %v1257_v60  ;;  %v428_v25 = vmul.f32 %v2350_v50, %v1820_v13  ;;  %v960_v39 = vadd.f32 %v928_v29, %v860_v61  ;;  %v360_v22 = vadd.f32 %v328_v30, %v228_v5  ;;  %v2504_v61 = vld [vmem:[%s1814_s19 + $0x112] sm:$0xff] }
  0x89   : > { %1414 = vst [vmem:[%s2056_s27 + $0x60] sm:$0xff] %v1382_v0  ;;  %v660_v15 = vadd.f32 %v628_v47, %v560_v9  ;;  %v529_v7 = vmul.f32 %v2407_v32, %v1822_v14  ;;  %v1194_v31 = vmul.f32 %v1162_v17, %v2438_v4  ;;  %v929_v34 = vmul.f32 %v2458_v21, %v1838_v26 }
  0x8a   : > { %v1730_v3 = vpop.eup %1729  ;;  %1733 = vtanh.f32 %v1289_v28  ;;  %v629_v50 = vmul.f32 %v2417_v38, %v1827_v18  ;;  %v1060_v56 = vadd.f32 %v1028_v33, %v960_v39  ;;  %v460_v41 = vadd.f32 %v428_v25, %v360_v22  ;;  %v2511_v28 = vld [vmem:[%s2898_s2] ss:$0 sm:$0xff] }
  0x8b   : > { %v1351_v6 = vadd.f32 1.0, %v1730_v3  ;;  %v760_v27 = vadd.f32 %v728_v8, %v660_v15  ;;  %v1128_v58 = vmul.f32 0.5, %v2357_v37  ;;  %v1226_v46 = vmul.f32 0.044715, %v1194_v31 }
  0x8c   : > { %v1029_v43 = vmul.f32 %v2430_v53, %v2468_v35  ;;  %v729_v49 = vmul.f32 %v2423_v52, %v1829_v19  ;;  %v2477_v24 = vadd.f32 %v1919_v48, %v1060_v56  ;;  %v561_v29 = vadd.f32 %v529_v7, %v460_v41  ;;  %v2529_v41 = vld [vmem:[%s1814_s19 + $0x121] sm:$0xff] }
  0x8d   : > { %v1383_v40 = vmul.f32 %v1351_v6, %v2370_v57  ;;  %v861_v2 = vadd.f32 %v829_v42, %v760_v27  ;;  %v1258_v62 = vadd.f32 %v1226_v46, %v2438_v4  ;;  %v229_v37 = vmul.f32 %v2373_v16, %v1816_v11  ;;  %v2496_v16 = vld [vmem:[%s1814_s19 + $0x111] sm:$0xff]  ;;  %v2523_v6 = vld [vmem:[%s1814_s19 + $0x120] sm:$0xff] }
  0x8e   : > { %v329_v51 = vmul.f32 %v2383_v45, %v1818_v12  ;;  %v429_v36 = vmul.f32 %v2388_v10, %v1820_v13  ;;  %v1163_v48 = vmul.f32 %v2477_v24, %v2477_v24  ;;  %v661_v23 = vadd.f32 %v629_v50, %v561_v29 }
  0x8f   : > { %1415 = vst [vmem:[%s2056_s27 + $0x68] sm:$0xff] %v1383_v40  ;;  %v961_v57 = vadd.f32 %v929_v34, %v861_v2  ;;  %v830_v33 = vmul.f32 %v2481_v63, %v1831_v20  ;;  %v1129_v59 = vmul.f32 0.5, %v2393_v1  ;;  %v1290_v54 = vmul.f32 0.7978846, %v1258_v62  ;;  %v2538_v62 = vld [vmem:[%s1814_s19 + $0x122] sm:$0xff] }
  0x90   : > { %v361_v55 = vadd.f32 %v329_v51, %v229_v37  ;;  %v530_v45 = vmul.f32 %v2446_v44, %v1822_v14  ;;  %v1732_v10 = vpop.eup %1731  ;;  %v1195_v47 = vmul.f32 %v1163_v48, %v2477_v24  ;;  %v761_v8 = vadd.f32 %v729_v49, %v661_v23 }
  0x91   : > { %v1061_v60 = vadd.f32 %v1029_v43, %v961_v57  ;;  %v930_v5 = vmul.f32 %v2496_v16, %v1838_v26  ;;  %v1352_v0 = vadd.f32 1.0, %v1732_v10  ;;  %1735 = vtanh.f32 %v1290_v54 }
  0x92   : > { %v461_v1 = vadd.f32 %v429_v36, %v361_v55  ;;  %v630_v9 = vmul.f32 %v2458_v21, %v1827_v18  ;;  %v1227_v30 = vmul.f32 0.044715, %v1195_v47  ;;  %v862_v42 = vadd.f32 %v830_v33, %v761_v8 }
  0x93   : > { %v1100_v17 = vadd.f32 %v2511_v28, %v1061_v60  ;;  %v1030_v25 = vmul.f32 %v2430_v53, %v2504_v61  ;;  %v1384_v39 = vmul.f32 %v1352_v0, %v1128_v58  ;;  %v730_v22 = vmul.f32 %v2468_v35, %v1829_v19 }
  0x94   : > { %v562_v15 = vadd.f32 %v530_v45, %v461_v1  ;;  %v230_v7 = vmul.f32 %v2407_v32, %v1816_v11  ;;  %v1130_v3 = vmul.f32 0.5, %v2438_v4  ;;  %v1259_v31 = vadd.f32 %v1227_v30, %v2477_v24  ;;  %v2565_v1 = vld [vmem:[%s1814_s19 + $0x128] sm:$0xff] }
  0x95   : > { %v1164_v34 = vmul.f32 %v1100_v17, %v1100_v17  ;;  %v962_v50 = vadd.f32 %v930_v5, %v862_v42  ;;  %1416 = vst [vmem:[%s2056_s27 + $0x70] sm:$0xff] %v1384_v39  ;;  %v831_v27 = vmul.f32 %v2523_v6, %v1831_v20  ;;  %v330_v58 = vmul.f32 %v2417_v38, %v1818_v12 }
  0x96   : > { %v662_v56 = vadd.f32 %v630_v9, %v562_v15  ;;  %v430_v32 = vmul.f32 %v2423_v52, %v1820_v13  ;;  %v1291_v46 = vmul.f32 0.7978846, %v1259_v31  ;;  %v931_v40 = vmul.f32 %v2529_v41, %v1838_v26 }
  0x97   : > { %v1734_v4 = vpop.eup %1733  ;;  %v1196_v43 = vmul.f32 %v1164_v34, %v1100_v17  ;;  %v1062_v49 = vadd.f32 %v1030_v25, %v962_v50  ;;  %v362_v37 = vadd.f32 %v330_v58, %v230_v7  ;;  %v531_v51 = vmul.f32 %v2481_v63, %v1822_v14  ;;  %v2582_v34 = vld [vmem:[%s1814_s19 + $0x12a] sm:$0xff] }
  0x98   : > { %v1353_v2 = vadd.f32 1.0, %v1734_v4  ;;  %v762_v29 = vadd.f32 %v730_v22, %v662_v56  ;;  %1737 = vtanh.f32 %v1291_v46  ;;  %v1031_v36 = vmul.f32 %v2430_v53, %v2538_v62 }
  0x99   : > { %v1228_v38 = vmul.f32 0.044715, %v1196_v43  ;;  %v2543_v52 = vadd.f32 %v2511_v28, %v1062_v49  ;;  %v462_v23 = vadd.f32 %v430_v32, %v362_v37  ;;  %v631_v33 = vmul.f32 %v2496_v16, %v1827_v18  ;;  %v2599_v37 = vld [vmem:[%s1814_s19 + $0x139] sm:$0xff] }
  0x9a   : > { %v1385_v48 = vmul.f32 %v1353_v2, %v1129_v59  ;;  %v863_v57 = vadd.f32 %v831_v27, %v762_v29  ;;  %v2550_v54 = vmul.f32 0.5, %v2477_v24  ;;  %v731_v10 = vmul.f32 %v2504_v61, %v1829_v19  ;;  %v2596_v29 = vld [vmem:[%s1814_s19 + $0x138] sm:$0xff] }
  0x9b   : > { %v1260_v55 = vadd.f32 %v1228_v38, %v1100_v17  ;;  %v1165_v45 = vmul.f32 %v2543_v52, %v2543_v52  ;;  %v563_v59 = vadd.f32 %v531_v51, %v462_v23  ;;  %v231_v60 = vmul.f32 %v2446_v44, %v1816_v11  ;;  %v2572_v44 = vld [vmem:[%s1814_s19 + $0x129] sm:$0xff]  ;;  %v2612_v23 = vld [vmem:[%s1814_s19 + $0x13a] sm:$0xff] }
  0x9c   : > { %1417 = vst [vmem:[%s2056_s27 + $0x78] sm:$0xff] %v1385_v48  ;;  %v963_v47 = vadd.f32 %v931_v40, %v863_v57  ;;  %v331_v8 = vmul.f32 %v2458_v21, %v1818_v12  ;;  %v2561_v5 = vmul.f32 0.5, %v1100_v17  ;;  %v431_v9 = vmul.f32 %v2468_v35, %v1820_v13 }
  0x9d   : > { %v1292_v24 = vmul.f32 0.7978846, %v1260_v55  ;;  %v1197_v0 = vmul.f32 %v1165_v45, %v2543_v52  ;;  %v663_v42 = vadd.f32 %v631_v33, %v563_v59  ;;  %v832_v25 = vmul.f32 %v2565_v1, %v1831_v20 }
  0x9e   : > { %v1063_v30 = vadd.f32 %v1031_v36, %v963_v47  ;;  %v363_v39 = vadd.f32 %v331_v8, %v231_v60  ;;  %v1736_v21 = vpop.eup %1735  ;;  %v932_v15 = vmul.f32 %v2572_v44, %v1838_v26  ;;  %v532_v22 = vmul.f32 %v2523_v6, %v1822_v14 }
  0x9f   : > { %1739 = vtanh.f32 %v1292_v24  ;;  %v1229_v17 = vmul.f32 0.044715, %v1197_v0  ;;  %v1354_v7 = vadd.f32 1.0, %v1736_v21  ;;  %v763_v31 = vadd.f32 %v731_v10, %v663_v42 }
  0xa0   : > { %v2579_v35 = vadd.f32 %v2511_v28, %v1063_v30  ;;  %v463_v50 = vadd.f32 %v431_v9, %v363_v39  ;;  %v1032_v27 = vmul.f32 %v2430_v53, %v2582_v34  ;;  %v632_v58 = vmul.f32 %v2529_v41, %v1827_v18 }
  0xa1   : > { %v1261_v56 = vadd.f32 %v1229_v17, %v2543_v52  ;;  %v232_v32 = vmul.f32 %v2481_v63, %v1816_v11  ;;  %v1386_v4 = vmul.f32 %v1354_v7, %v1130_v3  ;;  %v864_v43 = vadd.f32 %v832_v25, %v763_v31  ;;  %v2632_v17 = vld [vmem:[%s1814_s19 + $0x140] sm:$0xff] }
  0xa2   : > { %v1166_v46 = vmul.f32 %v2579_v35, %v2579_v35  ;;  %v732_v49 = vmul.f32 %v2538_v62, %v1829_v19  ;;  %v564_v2 = vadd.f32 %v532_v22, %v463_v50  ;;  %v332_v51 = vmul.f32 %v2496_v16, %v1818_v12  ;;  %v2641_v31 = vld [vmem:[%s1814_s19 + $0x141] sm:$0xff] }
  0xa3   : > { %v1293_v40 = vmul.f32 0.7978846, %v1261_v56  ;;  %v432_v63 = vmul.f32 %v2504_v61, %v1820_v13  ;;  %1418 = vst [vmem:[%s2056_s27 + $0x80] sm:$0xff] %v1386_v4  ;;  %v964_v38 = vadd.f32 %v932_v15, %v864_v43  ;;  %v833_v36 = vmul.f32 %v2596_v29, %v1831_v20 }
  0xa4   : > { %v1198_v3 = vmul.f32 %v1166_v46, %v2579_v35  ;;  %v933_v48 = vmul.f32 %v2599_v37, %v1838_v26  ;;  %v664_v57 = vadd.f32 %v632_v58, %v564_v2  ;;  %v364_v33 = vadd.f32 %v332_v51, %v232_v32  ;;  %v2650_v32 = vld [vmem:[%s1814_s19 + $0x142] sm:$0xff]  ;;  %v2657_v51 = vld [vmem:[%s1814_s19 + $0x150] sm:$0xff] }
  0xa5   : > { %1741 = vtanh.f32 %v1293_v40  ;;  %v533_v16 = vmul.f32 %v2565_v1, %v1822_v14  ;;  %v1738_v55 = vpop.eup %1737  ;;  %v1064_v45 = vadd.f32 %v1032_v27, %v964_v38  ;;  %v1033_v10 = vmul.f32 %v2430_v53, %v2612_v23 }
  0xa6   : > { %v1230_v61 = vmul.f32 0.044715, %v1198_v3  ;;  %v633_v47 = vmul.f32 %v2572_v44, %v1827_v18  ;;  %v1355_v59 = vadd.f32 1.0, %v1738_v55  ;;  %v764_v60 = vadd.f32 %v732_v49, %v664_v57 }
  0xa7   : > { %v464_v8 = vadd.f32 %v432_v63, %v364_v33  ;;  %v733_v24 = vmul.f32 %v2582_v34, %v1829_v19  ;;  %v2624_v9 = vadd.f32 %v2511_v28, %v1064_v45  ;;  %v233_v30 = vmul.f32 %v2523_v6, %v1816_v11  ;;  %v2671_v45 = vld [vmem:[%s1814_s19 + $0x151] sm:$0xff] }
  0xa8   : > { %v1262_v0 = vadd.f32 %v1230_v61, %v2579_v35  ;;  %v333_v42 = vmul.f32 %v2529_v41, %v1818_v12  ;;  %v1387_v25 = vmul.f32 %v1355_v59, %v2550_v54  ;;  %v865_v39 = vadd.f32 %v833_v36, %v764_v60 }
  0xa9   : > { %v565_v21 = vadd.f32 %v533_v16, %v464_v8  ;;  %v433_v15 = vmul.f32 %v2538_v62, %v1820_v13  ;;  %v1167_v7 = vmul.f32 %v2624_v9, %v2624_v9  ;;  %v834_v6 = vmul.f32 %v2632_v17, %v1831_v20 }
  0xaa   : > { %v1294_v22 = vmul.f32 0.7978846, %v1262_v0  ;;  %v365_v41 = vadd.f32 %v333_v42, %v233_v30  ;;  %1419 = vst [vmem:[%s2056_s27 + $0x88] sm:$0xff] %v1387_v25  ;;  %v965_v54 = vadd.f32 %v933_v48, %v865_v39  ;;  %v934_v56 = vmul.f32 %v2641_v31, %v1838_v26  ;;  %v2684_v30 = vld [vmem:[%s1814_s19 + $0x152] sm:$0xff] }
  0xab   : > { %v665_v50 = vadd.f32 %v633_v47, %v565_v21  ;;  %v534_v62 = vmul.f32 %v2596_v29, %v1822_v14  ;;  %v1199_v58 = vmul.f32 %v1167_v7, %v2624_v9  ;;  %v634_v46 = vmul.f32 %v2599_v37, %v1827_v18 }
  0xac   : > { %v1740_v27 = vpop.eup %1739  ;;  %1743 = vtanh.f32 %v1294_v22  ;;  %v465_v4 = vadd.f32 %v433_v15, %v365_v41  ;;  %v1065_v49 = vadd.f32 %v1033_v10, %v965_v54  ;;  %v1034_v2 = vmul.f32 %v2430_v53, %v2650_v32 }
  0xad   : > { %v1356_v43 = vadd.f32 1.0, %v1740_v27  ;;  %v765_v40 = vadd.f32 %v733_v24, %v665_v50  ;;  %v1231_v63 = vmul.f32 0.044715, %v1199_v58  ;;  %v734_v38 = vmul.f32 %v2612_v23, %v1829_v19 }
  0xae   : > { %v566_v3 = vadd.f32 %v534_v62, %v465_v4  ;;  %v835_v36 = vmul.f32 %v2657_v51, %v1831_v20  ;;  %v2665_v57 = vadd.f32 %v2511_v28, %v1065_v49  ;;  %v234_v16 = vmul.f32 %v2565_v1, %v1816_v11 }
  0xaf   : > { %v1388_v48 = vmul.f32 %v1356_v43, %v2561_v5  ;;  %v866_v33 = vadd.f32 %v834_v6, %v765_v40  ;;  %v1263_v55 = vadd.f32 %v1231_v63, %v2624_v9  ;;  %v334_v10 = vmul.f32 %v2572_v44, %v1818_v12  ;;  %v2703_v43 = vld [vmem:[%s1814_s19 + $0x158] sm:$0xff] }
  0xb0   : > { %v666_v61 = vadd.f32 %v634_v46, %v566_v3  ;;  %v434_v47 = vmul.f32 %v2582_v34, %v1820_v13  ;;  %v1133_v5 = vmul.f32 0.5, %v2543_v52  ;;  %v1168_v59 = vmul.f32 %v2665_v57, %v2665_v57 }
  0xb1   : > { %1420 = vst [vmem:[%s2056_s27 + $0x90] sm:$0xff] %v1388_v48  ;;  %v966_v60 = vadd.f32 %v934_v56, %v866_v33  ;;  %v935_v1 = vmul.f32 %v2671_v45, %v1838_v26  ;;  %v1295_v24 = vmul.f32 0.7978846, %v1263_v55  ;;  %v366_v42 = vadd.f32 %v334_v10, %v234_v16 }
  0xb2   : > { %v1742_v8 = vpop.eup %1741  ;;  %v766_v0 = vadd.f32 %v734_v38, %v666_v61  ;;  %v535_v44 = vmul.f32 %v2632_v17, %v1822_v14  ;;  %v1200_v52 = vmul.f32 %v1168_v59, %v2665_v57  ;;  %v1035_v39 = vmul.f32 %v2430_v53, %v2684_v30  ;;  %v2712_v38 = vld [vmem:[%s1814_s19 + $0x159] sm:$0xff] }
  0xb3   : > { %v1357_v34 = vadd.f32 1.0, %v1742_v8  ;;  %v1066_v25 = vadd.f32 %v1034_v2, %v966_v60  ;;  %1745 = vtanh.f32 %v1295_v24  ;;  %v466_v15 = vadd.f32 %v434_v47, %v366_v42  ;;  %v2720_v61 = vld [vmem:[%s1814_s19 + $0x15a] sm:$0xff] }
  0xb4   : > { %v867_v21 = vadd.f32 %v835_v36, %v766_v0  ;;  %v635_v22 = vmul.f32 %v2641_v31, %v1827_v18  ;;  %v1134_v6 = vmul.f32 0.5, %v2579_v35  ;;  %v1232_v41 = vmul.f32 0.044715, %v1200_v52  ;;  %v2733_v52 = vld [vmem:[%s1814_s19 + $0x168] sm:$0xff] }
  0xb5   : > { %v1389_v7 = vmul.f32 %v1357_v34, %v1133_v5  ;;  %v1105_v54 = vadd.f32 %v2511_v28, %v1066_v25  ;;  %v567_v56 = vadd.f32 %v535_v44, %v466_v15  ;;  %v735_v62 = vmul.f32 %v2650_v32, %v1829_v19 }
  0xb6   : > { %v967_v50 = vadd.f32 %v935_v1, %v867_v21  ;;  %v235_v27 = vmul.f32 %v2596_v29, %v1816_v11  ;;  %v1135_v58 = vmul.f32 0.5, %v2624_v9  ;;  %v1264_v4 = vadd.f32 %v1232_v41, %v2665_v57 }
  0xb7   : > { %1421 = vst [vmem:[%s2056_s27 + $0x98] sm:$0xff] %v1389_v7  ;;  %v1169_v46 = vmul.f32 %v1105_v54, %v1105_v54  ;;  %v335_v35 = vmul.f32 %v2599_v37, %v1818_v12  ;;  %v667_v40 = vadd.f32 %v635_v22, %v567_v56  ;;  %v836_v2 = vmul.f32 %v2703_v43, %v1831_v20 }
  0xb8   : > { %v1067_v49 = vadd.f32 %v1035_v39, %v967_v50  ;;  %v435_v29 = vmul.f32 %v2612_v23, %v1820_v13  ;;  %v1296_v3 = vmul.f32 0.7978846, %v1264_v4  ;;  %v536_v48 = vmul.f32 %v2657_v51, %v1822_v14  ;;  %v2746_v50 = vld [vmem:[%s1814_s19 + $0x169] sm:$0xff] }
  0xb9   : > { %v1744_v63 = vpop.eup %1743  ;;  %v1201_v9 = vmul.f32 %v1169_v46, %v1105_v54  ;;  %v367_v36 = vadd.f32 %v335_v35, %v235_v27  ;;  %v767_v16 = vadd.f32 %v735_v62, %v667_v40  ;;  %v936_v55 = vmul.f32 %v2712_v38, %v1838_v26 }
  0xba   : > { %v1358_v33 = vadd.f32 1.0, %v1744_v63  ;;  %v1106_v37 = vadd.f32 %v2511_v28, %v1067_v49  ;;  %1747 = vtanh.f32 %v1296_v3  ;;  %v636_v47 = vmul.f32 %v2671_v45, %v1827_v18 }
  0xbb   : > { %v1233_v23 = vmul.f32 0.044715, %v1201_v9  ;;  %v467_v10 = vadd.f32 %v435_v29, %v367_v36  ;;  %v868_v60 = vadd.f32 %v836_v2, %v767_v16  ;;  %v1036_v1 = vmul.f32 %v2430_v53, %v2720_v61  ;;  %v2769_v16 = vld [vmem:[%s1814_s19 + $0x170] sm:$0xff] }
  0xbc   : > { %v1390_v5 = vmul.f32 %v1358_v33, %v1134_v6  ;;  %v1170_v59 = vmul.f32 %v1106_v37, %v1106_v37  ;;  %v2727_v8 = vmul.f32 0.5, %v2665_v57  ;;  %v736_v42 = vmul.f32 %v2684_v30, %v1829_v19 }
  0xbd   : > { %v1265_v24 = vadd.f32 %v1233_v23, %v1105_v54  ;;  %v568_v0 = vadd.f32 %v536_v48, %v467_v10  ;;  %v968_v34 = vadd.f32 %v936_v55, %v868_v60  ;;  %v236_v25 = vmul.f32 %v2632_v17, %v1816_v11 }
  0xbe   : > { %1422 = vst [vmem:[%s2056_s27 + $0xa0] sm:$0xff] %v1390_v5  ;;  %v1202_v44 = vmul.f32 %v1170_v59, %v1106_v37  ;;  %v336_v39 = vmul.f32 %v2641_v31, %v1818_v12  ;;  %v837_v15 = vmul.f32 %v2733_v52, %v1831_v20  ;;  %v436_v22 = vmul.f32 %v2650_v32, %v1820_v13 }
  0xbf   : > { %v1297_v21 = vmul.f32 0.7978846, %v1265_v24  ;;  %v668_v57 = vadd.f32 %v636_v47, %v568_v0  ;;  %v2743_v7 = vmul.f32 0.5, %v1105_v54  ;;  %v1068_v41 = vadd.f32 %v1036_v1, %v968_v34  ;;  %v2756_v54 = vld [vmem:[%s1814_s19 + $0x16a] sm:$0xff] }
  0xc0   : > { %v1234_v6 = vmul.f32 0.044715, %v1202_v44  ;;  %v368_v56 = vadd.f32 %v336_v39, %v236_v25  ;;  %v1746_v17 = vpop.eup %1745  ;;  %v937_v31 = vmul.f32 %v2746_v50, %v1838_v26  ;;  %v537_v27 = vmul.f32 %v2703_v43, %v1822_v14  ;;  %v2782_v47 = vld [vmem:[%s1814_s19 + $0x171] sm:$0xff] }
  0xc1   : > { %1749 = vtanh.f32 %v1297_v21  ;;  %v768_v62 = vadd.f32 %v736_v42, %v668_v57  ;;  %v1359_v4 = vadd.f32 1.0, %v1746_v17  ;;  %v2753_v32 = vadd.f32 %v2511_v28, %v1068_v41 }
  0xc2   : > { %v1266_v46 = vadd.f32 %v1234_v6, %v1106_v37  ;;  %v468_v35 = vadd.f32 %v436_v22, %v368_v56  ;;  %v1037_v40 = vmul.f32 %v2430_v53, %v2756_v54  ;;  %v637_v2 = vmul.f32 %v2712_v38, %v1827_v18 }
  0xc3   : > { %v869_v49 = vadd.f32 %v837_v15, %v768_v62  ;;  %v237_v29 = vmul.f32 %v2657_v51, %v1816_v11  ;;  %v1391_v63 = vmul.f32 %v1359_v4, %v1135_v58  ;;  %v1171_v9 = vmul.f32 %v2753_v32, %v2753_v32 }
  0xc4   : > { %v1298_v3 = vmul.f32 0.7978846, %v1266_v46  ;;  %v737_v36 = vmul.f32 %v2720_v61, %v1829_v19  ;;  %v569_v33 = vadd.f32 %v537_v27, %v468_v35  ;;  %v337_v55 = vmul.f32 %v2671_v45, %v1818_v12  ;;  %v2787_v45 = vld [vmem:[%s1814_s19 + $0x172] sm:$0xff]  ;;  %v1621_v27 = vld [vmem:[%s1814_s19 + $0x180] sm:$0xff] }
  0xc5   : > { %v969_v48 = vadd.f32 %v937_v31, %v869_v49  ;;  %v437_v23 = vmul.f32 %v2684_v30, %v1820_v13  ;;  %1423 = vst [vmem:[%s2056_s27 + $0xa8] sm:$0xff] %v1391_v63  ;;  %v2776_v51 = vmul.f32 0.5, %v1106_v37  ;;  %v1203_v58 = vmul.f32 %v1171_v9, %v2753_v32 }
  0xc6   : > { %1751 = vtanh.f32 %v1298_v3  ;;  %v838_v10 = vmul.f32 %v2769_v16, %v1831_v20  ;;  %v669_v59 = vadd.f32 %v637_v2, %v569_v33  ;;  %v938_v60 = vmul.f32 %v2782_v47, %v1838_v26  ;;  %v1685_v2 = vld [vmem:[%s1814_s19 + $0x182] sm:$0xff] }
  0xc7   : > { %v1069_v5 = vadd.f32 %v1037_v40, %v969_v48  ;;  %v369_v1 = vadd.f32 %v337_v55, %v237_v29  ;;  %v1748_v30 = vpop.eup %1747  ;;  %v1235_v24 = vmul.f32 0.044715, %v1203_v58  ;;  %v1038_v37 = vmul.f32 %v2430_v53, %v2787_v45 }
  0xc8   : > { %v538_v0 = vmul.f32 %v2733_v52, %v1822_v14  ;;  %v638_v42 = vmul.f32 %v2746_v50, %v1827_v18  ;;  %v1360_v44 = vadd.f32 1.0, %v1748_v30  ;;  %v769_v25 = vadd.f32 %v737_v36, %v669_v59 }
  0xc9   : > { %v2796_v34 = vadd.f32 %v2511_v28, %v1069_v5  ;;  %v469_v39 = vadd.f32 %v437_v23, %v369_v1  ;;  %v1267_v21 = vadd.f32 %v1235_v24, %v2753_v32  ;;  %v238_v57 = vmul.f32 %v2703_v43, %v1816_v11  ;;  %v1653_v43 = vld [vmem:[%s1814_s19 + $0x181] sm:$0xff] }
  0xca   : > { %v338_v15 = vmul.f32 %v2712_v38, %v1818_v12  ;;  %v438_v22 = vmul.f32 %v2720_v61, %v1820_v13  ;;  %v1392_v6 = vmul.f32 %v1360_v44, %v2727_v8  ;;  %v870_v56 = vadd.f32 %v838_v10, %v769_v25  ;;  %v1654_v44 = vld [vmem:[%s1814_s19 + $0x189] sm:$0xff] }
  0xcb   : > { %v1172_v41 = vmul.f32 %v2796_v34, %v2796_v34  ;;  %v738_v17 = vmul.f32 %v2756_v54, %v1829_v19  ;;  %v1299_v62 = vmul.f32 0.7978846, %v1267_v21  ;;  %v570_v31 = vadd.f32 %v538_v0, %v469_v39 }
  0xcc   : > { %v370_v4 = vadd.f32 %v338_v15, %v238_v57  ;;  %v539_v38 = vmul.f32 %v2769_v16, %v1822_v14  ;;  %1424 = vst [vmem:[%s2056_s27 + $0xb0] sm:$0xff] %v1392_v6  ;;  %v970_v8 = vadd.f32 %v938_v60, %v870_v56  ;;  %v839_v46 = vmul.f32 %v1621_v27, %v1831_v20  ;;  %v1622_v60 = vld [vmem:[%s1814_s19 + $0x188] sm:$0xff] }
  0xcd   : > { %v1204_v61 = vmul.f32 %v1172_v41, %v2796_v34  ;;  %v939_v35 = vmul.f32 %v1653_v43, %v1838_v26  ;;  %1753 = vtanh.f32 %v1299_v62  ;;  %v670_v40 = vadd.f32 %v638_v42, %v570_v31 }
  0xce   : > { %v1750_v49 = vpop.eup %1749  ;;  %v470_v29 = vadd.f32 %v438_v22, %v370_v4  ;;  %v639_v63 = vmul.f32 %v2782_v47, %v1827_v18  ;;  %v1070_v36 = vadd.f32 %v1038_v37, %v970_v8  ;;  %v1039_v48 = vmul.f32 %v2430_v53, %v1685_v2  ;;  %v1686_v22 = vld [vmem:[%s1814_s19 + $0x18a] sm:$0xff] }
  0xcf   : > { %v1361_v3 = vadd.f32 1.0, %v1750_v49  ;;  %v1236_v9 = vmul.f32 0.044715, %v1204_v61  ;;  %v770_v33 = vadd.f32 %v738_v17, %v670_v40  ;;  %v739_v23 = vmul.f32 %v2787_v45, %v1829_v19 }
  0xd0   : > { %v571_v55 = vadd.f32 %v539_v38, %v470_v29  ;;  %v239_v58 = vmul.f32 %v2733_v52, %v1816_v11  ;;  %v2829_v59 = vadd.f32 %v2511_v28, %v1070_v36  ;;  %v339_v1 = vmul.f32 %v2746_v50, %v1818_v12  ;;  %v1687_v36 = vld [vmem:[%s1814_s19 + $0x19a] sm:$0xff] }
  0xd1   : > { %v1393_v10 = vmul.f32 %v1361_v3, %v2743_v7  ;;  %v1268_v5 = vadd.f32 %v1236_v9, %v2796_v34  ;;  %v871_v30 = vadd.f32 %v839_v46, %v770_v33  ;;  %v840_v37 = vmul.f32 %v1622_v60, %v1831_v20 }
  0xd2   : > { %v671_v24 = vadd.f32 %v639_v63, %v571_v55  ;;  %v439_v0 = vmul.f32 %v2756_v54, %v1820_v13  ;;  %v1173_v42 = vmul.f32 %v2829_v59, %v2829_v59  ;;  %v371_v25 = vadd.f32 %v339_v1, %v239_v58 }
  0xd3   : > { %v1752_v52 = vpop.eup %1751  ;;  %1425 = vst [vmem:[%s2056_s27 + $0xb8] sm:$0xff] %v1393_v10  ;;  %v1300_v7 = vmul.f32 0.7978846, %v1268_v5  ;;  %v540_v39 = vmul.f32 %v1621_v27, %v1822_v14  ;;  %v971_v21 = vadd.f32 %v939_v35, %v871_v30  ;;  %v940_v15 = vmul.f32 %v1654_v44, %v1838_v26  ;;  %v1623_v27 = vld [vmem:[%s1814_s19 + $0x198] sm:$0xff] }
  0xd4   : > { %v1362_v50 = vadd.f32 1.0, %v1752_v52  ;;  %v771_v57 = vadd.f32 %v739_v23, %v671_v24  ;;  %v1205_v54 = vmul.f32 %v1173_v42, %v2829_v59  ;;  %v471_v6 = vadd.f32 %v439_v0, %v371_v25  ;;  %v1655_v35 = vld [vmem:[%s1814_s19 + $0x199] sm:$0xff] }
  0xd5   : > { %1755 = vtanh.f32 %v1300_v7  ;;  %v640_v41 = vmul.f32 %v1653_v43, %v1827_v18  ;;  %v1071_v17 = vadd.f32 %v1039_v48, %v971_v21  ;;  %v1040_v31 = vmul.f32 %v2430_v53, %v1686_v22  ;;  %v1624_v24 = vld [vmem:[%s1814_s19 + $0x1a0] sm:$0xff] }
  0xd6   : > { %v1394_v56 = vmul.f32 %v1362_v50, %v2776_v51  ;;  %v872_v62 = vadd.f32 %v840_v37, %v771_v57  ;;  %v1237_v4 = vmul.f32 0.044715, %v1205_v54  ;;  %v572_v38 = vadd.f32 %v540_v39, %v471_v6  ;;  %v1656_v7 = vld [vmem:[%s1814_s19 + $0x1a1] sm:$0xff] }
  0xd7   : > { %v740_v61 = vmul.f32 %v1685_v2, %v1829_v19  ;;  %v2852_v8 = vadd.f32 %v2511_v28, %v1071_v17  ;;  %v240_v43 = vmul.f32 %v2769_v16, %v1816_v11  ;;  %v340_v51 = vmul.f32 %v2782_v47, %v1818_v12  ;;  %v1688_v57 = vld [vmem:[%s1814_s19 + $0x1a2] sm:$0xff] }
  0xd8   : > { %1426 = vst [vmem:[%s2056_s27 + $0xc0] sm:$0xff] %v1394_v56  ;;  %v972_v46 = vadd.f32 %v940_v15, %v872_v62  ;;  %v1269_v49 = vadd.f32 %v1237_v4, %v2829_v59  ;;  %v672_v40 = vadd.f32 %v640_v41, %v572_v38  ;;  %v841_v29 = vmul.f32 %v1623_v27, %v1831_v20 }
  0xd9   : > { %v440_v2 = vmul.f32 %v2787_v45, %v1820_v13  ;;  %v1139_v63 = vmul.f32 0.5, %v2753_v32  ;;  %v1174_v3 = vmul.f32 %v2852_v8, %v2852_v8  ;;  %v372_v48 = vadd.f32 %v340_v51, %v240_v43 }
  0xda   : > { %v1072_v9 = vadd.f32 %v1040_v31, %v972_v46  ;;  %v1754_v11 = vpop.eup %1753  ;;  %v1301_v16 = vmul.f32 0.7978846, %v1269_v49  ;;  %v772_v12 = vadd.f32 %v740_v61, %v672_v40  ;;  %v941_v47 = vmul.f32 %v1655_v35, %v1838_v26 }
  0xdb   : > { %v541_v33 = vmul.f32 %v1622_v60, %v1822_v14  ;;  %v1363_v55 = vadd.f32 1.0, %v1754_v11  ;;  %v1206_v13 = vmul.f32 %v1174_v3, %v2852_v8  ;;  %v472_v45 = vadd.f32 %v440_v2, %v372_v48 }
  0xdc   : > { %v1111_v32 = vadd.f32 %v2511_v28, %v1072_v9  ;;  %1757 = vtanh.f32 %v1301_v16  ;;  %v873_v23 = vadd.f32 %v841_v29, %v772_v12  ;;  %v1041_v58 = vmul.f32 %v2430_v53, %v1687_v36 }
  0xdd   : > { %v641_v10 = vmul.f32 %v1654_v44, %v1827_v18  ;;  %v1395_v5 = vmul.f32 %v1363_v55, %v1139_v63  ;;  %v1238_v1 = vmul.f32 0.044715, %v1206_v13  ;;  %v573_v60 = vadd.f32 %v541_v33, %v472_v45 }
  0xde   : > { %v1175_v30 = vmul.f32 %v1111_v32, %v1111_v32  ;;  %v973_v14 = vadd.f32 %v941_v47, %v873_v23  ;;  %v741_v37 = vmul.f32 %v1686_v22, %v1829_v19  ;;  %v1140_v42 = vmul.f32 0.5, %v2796_v34 }
  0xdf   : > { %1427 = vst [vmem:[%s2056_s27 + $0xc8] sm:$0xff] %v1395_v5  ;;  %v1270_v0 = vadd.f32 %v1238_v1, %v2852_v8  ;;  %v673_v39 = vadd.f32 %v641_v10, %v573_v60  ;;  %v842_v18 = vmul.f32 %v1624_v24, %v1831_v20  ;;  %v942_v22 = vmul.f32 %v1656_v7, %v1838_v26 }
  0xe0   : > { %v1207_v52 = vmul.f32 %v1175_v30, %v1111_v32  ;;  %v1073_v25 = vadd.f32 %v1041_v58, %v973_v14  ;;  %v1042_v17 = vmul.f32 %v2430_v53, %v1688_v57  ;;  %v1141_v27 = vmul.f32 0.5, %v2829_v59 }
  0xe1   : > { %v1302_v50 = vmul.f32 0.7978846, %v1270_v0  ;;  %v773_v19 = vadd.f32 %v741_v37, %v673_v39  ;;  %v1142_v40 = vmul.f32 0.5, %v2852_v8  ;;  %v1143_v9 = vmul.f32 0.5, %v1111_v32 }
  0xe2   : > { %v1756_v44 = vpop.eup %1755  ;;  %v1239_v21 = vmul.f32 0.044715, %v1207_v52  ;;  %v1112_v54 = vadd.f32 %v2511_v28, %v1073_v25 }
  0xe3   : > { %v1364_v15 = vadd.f32 1.0, %v1756_v44  ;;  %1759 = vtanh.f32 %v1302_v50  ;;  %v874_v34 = vadd.f32 %v842_v18, %v773_v19 }
  0xe4   : > { %v1271_v6 = vadd.f32 %v1239_v21, %v1111_v32  ;;  %v1176_v56 = vmul.f32 %v1112_v54, %v1112_v54  ;;  %v1144_v16 = vmul.f32 0.5, %v1112_v54 }
  0xe5   : > { %v1396_v41 = vmul.f32 %v1364_v15, %v1140_v42  ;;  %v974_v31 = vadd.f32 %v942_v22, %v874_v34 }
  0xe6   : > { %v1303_v20 = vmul.f32 0.7978846, %v1271_v6  ;;  %v1208_v62 = vmul.f32 %v1176_v56, %v1112_v54 }
  0xe7   : > { %1428 = vst [vmem:[%s2056_s27 + $0xd0] sm:$0xff] %v1396_v41  ;;  %v1074_v38 = vadd.f32 %v1042_v17, %v974_v31 }
  0xe8   : > { %1761 = vtanh.f32 %v1303_v20  ;;  %v1240_v4 = vmul.f32 0.044715, %v1208_v62 }
  0xe9   : > { %v1758_v61 = vpop.eup %1757  ;;  %v1113_v35 = vadd.f32 %v2511_v28, %v1074_v38 }
  0xea   : > { %v1365_v46 = vadd.f32 1.0, %v1758_v61  ;;  %v1272_v26 = vadd.f32 %v1240_v4, %v1112_v54 }
  0xeb   : > { %v1177_v49 = vmul.f32 %v1113_v35, %v1113_v35  ;;  %v1145_v8 = vmul.f32 0.5, %v1113_v35 }
  0xec   : > { %v1397_v43 = vmul.f32 %v1365_v46, %v1141_v27  ;;  %v1304_v51 = vmul.f32 0.7978846, %v1272_v26 }
  0xed   : > { %v1209_v53 = vmul.f32 %v1177_v49, %v1113_v35 }
  0xee   : > { %1429 = vst [vmem:[%s2056_s27 + $0xd8] sm:$0xff] %v1397_v43  ;;  %1763 = vtanh.f32 %v1304_v51 }
  0xef   : > { %v1241_v2 = vmul.f32 0.044715, %v1209_v53 }
  0xf0   : > { %v1760_v29 = vpop.eup %1759 }
  0xf1   : > { %v1366_v59 = vadd.f32 1.0, %v1760_v29  ;;  %v1273_v63 = vadd.f32 %v1241_v2, %v1113_v35 }
  0xf3   : > { %v1398_v3 = vmul.f32 %v1366_v59, %v1142_v40  ;;  %v1305_v28 = vmul.f32 0.7978846, %v1273_v63 }
  0xf5   : > { %v1762_v36 = vpop.eup %1761  ;;  %1430 = vst [vmem:[%s2056_s27 + $0xe0] sm:$0xff] %v1398_v3  ;;  %1765 = vtanh.f32 %v1305_v28 }
  0xf6   : > { %v1367_v48 = vadd.f32 1.0, %v1762_v36 }
  0xf8   : > { %v1399_v11 = vmul.f32 %v1367_v48, %v1143_v9 }
  0xfa   : > { %1431 = vst [vmem:[%s2056_s27 + $0xe8] sm:$0xff] %v1399_v11 }
  0xfb   : > { %v1764_v12 = vpop.eup %1763 }
  0xfc   : > { %v1368_v47 = vadd.f32 1.0, %v1764_v12 }
  0xfe   : > { %v1400_v33 = vmul.f32 %v1368_v47, %v1144_v16 }
 0x100   : > { %1432 = vst [vmem:[%s2056_s27 + $0xf0] sm:$0xff] %v1400_v33 }
 0x102   : > { %v1766_v55 = vpop.eup %1765 }
 0x103   : > { %v1369_v13 = vadd.f32 1.0, %v1766_v55 }
 0x105   : > { %v1401_v45 = vmul.f32 %v1369_v13, %v1145_v8 }
 0x107   : > { %1433 = vst [vmem:[%s2056_s27 + $0xf8] sm:$0xff] %v1401_v45 }
 0x108 PF: > { %s13_s12 = sadd.s32 1, %s1775_s12  }
 0x109   : > { %p10_p4 = scmp.ge.s32.totalorder %s13_s12, 4  }
 0x10b   :  { %12 = sbr.rel (!%p10_p4) target bundleno = 1 (0x1), region = 64 }

</bundles_post_ra>
